<compile_context>
chip_gen: v7x
topology: tpu7x:2x2x1
jax: 0.10.0
libtpu: 0.0.40
codegen_flags: <defaults>
</compile_context>

<pallas_src>
import functools

import jax
import jax.numpy as jnp
from jax import random
from jax.experimental import pallas as pl
from jax.experimental.pallas import tpu as pltpu


# ----------------------------------------------------------------------------
# In-kernel building blocks
# ----------------------------------------------------------------------------
def _conv3x3_acc(pad_ref, w_ref, base, *, H, W, cin, off, dil):
    """Dilated 3x3 conv = 9 shifted MXU dots accumulated in f32 (no im2col).

    pad_ref: (Hp, Wp, cin) f32 VMEM scratch, zero halo, image interior at `off`.
    w_ref:   (n*9, cin, cout) bf16 packed weights, tap-major (ky*3+kx);
             `base` selects which conv's 9 taps to use.
    Returns (H*W, cout) f32 accumulator (bias NOT added).
    """
    M = H * W
    acc = None
    for ky in range(3):
        for kx in range(3):
            r0 = off + (ky - 1) * dil
            c0 = off + (kx - 1) * dil
            slab = pad_ref[r0:r0 + H, c0:c0 + W, :].reshape(M, cin)
            part = jnp.dot(slab.astype(jnp.bfloat16),
                           w_ref[base + ky * 3 + kx],
                           preferred_element_type=jnp.float32)
            acc = part if acc is None else acc + part
    return acc


def _zero_halo(pad_ref, *, H, W, cin, off):
    """Zero only the halo bands of the (H+2*off, W+2*off, cin) pad scratch."""
    Hp, Wp = H + 2 * off, W + 2 * off
    z_row = jnp.zeros((off, Wp, cin), jnp.float32)
    pad_ref[0:off, :, :] = z_row
    pad_ref[off + H:Hp, :, :] = z_row
    z_col = jnp.zeros((Hp, off, cin), jnp.float32)
    pad_ref[:, 0:off, :] = z_col
    pad_ref[:, off + W:Wp, :] = z_col


# ----------------------------------------------------------------------------
# Kernel A: s1f1(latent)+f -> residual chain -> conv1 (+skip) -> conv2
# ----------------------------------------------------------------------------
def _decunit_pre_kernel(latent_ref, f_ref, s1w_ref, s1b_ref, w3_ref, b3_ref,
                        c2w_ref, c2b_ref, o_ref, pad, *, H, W, cin, res_num):
    _zero_halo(pad, H=H, W=W, cin=cin, off=1)

    def set_img(v):                                   # v: (M, cin) f32
        pad[1:1 + H, 1:1 + W, :] = v.reshape(H, W, cin)

    conv = functools.partial(_conv3x3_acc, pad, H=H, W=W, cin=cin, off=1, dil=1)

    # 1x1: s1f1(latent) + f   (bias + skip fused, f32)
    out0 = jnp.dot(latent_ref[0], s1w_ref[...],
                   preferred_element_type=jnp.float32)
    out0 = out0 + s1b_ref[...] + f_ref[0]

    # residual chain, carried in vregs; pad scratch re-used per conv
    h = out0
    for r in range(res_num):
        set_img(h)
        t = conv(w3_ref, (2 * r) * 9) + b3_ref[2 * r:2 * r + 1, :]
        t = jnp.maximum(t, 0.0)
        set_img(t)
        h = conv(w3_ref, (2 * r + 1) * 9) + b3_ref[2 * r + 1:2 * r + 2, :] + h

    # out = out0 + conv1(res_out)
    set_img(h)
    c1 = 2 * res_num
    out_pre = out0 + conv(w3_ref, c1 * 9) + b3_ref[c1:c1 + 1, :]

    # conv2: cin -> 4*cin (PixelShuffle applied outside as one bf16 transpose)
    set_img(out_pre)
    v = conv(c2w_ref, 0) + c2b_ref[...]
    o_ref[0] = v.astype(o_ref.dtype)


# ----------------------------------------------------------------------------
# Kernel B: fused atrous block (d=1,2,4 with folded 1x1 reduce) + params head
# ----------------------------------------------------------------------------
def _decunit_post_kernel(x_ref, atw_ref, atb_ref, pw_ref, pb_ref,
                         out_ref, par_ref, pad, *, H, W, cin):
    off = 4                                          # halo = max dilation
    _zero_halo(pad, H=H, W=W, cin=cin, off=off)
    pad[off:off + H, off:off + W, :] = x_ref[0].astype(jnp.float32)

    acc = None
    for i, dil in enumerate((1, 2, 4)):              # 1x1 reduce folded into W'
        part = _conv3x3_acc(pad, atw_ref, i * 9, H=H, W=W, cin=cin,
                            off=off, dil=dil)
        acc = part if acc is None else acc + part
    out = acc + atb_ref[...]
    out_ref[0] = out.astype(out_ref.dtype)

    par = jnp.dot(out.astype(jnp.bfloat16), pw_ref[...],
                  preferred_element_type=jnp.float32) + pb_ref[...]
    par_ref[0] = par.astype(par_ref.dtype)


# ----------------------------------------------------------------------------
# pallas_call wrappers
# ----------------------------------------------------------------------------
def _bcast_spec(shape):
    nd = len(shape)
    return pl.BlockSpec(shape, lambda i, _nd=nd: (0,) * _nd)


def decunit_pre_call(latent, f, s1w, s1b, w3, b3, c2w, c2b, res_num):
    """latent: (B,H,W,C_Q), f: (B,H,W,cin) -> conv2 output (B,H,W,4*cin) bf16."""
    B, H, W, C_Q = latent.shape
    cin = f.shape[-1]
    M = H * W
    cout2 = c2w.shape[-1]

    lat2 = latent.reshape(B, M, C_Q).astype(jnp.bfloat16)
    f2 = f.reshape(B, M, cin)

    in_specs = [pl.BlockSpec((1, M, C_Q), lambda i: (i, 0, 0)),
                pl.BlockSpec((1, M, cin), lambda i: (i, 0, 0)),
                _bcast_spec(s1w.shape), _bcast_spec(s1b.shape),
                _bcast_spec(w3.shape), _bcast_spec(b3.shape),
                _bcast_spec(c2w.shape), _bcast_spec(c2b.shape)]

    out = pl.pallas_call(
        functools.partial(_decunit_pre_kernel, H=H, W=W, cin=cin,
                          res_num=res_num),
        out_shape=jax.ShapeDtypeStruct((B, M, cout2), jnp.bfloat16),
        grid=(B,),
        in_specs=in_specs,
        out_specs=pl.BlockSpec((1, M, cout2), lambda i: (i, 0, 0)),
        scratch_shapes=[pltpu.VMEM((H + 2, W + 2, cin), jnp.float32)],
        compiler_params=pltpu.CompilerParams(
            dimension_semantics=("parallel",),
            vmem_limit_bytes=32 * 1024 * 1024),
    )(lat2, f2, s1w, s1b, w3, b3, c2w, c2b)
    return out.reshape(B, H, W, cout2)


def decunit_post_call(u, atw, atb, pw, pb):
    """u: (B,H2,W2,cin) bf16 -> (out (B,H2,W2,cin), params (B,H2,W2,pnum)) f32."""
    B, H2, W2, cin = u.shape
    M = H2 * W2
    pnum = pw.shape[-1]

    in_specs = [pl.BlockSpec((1, H2, W2, cin), lambda i: (i, 0, 0, 0)),
                _bcast_spec(atw.shape), _bcast_spec(atb.shape),
                _bcast_spec(pw.shape), _bcast_spec(pb.shape)]

    out, par = pl.pallas_call(
        functools.partial(_decunit_post_kernel, H=H2, W=W2, cin=cin),
        out_shape=(jax.ShapeDtypeStruct((B, M, cin), jnp.float32),
                   jax.ShapeDtypeStruct((B, M, pnum), jnp.float32)),
        grid=(B,),
        in_specs=in_specs,
        out_specs=(pl.BlockSpec((1, M, cin), lambda i: (i, 0, 0)),
                   pl.BlockSpec((1, M, pnum), lambda i: (i, 0, 0))),
        scratch_shapes=[pltpu.VMEM((H2 + 8, W2 + 8, cin), jnp.float32)],
        compiler_params=pltpu.CompilerParams(
            dimension_semantics=("parallel",),
            vmem_limit_bytes=32 * 1024 * 1024),
    )(u, atw, atb, pw, pb)
    return out.reshape(B, H2, W2, cin), par.reshape(B, H2, W2, pnum)


def pixel_shuffle_nhwc(x, r=2):
    """PyTorch nn.PixelShuffle(r) semantics, NHWC layout (pure reshape/transpose)."""
    B, H, W, C4 = x.shape
    C = C4 // (r * r)
    x = x.reshape(B, H, W, C, r, r)
    x = jnp.transpose(x, (0, 1, 4, 2, 5, 3))
    return x.reshape(B, H * r, W * r, C)


# ----------------------------------------------------------------------------
# Parameter construction / packing
# ----------------------------------------------------------------------------
def init_decunit_params(key, in_ch, C_Q, res_num, param_num, dtype=jnp.float32):
    def nrm(k, shape, scale=0.1):
        return (scale * random.normal(k, shape)).astype(dtype)

    keys = iter(random.split(key, 64))
    p = {}
    p["s1f1_w"] = nrm(next(keys), (C_Q, in_ch))
    p["s1f1_b"] = nrm(next(keys), (in_ch,), 0.01)
    p["res"] = []
    for _ in range(res_num):
        p["res"].append(dict(
            w1=nrm(next(keys), (3, 3, in_ch, in_ch)),
            b1=nrm(next(keys), (in_ch,), 0.01),
            w2=nrm(next(keys), (3, 3, in_ch, in_ch)),
            b2=nrm(next(keys), (in_ch,), 0.01),
        ))
    p["conv1_w"] = nrm(next(keys), (3, 3, in_ch, in_ch))
    p["conv1_b"] = nrm(next(keys), (in_ch,), 0.01)
    p["conv2_w"] = nrm(next(keys), (3, 3, in_ch, in_ch * 4))
    p["conv2_b"] = nrm(next(keys), (in_ch * 4,), 0.01)
    for name in ("at1", "at2", "at3"):
        p[name + "_w"] = nrm(next(keys), (3, 3, in_ch, in_ch))
        p[name + "_b"] = nrm(next(keys), (in_ch,), 0.01)
    p["at_s1f1_w"] = nrm(next(keys), (3 * in_ch, in_ch))
    p["at_s1f1_b"] = nrm(next(keys), (in_ch,), 0.01)
    p["param_w"] = nrm(next(keys), (in_ch, param_num))
    p["param_b"] = nrm(next(keys), (param_num,), 0.01)
    return p


def _tap_major(w):
    """(3,3,cin,cout) HWIO -> (9,cin,cout), tap index = ky*3+kx."""
    _, _, ci, co = w.shape
    return w.reshape(9, ci, co)


# ----------------------------------------------------------------------------
# DecUnit forward (NCHW in / NCHW out, like the PyTorch module)
# ----------------------------------------------------------------------------
def dec_unit_forward(latent_nchw, f_nchw, p):
    latent = jnp.transpose(latent_nchw, (0, 2, 3, 1))        # NHWC
    f = jnp.transpose(f_nchw, (0, 2, 3, 1))
    res_num = len(p["res"])
    cin = f.shape[-1]

    # ---- kernel A packed weights ----
    w3_list, b3_list = [], []
    for rb in p["res"]:
        w3_list += [_tap_major(rb["w1"]), _tap_major(rb["w2"])]
        b3_list += [rb["b1"], rb["b2"]]
    w3_list.append(_tap_major(p["conv1_w"]))
    b3_list.append(p["conv1_b"])
    w3 = jnp.concatenate(w3_list, axis=0).astype(jnp.bfloat16)   # ((2r+1)*9,cin,cin)
    b3 = jnp.stack(b3_list, axis=0).astype(jnp.float32)          # (2r+1, cin)
    s1w = p["s1f1_w"].astype(jnp.bfloat16)
    s1b = p["s1f1_b"].reshape(1, -1).astype(jnp.float32)
    c2w = _tap_major(p["conv2_w"]).astype(jnp.bfloat16)          # (9, cin, 4cin)
    c2b = p["conv2_b"].reshape(1, -1).astype(jnp.float32)

    v = decunit_pre_call(latent, f, s1w, s1b, w3, b3, c2w, c2b, res_num)
    u = pixel_shuffle_nhwc(v, r=2)                               # (B,2H,2W,cin) bf16

    # ---- kernel B: fold the linear 1x1 reduce into the atrous weights ----
    R = p["at_s1f1_w"]                                           # (3*cin, cin)
    atb = p["at_s1f1_b"].astype(jnp.float32)
    atw_list = []
    for i, nm in enumerate(("at1", "at2", "at3")):
        Wi = p[nm + "_w"].reshape(9 * cin, cin)
        Ri = R[i * cin:(i + 1) * cin, :]
        atw_list.append((Wi @ Ri).reshape(9, cin, cin))
        atb = atb + p[nm + "_b"] @ Ri
    atw = jnp.concatenate(atw_list, axis=0).astype(jnp.bfloat16)  # (27, cin, cin)
    atb = atb.reshape(1, -1).astype(jnp.float32)
    pw = p["param_w"].astype(jnp.bfloat16)
    pb = p["param_b"].reshape(1, -1).astype(jnp.float32)

    out, pr = decunit_post_call(u, atw, atb, pw, pb)
    return jnp.transpose(out, (0, 3, 1, 2)), jnp.transpose(pr, (0, 3, 1, 2))


# ----------------------------------------------------------------------------
# Pure-JAX reference (numerical check)
# ----------------------------------------------------------------------------
def _conv_ref(x, w, b, dil=1):
    out = jax.lax.conv_general_dilated(
        x, w, window_strides=(1, 1), padding=[(dil, dil), (dil, dil)],
        rhs_dilation=(dil, dil), dimension_numbers=("NHWC", "HWIO", "NHWC"))
    return out + b.reshape(1, 1, 1, -1)


def dec_unit_ref(latent_nchw, f_nchw, p):
    latent = jnp.transpose(latent_nchw, (0, 2, 3, 1))
    f = jnp.transpose(f_nchw, (0, 2, 3, 1))
    out0 = jnp.einsum("bhwc,cd->bhwd", latent, p["s1f1_w"]) + p["s1f1_b"] + f
    h = out0
    for rb in p["res"]:
        t = jax.nn.relu(_conv_ref(h, rb["w1"], rb["b1"]))
        h = _conv_ref(t, rb["w2"], rb["b2"]) + h
    out = out0 + _conv_ref(h, p["conv1_w"], p["conv1_b"])
    v = _conv_ref(out, p["conv2_w"], p["conv2_b"])
    u = pixel_shuffle_nhwc(v, r=2)
    a1 = _conv_ref(u, p["at1_w"], p["at1_b"], 1)
    a2 = _conv_ref(u, p["at2_w"], p["at2_b"], 2)
    a3 = _conv_ref(u, p["at3_w"], p["at3_b"], 4)
    cat = jnp.concatenate([a1, a2, a3], axis=-1)
    out_at = jnp.einsum("bhwc,cd->bhwd", cat, p["at_s1f1_w"]) + p["at_s1f1_b"]
    params = jnp.einsum("bhwc,cd->bhwd", out_at, p["param_w"]) + p["param_b"]
    return (jnp.transpose(out_at, (0, 3, 1, 2)),
            jnp.transpose(params, (0, 3, 1, 2)))


# ----------------------------------------------------------------------------
if __name__ == "__main__":
    B, in_ch, C_Q, res_num, param_num = 2, 16, 4, 2, 10
    H = W = 8

    key = jax.random.PRNGKey(0)
    k_lat, k_f, k_par = random.split(key, 3)
    latent = random.normal(k_lat, (B, C_Q, H, W), dtype=jnp.float32)    # NCHW
    f = random.normal(k_f, (B, in_ch, H, W), dtype=jnp.float32)          # NCHW
    params = init_decunit_params(k_par, in_ch, C_Q, res_num, param_num)

    fwd = jax.jit(dec_unit_forward)
    out, mix_params = fwd(latent, f, params)
    jax.block_until_ready((out, mix_params))

    assert out.shape == (B, in_ch, 2 * H, 2 * W), out.shape
    assert mix_params.shape == (B, param_num, 2 * H, 2 * W), mix_params.shape

    # numerical check vs pure-JAX reference (bf16 matmul operands -> loose tol)
    ref_out, ref_mix = dec_unit_ref(latent, f, params)

    def rel_err(a, b):
        return float(jnp.max(jnp.abs(a - b)) / (jnp.max(jnp.abs(b)) + 1e-6))

    assert rel_err(out, ref_out) < 5e-2, rel_err(out, ref_out)
    assert rel_err(mix_params, ref_mix) < 5e-2, rel_err(mix_params, ref_mix)

    print("KERNEL_OK")
</pallas_src>

<mosaic_0001>
module attributes {stable_mosaic.version = 11 : i64} {
  func.func @_decunit_pre_kernel(%arg0: i32, %arg1: memref<1x64x4xbf16, #tpu.memory_space<vmem>>, %arg2: memref<1x64x16xf32, #tpu.memory_space<vmem>>, %arg3: memref<4x16xbf16, #tpu.memory_space<vmem>>, %arg4: memref<1x16xf32, #tpu.memory_space<vmem>>, %arg5: memref<45x16x16xbf16, #tpu.memory_space<vmem>>, %arg6: memref<5x16xf32, #tpu.memory_space<vmem>>, %arg7: memref<9x16x64xbf16, #tpu.memory_space<vmem>>, %arg8: memref<1x64xf32, #tpu.memory_space<vmem>>, %arg9: memref<1x64x64xbf16, #tpu.memory_space<vmem>>, %arg10: memref<10x10x16xf32, #tpu.memory_space<vmem>>) attributes {dimension_semantics = [#tpu.dimension_semantics<parallel>], iteration_bounds = array<i64: 2>, scalar_prefetch = 0 : i64, scratch_operands = 1 : i64, tpu.core_type = #tpu.core_type<tc>, window_params = [{transform_indices = @transform_0, window_bounds = array<i64: 1, 64, 4>}, {transform_indices = @transform_1, window_bounds = array<i64: 1, 64, 16>}, {pipeline_mode = #tpu.pipeline_mode<synchronous>, transform_indices = @transform_2, window_bounds = array<i64: 4, 16>}, {pipeline_mode = #tpu.pipeline_mode<synchronous>, transform_indices = @transform_3, window_bounds = array<i64: 1, 16>}, {pipeline_mode = #tpu.pipeline_mode<synchronous>, transform_indices = @transform_4, window_bounds = array<i64: 45, 16, 16>}, {pipeline_mode = #tpu.pipeline_mode<synchronous>, transform_indices = @transform_5, window_bounds = array<i64: 5, 16>}, {pipeline_mode = #tpu.pipeline_mode<synchronous>, transform_indices = @transform_6, window_bounds = array<i64: 9, 16, 64>}, {pipeline_mode = #tpu.pipeline_mode<synchronous>, transform_indices = @transform_7, window_bounds = array<i64: 1, 64>}, {transform_indices = @transform_8, window_bounds = array<i64: 1, 64, 64>}]} {
    %cst = arith.constant 0.000000e+00 : f32
    %0 = vector.broadcast %cst : f32 to vector<1x10x16xf32>
    %c0 = arith.constant 0 : index
    %c0_0 = arith.constant 0 : index
    %c0_1 = arith.constant 0 : index
    %1 = vector.load %arg10[%c0, %c0_0, %c0_1] : memref<10x10x16xf32, #tpu.memory_space<vmem>>, vector<1x10x16xf32>
    tpu.vector_store %arg10[%c0, %c0_0, %c0_1], %0 {strides = array<i32>} : memref<10x10x16xf32, #tpu.memory_space<vmem>>, vector<1x10x16xf32>,
    %c9 = arith.constant 9 : index
    %c0_2 = arith.constant 0 : index
    %c0_3 = arith.constant 0 : index
    %2 = vector.load %arg10[%c9, %c0_2, %c0_3] : memref<10x10x16xf32, #tpu.memory_space<vmem>>, vector<1x10x16xf32>
    tpu.vector_store %arg10[%c9, %c0_2, %c0_3], %0 {strides = array<i32>} : memref<10x10x16xf32, #tpu.memory_space<vmem>>, vector<1x10x16xf32>,
    %cst_4 = arith.constant 0.000000e+00 : f32
    %3 = vector.broadcast %cst_4 : f32 to vector<10x1x16xf32>
    %c0_5 = arith.constant 0 : index
    %c0_6 = arith.constant 0 : index
    %c0_7 = arith.constant 0 : index
    %4 = vector.load %arg10[%c0_5, %c0_6, %c0_7] : memref<10x10x16xf32, #tpu.memory_space<vmem>>, vector<10x1x16xf32>
    tpu.vector_store %arg10[%c0_5, %c0_6, %c0_7], %3 {strides = array<i32>} : memref<10x10x16xf32, #tpu.memory_space<vmem>>, vector<10x1x16xf32>,
    %c0_8 = arith.constant 0 : index
    %c9_9 = arith.constant 9 : index
    %c0_10 = arith.constant 0 : index
    %5 = vector.load %arg10[%c0_8, %c9_9, %c0_10] : memref<10x10x16xf32, #tpu.memory_space<vmem>>, vector<10x1x16xf32>
    tpu.vector_store %arg10[%c0_8, %c9_9, %c0_10], %3 {strides = array<i32>} : memref<10x10x16xf32, #tpu.memory_space<vmem>>, vector<10x1x16xf32>,
    %c0_11 = arith.constant 0 : index
    %c0_12 = arith.constant 0 : index
    %c0_13 = arith.constant 0 : index
    %6 = vector.load %arg1[%c0_11, %c0_12, %c0_13] : memref<1x64x4xbf16, #tpu.memory_space<vmem>>, vector<1x64x4xbf16>
    %7 = vector.shape_cast %6 : vector<1x64x4xbf16> to vector<64x4xbf16>
    %c0_14 = arith.constant 0 : index
    %c0_15 = arith.constant 0 : index
    %8 = vector.load %arg3[%c0_14, %c0_15] : memref<4x16xbf16, #tpu.memory_space<vmem>>, vector<4x16xbf16>
    %cst_16 = arith.constant dense<0.000000e+00> : vector<64x16xf32>
    %9 = tpu.matmul %7, %8, %cst_16 {dimension_numbers = #tpu.dot_dimension_numbers<[1], [0], [0], [1], [0, 0, 1, 1], [], []>} : vector<64x4xbf16>, vector<4x16xbf16>, vector<64x16xf32> -> vector<64x16xf32>
    %c0_17 = arith.constant 0 : index
    %c0_18 = arith.constant 0 : index
    %10 = vector.load %arg4[%c0_17, %c0_18] : memref<1x16xf32, #tpu.memory_space<vmem>>, vector<1x16xf32>
    %11 = vector.broadcast %10 : vector<1x16xf32> to vector<64x16xf32>
    %12 = arith.addf %9, %11 : vector<64x16xf32>
    %c0_19 = arith.constant 0 : index
    %c0_20 = arith.constant 0 : index
    %c0_21 = arith.constant 0 : index
    %13 = vector.load %arg2[%c0_19, %c0_20, %c0_21] : memref<1x64x16xf32, #tpu.memory_space<vmem>>, vector<1x64x16xf32>
    %14 = vector.shape_cast %13 : vector<1x64x16xf32> to vector<64x16xf32>
    %15 = arith.addf %12, %14 : vector<64x16xf32>
    %16 = vector.shape_cast %15 : vector<64x16xf32> to vector<8x8x16xf32>
    %c1 = arith.constant 1 : index
    %c1_22 = arith.constant 1 : index
    %c0_23 = arith.constant 0 : index
    %17 = vector.load %arg10[%c1, %c1_22, %c0_23] : memref<10x10x16xf32, #tpu.memory_space<vmem>>, vector<8x8x16xf32>
    tpu.vector_store %arg10[%c1, %c1_22, %c0_23], %16 {strides = array<i32>} : memref<10x10x16xf32, #tpu.memory_space<vmem>>, vector<8x8x16xf32>,
    %c0_24 = arith.constant 0 : index
    %c0_25 = arith.constant 0 : index
    %c0_26 = arith.constant 0 : index
    %18 = vector.load %arg10[%c0_24, %c0_25, %c0_26] : memref<10x10x16xf32, #tpu.memory_space<vmem>>, vector<8x8x16xf32>
    %19 = vector.shape_cast %18 : vector<8x8x16xf32> to vector<64x16xf32>
    %20 = arith.truncf %19 : vector<64x16xf32> to vector<64x16xbf16>
    %c0_27 = arith.constant 0 : index
    %c0_28 = arith.constant 0 : index
    %c0_29 = arith.constant 0 : index
    %21 = vector.load %arg5[%c0_27, %c0_28, %c0_29] : memref<45x16x16xbf16, #tpu.memory_space<vmem>>, vector<1x16x16xbf16>
    %22 = vector.shape_cast %21 : vector<1x16x16xbf16> to vector<16x16xbf16>
    %cst_30 = arith.constant dense<0.000000e+00> : vector<64x16xf32>
    %23 = tpu.matmul %20, %22, %cst_30 {dimension_numbers = #tpu.dot_dimension_numbers<[1], [0], [0], [1], [0, 0, 1, 1], [], []>} : vector<64x16xbf16>, vector<16x16xbf16>, vector<64x16xf32> -> vector<64x16xf32>
    %c0_31 = arith.constant 0 : index
    %c1_32 = arith.constant 1 : index
    %c0_33 = arith.constant 0 : index
    %24 = vector.load %arg10[%c0_31, %c1_32, %c0_33] : memref<10x10x16xf32, #tpu.memory_space<vmem>>, vector<8x8x16xf32>
    %25 = vector.shape_cast %24 : vector<8x8x16xf32> to vector<64x16xf32>
    %26 = arith.truncf %25 : vector<64x16xf32> to vector<64x16xbf16>
    %c1_34 = arith.constant 1 : index
    %c0_35 = arith.constant 0 : index
    %c0_36 = arith.constant 0 : index
    %27 = vector.load %arg5[%c1_34, %c0_35, %c0_36] : memref<45x16x16xbf16, #tpu.memory_space<vmem>>, vector<1x16x16xbf16>
    %28 = vector.shape_cast %27 : vector<1x16x16xbf16> to vector<16x16xbf16>
    %cst_37 = arith.constant dense<0.000000e+00> : vector<64x16xf32>
    %29 = tpu.matmul %26, %28, %cst_37 {dimension_numbers = #tpu.dot_dimension_numbers<[1], [0], [0], [1], [0, 0, 1, 1], [], []>} : vector<64x16xbf16>, vector<16x16xbf16>, vector<64x16xf32> -> vector<64x16xf32>
    %30 = arith.addf %23, %29 : vector<64x16xf32>
    %c0_38 = arith.constant 0 : index
    %c2 = arith.constant 2 : index
    %c0_39 = arith.constant 0 : index
    %31 = vector.load %arg10[%c0_38, %c2, %c0_39] : memref<10x10x16xf32, #tpu.memory_space<vmem>>, vector<8x8x16xf32>
    %32 = vector.shape_cast %31 : vector<8x8x16xf32> to vector<64x16xf32>
    %33 = arith.truncf %32 : vector<64x16xf32> to vector<64x16xbf16>
    %c2_40 = arith.constant 2 : index
    %c0_41 = arith.constant 0 : index
    %c0_42 = arith.constant 0 : index
    %34 = vector.load %arg5[%c2_40, %c0_41, %c0_42] : memref<45x16x16xbf16, #tpu.memory_space<vmem>>, vector<1x16x16xbf16>
    %35 = vector.shape_cast %34 : vector<1x16x16xbf16> to vector<16x16xbf16>
    %cst_43 = arith.constant dense<0.000000e+00> : vector<64x16xf32>
    %36 = tpu.matmul %33, %35, %cst_43 {dimension_numbers = #tpu.dot_dimension_numbers<[1], [0], [0], [1], [0, 0, 1, 1], [], []>} : vector<64x16xbf16>, vector<16x16xbf16>, vector<64x16xf32> -> vector<64x16xf32>
    %37 = arith.addf %30, %36 : vector<64x16xf32>
    %c1_44 = arith.constant 1 : index
    %c0_45 = arith.constant 0 : index
    %c0_46 = arith.constant 0 : index
    %38 = vector.load %arg10[%c1_44, %c0_45, %c0_46] : memref<10x10x16xf32, #tpu.memory_space<vmem>>, vector<8x8x16xf32>
    %39 = vector.shape_cast %38 : vector<8x8x16xf32> to vector<64x16xf32>
    %40 = arith.truncf %39 : vector<64x16xf32> to vector<64x16xbf16>
    %c3 = arith.constant 3 : index
    %c0_47 = arith.constant 0 : index
    %c0_48 = arith.constant 0 : index
    %41 = vector.load %arg5[%c3, %c0_47, %c0_48] : memref<45x16x16xbf16, #tpu.memory_space<vmem>>, vector<1x16x16xbf16>
    %42 = vector.shape_cast %41 : vector<1x16x16xbf16> to vector<16x16xbf16>
    %cst_49 = arith.constant dense<0.000000e+00> : vector<64x16xf32>
    %43 = tpu.matmul %40, %42, %cst_49 {dimension_numbers = #tpu.dot_dimension_numbers<[1], [0], [0], [1], [0, 0, 1, 1], [], []>} : vector<64x16xbf16>, vector<16x16xbf16>, vector<64x16xf32> -> vector<64x16xf32>
    %44 = arith.addf %37, %43 : vector<64x16xf32>
    %c1_50 = arith.constant 1 : index
    %c1_51 = arith.constant 1 : index
    %c0_52 = arith.constant 0 : index
    %45 = vector.load %arg10[%c1_50, %c1_51, %c0_52] : memref<10x10x16xf32, #tpu.memory_space<vmem>>, vector<8x8x16xf32>
    %46 = vector.shape_cast %45 : vector<8x8x16xf32> to vector<64x16xf32>
    %47 = arith.truncf %46 : vector<64x16xf32> to vector<64x16xbf16>
    %c4 = arith.constant 4 : index
    %c0_53 = arith.constant 0 : index
    %c0_54 = arith.constant 0 : index
    %48 = vector.load %arg5[%c4, %c0_53, %c0_54] : memref<45x16x16xbf16, #tpu.memory_space<vmem>>, vector<1x16x16xbf16>
    %49 = vector.shape_cast %48 : vector<1x16x16xbf16> to vector<16x16xbf16>
    %cst_55 = arith.constant dense<0.000000e+00> : vector<64x16xf32>
    %50 = tpu.matmul %47, %49, %cst_55 {dimension_numbers = #tpu.dot_dimension_numbers<[1], [0], [0], [1], [0, 0, 1, 1], [], []>} : vector<64x16xbf16>, vector<16x16xbf16>, vector<64x16xf32> -> vector<64x16xf32>
    %51 = arith.addf %44, %50 : vector<64x16xf32>
    %c1_56 = arith.constant 1 : index
    %c2_57 = arith.constant 2 : index
    %c0_58 = arith.constant 0 : index
    %52 = vector.load %arg10[%c1_56, %c2_57, %c0_58] : memref<10x10x16xf32, #tpu.memory_space<vmem>>, vector<8x8x16xf32>
    %53 = vector.shape_cast %52 : vector<8x8x16xf32> to vector<64x16xf32>
    %54 = arith.truncf %53 : vector<64x16xf32> to vector<64x16xbf16>
    %c5 = arith.constant 5 : index
    %c0_59 = arith.constant 0 : index
    %c0_60 = arith.constant 0 : index
    %55 = vector.load %arg5[%c5, %c0_59, %c0_60] : memref<45x16x16xbf16, #tpu.memory_space<vmem>>, vector<1x16x16xbf16>
    %56 = vector.shape_cast %55 : vector<1x16x16xbf16> to vector<16x16xbf16>
    %cst_61 = arith.constant dense<0.000000e+00> : vector<64x16xf32>
    %57 = tpu.matmul %54, %56, %cst_61 {dimension_numbers = #tpu.dot_dimension_numbers<[1], [0], [0], [1], [0, 0, 1, 1], [], []>} : vector<64x16xbf16>, vector<16x16xbf16>, vector<64x16xf32> -> vector<64x16xf32>
    %58 = arith.addf %51, %57 : vector<64x16xf32>
    %c2_62 = arith.constant 2 : index
    %c0_63 = arith.constant 0 : index
    %c0_64 = arith.constant 0 : index
    %59 = vector.load %arg10[%c2_62, %c0_63, %c0_64] : memref<10x10x16xf32, #tpu.memory_space<vmem>>, vector<8x8x16xf32>
    %60 = vector.shape_cast %59 : vector<8x8x16xf32> to vector<64x16xf32>
    %61 = arith.truncf %60 : vector<64x16xf32> to vector<64x16xbf16>
    %c6 = arith.constant 6 : index
    %c0_65 = arith.constant 0 : index
    %c0_66 = arith.constant 0 : index
    %62 = vector.load %arg5[%c6, %c0_65, %c0_66] : memref<45x16x16xbf16, #tpu.memory_space<vmem>>, vector<1x16x16xbf16>
    %63 = vector.shape_cast %62 : vector<1x16x16xbf16> to vector<16x16xbf16>
    %cst_67 = arith.constant dense<0.000000e+00> : vector<64x16xf32>
    %64 = tpu.matmul %61, %63, %cst_67 {dimension_numbers = #tpu.dot_dimension_numbers<[1], [0], [0], [1], [0, 0, 1, 1], [], []>} : vector<64x16xbf16>, vector<16x16xbf16>, vector<64x16xf32> -> vector<64x16xf32>
    %65 = arith.addf %58, %64 : vector<64x16xf32>
    %c2_68 = arith.constant 2 : index
    %c1_69 = arith.constant 1 : index
    %c0_70 = arith.constant 0 : index
    %66 = vector.load %arg10[%c2_68, %c1_69, %c0_70] : memref<10x10x16xf32, #tpu.memory_space<vmem>>, vector<8x8x16xf32>
    %67 = vector.shape_cast %66 : vector<8x8x16xf32> to vector<64x16xf32>
    %68 = arith.truncf %67 : vector<64x16xf32> to vector<64x16xbf16>
    %c7 = arith.constant 7 : index
    %c0_71 = arith.constant 0 : index
    %c0_72 = arith.constant 0 : index
    %69 = vector.load %arg5[%c7, %c0_71, %c0_72] : memref<45x16x16xbf16, #tpu.memory_space<vmem>>, vector<1x16x16xbf16>
    %70 = vector.shape_cast %69 : vector<1x16x16xbf16> to vector<16x16xbf16>
    %cst_73 = arith.constant dense<0.000000e+00> : vector<64x16xf32>
    %71 = tpu.matmul %68, %70, %cst_73 {dimension_numbers = #tpu.dot_dimension_numbers<[1], [0], [0], [1], [0, 0, 1, 1], [], []>} : vector<64x16xbf16>, vector<16x16xbf16>, vector<64x16xf32> -> vector<64x16xf32>
    %72 = arith.addf %65, %71 : vector<64x16xf32>
    %c2_74 = arith.constant 2 : index
    %c2_75 = arith.constant 2 : index
    %c0_76 = arith.constant 0 : index
    %73 = vector.load %arg10[%c2_74, %c2_75, %c0_76] : memref<10x10x16xf32, #tpu.memory_space<vmem>>, vector<8x8x16xf32>
    %74 = vector.shape_cast %73 : vector<8x8x16xf32> to vector<64x16xf32>
    %75 = arith.truncf %74 : vector<64x16xf32> to vector<64x16xbf16>
    %c8 = arith.constant 8 : index
    %c0_77 = arith.constant 0 : index
    %c0_78 = arith.constant 0 : index
    %76 = vector.load %arg5[%c8, %c0_77, %c0_78] : memref<45x16x16xbf16, #tpu.memory_space<vmem>>, vector<1x16x16xbf16>
    %77 = vector.shape_cast %76 : vector<1x16x16xbf16> to vector<16x16xbf16>
    %cst_79 = arith.constant dense<0.000000e+00> : vector<64x16xf32>
    %78 = tpu.matmul %75, %77, %cst_79 {dimension_numbers = #tpu.dot_dimension_numbers<[1], [0], [0], [1], [0, 0, 1, 1], [], []>} : vector<64x16xbf16>, vector<16x16xbf16>, vector<64x16xf32> -> vector<64x16xf32>
    %79 = arith.addf %72, %78 : vector<64x16xf32>
    %c0_80 = arith.constant 0 : index
    %c0_81 = arith.constant 0 : index
    %80 = vector.load %arg6[%c0_80, %c0_81] : memref<5x16xf32, #tpu.memory_space<vmem>>, vector<1x16xf32>
    %81 = vector.broadcast %80 : vector<1x16xf32> to vector<64x16xf32>
    %82 = arith.addf %79, %81 : vector<64x16xf32>
    %cst_82 = arith.constant 0.000000e+00 : f32
    %83 = vector.broadcast %cst_82 : f32 to vector<64x16xf32>
    %84 = arith.maximumf %82, %83 : vector<64x16xf32>
    %85 = vector.shape_cast %84 : vector<64x16xf32> to vector<8x8x16xf32>
    %c1_83 = arith.constant 1 : index
    %c1_84 = arith.constant 1 : index
    %c0_85 = arith.constant 0 : index
    %86 = vector.load %arg10[%c1_83, %c1_84, %c0_85] : memref<10x10x16xf32, #tpu.memory_space<vmem>>, vector<8x8x16xf32>
    tpu.vector_store %arg10[%c1_83, %c1_84, %c0_85], %85 {strides = array<i32>} : memref<10x10x16xf32, #tpu.memory_space<vmem>>, vector<8x8x16xf32>,
    %c0_86 = arith.constant 0 : index
    %c0_87 = arith.constant 0 : index
    %c0_88 = arith.constant 0 : index
    %87 = vector.load %arg10[%c0_86, %c0_87, %c0_88] : memref<10x10x16xf32, #tpu.memory_space<vmem>>, vector<8x8x16xf32>
    %88 = vector.shape_cast %87 : vector<8x8x16xf32> to vector<64x16xf32>
    %89 = arith.truncf %88 : vector<64x16xf32> to vector<64x16xbf16>
    %c9_89 = arith.constant 9 : index
    %c0_90 = arith.constant 0 : index
    %c0_91 = arith.constant 0 : index
    %90 = vector.load %arg5[%c9_89, %c0_90, %c0_91] : memref<45x16x16xbf16, #tpu.memory_space<vmem>>, vector<1x16x16xbf16>
    %91 = vector.shape_cast %90 : vector<1x16x16xbf16> to vector<16x16xbf16>
    %cst_92 = arith.constant dense<0.000000e+00> : vector<64x16xf32>
    %92 = tpu.matmul %89, %91, %cst_92 {dimension_numbers = #tpu.dot_dimension_numbers<[1], [0], [0], [1], [0, 0, 1, 1], [], []>} : vector<64x16xbf16>, vector<16x16xbf16>, vector<64x16xf32> -> vector<64x16xf32>
    %c0_93 = arith.constant 0 : index
    %c1_94 = arith.constant 1 : index
    %c0_95 = arith.constant 0 : index
    %93 = vector.load %arg10[%c0_93, %c1_94, %c0_95] : memref<10x10x16xf32, #tpu.memory_space<vmem>>, vector<8x8x16xf32>
    %94 = vector.shape_cast %93 : vector<8x8x16xf32> to vector<64x16xf32>
    %95 = arith.truncf %94 : vector<64x16xf32> to vector<64x16xbf16>
    %c10 = arith.constant 10 : index
    %c0_96 = arith.constant 0 : index
    %c0_97 = arith.constant 0 : index
    %96 = vector.load %arg5[%c10, %c0_96, %c0_97] : memref<45x16x16xbf16, #tpu.memory_space<vmem>>, vector<1x16x16xbf16>
    %97 = vector.shape_cast %96 : vector<1x16x16xbf16> to vector<16x16xbf16>
    %cst_98 = arith.constant dense<0.000000e+00> : vector<64x16xf32>
    %98 = tpu.matmul %95, %97, %cst_98 {dimension_numbers = #tpu.dot_dimension_numbers<[1], [0], [0], [1], [0, 0, 1, 1], [], []>} : vector<64x16xbf16>, vector<16x16xbf16>, vector<64x16xf32> -> vector<64x16xf32>
    %99 = arith.addf %92, %98 : vector<64x16xf32>
    %c0_99 = arith.constant 0 : index
    %c2_100 = arith.constant 2 : index
    %c0_101 = arith.constant 0 : index
    %100 = vector.load %arg10[%c0_99, %c2_100, %c0_101] : memref<10x10x16xf32, #tpu.memory_space<vmem>>, vector<8x8x16xf32>
    %101 = vector.shape_cast %100 : vector<8x8x16xf32> to vector<64x16xf32>
    %102 = arith.truncf %101 : vector<64x16xf32> to vector<64x16xbf16>
    %c11 = arith.constant 11 : index
    %c0_102 = arith.constant 0 : index
    %c0_103 = arith.constant 0 : index
    %103 = vector.load %arg5[%c11, %c0_102, %c0_103] : memref<45x16x16xbf16, #tpu.memory_space<vmem>>, vector<1x16x16xbf16>
    %104 = vector.shape_cast %103 : vector<1x16x16xbf16> to vector<16x16xbf16>
    %cst_104 = arith.constant dense<0.000000e+00> : vector<64x16xf32>
    %105 = tpu.matmul %102, %104, %cst_104 {dimension_numbers = #tpu.dot_dimension_numbers<[1], [0], [0], [1], [0, 0, 1, 1], [], []>} : vector<64x16xbf16>, vector<16x16xbf16>, vector<64x16xf32> -> vector<64x16xf32>
    %106 = arith.addf %99, %105 : vector<64x16xf32>
    %c1_105 = arith.constant 1 : index
    %c0_106 = arith.constant 0 : index
    %c0_107 = arith.constant 0 : index
    %107 = vector.load %arg10[%c1_105, %c0_106, %c0_107] : memref<10x10x16xf32, #tpu.memory_space<vmem>>, vector<8x8x16xf32>
    %108 = vector.shape_cast %107 : vector<8x8x16xf32> to vector<64x16xf32>
    %109 = arith.truncf %108 : vector<64x16xf32> to vector<64x16xbf16>
    %c12 = arith.constant 12 : index
    %c0_108 = arith.constant 0 : index
    %c0_109 = arith.constant 0 : index
    %110 = vector.load %arg5[%c12, %c0_108, %c0_109] : memref<45x16x16xbf16, #tpu.memory_space<vmem>>, vector<1x16x16xbf16>
    %111 = vector.shape_cast %110 : vector<1x16x16xbf16> to vector<16x16xbf16>
    %cst_110 = arith.constant dense<0.000000e+00> : vector<64x16xf32>
    %112 = tpu.matmul %109, %111, %cst_110 {dimension_numbers = #tpu.dot_dimension_numbers<[1], [0], [0], [1], [0, 0, 1, 1], [], []>} : vector<64x16xbf16>, vector<16x16xbf16>, vector<64x16xf32> -> vector<64x16xf32>
    %113 = arith.addf %106, %112 : vector<64x16xf32>
    %c1_111 = arith.constant 1 : index
    %c1_112 = arith.constant 1 : index
    %c0_113 = arith.constant 0 : index
    %114 = vector.load %arg10[%c1_111, %c1_112, %c0_113] : memref<10x10x16xf32, #tpu.memory_space<vmem>>, vector<8x8x16xf32>
    %115 = vector.shape_cast %114 : vector<8x8x16xf32> to vector<64x16xf32>
    %116 = arith.truncf %115 : vector<64x16xf32> to vector<64x16xbf16>
    %c13 = arith.constant 13 : index
    %c0_114 = arith.constant 0 : index
    %c0_115 = arith.constant 0 : index
    %117 = vector.load %arg5[%c13, %c0_114, %c0_115] : memref<45x16x16xbf16, #tpu.memory_space<vmem>>, vector<1x16x16xbf16>
    %118 = vector.shape_cast %117 : vector<1x16x16xbf16> to vector<16x16xbf16>
    %cst_116 = arith.constant dense<0.000000e+00> : vector<64x16xf32>
    %119 = tpu.matmul %116, %118, %cst_116 {dimension_numbers = #tpu.dot_dimension_numbers<[1], [0], [0], [1], [0, 0, 1, 1], [], []>} : vector<64x16xbf16>, vector<16x16xbf16>, vector<64x16xf32> -> vector<64x16xf32>
    %120 = arith.addf %113, %119 : vector<64x16xf32>
    %c1_117 = arith.constant 1 : index
    %c2_118 = arith.constant 2 : index
    %c0_119 = arith.constant 0 : index
    %121 = vector.load %arg10[%c1_117, %c2_118, %c0_119] : memref<10x10x16xf32, #tpu.memory_space<vmem>>, vector<8x8x16xf32>
    %122 = vector.shape_cast %121 : vector<8x8x16xf32> to vector<64x16xf32>
    %123 = arith.truncf %122 : vector<64x16xf32> to vector<64x16xbf16>
    %c14 = arith.constant 14 : index
    %c0_120 = arith.constant 0 : index
    %c0_121 = arith.constant 0 : index
    %124 = vector.load %arg5[%c14, %c0_120, %c0_121] : memref<45x16x16xbf16, #tpu.memory_space<vmem>>, vector<1x16x16xbf16>
    %125 = vector.shape_cast %124 : vector<1x16x16xbf16> to vector<16x16xbf16>
    %cst_122 = arith.constant dense<0.000000e+00> : vector<64x16xf32>
    %126 = tpu.matmul %123, %125, %cst_122 {dimension_numbers = #tpu.dot_dimension_numbers<[1], [0], [0], [1], [0, 0, 1, 1], [], []>} : vector<64x16xbf16>, vector<16x16xbf16>, vector<64x16xf32> -> vector<64x16xf32>
    %127 = arith.addf %120, %126 : vector<64x16xf32>
    %c2_123 = arith.constant 2 : index
    %c0_124 = arith.constant 0 : index
    %c0_125 = arith.constant 0 : index
    %128 = vector.load %arg10[%c2_123, %c0_124, %c0_125] : memref<10x10x16xf32, #tpu.memory_space<vmem>>, vector<8x8x16xf32>
    %129 = vector.shape_cast %128 : vector<8x8x16xf32> to vector<64x16xf32>
    %130 = arith.truncf %129 : vector<64x16xf32> to vector<64x16xbf16>
    %c15 = arith.constant 15 : index
    %c0_126 = arith.constant 0 : index
    %c0_127 = arith.constant 0 : index
    %131 = vector.load %arg5[%c15, %c0_126, %c0_127] : memref<45x16x16xbf16, #tpu.memory_space<vmem>>, vector<1x16x16xbf16>
    %132 = vector.shape_cast %131 : vector<1x16x16xbf16> to vector<16x16xbf16>
    %cst_128 = arith.constant dense<0.000000e+00> : vector<64x16xf32>
    %133 = tpu.matmul %130, %132, %cst_128 {dimension_numbers = #tpu.dot_dimension_numbers<[1], [0], [0], [1], [0, 0, 1, 1], [], []>} : vector<64x16xbf16>, vector<16x16xbf16>, vector<64x16xf32> -> vector<64x16xf32>
    %134 = arith.addf %127, %133 : vector<64x16xf32>
    %c2_129 = arith.constant 2 : index
    %c1_130 = arith.constant 1 : index
    %c0_131 = arith.constant 0 : index
    %135 = vector.load %arg10[%c2_129, %c1_130, %c0_131] : memref<10x10x16xf32, #tpu.memory_space<vmem>>, vector<8x8x16xf32>
    %136 = vector.shape_cast %135 : vector<8x8x16xf32> to vector<64x16xf32>
    %137 = arith.truncf %136 : vector<64x16xf32> to vector<64x16xbf16>
    %c16 = arith.constant 16 : index
    %c0_132 = arith.constant 0 : index
    %c0_133 = arith.constant 0 : index
    %138 = vector.load %arg5[%c16, %c0_132, %c0_133] : memref<45x16x16xbf16, #tpu.memory_space<vmem>>, vector<1x16x16xbf16>
    %139 = vector.shape_cast %138 : vector<1x16x16xbf16> to vector<16x16xbf16>
    %cst_134 = arith.constant dense<0.000000e+00> : vector<64x16xf32>
    %140 = tpu.matmul %137, %139, %cst_134 {dimension_numbers = #tpu.dot_dimension_numbers<[1], [0], [0], [1], [0, 0, 1, 1], [], []>} : vector<64x16xbf16>, vector<16x16xbf16>, vector<64x16xf32> -> vector<64x16xf32>
    %141 = arith.addf %134, %140 : vector<64x16xf32>
    %c2_135 = arith.constant 2 : index
    %c2_136 = arith.constant 2 : index
    %c0_137 = arith.constant 0 : index
    %142 = vector.load %arg10[%c2_135, %c2_136, %c0_137] : memref<10x10x16xf32, #tpu.memory_space<vmem>>, vector<8x8x16xf32>
    %143 = vector.shape_cast %142 : vector<8x8x16xf32> to vector<64x16xf32>
    %144 = arith.truncf %143 : vector<64x16xf32> to vector<64x16xbf16>
    %c17 = arith.constant 17 : index
    %c0_138 = arith.constant 0 : index
    %c0_139 = arith.constant 0 : index
    %145 = vector.load %arg5[%c17, %c0_138, %c0_139] : memref<45x16x16xbf16, #tpu.memory_space<vmem>>, vector<1x16x16xbf16>
    %146 = vector.shape_cast %145 : vector<1x16x16xbf16> to vector<16x16xbf16>
    %cst_140 = arith.constant dense<0.000000e+00> : vector<64x16xf32>
    %147 = tpu.matmul %144, %146, %cst_140 {dimension_numbers = #tpu.dot_dimension_numbers<[1], [0], [0], [1], [0, 0, 1, 1], [], []>} : vector<64x16xbf16>, vector<16x16xbf16>, vector<64x16xf32> -> vector<64x16xf32>
    %148 = arith.addf %141, %147 : vector<64x16xf32>
    %c1_141 = arith.constant 1 : index
    %c0_142 = arith.constant 0 : index
    %149 = vector.load %arg6[%c1_141, %c0_142] : memref<5x16xf32, #tpu.memory_space<vmem>>, vector<1x16xf32>
    %150 = vector.broadcast %149 : vector<1x16xf32> to vector<64x16xf32>
    %151 = arith.addf %148, %150 : vector<64x16xf32>
    %152 = arith.addf %151, %15 : vector<64x16xf32>
    %153 = vector.shape_cast %152 : vector<64x16xf32> to vector<8x8x16xf32>
    %c1_143 = arith.constant 1 : index
    %c1_144 = arith.constant 1 : index
    %c0_145 = arith.constant 0 : index
    %154 = vector.load %arg10[%c1_143, %c1_144, %c0_145] : memref<10x10x16xf32, #tpu.memory_space<vmem>>, vector<8x8x16xf32>
    tpu.vector_store %arg10[%c1_143, %c1_144, %c0_145], %153 {strides = array<i32>} : memref<10x10x16xf32, #tpu.memory_space<vmem>>, vector<8x8x16xf32>,
    %c0_146 = arith.constant 0 : index
    %c0_147 = arith.constant 0 : index
    %c0_148 = arith.constant 0 : index
    %155 = vector.load %arg10[%c0_146, %c0_147, %c0_148] : memref<10x10x16xf32, #tpu.memory_space<vmem>>, vector<8x8x16xf32>
    %156 = vector.shape_cast %155 : vector<8x8x16xf32> to vector<64x16xf32>
    %157 = arith.truncf %156 : vector<64x16xf32> to vector<64x16xbf16>
    %c18 = arith.constant 18 : index
    %c0_149 = arith.constant 0 : index
    %c0_150 = arith.constant 0 : index
    %158 = vector.load %arg5[%c18, %c0_149, %c0_150] : memref<45x16x16xbf16, #tpu.memory_space<vmem>>, vector<1x16x16xbf16>
    %159 = vector.shape_cast %158 : vector<1x16x16xbf16> to vector<16x16xbf16>
    %cst_151 = arith.constant dense<0.000000e+00> : vector<64x16xf32>
    %160 = tpu.matmul %157, %159, %cst_151 {dimension_numbers = #tpu.dot_dimension_numbers<[1], [0], [0], [1], [0, 0, 1, 1], [], []>} : vector<64x16xbf16>, vector<16x16xbf16>, vector<64x16xf32> -> vector<64x16xf32>
    %c0_152 = arith.constant 0 : index
    %c1_153 = arith.constant 1 : index
    %c0_154 = arith.constant 0 : index
    %161 = vector.load %arg10[%c0_152, %c1_153, %c0_154] : memref<10x10x16xf32, #tpu.memory_space<vmem>>, vector<8x8x16xf32>
    %162 = vector.shape_cast %161 : vector<8x8x16xf32> to vector<64x16xf32>
    %163 = arith.truncf %162 : vector<64x16xf32> to vector<64x16xbf16>
    %c19 = arith.constant 19 : index
    %c0_155 = arith.constant 0 : index
    %c0_156 = arith.constant 0 : index
    %164 = vector.load %arg5[%c19, %c0_155, %c0_156] : memref<45x16x16xbf16, #tpu.memory_space<vmem>>, vector<1x16x16xbf16>
    %165 = vector.shape_cast %164 : vector<1x16x16xbf16> to vector<16x16xbf16>
    %cst_157 = arith.constant dense<0.000000e+00> : vector<64x16xf32>
    %166 = tpu.matmul %163, %165, %cst_157 {dimension_numbers = #tpu.dot_dimension_numbers<[1], [0], [0], [1], [0, 0, 1, 1], [], []>} : vector<64x16xbf16>, vector<16x16xbf16>, vector<64x16xf32> -> vector<64x16xf32>
    %167 = arith.addf %160, %166 : vector<64x16xf32>
    %c0_158 = arith.constant 0 : index
    %c2_159 = arith.constant 2 : index
    %c0_160 = arith.constant 0 : index
    %168 = vector.load %arg10[%c0_158, %c2_159, %c0_160] : memref<10x10x16xf32, #tpu.memory_space<vmem>>, vector<8x8x16xf32>
    %169 = vector.shape_cast %168 : vector<8x8x16xf32> to vector<64x16xf32>
    %170 = arith.truncf %169 : vector<64x16xf32> to vector<64x16xbf16>
    %c20 = arith.constant 20 : index
    %c0_161 = arith.constant 0 : index
    %c0_162 = arith.constant 0 : index
    %171 = vector.load %arg5[%c20, %c0_161, %c0_162] : memref<45x16x16xbf16, #tpu.memory_space<vmem>>, vector<1x16x16xbf16>
    %172 = vector.shape_cast %171 : vector<1x16x16xbf16> to vector<16x16xbf16>
    %cst_163 = arith.constant dense<0.000000e+00> : vector<64x16xf32>
    %173 = tpu.matmul %170, %172, %cst_163 {dimension_numbers = #tpu.dot_dimension_numbers<[1], [0], [0], [1], [0, 0, 1, 1], [], []>} : vector<64x16xbf16>, vector<16x16xbf16>, vector<64x16xf32> -> vector<64x16xf32>
    %174 = arith.addf %167, %173 : vector<64x16xf32>
    %c1_164 = arith.constant 1 : index
    %c0_165 = arith.constant 0 : index
    %c0_166 = arith.constant 0 : index
    %175 = vector.load %arg10[%c1_164, %c0_165, %c0_166] : memref<10x10x16xf32, #tpu.memory_space<vmem>>, vector<8x8x16xf32>
    %176 = vector.shape_cast %175 : vector<8x8x16xf32> to vector<64x16xf32>
    %177 = arith.truncf %176 : vector<64x16xf32> to vector<64x16xbf16>
    %c21 = arith.constant 21 : index
    %c0_167 = arith.constant 0 : index
    %c0_168 = arith.constant 0 : index
    %178 = vector.load %arg5[%c21, %c0_167, %c0_168] : memref<45x16x16xbf16, #tpu.memory_space<vmem>>, vector<1x16x16xbf16>
    %179 = vector.shape_cast %178 : vector<1x16x16xbf16> to vector<16x16xbf16>
    %cst_169 = arith.constant dense<0.000000e+00> : vector<64x16xf32>
    %180 = tpu.matmul %177, %179, %cst_169 {dimension_numbers = #tpu.dot_dimension_numbers<[1], [0], [0], [1], [0, 0, 1, 1], [], []>} : vector<64x16xbf16>, vector<16x16xbf16>, vector<64x16xf32> -> vector<64x16xf32>
    %181 = arith.addf %174, %180 : vector<64x16xf32>
    %c1_170 = arith.constant 1 : index
    %c1_171 = arith.constant 1 : index
    %c0_172 = arith.constant 0 : index
    %182 = vector.load %arg10[%c1_170, %c1_171, %c0_172] : memref<10x10x16xf32, #tpu.memory_space<vmem>>, vector<8x8x16xf32>
    %183 = vector.shape_cast %182 : vector<8x8x16xf32> to vector<64x16xf32>
    %184 = arith.truncf %183 : vector<64x16xf32> to vector<64x16xbf16>
    %c22 = arith.constant 22 : index
    %c0_173 = arith.constant 0 : index
    %c0_174 = arith.constant 0 : index
    %185 = vector.load %arg5[%c22, %c0_173, %c0_174] : memref<45x16x16xbf16, #tpu.memory_space<vmem>>, vector<1x16x16xbf16>
    %186 = vector.shape_cast %185 : vector<1x16x16xbf16> to vector<16x16xbf16>
    %cst_175 = arith.constant dense<0.000000e+00> : vector<64x16xf32>
    %187 = tpu.matmul %184, %186, %cst_175 {dimension_numbers = #tpu.dot_dimension_numbers<[1], [0], [0], [1], [0, 0, 1, 1], [], []>} : vector<64x16xbf16>, vector<16x16xbf16>, vector<64x16xf32> -> vector<64x16xf32>
    %188 = arith.addf %181, %187 : vector<64x16xf32>
    %c1_176 = arith.constant 1 : index
    %c2_177 = arith.constant 2 : index
    %c0_178 = arith.constant 0 : index
    %189 = vector.load %arg10[%c1_176, %c2_177, %c0_178] : memref<10x10x16xf32, #tpu.memory_space<vmem>>, vector<8x8x16xf32>
    %190 = vector.shape_cast %189 : vector<8x8x16xf32> to vector<64x16xf32>
    %191 = arith.truncf %190 : vector<64x16xf32> to vector<64x16xbf16>
    %c23 = arith.constant 23 : index
    %c0_179 = arith.constant 0 : index
    %c0_180 = arith.constant 0 : index
    %192 = vector.load %arg5[%c23, %c0_179, %c0_180] : memref<45x16x16xbf16, #tpu.memory_space<vmem>>, vector<1x16x16xbf16>
    %193 = vector.shape_cast %192 : vector<1x16x16xbf16> to vector<16x16xbf16>
    %cst_181 = arith.constant dense<0.000000e+00> : vector<64x16xf32>
    %194 = tpu.matmul %191, %193, %cst_181 {dimension_numbers = #tpu.dot_dimension_numbers<[1], [0], [0], [1], [0, 0, 1, 1], [], []>} : vector<64x16xbf16>, vector<16x16xbf16>, vector<64x16xf32> -> vector<64x16xf32>
    %195 = arith.addf %188, %194 : vector<64x16xf32>
    %c2_182 = arith.constant 2 : index
    %c0_183 = arith.constant 0 : index
    %c0_184 = arith.constant 0 : index
    %196 = vector.load %arg10[%c2_182, %c0_183, %c0_184] : memref<10x10x16xf32, #tpu.memory_space<vmem>>, vector<8x8x16xf32>
    %197 = vector.shape_cast %196 : vector<8x8x16xf32> to vector<64x16xf32>
    %198 = arith.truncf %197 : vector<64x16xf32> to vector<64x16xbf16>
    %c24 = arith.constant 24 : index
    %c0_185 = arith.constant 0 : index
    %c0_186 = arith.constant 0 : index
    %199 = vector.load %arg5[%c24, %c0_185, %c0_186] : memref<45x16x16xbf16, #tpu.memory_space<vmem>>, vector<1x16x16xbf16>
    %200 = vector.shape_cast %199 : vector<1x16x16xbf16> to vector<16x16xbf16>
    %cst_187 = arith.constant dense<0.000000e+00> : vector<64x16xf32>
    %201 = tpu.matmul %198, %200, %cst_187 {dimension_numbers = #tpu.dot_dimension_numbers<[1], [0], [0], [1], [0, 0, 1, 1], [], []>} : vector<64x16xbf16>, vector<16x16xbf16>, vector<64x16xf32> -> vector<64x16xf32>
    %202 = arith.addf %195, %201 : vector<64x16xf32>
    %c2_188 = arith.constant 2 : index
    %c1_189 = arith.constant 1 : index
    %c0_190 = arith.constant 0 : index
    %203 = vector.load %arg10[%c2_188, %c1_189, %c0_190] : memref<10x10x16xf32, #tpu.memory_space<vmem>>, vector<8x8x16xf32>
    %204 = vector.shape_cast %203 : vector<8x8x16xf32> to vector<64x16xf32>
    %205 = arith.truncf %204 : vector<64x16xf32> to vector<64x16xbf16>
    %c25 = arith.constant 25 : index
    %c0_191 = arith.constant 0 : index
    %c0_192 = arith.constant 0 : index
    %206 = vector.load %arg5[%c25, %c0_191, %c0_192] : memref<45x16x16xbf16, #tpu.memory_space<vmem>>, vector<1x16x16xbf16>
    %207 = vector.shape_cast %206 : vector<1x16x16xbf16> to vector<16x16xbf16>
    %cst_193 = arith.constant dense<0.000000e+00> : vector<64x16xf32>
    %208 = tpu.matmul %205, %207, %cst_193 {dimension_numbers = #tpu.dot_dimension_numbers<[1], [0], [0], [1], [0, 0, 1, 1], [], []>} : vector<64x16xbf16>, vector<16x16xbf16>, vector<64x16xf32> -> vector<64x16xf32>
    %209 = arith.addf %202, %208 : vector<64x16xf32>
    %c2_194 = arith.constant 2 : index
    %c2_195 = arith.constant 2 : index
    %c0_196 = arith.constant 0 : index
    %210 = vector.load %arg10[%c2_194, %c2_195, %c0_196] : memref<10x10x16xf32, #tpu.memory_space<vmem>>, vector<8x8x16xf32>
    %211 = vector.shape_cast %210 : vector<8x8x16xf32> to vector<64x16xf32>
    %212 = arith.truncf %211 : vector<64x16xf32> to vector<64x16xbf16>
    %c26 = arith.constant 26 : index
    %c0_197 = arith.constant 0 : index
    %c0_198 = arith.constant 0 : index
    %213 = vector.load %arg5[%c26, %c0_197, %c0_198] : memref<45x16x16xbf16, #tpu.memory_space<vmem>>, vector<1x16x16xbf16>
    %214 = vector.shape_cast %213 : vector<1x16x16xbf16> to vector<16x16xbf16>
    %cst_199 = arith.constant dense<0.000000e+00> : vector<64x16xf32>
    %215 = tpu.matmul %212, %214, %cst_199 {dimension_numbers = #tpu.dot_dimension_numbers<[1], [0], [0], [1], [0, 0, 1, 1], [], []>} : vector<64x16xbf16>, vector<16x16xbf16>, vector<64x16xf32> -> vector<64x16xf32>
    %216 = arith.addf %209, %215 : vector<64x16xf32>
    %c2_200 = arith.constant 2 : index
    %c0_201 = arith.constant 0 : index
    %217 = vector.load %arg6[%c2_200, %c0_201] : memref<5x16xf32, #tpu.memory_space<vmem>>, vector<1x16xf32>
    %218 = vector.broadcast %217 : vector<1x16xf32> to vector<64x16xf32>
    %219 = arith.addf %216, %218 : vector<64x16xf32>
    %cst_202 = arith.constant 0.000000e+00 : f32
    %220 = vector.broadcast %cst_202 : f32 to vector<64x16xf32>
    %221 = arith.maximumf %219, %220 : vector<64x16xf32>
    %222 = vector.shape_cast %221 : vector<64x16xf32> to vector<8x8x16xf32>
    %c1_203 = arith.constant 1 : index
    %c1_204 = arith.constant 1 : index
    %c0_205 = arith.constant 0 : index
    %223 = vector.load %arg10[%c1_203, %c1_204, %c0_205] : memref<10x10x16xf32, #tpu.memory_space<vmem>>, vector<8x8x16xf32>
    tpu.vector_store %arg10[%c1_203, %c1_204, %c0_205], %222 {strides = array<i32>} : memref<10x10x16xf32, #tpu.memory_space<vmem>>, vector<8x8x16xf32>,
    %c0_206 = arith.constant 0 : index
    %c0_207 = arith.constant 0 : index
    %c0_208 = arith.constant 0 : index
    %224 = vector.load %arg10[%c0_206, %c0_207, %c0_208] : memref<10x10x16xf32, #tpu.memory_space<vmem>>, vector<8x8x16xf32>
    %225 = vector.shape_cast %224 : vector<8x8x16xf32> to vector<64x16xf32>
    %226 = arith.truncf %225 : vector<64x16xf32> to vector<64x16xbf16>
    %c27 = arith.constant 27 : index
    %c0_209 = arith.constant 0 : index
    %c0_210 = arith.constant 0 : index
    %227 = vector.load %arg5[%c27, %c0_209, %c0_210] : memref<45x16x16xbf16, #tpu.memory_space<vmem>>, vector<1x16x16xbf16>
    %228 = vector.shape_cast %227 : vector<1x16x16xbf16> to vector<16x16xbf16>
    %cst_211 = arith.constant dense<0.000000e+00> : vector<64x16xf32>
    %229 = tpu.matmul %226, %228, %cst_211 {dimension_numbers = #tpu.dot_dimension_numbers<[1], [0], [0], [1], [0, 0, 1, 1], [], []>} : vector<64x16xbf16>, vector<16x16xbf16>, vector<64x16xf32> -> vector<64x16xf32>
    %c0_212 = arith.constant 0 : index
    %c1_213 = arith.constant 1 : index
    %c0_214 = arith.constant 0 : index
    %230 = vector.load %arg10[%c0_212, %c1_213, %c0_214] : memref<10x10x16xf32, #tpu.memory_space<vmem>>, vector<8x8x16xf32>
    %231 = vector.shape_cast %230 : vector<8x8x16xf32> to vector<64x16xf32>
    %232 = arith.truncf %231 : vector<64x16xf32> to vector<64x16xbf16>
    %c28 = arith.constant 28 : index
    %c0_215 = arith.constant 0 : index
    %c0_216 = arith.constant 0 : index
    %233 = vector.load %arg5[%c28, %c0_215, %c0_216] : memref<45x16x16xbf16, #tpu.memory_space<vmem>>, vector<1x16x16xbf16>
    %234 = vector.shape_cast %233 : vector<1x16x16xbf16> to vector<16x16xbf16>
    %cst_217 = arith.constant dense<0.000000e+00> : vector<64x16xf32>
    %235 = tpu.matmul %232, %234, %cst_217 {dimension_numbers = #tpu.dot_dimension_numbers<[1], [0], [0], [1], [0, 0, 1, 1], [], []>} : vector<64x16xbf16>, vector<16x16xbf16>, vector<64x16xf32> -> vector<64x16xf32>
    %236 = arith.addf %229, %235 : vector<64x16xf32>
    %c0_218 = arith.constant 0 : index
    %c2_219 = arith.constant 2 : index
    %c0_220 = arith.constant 0 : index
    %237 = vector.load %arg10[%c0_218, %c2_219, %c0_220] : memref<10x10x16xf32, #tpu.memory_space<vmem>>, vector<8x8x16xf32>
    %238 = vector.shape_cast %237 : vector<8x8x16xf32> to vector<64x16xf32>
    %239 = arith.truncf %238 : vector<64x16xf32> to vector<64x16xbf16>
    %c29 = arith.constant 29 : index
    %c0_221 = arith.constant 0 : index
    %c0_222 = arith.constant 0 : index
    %240 = vector.load %arg5[%c29, %c0_221, %c0_222] : memref<45x16x16xbf16, #tpu.memory_space<vmem>>, vector<1x16x16xbf16>
    %241 = vector.shape_cast %240 : vector<1x16x16xbf16> to vector<16x16xbf16>
    %cst_223 = arith.constant dense<0.000000e+00> : vector<64x16xf32>
    %242 = tpu.matmul %239, %241, %cst_223 {dimension_numbers = #tpu.dot_dimension_numbers<[1], [0], [0], [1], [0, 0, 1, 1], [], []>} : vector<64x16xbf16>, vector<16x16xbf16>, vector<64x16xf32> -> vector<64x16xf32>
    %243 = arith.addf %236, %242 : vector<64x16xf32>
    %c1_224 = arith.constant 1 : index
    %c0_225 = arith.constant 0 : index
    %c0_226 = arith.constant 0 : index
    %244 = vector.load %arg10[%c1_224, %c0_225, %c0_226] : memref<10x10x16xf32, #tpu.memory_space<vmem>>, vector<8x8x16xf32>
    %245 = vector.shape_cast %244 : vector<8x8x16xf32> to vector<64x16xf32>
    %246 = arith.truncf %245 : vector<64x16xf32> to vector<64x16xbf16>
    %c30 = arith.constant 30 : index
    %c0_227 = arith.constant 0 : index
    %c0_228 = arith.constant 0 : index
    %247 = vector.load %arg5[%c30, %c0_227, %c0_228] : memref<45x16x16xbf16, #tpu.memory_space<vmem>>, vector<1x16x16xbf16>
    %248 = vector.shape_cast %247 : vector<1x16x16xbf16> to vector<16x16xbf16>
    %cst_229 = arith.constant dense<0.000000e+00> : vector<64x16xf32>
    %249 = tpu.matmul %246, %248, %cst_229 {dimension_numbers = #tpu.dot_dimension_numbers<[1], [0], [0], [1], [0, 0, 1, 1], [], []>} : vector<64x16xbf16>, vector<16x16xbf16>, vector<64x16xf32> -> vector<64x16xf32>
    %250 = arith.addf %243, %249 : vector<64x16xf32>
    %c1_230 = arith.constant 1 : index
    %c1_231 = arith.constant 1 : index
    %c0_232 = arith.constant 0 : index
    %251 = vector.load %arg10[%c1_230, %c1_231, %c0_232] : memref<10x10x16xf32, #tpu.memory_space<vmem>>, vector<8x8x16xf32>
    %252 = vector.shape_cast %251 : vector<8x8x16xf32> to vector<64x16xf32>
    %253 = arith.truncf %252 : vector<64x16xf32> to vector<64x16xbf16>
    %c31 = arith.constant 31 : index
    %c0_233 = arith.constant 0 : index
    %c0_234 = arith.constant 0 : index
    %254 = vector.load %arg5[%c31, %c0_233, %c0_234] : memref<45x16x16xbf16, #tpu.memory_space<vmem>>, vector<1x16x16xbf16>
    %255 = vector.shape_cast %254 : vector<1x16x16xbf16> to vector<16x16xbf16>
    %cst_235 = arith.constant dense<0.000000e+00> : vector<64x16xf32>
    %256 = tpu.matmul %253, %255, %cst_235 {dimension_numbers = #tpu.dot_dimension_numbers<[1], [0], [0], [1], [0, 0, 1, 1], [], []>} : vector<64x16xbf16>, vector<16x16xbf16>, vector<64x16xf32> -> vector<64x16xf32>
    %257 = arith.addf %250, %256 : vector<64x16xf32>
    %c1_236 = arith.constant 1 : index
    %c2_237 = arith.constant 2 : index
    %c0_238 = arith.constant 0 : index
    %258 = vector.load %arg10[%c1_236, %c2_237, %c0_238] : memref<10x10x16xf32, #tpu.memory_space<vmem>>, vector<8x8x16xf32>
    %259 = vector.shape_cast %258 : vector<8x8x16xf32> to vector<64x16xf32>
    %260 = arith.truncf %259 : vector<64x16xf32> to vector<64x16xbf16>
    %c32 = arith.constant 32 : index
    %c0_239 = arith.constant 0 : index
    %c0_240 = arith.constant 0 : index
    %261 = vector.load %arg5[%c32, %c0_239, %c0_240] : memref<45x16x16xbf16, #tpu.memory_space<vmem>>, vector<1x16x16xbf16>
    %262 = vector.shape_cast %261 : vector<1x16x16xbf16> to vector<16x16xbf16>
    %cst_241 = arith.constant dense<0.000000e+00> : vector<64x16xf32>
    %263 = tpu.matmul %260, %262, %cst_241 {dimension_numbers = #tpu.dot_dimension_numbers<[1], [0], [0], [1], [0, 0, 1, 1], [], []>} : vector<64x16xbf16>, vector<16x16xbf16>, vector<64x16xf32> -> vector<64x16xf32>
    %264 = arith.addf %257, %263 : vector<64x16xf32>
    %c2_242 = arith.constant 2 : index
    %c0_243 = arith.constant 0 : index
    %c0_244 = arith.constant 0 : index
    %265 = vector.load %arg10[%c2_242, %c0_243, %c0_244] : memref<10x10x16xf32, #tpu.memory_space<vmem>>, vector<8x8x16xf32>
    %266 = vector.shape_cast %265 : vector<8x8x16xf32> to vector<64x16xf32>
    %267 = arith.truncf %266 : vector<64x16xf32> to vector<64x16xbf16>
    %c33 = arith.constant 33 : index
    %c0_245 = arith.constant 0 : index
    %c0_246 = arith.constant 0 : index
    %268 = vector.load %arg5[%c33, %c0_245, %c0_246] : memref<45x16x16xbf16, #tpu.memory_space<vmem>>, vector<1x16x16xbf16>
    %269 = vector.shape_cast %268 : vector<1x16x16xbf16> to vector<16x16xbf16>
    %cst_247 = arith.constant dense<0.000000e+00> : vector<64x16xf32>
    %270 = tpu.matmul %267, %269, %cst_247 {dimension_numbers = #tpu.dot_dimension_numbers<[1], [0], [0], [1], [0, 0, 1, 1], [], []>} : vector<64x16xbf16>, vector<16x16xbf16>, vector<64x16xf32> -> vector<64x16xf32>
    %271 = arith.addf %264, %270 : vector<64x16xf32>
    %c2_248 = arith.constant 2 : index
    %c1_249 = arith.constant 1 : index
    %c0_250 = arith.constant 0 : index
    %272 = vector.load %arg10[%c2_248, %c1_249, %c0_250] : memref<10x10x16xf32, #tpu.memory_space<vmem>>, vector<8x8x16xf32>
    %273 = vector.shape_cast %272 : vector<8x8x16xf32> to vector<64x16xf32>
    %274 = arith.truncf %273 : vector<64x16xf32> to vector<64x16xbf16>
    %c34 = arith.constant 34 : index
    %c0_251 = arith.constant 0 : index
    %c0_252 = arith.constant 0 : index
    %275 = vector.load %arg5[%c34, %c0_251, %c0_252] : memref<45x16x16xbf16, #tpu.memory_space<vmem>>, vector<1x16x16xbf16>
    %276 = vector.shape_cast %275 : vector<1x16x16xbf16> to vector<16x16xbf16>
    %cst_253 = arith.constant dense<0.000000e+00> : vector<64x16xf32>
    %277 = tpu.matmul %274, %276, %cst_253 {dimension_numbers = #tpu.dot_dimension_numbers<[1], [0], [0], [1], [0, 0, 1, 1], [], []>} : vector<64x16xbf16>, vector<16x16xbf16>, vector<64x16xf32> -> vector<64x16xf32>
    %278 = arith.addf %271, %277 : vector<64x16xf32>
    %c2_254 = arith.constant 2 : index
    %c2_255 = arith.constant 2 : index
    %c0_256 = arith.constant 0 : index
    %279 = vector.load %arg10[%c2_254, %c2_255, %c0_256] : memref<10x10x16xf32, #tpu.memory_space<vmem>>, vector<8x8x16xf32>
    %280 = vector.shape_cast %279 : vector<8x8x16xf32> to vector<64x16xf32>
    %281 = arith.truncf %280 : vector<64x16xf32> to vector<64x16xbf16>
    %c35 = arith.constant 35 : index
    %c0_257 = arith.constant 0 : index
    %c0_258 = arith.constant 0 : index
    %282 = vector.load %arg5[%c35, %c0_257, %c0_258] : memref<45x16x16xbf16, #tpu.memory_space<vmem>>, vector<1x16x16xbf16>
    %283 = vector.shape_cast %282 : vector<1x16x16xbf16> to vector<16x16xbf16>
    %cst_259 = arith.constant dense<0.000000e+00> : vector<64x16xf32>
    %284 = tpu.matmul %281, %283, %cst_259 {dimension_numbers = #tpu.dot_dimension_numbers<[1], [0], [0], [1], [0, 0, 1, 1], [], []>} : vector<64x16xbf16>, vector<16x16xbf16>, vector<64x16xf32> -> vector<64x16xf32>
    %285 = arith.addf %278, %284 : vector<64x16xf32>
    %c3_260 = arith.constant 3 : index
    %c0_261 = arith.constant 0 : index
    %286 = vector.load %arg6[%c3_260, %c0_261] : memref<5x16xf32, #tpu.memory_space<vmem>>, vector<1x16xf32>
    %287 = vector.broadcast %286 : vector<1x16xf32> to vector<64x16xf32>
    %288 = arith.addf %285, %287 : vector<64x16xf32>
    %289 = arith.addf %288, %152 : vector<64x16xf32>
    %290 = vector.shape_cast %289 : vector<64x16xf32> to vector<8x8x16xf32>
    %c1_262 = arith.constant 1 : index
    %c1_263 = arith.constant 1 : index
    %c0_264 = arith.constant 0 : index
    %291 = vector.load %arg10[%c1_262, %c1_263, %c0_264] : memref<10x10x16xf32, #tpu.memory_space<vmem>>, vector<8x8x16xf32>
    tpu.vector_store %arg10[%c1_262, %c1_263, %c0_264], %290 {strides = array<i32>} : memref<10x10x16xf32, #tpu.memory_space<vmem>>, vector<8x8x16xf32>,
    %c0_265 = arith.constant 0 : index
    %c0_266 = arith.constant 0 : index
    %c0_267 = arith.constant 0 : index
    %292 = vector.load %arg10[%c0_265, %c0_266, %c0_267] : memref<10x10x16xf32, #tpu.memory_space<vmem>>, vector<8x8x16xf32>
    %293 = vector.shape_cast %292 : vector<8x8x16xf32> to vector<64x16xf32>
    %294 = arith.truncf %293 : vector<64x16xf32> to vector<64x16xbf16>
    %c36 = arith.constant 36 : index
    %c0_268 = arith.constant 0 : index
    %c0_269 = arith.constant 0 : index
    %295 = vector.load %arg5[%c36, %c0_268, %c0_269] : memref<45x16x16xbf16, #tpu.memory_space<vmem>>, vector<1x16x16xbf16>
    %296 = vector.shape_cast %295 : vector<1x16x16xbf16> to vector<16x16xbf16>
    %cst_270 = arith.constant dense<0.000000e+00> : vector<64x16xf32>
    %297 = tpu.matmul %294, %296, %cst_270 {dimension_numbers = #tpu.dot_dimension_numbers<[1], [0], [0], [1], [0, 0, 1, 1], [], []>} : vector<64x16xbf16>, vector<16x16xbf16>, vector<64x16xf32> -> vector<64x16xf32>
    %c0_271 = arith.constant 0 : index
    %c1_272 = arith.constant 1 : index
    %c0_273 = arith.constant 0 : index
    %298 = vector.load %arg10[%c0_271, %c1_272, %c0_273] : memref<10x10x16xf32, #tpu.memory_space<vmem>>, vector<8x8x16xf32>
    %299 = vector.shape_cast %298 : vector<8x8x16xf32> to vector<64x16xf32>
    %300 = arith.truncf %299 : vector<64x16xf32> to vector<64x16xbf16>
    %c37 = arith.constant 37 : index
    %c0_274 = arith.constant 0 : index
    %c0_275 = arith.constant 0 : index
    %301 = vector.load %arg5[%c37, %c0_274, %c0_275] : memref<45x16x16xbf16, #tpu.memory_space<vmem>>, vector<1x16x16xbf16>
    %302 = vector.shape_cast %301 : vector<1x16x16xbf16> to vector<16x16xbf16>
    %cst_276 = arith.constant dense<0.000000e+00> : vector<64x16xf32>
    %303 = tpu.matmul %300, %302, %cst_276 {dimension_numbers = #tpu.dot_dimension_numbers<[1], [0], [0], [1], [0, 0, 1, 1], [], []>} : vector<64x16xbf16>, vector<16x16xbf16>, vector<64x16xf32> -> vector<64x16xf32>
    %304 = arith.addf %297, %303 : vector<64x16xf32>
    %c0_277 = arith.constant 0 : index
    %c2_278 = arith.constant 2 : index
    %c0_279 = arith.constant 0 : index
    %305 = vector.load %arg10[%c0_277, %c2_278, %c0_279] : memref<10x10x16xf32, #tpu.memory_space<vmem>>, vector<8x8x16xf32>
    %306 = vector.shape_cast %305 : vector<8x8x16xf32> to vector<64x16xf32>
    %307 = arith.truncf %306 : vector<64x16xf32> to vector<64x16xbf16>
    %c38 = arith.constant 38 : index
    %c0_280 = arith.constant 0 : index
    %c0_281 = arith.constant 0 : index
    %308 = vector.load %arg5[%c38, %c0_280, %c0_281] : memref<45x16x16xbf16, #tpu.memory_space<vmem>>, vector<1x16x16xbf16>
    %309 = vector.shape_cast %308 : vector<1x16x16xbf16> to vector<16x16xbf16>
    %cst_282 = arith.constant dense<0.000000e+00> : vector<64x16xf32>
    %310 = tpu.matmul %307, %309, %cst_282 {dimension_numbers = #tpu.dot_dimension_numbers<[1], [0], [0], [1], [0, 0, 1, 1], [], []>} : vector<64x16xbf16>, vector<16x16xbf16>, vector<64x16xf32> -> vector<64x16xf32>
    %311 = arith.addf %304, %310 : vector<64x16xf32>
    %c1_283 = arith.constant 1 : index
    %c0_284 = arith.constant 0 : index
    %c0_285 = arith.constant 0 : index
    %312 = vector.load %arg10[%c1_283, %c0_284, %c0_285] : memref<10x10x16xf32, #tpu.memory_space<vmem>>, vector<8x8x16xf32>
    %313 = vector.shape_cast %312 : vector<8x8x16xf32> to vector<64x16xf32>
    %314 = arith.truncf %313 : vector<64x16xf32> to vector<64x16xbf16>
    %c39 = arith.constant 39 : index
    %c0_286 = arith.constant 0 : index
    %c0_287 = arith.constant 0 : index
    %315 = vector.load %arg5[%c39, %c0_286, %c0_287] : memref<45x16x16xbf16, #tpu.memory_space<vmem>>, vector<1x16x16xbf16>
    %316 = vector.shape_cast %315 : vector<1x16x16xbf16> to vector<16x16xbf16>
    %cst_288 = arith.constant dense<0.000000e+00> : vector<64x16xf32>
    %317 = tpu.matmul %314, %316, %cst_288 {dimension_numbers = #tpu.dot_dimension_numbers<[1], [0], [0], [1], [0, 0, 1, 1], [], []>} : vector<64x16xbf16>, vector<16x16xbf16>, vector<64x16xf32> -> vector<64x16xf32>
    %318 = arith.addf %311, %317 : vector<64x16xf32>
    %c1_289 = arith.constant 1 : index
    %c1_290 = arith.constant 1 : index
    %c0_291 = arith.constant 0 : index
    %319 = vector.load %arg10[%c1_289, %c1_290, %c0_291] : memref<10x10x16xf32, #tpu.memory_space<vmem>>, vector<8x8x16xf32>
    %320 = vector.shape_cast %319 : vector<8x8x16xf32> to vector<64x16xf32>
    %321 = arith.truncf %320 : vector<64x16xf32> to vector<64x16xbf16>
    %c40 = arith.constant 40 : index
    %c0_292 = arith.constant 0 : index
    %c0_293 = arith.constant 0 : index
    %322 = vector.load %arg5[%c40, %c0_292, %c0_293] : memref<45x16x16xbf16, #tpu.memory_space<vmem>>, vector<1x16x16xbf16>
    %323 = vector.shape_cast %322 : vector<1x16x16xbf16> to vector<16x16xbf16>
    %cst_294 = arith.constant dense<0.000000e+00> : vector<64x16xf32>
    %324 = tpu.matmul %321, %323, %cst_294 {dimension_numbers = #tpu.dot_dimension_numbers<[1], [0], [0], [1], [0, 0, 1, 1], [], []>} : vector<64x16xbf16>, vector<16x16xbf16>, vector<64x16xf32> -> vector<64x16xf32>
    %325 = arith.addf %318, %324 : vector<64x16xf32>
    %c1_295 = arith.constant 1 : index
    %c2_296 = arith.constant 2 : index
    %c0_297 = arith.constant 0 : index
    %326 = vector.load %arg10[%c1_295, %c2_296, %c0_297] : memref<10x10x16xf32, #tpu.memory_space<vmem>>, vector<8x8x16xf32>
    %327 = vector.shape_cast %326 : vector<8x8x16xf32> to vector<64x16xf32>
    %328 = arith.truncf %327 : vector<64x16xf32> to vector<64x16xbf16>
    %c41 = arith.constant 41 : index
    %c0_298 = arith.constant 0 : index
    %c0_299 = arith.constant 0 : index
    %329 = vector.load %arg5[%c41, %c0_298, %c0_299] : memref<45x16x16xbf16, #tpu.memory_space<vmem>>, vector<1x16x16xbf16>
    %330 = vector.shape_cast %329 : vector<1x16x16xbf16> to vector<16x16xbf16>
    %cst_300 = arith.constant dense<0.000000e+00> : vector<64x16xf32>
    %331 = tpu.matmul %328, %330, %cst_300 {dimension_numbers = #tpu.dot_dimension_numbers<[1], [0], [0], [1], [0, 0, 1, 1], [], []>} : vector<64x16xbf16>, vector<16x16xbf16>, vector<64x16xf32> -> vector<64x16xf32>
    %332 = arith.addf %325, %331 : vector<64x16xf32>
    %c2_301 = arith.constant 2 : index
    %c0_302 = arith.constant 0 : index
    %c0_303 = arith.constant 0 : index
    %333 = vector.load %arg10[%c2_301, %c0_302, %c0_303] : memref<10x10x16xf32, #tpu.memory_space<vmem>>, vector<8x8x16xf32>
    %334 = vector.shape_cast %333 : vector<8x8x16xf32> to vector<64x16xf32>
    %335 = arith.truncf %334 : vector<64x16xf32> to vector<64x16xbf16>
    %c42 = arith.constant 42 : index
    %c0_304 = arith.constant 0 : index
    %c0_305 = arith.constant 0 : index
    %336 = vector.load %arg5[%c42, %c0_304, %c0_305] : memref<45x16x16xbf16, #tpu.memory_space<vmem>>, vector<1x16x16xbf16>
    %337 = vector.shape_cast %336 : vector<1x16x16xbf16> to vector<16x16xbf16>
    %cst_306 = arith.constant dense<0.000000e+00> : vector<64x16xf32>
    %338 = tpu.matmul %335, %337, %cst_306 {dimension_numbers = #tpu.dot_dimension_numbers<[1], [0], [0], [1], [0, 0, 1, 1], [], []>} : vector<64x16xbf16>, vector<16x16xbf16>, vector<64x16xf32> -> vector<64x16xf32>
    %339 = arith.addf %332, %338 : vector<64x16xf32>
    %c2_307 = arith.constant 2 : index
    %c1_308 = arith.constant 1 : index
    %c0_309 = arith.constant 0 : index
    %340 = vector.load %arg10[%c2_307, %c1_308, %c0_309] : memref<10x10x16xf32, #tpu.memory_space<vmem>>, vector<8x8x16xf32>
    %341 = vector.shape_cast %340 : vector<8x8x16xf32> to vector<64x16xf32>
    %342 = arith.truncf %341 : vector<64x16xf32> to vector<64x16xbf16>
    %c43 = arith.constant 43 : index
    %c0_310 = arith.constant 0 : index
    %c0_311 = arith.constant 0 : index
    %343 = vector.load %arg5[%c43, %c0_310, %c0_311] : memref<45x16x16xbf16, #tpu.memory_space<vmem>>, vector<1x16x16xbf16>
    %344 = vector.shape_cast %343 : vector<1x16x16xbf16> to vector<16x16xbf16>
    %cst_312 = arith.constant dense<0.000000e+00> : vector<64x16xf32>
    %345 = tpu.matmul %342, %344, %cst_312 {dimension_numbers = #tpu.dot_dimension_numbers<[1], [0], [0], [1], [0, 0, 1, 1], [], []>} : vector<64x16xbf16>, vector<16x16xbf16>, vector<64x16xf32> -> vector<64x16xf32>
    %346 = arith.addf %339, %345 : vector<64x16xf32>
    %c2_313 = arith.constant 2 : index
    %c2_314 = arith.constant 2 : index
    %c0_315 = arith.constant 0 : index
    %347 = vector.load %arg10[%c2_313, %c2_314, %c0_315] : memref<10x10x16xf32, #tpu.memory_space<vmem>>, vector<8x8x16xf32>
    %348 = vector.shape_cast %347 : vector<8x8x16xf32> to vector<64x16xf32>
    %349 = arith.truncf %348 : vector<64x16xf32> to vector<64x16xbf16>
    %c44 = arith.constant 44 : index
    %c0_316 = arith.constant 0 : index
    %c0_317 = arith.constant 0 : index
    %350 = vector.load %arg5[%c44, %c0_316, %c0_317] : memref<45x16x16xbf16, #tpu.memory_space<vmem>>, vector<1x16x16xbf16>
    %351 = vector.shape_cast %350 : vector<1x16x16xbf16> to vector<16x16xbf16>
    %cst_318 = arith.constant dense<0.000000e+00> : vector<64x16xf32>
    %352 = tpu.matmul %349, %351, %cst_318 {dimension_numbers = #tpu.dot_dimension_numbers<[1], [0], [0], [1], [0, 0, 1, 1], [], []>} : vector<64x16xbf16>, vector<16x16xbf16>, vector<64x16xf32> -> vector<64x16xf32>
    %353 = arith.addf %346, %352 : vector<64x16xf32>
    %354 = arith.addf %15, %353 : vector<64x16xf32>
    %c4_319 = arith.constant 4 : index
    %c0_320 = arith.constant 0 : index
    %355 = vector.load %arg6[%c4_319, %c0_320] : memref<5x16xf32, #tpu.memory_space<vmem>>, vector<1x16xf32>
    %356 = vector.broadcast %355 : vector<1x16xf32> to vector<64x16xf32>
    %357 = arith.addf %354, %356 : vector<64x16xf32>
    %358 = vector.shape_cast %357 : vector<64x16xf32> to vector<8x8x16xf32>
    %c1_321 = arith.constant 1 : index
    %c1_322 = arith.constant 1 : index
    %c0_323 = arith.constant 0 : index
    %359 = vector.load %arg10[%c1_321, %c1_322, %c0_323] : memref<10x10x16xf32, #tpu.memory_space<vmem>>, vector<8x8x16xf32>
    tpu.vector_store %arg10[%c1_321, %c1_322, %c0_323], %358 {strides = array<i32>} : memref<10x10x16xf32, #tpu.memory_space<vmem>>, vector<8x8x16xf32>,
    %c0_324 = arith.constant 0 : index
    %c0_325 = arith.constant 0 : index
    %c0_326 = arith.constant 0 : index
    %360 = vector.load %arg10[%c0_324, %c0_325, %c0_326] : memref<10x10x16xf32, #tpu.memory_space<vmem>>, vector<8x8x16xf32>
    %361 = vector.shape_cast %360 : vector<8x8x16xf32> to vector<64x16xf32>
    %362 = arith.truncf %361 : vector<64x16xf32> to vector<64x16xbf16>
    %c0_327 = arith.constant 0 : index
    %c0_328 = arith.constant 0 : index
    %c0_329 = arith.constant 0 : index
    %363 = vector.load %arg7[%c0_327, %c0_328, %c0_329] : memref<9x16x64xbf16, #tpu.memory_space<vmem>>, vector<1x16x64xbf16>
    %364 = vector.shape_cast %363 : vector<1x16x64xbf16> to vector<16x64xbf16>
    %cst_330 = arith.constant dense<0.000000e+00> : vector<64x64xf32>
    %365 = tpu.matmul %362, %364, %cst_330 {dimension_numbers = #tpu.dot_dimension_numbers<[1], [0], [0], [1], [0, 0, 1, 1], [], []>} : vector<64x16xbf16>, vector<16x64xbf16>, vector<64x64xf32> -> vector<64x64xf32>
    %c0_331 = arith.constant 0 : index
    %c1_332 = arith.constant 1 : index
    %c0_333 = arith.constant 0 : index
    %366 = vector.load %arg10[%c0_331, %c1_332, %c0_333] : memref<10x10x16xf32, #tpu.memory_space<vmem>>, vector<8x8x16xf32>
    %367 = vector.shape_cast %366 : vector<8x8x16xf32> to vector<64x16xf32>
    %368 = arith.truncf %367 : vector<64x16xf32> to vector<64x16xbf16>
    %c1_334 = arith.constant 1 : index
    %c0_335 = arith.constant 0 : index
    %c0_336 = arith.constant 0 : index
    %369 = vector.load %arg7[%c1_334, %c0_335, %c0_336] : memref<9x16x64xbf16, #tpu.memory_space<vmem>>, vector<1x16x64xbf16>
    %370 = vector.shape_cast %369 : vector<1x16x64xbf16> to vector<16x64xbf16>
    %cst_337 = arith.constant dense<0.000000e+00> : vector<64x64xf32>
    %371 = tpu.matmul %368, %370, %cst_337 {dimension_numbers = #tpu.dot_dimension_numbers<[1], [0], [0], [1], [0, 0, 1, 1], [], []>} : vector<64x16xbf16>, vector<16x64xbf16>, vector<64x64xf32> -> vector<64x64xf32>
    %372 = arith.addf %365, %371 : vector<64x64xf32>
    %c0_338 = arith.constant 0 : index
    %c2_339 = arith.constant 2 : index
    %c0_340 = arith.constant 0 : index
    %373 = vector.load %arg10[%c0_338, %c2_339, %c0_340] : memref<10x10x16xf32, #tpu.memory_space<vmem>>, vector<8x8x16xf32>
    %374 = vector.shape_cast %373 : vector<8x8x16xf32> to vector<64x16xf32>
    %375 = arith.truncf %374 : vector<64x16xf32> to vector<64x16xbf16>
    %c2_341 = arith.constant 2 : index
    %c0_342 = arith.constant 0 : index
    %c0_343 = arith.constant 0 : index
    %376 = vector.load %arg7[%c2_341, %c0_342, %c0_343] : memref<9x16x64xbf16, #tpu.memory_space<vmem>>, vector<1x16x64xbf16>
    %377 = vector.shape_cast %376 : vector<1x16x64xbf16> to vector<16x64xbf16>
    %cst_344 = arith.constant dense<0.000000e+00> : vector<64x64xf32>
    %378 = tpu.matmul %375, %377, %cst_344 {dimension_numbers = #tpu.dot_dimension_numbers<[1], [0], [0], [1], [0, 0, 1, 1], [], []>} : vector<64x16xbf16>, vector<16x64xbf16>, vector<64x64xf32> -> vector<64x64xf32>
    %379 = arith.addf %372, %378 : vector<64x64xf32>
    %c1_345 = arith.constant 1 : index
    %c0_346 = arith.constant 0 : index
    %c0_347 = arith.constant 0 : index
    %380 = vector.load %arg10[%c1_345, %c0_346, %c0_347] : memref<10x10x16xf32, #tpu.memory_space<vmem>>, vector<8x8x16xf32>
    %381 = vector.shape_cast %380 : vector<8x8x16xf32> to vector<64x16xf32>
    %382 = arith.truncf %381 : vector<64x16xf32> to vector<64x16xbf16>
    %c3_348 = arith.constant 3 : index
    %c0_349 = arith.constant 0 : index
    %c0_350 = arith.constant 0 : index
    %383 = vector.load %arg7[%c3_348, %c0_349, %c0_350] : memref<9x16x64xbf16, #tpu.memory_space<vmem>>, vector<1x16x64xbf16>
    %384 = vector.shape_cast %383 : vector<1x16x64xbf16> to vector<16x64xbf16>
    %cst_351 = arith.constant dense<0.000000e+00> : vector<64x64xf32>
    %385 = tpu.matmul %382, %384, %cst_351 {dimension_numbers = #tpu.dot_dimension_numbers<[1], [0], [0], [1], [0, 0, 1, 1], [], []>} : vector<64x16xbf16>, vector<16x64xbf16>, vector<64x64xf32> -> vector<64x64xf32>
    %386 = arith.addf %379, %385 : vector<64x64xf32>
    %c1_352 = arith.constant 1 : index
    %c1_353 = arith.constant 1 : index
    %c0_354 = arith.constant 0 : index
    %387 = vector.load %arg10[%c1_352, %c1_353, %c0_354] : memref<10x10x16xf32, #tpu.memory_space<vmem>>, vector<8x8x16xf32>
    %388 = vector.shape_cast %387 : vector<8x8x16xf32> to vector<64x16xf32>
    %389 = arith.truncf %388 : vector<64x16xf32> to vector<64x16xbf16>
    %c4_355 = arith.constant 4 : index
    %c0_356 = arith.constant 0 : index
    %c0_357 = arith.constant 0 : index
    %390 = vector.load %arg7[%c4_355, %c0_356, %c0_357] : memref<9x16x64xbf16, #tpu.memory_space<vmem>>, vector<1x16x64xbf16>
    %391 = vector.shape_cast %390 : vector<1x16x64xbf16> to vector<16x64xbf16>
    %cst_358 = arith.constant dense<0.000000e+00> : vector<64x64xf32>
    %392 = tpu.matmul %389, %391, %cst_358 {dimension_numbers = #tpu.dot_dimension_numbers<[1], [0], [0], [1], [0, 0, 1, 1], [], []>} : vector<64x16xbf16>, vector<16x64xbf16>, vector<64x64xf32> -> vector<64x64xf32>
    %393 = arith.addf %386, %392 : vector<64x64xf32>
    %c1_359 = arith.constant 1 : index
    %c2_360 = arith.constant 2 : index
    %c0_361 = arith.constant 0 : index
    %394 = vector.load %arg10[%c1_359, %c2_360, %c0_361] : memref<10x10x16xf32, #tpu.memory_space<vmem>>, vector<8x8x16xf32>
    %395 = vector.shape_cast %394 : vector<8x8x16xf32> to vector<64x16xf32>
    %396 = arith.truncf %395 : vector<64x16xf32> to vector<64x16xbf16>
    %c5_362 = arith.constant 5 : index
    %c0_363 = arith.constant 0 : index
    %c0_364 = arith.constant 0 : index
    %397 = vector.load %arg7[%c5_362, %c0_363, %c0_364] : memref<9x16x64xbf16, #tpu.memory_space<vmem>>, vector<1x16x64xbf16>
    %398 = vector.shape_cast %397 : vector<1x16x64xbf16> to vector<16x64xbf16>
    %cst_365 = arith.constant dense<0.000000e+00> : vector<64x64xf32>
    %399 = tpu.matmul %396, %398, %cst_365 {dimension_numbers = #tpu.dot_dimension_numbers<[1], [0], [0], [1], [0, 0, 1, 1], [], []>} : vector<64x16xbf16>, vector<16x64xbf16>, vector<64x64xf32> -> vector<64x64xf32>
    %400 = arith.addf %393, %399 : vector<64x64xf32>
    %c2_366 = arith.constant 2 : index
    %c0_367 = arith.constant 0 : index
    %c0_368 = arith.constant 0 : index
    %401 = vector.load %arg10[%c2_366, %c0_367, %c0_368] : memref<10x10x16xf32, #tpu.memory_space<vmem>>, vector<8x8x16xf32>
    %402 = vector.shape_cast %401 : vector<8x8x16xf32> to vector<64x16xf32>
    %403 = arith.truncf %402 : vector<64x16xf32> to vector<64x16xbf16>
    %c6_369 = arith.constant 6 : index
    %c0_370 = arith.constant 0 : index
    %c0_371 = arith.constant 0 : index
    %404 = vector.load %arg7[%c6_369, %c0_370, %c0_371] : memref<9x16x64xbf16, #tpu.memory_space<vmem>>, vector<1x16x64xbf16>
    %405 = vector.shape_cast %404 : vector<1x16x64xbf16> to vector<16x64xbf16>
    %cst_372 = arith.constant dense<0.000000e+00> : vector<64x64xf32>
    %406 = tpu.matmul %403, %405, %cst_372 {dimension_numbers = #tpu.dot_dimension_numbers<[1], [0], [0], [1], [0, 0, 1, 1], [], []>} : vector<64x16xbf16>, vector<16x64xbf16>, vector<64x64xf32> -> vector<64x64xf32>
    %407 = arith.addf %400, %406 : vector<64x64xf32>
    %c2_373 = arith.constant 2 : index
    %c1_374 = arith.constant 1 : index
    %c0_375 = arith.constant 0 : index
    %408 = vector.load %arg10[%c2_373, %c1_374, %c0_375] : memref<10x10x16xf32, #tpu.memory_space<vmem>>, vector<8x8x16xf32>
    %409 = vector.shape_cast %408 : vector<8x8x16xf32> to vector<64x16xf32>
    %410 = arith.truncf %409 : vector<64x16xf32> to vector<64x16xbf16>
    %c7_376 = arith.constant 7 : index
    %c0_377 = arith.constant 0 : index
    %c0_378 = arith.constant 0 : index
    %411 = vector.load %arg7[%c7_376, %c0_377, %c0_378] : memref<9x16x64xbf16, #tpu.memory_space<vmem>>, vector<1x16x64xbf16>
    %412 = vector.shape_cast %411 : vector<1x16x64xbf16> to vector<16x64xbf16>
    %cst_379 = arith.constant dense<0.000000e+00> : vector<64x64xf32>
    %413 = tpu.matmul %410, %412, %cst_379 {dimension_numbers = #tpu.dot_dimension_numbers<[1], [0], [0], [1], [0, 0, 1, 1], [], []>} : vector<64x16xbf16>, vector<16x64xbf16>, vector<64x64xf32> -> vector<64x64xf32>
    %414 = arith.addf %407, %413 : vector<64x64xf32>
    %c2_380 = arith.constant 2 : index
    %c2_381 = arith.constant 2 : index
    %c0_382 = arith.constant 0 : index
    %415 = vector.load %arg10[%c2_380, %c2_381, %c0_382] : memref<10x10x16xf32, #tpu.memory_space<vmem>>, vector<8x8x16xf32>
    %416 = vector.shape_cast %415 : vector<8x8x16xf32> to vector<64x16xf32>
    %417 = arith.truncf %416 : vector<64x16xf32> to vector<64x16xbf16>
    %c8_383 = arith.constant 8 : index
    %c0_384 = arith.constant 0 : index
    %c0_385 = arith.constant 0 : index
    %418 = vector.load %arg7[%c8_383, %c0_384, %c0_385] : memref<9x16x64xbf16, #tpu.memory_space<vmem>>, vector<1x16x64xbf16>
    %419 = vector.shape_cast %418 : vector<1x16x64xbf16> to vector<16x64xbf16>
    %cst_386 = arith.constant dense<0.000000e+00> : vector<64x64xf32>
    %420 = tpu.matmul %417, %419, %cst_386 {dimension_numbers = #tpu.dot_dimension_numbers<[1], [0], [0], [1], [0, 0, 1, 1], [], []>} : vector<64x16xbf16>, vector<16x64xbf16>, vector<64x64xf32> -> vector<64x64xf32>
    %421 = arith.addf %414, %420 : vector<64x64xf32>
    %c0_387 = arith.constant 0 : index
    %c0_388 = arith.constant 0 : index
    %422 = vector.load %arg8[%c0_387, %c0_388] : memref<1x64xf32, #tpu.memory_space<vmem>>, vector<1x64xf32>
    %423 = vector.broadcast %422 : vector<1x64xf32> to vector<64x64xf32>
    %424 = arith.addf %421, %423 : vector<64x64xf32>
    %425 = arith.truncf %424 : vector<64x64xf32> to vector<64x64xbf16>
    %c0_389 = arith.constant 0 : index
    %c0_390 = arith.constant 0 : index
    %c0_391 = arith.constant 0 : index
    %426 = vector.load %arg9[%c0_389, %c0_390, %c0_391] : memref<1x64x64xbf16, #tpu.memory_space<vmem>>, vector<1x64x64xbf16>
    %427 = vector.shape_cast %426 : vector<1x64x64xbf16> to vector<64x64xbf16>
    %428 = vector.shape_cast %425 : vector<64x64xbf16> to vector<1x64x64xbf16>
    tpu.vector_store %arg9[%c0_389, %c0_390, %c0_391], %428 {strides = array<i32>} : memref<1x64x64xbf16, #tpu.memory_space<vmem>>, vector<1x64x64xbf16>,
    return
  }
  func.func @transform_0(%arg0: i32) -> (i32, i32, i32) {
    %c0_i32 = arith.constant 0 : i32
    %c0_i32_0 = arith.constant 0 : i32
    %c0_i32_1 = arith.constant 0 : i32
    return %arg0, %c0_i32, %c0_i32_0 : i32, i32, i32
  }
  func.func @transform_1(%arg0: i32) -> (i32, i32, i32) {
    %c0_i32 = arith.constant 0 : i32
    %c0_i32_0 = arith.constant 0 : i32
    %c0_i32_1 = arith.constant 0 : i32
    return %arg0, %c0_i32, %c0_i32_0 : i32, i32, i32
  }
  func.func @transform_2(%arg0: i32) -> (i32, i32) {
    %c0_i32 = arith.constant 0 : i32
    %c0_i32_0 = arith.constant 0 : i32
    %c0_i32_1 = arith.constant 0 : i32
    return %c0_i32, %c0_i32_0 : i32, i32
  }
  func.func @transform_3(%arg0: i32) -> (i32, i32) {
    %c0_i32 = arith.constant 0 : i32
    %c0_i32_0 = arith.constant 0 : i32
    %c0_i32_1 = arith.constant 0 : i32
    return %c0_i32, %c0_i32_0 : i32, i32
  }
  func.func @transform_4(%arg0: i32) -> (i32, i32, i32) {
    %c0_i32 = arith.constant 0 : i32
    %c0_i32_0 = arith.constant 0 : i32
    %c0_i32_1 = arith.constant 0 : i32
    %c0_i32_2 = arith.constant 0 : i32
    return %c0_i32, %c0_i32_0, %c0_i32_1 : i32, i32, i32
  }
  func.func @transform_5(%arg0: i32) -> (i32, i32) {
    %c0_i32 = arith.constant 0 : i32
    %c0_i32_0 = arith.constant 0 : i32
    %c0_i32_1 = arith.constant 0 : i32
    return %c0_i32, %c0_i32_0 : i32, i32
  }
  func.func @transform_6(%arg0: i32) -> (i32, i32, i32) {
    %c0_i32 = arith.constant 0 : i32
    %c0_i32_0 = arith.constant 0 : i32
    %c0_i32_1 = arith.constant 0 : i32
    %c0_i32_2 = arith.constant 0 : i32
    return %c0_i32, %c0_i32_0, %c0_i32_1 : i32, i32, i32
  }
  func.func @transform_7(%arg0: i32) -> (i32, i32) {
    %c0_i32 = arith.constant 0 : i32
    %c0_i32_0 = arith.constant 0 : i32
    %c0_i32_1 = arith.constant 0 : i32
    return %c0_i32, %c0_i32_0 : i32, i32
  }
  func.func @transform_8(%arg0: i32) -> (i32, i32, i32) {
    %c0_i32 = arith.constant 0 : i32
    %c0_i32_0 = arith.constant 0 : i32
    %c0_i32_1 = arith.constant 0 : i32
    return %arg0, %c0_i32, %c0_i32_0 : i32, i32, i32
  }
}

module attributes {stable_mosaic.version = 11 : i64} {
  func.func @_decunit_post_kernel(%arg0: i32, %arg1: memref<1x16x16x16xbf16, #tpu.memory_space<vmem>>, %arg2: memref<27x16x16xbf16, #tpu.memory_space<vmem>>, %arg3: memref<1x16xf32, #tpu.memory_space<vmem>>, %arg4: memref<16x10xbf16, #tpu.memory_space<vmem>>, %arg5: memref<1x10xf32, #tpu.memory_space<vmem>>, %arg6: memref<1x256x16xf32, #tpu.memory_space<vmem>>, %arg7: memref<1x256x10xf32, #tpu.memory_space<vmem>>, %arg8: memref<24x24x16xf32, #tpu.memory_space<vmem>>) attributes {dimension_semantics = [#tpu.dimension_semantics<parallel>], iteration_bounds = array<i64: 2>, scalar_prefetch = 0 : i64, scratch_operands = 1 : i64, tpu.core_type = #tpu.core_type<tc>, window_params = [{transform_indices = @transform_0, window_bounds = array<i64: 1, 16, 16, 16>}, {pipeline_mode = #tpu.pipeline_mode<synchronous>, transform_indices = @transform_1, window_bounds = array<i64: 27, 16, 16>}, {pipeline_mode = #tpu.pipeline_mode<synchronous>, transform_indices = @transform_2, window_bounds = array<i64: 1, 16>}, {pipeline_mode = #tpu.pipeline_mode<synchronous>, transform_indices = @transform_3, window_bounds = array<i64: 16, 10>}, {pipeline_mode = #tpu.pipeline_mode<synchronous>, transform_indices = @transform_4, window_bounds = array<i64: 1, 10>}, {transform_indices = @transform_5, window_bounds = array<i64: 1, 256, 16>}, {transform_indices = @transform_6, window_bounds = array<i64: 1, 256, 10>}]} {
    %cst = arith.constant 0.000000e+00 : f32
    %0 = vector.broadcast %cst : f32 to vector<4x24x16xf32>
    %c0 = arith.constant 0 : index
    %c0_0 = arith.constant 0 : index
    %c0_1 = arith.constant 0 : index
    %1 = vector.load %arg8[%c0, %c0_0, %c0_1] : memref<24x24x16xf32, #tpu.memory_space<vmem>>, vector<4x24x16xf32>
    tpu.vector_store %arg8[%c0, %c0_0, %c0_1], %0 {strides = array<i32>} : memref<24x24x16xf32, #tpu.memory_space<vmem>>, vector<4x24x16xf32>,
    %c20 = arith.constant 20 : index
    %c0_2 = arith.constant 0 : index
    %c0_3 = arith.constant 0 : index
    %2 = vector.load %arg8[%c20, %c0_2, %c0_3] : memref<24x24x16xf32, #tpu.memory_space<vmem>>, vector<4x24x16xf32>
    tpu.vector_store %arg8[%c20, %c0_2, %c0_3], %0 {strides = array<i32>} : memref<24x24x16xf32, #tpu.memory_space<vmem>>, vector<4x24x16xf32>,
    %cst_4 = arith.constant 0.000000e+00 : f32
    %3 = vector.broadcast %cst_4 : f32 to vector<24x4x16xf32>
    %c0_5 = arith.constant 0 : index
    %c0_6 = arith.constant 0 : index
    %c0_7 = arith.constant 0 : index
    %4 = vector.load %arg8[%c0_5, %c0_6, %c0_7] : memref<24x24x16xf32, #tpu.memory_space<vmem>>, vector<24x4x16xf32>
    tpu.vector_store %arg8[%c0_5, %c0_6, %c0_7], %3 {strides = array<i32>} : memref<24x24x16xf32, #tpu.memory_space<vmem>>, vector<24x4x16xf32>,
    %c0_8 = arith.constant 0 : index
    %c20_9 = arith.constant 20 : index
    %c0_10 = arith.constant 0 : index
    %5 = vector.load %arg8[%c0_8, %c20_9, %c0_10] : memref<24x24x16xf32, #tpu.memory_space<vmem>>, vector<24x4x16xf32>
    tpu.vector_store %arg8[%c0_8, %c20_9, %c0_10], %3 {strides = array<i32>} : memref<24x24x16xf32, #tpu.memory_space<vmem>>, vector<24x4x16xf32>,
    %c0_11 = arith.constant 0 : index
    %c0_12 = arith.constant 0 : index
    %c0_13 = arith.constant 0 : index
    %c0_14 = arith.constant 0 : index
    %6 = vector.load %arg1[%c0_11, %c0_12, %c0_13, %c0_14] : memref<1x16x16x16xbf16, #tpu.memory_space<vmem>>, vector<1x16x16x16xbf16>
    %7 = vector.shape_cast %6 : vector<1x16x16x16xbf16> to vector<16x16x16xbf16>
    %8 = arith.extf %7 : vector<16x16x16xbf16> to vector<16x16x16xf32>
    %c4 = arith.constant 4 : index
    %c4_15 = arith.constant 4 : index
    %c0_16 = arith.constant 0 : index
    %9 = vector.load %arg8[%c4, %c4_15, %c0_16] : memref<24x24x16xf32, #tpu.memory_space<vmem>>, vector<16x16x16xf32>
    tpu.vector_store %arg8[%c4, %c4_15, %c0_16], %8 {strides = array<i32>} : memref<24x24x16xf32, #tpu.memory_space<vmem>>, vector<16x16x16xf32>,
    %c3 = arith.constant 3 : index
    %c3_17 = arith.constant 3 : index
    %c0_18 = arith.constant 0 : index
    %10 = vector.load %arg8[%c3, %c3_17, %c0_18] : memref<24x24x16xf32, #tpu.memory_space<vmem>>, vector<16x16x16xf32>
    %11 = vector.shape_cast %10 : vector<16x16x16xf32> to vector<256x16xf32>
    %12 = arith.truncf %11 : vector<256x16xf32> to vector<256x16xbf16>
    %c0_19 = arith.constant 0 : index
    %c0_20 = arith.constant 0 : index
    %c0_21 = arith.constant 0 : index
    %13 = vector.load %arg2[%c0_19, %c0_20, %c0_21] : memref<27x16x16xbf16, #tpu.memory_space<vmem>>, vector<1x16x16xbf16>
    %14 = vector.shape_cast %13 : vector<1x16x16xbf16> to vector<16x16xbf16>
    %cst_22 = arith.constant dense<0.000000e+00> : vector<256x16xf32>
    %15 = tpu.matmul %12, %14, %cst_22 {dimension_numbers = #tpu.dot_dimension_numbers<[1], [0], [0], [1], [0, 0, 1, 1], [], []>} : vector<256x16xbf16>, vector<16x16xbf16>, vector<256x16xf32> -> vector<256x16xf32>
    %c3_23 = arith.constant 3 : index
    %c4_24 = arith.constant 4 : index
    %c0_25 = arith.constant 0 : index
    %16 = vector.load %arg8[%c3_23, %c4_24, %c0_25] : memref<24x24x16xf32, #tpu.memory_space<vmem>>, vector<16x16x16xf32>
    %17 = vector.shape_cast %16 : vector<16x16x16xf32> to vector<256x16xf32>
    %18 = arith.truncf %17 : vector<256x16xf32> to vector<256x16xbf16>
    %c1 = arith.constant 1 : index
    %c0_26 = arith.constant 0 : index
    %c0_27 = arith.constant 0 : index
    %19 = vector.load %arg2[%c1, %c0_26, %c0_27] : memref<27x16x16xbf16, #tpu.memory_space<vmem>>, vector<1x16x16xbf16>
    %20 = vector.shape_cast %19 : vector<1x16x16xbf16> to vector<16x16xbf16>
    %cst_28 = arith.constant dense<0.000000e+00> : vector<256x16xf32>
    %21 = tpu.matmul %18, %20, %cst_28 {dimension_numbers = #tpu.dot_dimension_numbers<[1], [0], [0], [1], [0, 0, 1, 1], [], []>} : vector<256x16xbf16>, vector<16x16xbf16>, vector<256x16xf32> -> vector<256x16xf32>
    %22 = arith.addf %15, %21 : vector<256x16xf32>
    %c3_29 = arith.constant 3 : index
    %c5 = arith.constant 5 : index
    %c0_30 = arith.constant 0 : index
    %23 = vector.load %arg8[%c3_29, %c5, %c0_30] : memref<24x24x16xf32, #tpu.memory_space<vmem>>, vector<16x16x16xf32>
    %24 = vector.shape_cast %23 : vector<16x16x16xf32> to vector<256x16xf32>
    %25 = arith.truncf %24 : vector<256x16xf32> to vector<256x16xbf16>
    %c2 = arith.constant 2 : index
    %c0_31 = arith.constant 0 : index
    %c0_32 = arith.constant 0 : index
    %26 = vector.load %arg2[%c2, %c0_31, %c0_32] : memref<27x16x16xbf16, #tpu.memory_space<vmem>>, vector<1x16x16xbf16>
    %27 = vector.shape_cast %26 : vector<1x16x16xbf16> to vector<16x16xbf16>
    %cst_33 = arith.constant dense<0.000000e+00> : vector<256x16xf32>
    %28 = tpu.matmul %25, %27, %cst_33 {dimension_numbers = #tpu.dot_dimension_numbers<[1], [0], [0], [1], [0, 0, 1, 1], [], []>} : vector<256x16xbf16>, vector<16x16xbf16>, vector<256x16xf32> -> vector<256x16xf32>
    %29 = arith.addf %22, %28 : vector<256x16xf32>
    %c4_34 = arith.constant 4 : index
    %c3_35 = arith.constant 3 : index
    %c0_36 = arith.constant 0 : index
    %30 = vector.load %arg8[%c4_34, %c3_35, %c0_36] : memref<24x24x16xf32, #tpu.memory_space<vmem>>, vector<16x16x16xf32>
    %31 = vector.shape_cast %30 : vector<16x16x16xf32> to vector<256x16xf32>
    %32 = arith.truncf %31 : vector<256x16xf32> to vector<256x16xbf16>
    %c3_37 = arith.constant 3 : index
    %c0_38 = arith.constant 0 : index
    %c0_39 = arith.constant 0 : index
    %33 = vector.load %arg2[%c3_37, %c0_38, %c0_39] : memref<27x16x16xbf16, #tpu.memory_space<vmem>>, vector<1x16x16xbf16>
    %34 = vector.shape_cast %33 : vector<1x16x16xbf16> to vector<16x16xbf16>
    %cst_40 = arith.constant dense<0.000000e+00> : vector<256x16xf32>
    %35 = tpu.matmul %32, %34, %cst_40 {dimension_numbers = #tpu.dot_dimension_numbers<[1], [0], [0], [1], [0, 0, 1, 1], [], []>} : vector<256x16xbf16>, vector<16x16xbf16>, vector<256x16xf32> -> vector<256x16xf32>
    %36 = arith.addf %29, %35 : vector<256x16xf32>
    %c4_41 = arith.constant 4 : index
    %c4_42 = arith.constant 4 : index
    %c0_43 = arith.constant 0 : index
    %37 = vector.load %arg8[%c4_41, %c4_42, %c0_43] : memref<24x24x16xf32, #tpu.memory_space<vmem>>, vector<16x16x16xf32>
    %38 = vector.shape_cast %37 : vector<16x16x16xf32> to vector<256x16xf32>
    %39 = arith.truncf %38 : vector<256x16xf32> to vector<256x16xbf16>
    %c4_44 = arith.constant 4 : index
    %c0_45 = arith.constant 0 : index
    %c0_46 = arith.constant 0 : index
    %40 = vector.load %arg2[%c4_44, %c0_45, %c0_46] : memref<27x16x16xbf16, #tpu.memory_space<vmem>>, vector<1x16x16xbf16>
    %41 = vector.shape_cast %40 : vector<1x16x16xbf16> to vector<16x16xbf16>
    %cst_47 = arith.constant dense<0.000000e+00> : vector<256x16xf32>
    %42 = tpu.matmul %39, %41, %cst_47 {dimension_numbers = #tpu.dot_dimension_numbers<[1], [0], [0], [1], [0, 0, 1, 1], [], []>} : vector<256x16xbf16>, vector<16x16xbf16>, vector<256x16xf32> -> vector<256x16xf32>
    %43 = arith.addf %36, %42 : vector<256x16xf32>
    %c4_48 = arith.constant 4 : index
    %c5_49 = arith.constant 5 : index
    %c0_50 = arith.constant 0 : index
    %44 = vector.load %arg8[%c4_48, %c5_49, %c0_50] : memref<24x24x16xf32, #tpu.memory_space<vmem>>, vector<16x16x16xf32>
    %45 = vector.shape_cast %44 : vector<16x16x16xf32> to vector<256x16xf32>
    %46 = arith.truncf %45 : vector<256x16xf32> to vector<256x16xbf16>
    %c5_51 = arith.constant 5 : index
    %c0_52 = arith.constant 0 : index
    %c0_53 = arith.constant 0 : index
    %47 = vector.load %arg2[%c5_51, %c0_52, %c0_53] : memref<27x16x16xbf16, #tpu.memory_space<vmem>>, vector<1x16x16xbf16>
    %48 = vector.shape_cast %47 : vector<1x16x16xbf16> to vector<16x16xbf16>
    %cst_54 = arith.constant dense<0.000000e+00> : vector<256x16xf32>
    %49 = tpu.matmul %46, %48, %cst_54 {dimension_numbers = #tpu.dot_dimension_numbers<[1], [0], [0], [1], [0, 0, 1, 1], [], []>} : vector<256x16xbf16>, vector<16x16xbf16>, vector<256x16xf32> -> vector<256x16xf32>
    %50 = arith.addf %43, %49 : vector<256x16xf32>
    %c5_55 = arith.constant 5 : index
    %c3_56 = arith.constant 3 : index
    %c0_57 = arith.constant 0 : index
    %51 = vector.load %arg8[%c5_55, %c3_56, %c0_57] : memref<24x24x16xf32, #tpu.memory_space<vmem>>, vector<16x16x16xf32>
    %52 = vector.shape_cast %51 : vector<16x16x16xf32> to vector<256x16xf32>
    %53 = arith.truncf %52 : vector<256x16xf32> to vector<256x16xbf16>
    %c6 = arith.constant 6 : index
    %c0_58 = arith.constant 0 : index
    %c0_59 = arith.constant 0 : index
    %54 = vector.load %arg2[%c6, %c0_58, %c0_59] : memref<27x16x16xbf16, #tpu.memory_space<vmem>>, vector<1x16x16xbf16>
    %55 = vector.shape_cast %54 : vector<1x16x16xbf16> to vector<16x16xbf16>
    %cst_60 = arith.constant dense<0.000000e+00> : vector<256x16xf32>
    %56 = tpu.matmul %53, %55, %cst_60 {dimension_numbers = #tpu.dot_dimension_numbers<[1], [0], [0], [1], [0, 0, 1, 1], [], []>} : vector<256x16xbf16>, vector<16x16xbf16>, vector<256x16xf32> -> vector<256x16xf32>
    %57 = arith.addf %50, %56 : vector<256x16xf32>
    %c5_61 = arith.constant 5 : index
    %c4_62 = arith.constant 4 : index
    %c0_63 = arith.constant 0 : index
    %58 = vector.load %arg8[%c5_61, %c4_62, %c0_63] : memref<24x24x16xf32, #tpu.memory_space<vmem>>, vector<16x16x16xf32>
    %59 = vector.shape_cast %58 : vector<16x16x16xf32> to vector<256x16xf32>
    %60 = arith.truncf %59 : vector<256x16xf32> to vector<256x16xbf16>
    %c7 = arith.constant 7 : index
    %c0_64 = arith.constant 0 : index
    %c0_65 = arith.constant 0 : index
    %61 = vector.load %arg2[%c7, %c0_64, %c0_65] : memref<27x16x16xbf16, #tpu.memory_space<vmem>>, vector<1x16x16xbf16>
    %62 = vector.shape_cast %61 : vector<1x16x16xbf16> to vector<16x16xbf16>
    %cst_66 = arith.constant dense<0.000000e+00> : vector<256x16xf32>
    %63 = tpu.matmul %60, %62, %cst_66 {dimension_numbers = #tpu.dot_dimension_numbers<[1], [0], [0], [1], [0, 0, 1, 1], [], []>} : vector<256x16xbf16>, vector<16x16xbf16>, vector<256x16xf32> -> vector<256x16xf32>
    %64 = arith.addf %57, %63 : vector<256x16xf32>
    %c5_67 = arith.constant 5 : index
    %c5_68 = arith.constant 5 : index
    %c0_69 = arith.constant 0 : index
    %65 = vector.load %arg8[%c5_67, %c5_68, %c0_69] : memref<24x24x16xf32, #tpu.memory_space<vmem>>, vector<16x16x16xf32>
    %66 = vector.shape_cast %65 : vector<16x16x16xf32> to vector<256x16xf32>
    %67 = arith.truncf %66 : vector<256x16xf32> to vector<256x16xbf16>
    %c8 = arith.constant 8 : index
    %c0_70 = arith.constant 0 : index
    %c0_71 = arith.constant 0 : index
    %68 = vector.load %arg2[%c8, %c0_70, %c0_71] : memref<27x16x16xbf16, #tpu.memory_space<vmem>>, vector<1x16x16xbf16>
    %69 = vector.shape_cast %68 : vector<1x16x16xbf16> to vector<16x16xbf16>
    %cst_72 = arith.constant dense<0.000000e+00> : vector<256x16xf32>
    %70 = tpu.matmul %67, %69, %cst_72 {dimension_numbers = #tpu.dot_dimension_numbers<[1], [0], [0], [1], [0, 0, 1, 1], [], []>} : vector<256x16xbf16>, vector<16x16xbf16>, vector<256x16xf32> -> vector<256x16xf32>
    %71 = arith.addf %64, %70 : vector<256x16xf32>
    %c2_73 = arith.constant 2 : index
    %c2_74 = arith.constant 2 : index
    %c0_75 = arith.constant 0 : index
    %72 = vector.load %arg8[%c2_73, %c2_74, %c0_75] : memref<24x24x16xf32, #tpu.memory_space<vmem>>, vector<16x16x16xf32>
    %73 = vector.shape_cast %72 : vector<16x16x16xf32> to vector<256x16xf32>
    %74 = arith.truncf %73 : vector<256x16xf32> to vector<256x16xbf16>
    %c9 = arith.constant 9 : index
    %c0_76 = arith.constant 0 : index
    %c0_77 = arith.constant 0 : index
    %75 = vector.load %arg2[%c9, %c0_76, %c0_77] : memref<27x16x16xbf16, #tpu.memory_space<vmem>>, vector<1x16x16xbf16>
    %76 = vector.shape_cast %75 : vector<1x16x16xbf16> to vector<16x16xbf16>
    %cst_78 = arith.constant dense<0.000000e+00> : vector<256x16xf32>
    %77 = tpu.matmul %74, %76, %cst_78 {dimension_numbers = #tpu.dot_dimension_numbers<[1], [0], [0], [1], [0, 0, 1, 1], [], []>} : vector<256x16xbf16>, vector<16x16xbf16>, vector<256x16xf32> -> vector<256x16xf32>
    %c2_79 = arith.constant 2 : index
    %c4_80 = arith.constant 4 : index
    %c0_81 = arith.constant 0 : index
    %78 = vector.load %arg8[%c2_79, %c4_80, %c0_81] : memref<24x24x16xf32, #tpu.memory_space<vmem>>, vector<16x16x16xf32>
    %79 = vector.shape_cast %78 : vector<16x16x16xf32> to vector<256x16xf32>
    %80 = arith.truncf %79 : vector<256x16xf32> to vector<256x16xbf16>
    %c10 = arith.constant 10 : index
    %c0_82 = arith.constant 0 : index
    %c0_83 = arith.constant 0 : index
    %81 = vector.load %arg2[%c10, %c0_82, %c0_83] : memref<27x16x16xbf16, #tpu.memory_space<vmem>>, vector<1x16x16xbf16>
    %82 = vector.shape_cast %81 : vector<1x16x16xbf16> to vector<16x16xbf16>
    %cst_84 = arith.constant dense<0.000000e+00> : vector<256x16xf32>
    %83 = tpu.matmul %80, %82, %cst_84 {dimension_numbers = #tpu.dot_dimension_numbers<[1], [0], [0], [1], [0, 0, 1, 1], [], []>} : vector<256x16xbf16>, vector<16x16xbf16>, vector<256x16xf32> -> vector<256x16xf32>
    %84 = arith.addf %77, %83 : vector<256x16xf32>
    %c2_85 = arith.constant 2 : index
    %c6_86 = arith.constant 6 : index
    %c0_87 = arith.constant 0 : index
    %85 = vector.load %arg8[%c2_85, %c6_86, %c0_87] : memref<24x24x16xf32, #tpu.memory_space<vmem>>, vector<16x16x16xf32>
    %86 = vector.shape_cast %85 : vector<16x16x16xf32> to vector<256x16xf32>
    %87 = arith.truncf %86 : vector<256x16xf32> to vector<256x16xbf16>
    %c11 = arith.constant 11 : index
    %c0_88 = arith.constant 0 : index
    %c0_89 = arith.constant 0 : index
    %88 = vector.load %arg2[%c11, %c0_88, %c0_89] : memref<27x16x16xbf16, #tpu.memory_space<vmem>>, vector<1x16x16xbf16>
    %89 = vector.shape_cast %88 : vector<1x16x16xbf16> to vector<16x16xbf16>
    %cst_90 = arith.constant dense<0.000000e+00> : vector<256x16xf32>
    %90 = tpu.matmul %87, %89, %cst_90 {dimension_numbers = #tpu.dot_dimension_numbers<[1], [0], [0], [1], [0, 0, 1, 1], [], []>} : vector<256x16xbf16>, vector<16x16xbf16>, vector<256x16xf32> -> vector<256x16xf32>
    %91 = arith.addf %84, %90 : vector<256x16xf32>
    %c4_91 = arith.constant 4 : index
    %c2_92 = arith.constant 2 : index
    %c0_93 = arith.constant 0 : index
    %92 = vector.load %arg8[%c4_91, %c2_92, %c0_93] : memref<24x24x16xf32, #tpu.memory_space<vmem>>, vector<16x16x16xf32>
    %93 = vector.shape_cast %92 : vector<16x16x16xf32> to vector<256x16xf32>
    %94 = arith.truncf %93 : vector<256x16xf32> to vector<256x16xbf16>
    %c12 = arith.constant 12 : index
    %c0_94 = arith.constant 0 : index
    %c0_95 = arith.constant 0 : index
    %95 = vector.load %arg2[%c12, %c0_94, %c0_95] : memref<27x16x16xbf16, #tpu.memory_space<vmem>>, vector<1x16x16xbf16>
    %96 = vector.shape_cast %95 : vector<1x16x16xbf16> to vector<16x16xbf16>
    %cst_96 = arith.constant dense<0.000000e+00> : vector<256x16xf32>
    %97 = tpu.matmul %94, %96, %cst_96 {dimension_numbers = #tpu.dot_dimension_numbers<[1], [0], [0], [1], [0, 0, 1, 1], [], []>} : vector<256x16xbf16>, vector<16x16xbf16>, vector<256x16xf32> -> vector<256x16xf32>
    %98 = arith.addf %91, %97 : vector<256x16xf32>
    %c4_97 = arith.constant 4 : index
    %c4_98 = arith.constant 4 : index
    %c0_99 = arith.constant 0 : index
    %99 = vector.load %arg8[%c4_97, %c4_98, %c0_99] : memref<24x24x16xf32, #tpu.memory_space<vmem>>, vector<16x16x16xf32>
    %100 = vector.shape_cast %99 : vector<16x16x16xf32> to vector<256x16xf32>
    %101 = arith.truncf %100 : vector<256x16xf32> to vector<256x16xbf16>
    %c13 = arith.constant 13 : index
    %c0_100 = arith.constant 0 : index
    %c0_101 = arith.constant 0 : index
    %102 = vector.load %arg2[%c13, %c0_100, %c0_101] : memref<27x16x16xbf16, #tpu.memory_space<vmem>>, vector<1x16x16xbf16>
    %103 = vector.shape_cast %102 : vector<1x16x16xbf16> to vector<16x16xbf16>
    %cst_102 = arith.constant dense<0.000000e+00> : vector<256x16xf32>
    %104 = tpu.matmul %101, %103, %cst_102 {dimension_numbers = #tpu.dot_dimension_numbers<[1], [0], [0], [1], [0, 0, 1, 1], [], []>} : vector<256x16xbf16>, vector<16x16xbf16>, vector<256x16xf32> -> vector<256x16xf32>
    %105 = arith.addf %98, %104 : vector<256x16xf32>
    %c4_103 = arith.constant 4 : index
    %c6_104 = arith.constant 6 : index
    %c0_105 = arith.constant 0 : index
    %106 = vector.load %arg8[%c4_103, %c6_104, %c0_105] : memref<24x24x16xf32, #tpu.memory_space<vmem>>, vector<16x16x16xf32>
    %107 = vector.shape_cast %106 : vector<16x16x16xf32> to vector<256x16xf32>
    %108 = arith.truncf %107 : vector<256x16xf32> to vector<256x16xbf16>
    %c14 = arith.constant 14 : index
    %c0_106 = arith.constant 0 : index
    %c0_107 = arith.constant 0 : index
    %109 = vector.load %arg2[%c14, %c0_106, %c0_107] : memref<27x16x16xbf16, #tpu.memory_space<vmem>>, vector<1x16x16xbf16>
    %110 = vector.shape_cast %109 : vector<1x16x16xbf16> to vector<16x16xbf16>
    %cst_108 = arith.constant dense<0.000000e+00> : vector<256x16xf32>
    %111 = tpu.matmul %108, %110, %cst_108 {dimension_numbers = #tpu.dot_dimension_numbers<[1], [0], [0], [1], [0, 0, 1, 1], [], []>} : vector<256x16xbf16>, vector<16x16xbf16>, vector<256x16xf32> -> vector<256x16xf32>
    %112 = arith.addf %105, %111 : vector<256x16xf32>
    %c6_109 = arith.constant 6 : index
    %c2_110 = arith.constant 2 : index
    %c0_111 = arith.constant 0 : index
    %113 = vector.load %arg8[%c6_109, %c2_110, %c0_111] : memref<24x24x16xf32, #tpu.memory_space<vmem>>, vector<16x16x16xf32>
    %114 = vector.shape_cast %113 : vector<16x16x16xf32> to vector<256x16xf32>
    %115 = arith.truncf %114 : vector<256x16xf32> to vector<256x16xbf16>
    %c15 = arith.constant 15 : index
    %c0_112 = arith.constant 0 : index
    %c0_113 = arith.constant 0 : index
    %116 = vector.load %arg2[%c15, %c0_112, %c0_113] : memref<27x16x16xbf16, #tpu.memory_space<vmem>>, vector<1x16x16xbf16>
    %117 = vector.shape_cast %116 : vector<1x16x16xbf16> to vector<16x16xbf16>
    %cst_114 = arith.constant dense<0.000000e+00> : vector<256x16xf32>
    %118 = tpu.matmul %115, %117, %cst_114 {dimension_numbers = #tpu.dot_dimension_numbers<[1], [0], [0], [1], [0, 0, 1, 1], [], []>} : vector<256x16xbf16>, vector<16x16xbf16>, vector<256x16xf32> -> vector<256x16xf32>
    %119 = arith.addf %112, %118 : vector<256x16xf32>
    %c6_115 = arith.constant 6 : index
    %c4_116 = arith.constant 4 : index
    %c0_117 = arith.constant 0 : index
    %120 = vector.load %arg8[%c6_115, %c4_116, %c0_117] : memref<24x24x16xf32, #tpu.memory_space<vmem>>, vector<16x16x16xf32>
    %121 = vector.shape_cast %120 : vector<16x16x16xf32> to vector<256x16xf32>
    %122 = arith.truncf %121 : vector<256x16xf32> to vector<256x16xbf16>
    %c16 = arith.constant 16 : index
    %c0_118 = arith.constant 0 : index
    %c0_119 = arith.constant 0 : index
    %123 = vector.load %arg2[%c16, %c0_118, %c0_119] : memref<27x16x16xbf16, #tpu.memory_space<vmem>>, vector<1x16x16xbf16>
    %124 = vector.shape_cast %123 : vector<1x16x16xbf16> to vector<16x16xbf16>
    %cst_120 = arith.constant dense<0.000000e+00> : vector<256x16xf32>
    %125 = tpu.matmul %122, %124, %cst_120 {dimension_numbers = #tpu.dot_dimension_numbers<[1], [0], [0], [1], [0, 0, 1, 1], [], []>} : vector<256x16xbf16>, vector<16x16xbf16>, vector<256x16xf32> -> vector<256x16xf32>
    %126 = arith.addf %119, %125 : vector<256x16xf32>
    %c6_121 = arith.constant 6 : index
    %c6_122 = arith.constant 6 : index
    %c0_123 = arith.constant 0 : index
    %127 = vector.load %arg8[%c6_121, %c6_122, %c0_123] : memref<24x24x16xf32, #tpu.memory_space<vmem>>, vector<16x16x16xf32>
    %128 = vector.shape_cast %127 : vector<16x16x16xf32> to vector<256x16xf32>
    %129 = arith.truncf %128 : vector<256x16xf32> to vector<256x16xbf16>
    %c17 = arith.constant 17 : index
    %c0_124 = arith.constant 0 : index
    %c0_125 = arith.constant 0 : index
    %130 = vector.load %arg2[%c17, %c0_124, %c0_125] : memref<27x16x16xbf16, #tpu.memory_space<vmem>>, vector<1x16x16xbf16>
    %131 = vector.shape_cast %130 : vector<1x16x16xbf16> to vector<16x16xbf16>
    %cst_126 = arith.constant dense<0.000000e+00> : vector<256x16xf32>
    %132 = tpu.matmul %129, %131, %cst_126 {dimension_numbers = #tpu.dot_dimension_numbers<[1], [0], [0], [1], [0, 0, 1, 1], [], []>} : vector<256x16xbf16>, vector<16x16xbf16>, vector<256x16xf32> -> vector<256x16xf32>
    %133 = arith.addf %126, %132 : vector<256x16xf32>
    %134 = arith.addf %71, %133 : vector<256x16xf32>
    %c0_127 = arith.constant 0 : index
    %c0_128 = arith.constant 0 : index
    %c0_129 = arith.constant 0 : index
    %135 = vector.load %arg8[%c0_127, %c0_128, %c0_129] : memref<24x24x16xf32, #tpu.memory_space<vmem>>, vector<16x16x16xf32>
    %136 = vector.shape_cast %135 : vector<16x16x16xf32> to vector<256x16xf32>
    %137 = arith.truncf %136 : vector<256x16xf32> to vector<256x16xbf16>
    %c18 = arith.constant 18 : index
    %c0_130 = arith.constant 0 : index
    %c0_131 = arith.constant 0 : index
    %138 = vector.load %arg2[%c18, %c0_130, %c0_131] : memref<27x16x16xbf16, #tpu.memory_space<vmem>>, vector<1x16x16xbf16>
    %139 = vector.shape_cast %138 : vector<1x16x16xbf16> to vector<16x16xbf16>
    %cst_132 = arith.constant dense<0.000000e+00> : vector<256x16xf32>
    %140 = tpu.matmul %137, %139, %cst_132 {dimension_numbers = #tpu.dot_dimension_numbers<[1], [0], [0], [1], [0, 0, 1, 1], [], []>} : vector<256x16xbf16>, vector<16x16xbf16>, vector<256x16xf32> -> vector<256x16xf32>
    %c0_133 = arith.constant 0 : index
    %c4_134 = arith.constant 4 : index
    %c0_135 = arith.constant 0 : index
    %141 = vector.load %arg8[%c0_133, %c4_134, %c0_135] : memref<24x24x16xf32, #tpu.memory_space<vmem>>, vector<16x16x16xf32>
    %142 = vector.shape_cast %141 : vector<16x16x16xf32> to vector<256x16xf32>
    %143 = arith.truncf %142 : vector<256x16xf32> to vector<256x16xbf16>
    %c19 = arith.constant 19 : index
    %c0_136 = arith.constant 0 : index
    %c0_137 = arith.constant 0 : index
    %144 = vector.load %arg2[%c19, %c0_136, %c0_137] : memref<27x16x16xbf16, #tpu.memory_space<vmem>>, vector<1x16x16xbf16>
    %145 = vector.shape_cast %144 : vector<1x16x16xbf16> to vector<16x16xbf16>
    %cst_138 = arith.constant dense<0.000000e+00> : vector<256x16xf32>
    %146 = tpu.matmul %143, %145, %cst_138 {dimension_numbers = #tpu.dot_dimension_numbers<[1], [0], [0], [1], [0, 0, 1, 1], [], []>} : vector<256x16xbf16>, vector<16x16xbf16>, vector<256x16xf32> -> vector<256x16xf32>
    %147 = arith.addf %140, %146 : vector<256x16xf32>
    %c0_139 = arith.constant 0 : index
    %c8_140 = arith.constant 8 : index
    %c0_141 = arith.constant 0 : index
    %148 = vector.load %arg8[%c0_139, %c8_140, %c0_141] : memref<24x24x16xf32, #tpu.memory_space<vmem>>, vector<16x16x16xf32>
    %149 = vector.shape_cast %148 : vector<16x16x16xf32> to vector<256x16xf32>
    %150 = arith.truncf %149 : vector<256x16xf32> to vector<256x16xbf16>
    %c20_142 = arith.constant 20 : index
    %c0_143 = arith.constant 0 : index
    %c0_144 = arith.constant 0 : index
    %151 = vector.load %arg2[%c20_142, %c0_143, %c0_144] : memref<27x16x16xbf16, #tpu.memory_space<vmem>>, vector<1x16x16xbf16>
    %152 = vector.shape_cast %151 : vector<1x16x16xbf16> to vector<16x16xbf16>
    %cst_145 = arith.constant dense<0.000000e+00> : vector<256x16xf32>
    %153 = tpu.matmul %150, %152, %cst_145 {dimension_numbers = #tpu.dot_dimension_numbers<[1], [0], [0], [1], [0, 0, 1, 1], [], []>} : vector<256x16xbf16>, vector<16x16xbf16>, vector<256x16xf32> -> vector<256x16xf32>
    %154 = arith.addf %147, %153 : vector<256x16xf32>
    %c4_146 = arith.constant 4 : index
    %c0_147 = arith.constant 0 : index
    %c0_148 = arith.constant 0 : index
    %155 = vector.load %arg8[%c4_146, %c0_147, %c0_148] : memref<24x24x16xf32, #tpu.memory_space<vmem>>, vector<16x16x16xf32>
    %156 = vector.shape_cast %155 : vector<16x16x16xf32> to vector<256x16xf32>
    %157 = arith.truncf %156 : vector<256x16xf32> to vector<256x16xbf16>
    %c21 = arith.constant 21 : index
    %c0_149 = arith.constant 0 : index
    %c0_150 = arith.constant 0 : index
    %158 = vector.load %arg2[%c21, %c0_149, %c0_150] : memref<27x16x16xbf16, #tpu.memory_space<vmem>>, vector<1x16x16xbf16>
    %159 = vector.shape_cast %158 : vector<1x16x16xbf16> to vector<16x16xbf16>
    %cst_151 = arith.constant dense<0.000000e+00> : vector<256x16xf32>
    %160 = tpu.matmul %157, %159, %cst_151 {dimension_numbers = #tpu.dot_dimension_numbers<[1], [0], [0], [1], [0, 0, 1, 1], [], []>} : vector<256x16xbf16>, vector<16x16xbf16>, vector<256x16xf32> -> vector<256x16xf32>
    %161 = arith.addf %154, %160 : vector<256x16xf32>
    %c4_152 = arith.constant 4 : index
    %c4_153 = arith.constant 4 : index
    %c0_154 = arith.constant 0 : index
    %162 = vector.load %arg8[%c4_152, %c4_153, %c0_154] : memref<24x24x16xf32, #tpu.memory_space<vmem>>, vector<16x16x16xf32>
    %163 = vector.shape_cast %162 : vector<16x16x16xf32> to vector<256x16xf32>
    %164 = arith.truncf %163 : vector<256x16xf32> to vector<256x16xbf16>
    %c22 = arith.constant 22 : index
    %c0_155 = arith.constant 0 : index
    %c0_156 = arith.constant 0 : index
    %165 = vector.load %arg2[%c22, %c0_155, %c0_156] : memref<27x16x16xbf16, #tpu.memory_space<vmem>>, vector<1x16x16xbf16>
    %166 = vector.shape_cast %165 : vector<1x16x16xbf16> to vector<16x16xbf16>
    %cst_157 = arith.constant dense<0.000000e+00> : vector<256x16xf32>
    %167 = tpu.matmul %164, %166, %cst_157 {dimension_numbers = #tpu.dot_dimension_numbers<[1], [0], [0], [1], [0, 0, 1, 1], [], []>} : vector<256x16xbf16>, vector<16x16xbf16>, vector<256x16xf32> -> vector<256x16xf32>
    %168 = arith.addf %161, %167 : vector<256x16xf32>
    %c4_158 = arith.constant 4 : index
    %c8_159 = arith.constant 8 : index
    %c0_160 = arith.constant 0 : index
    %169 = vector.load %arg8[%c4_158, %c8_159, %c0_160] : memref<24x24x16xf32, #tpu.memory_space<vmem>>, vector<16x16x16xf32>
    %170 = vector.shape_cast %169 : vector<16x16x16xf32> to vector<256x16xf32>
    %171 = arith.truncf %170 : vector<256x16xf32> to vector<256x16xbf16>
    %c23 = arith.constant 23 : index
    %c0_161 = arith.constant 0 : index
    %c0_162 = arith.constant 0 : index
    %172 = vector.load %arg2[%c23, %c0_161, %c0_162] : memref<27x16x16xbf16, #tpu.memory_space<vmem>>, vector<1x16x16xbf16>
    %173 = vector.shape_cast %172 : vector<1x16x16xbf16> to vector<16x16xbf16>
    %cst_163 = arith.constant dense<0.000000e+00> : vector<256x16xf32>
    %174 = tpu.matmul %171, %173, %cst_163 {dimension_numbers = #tpu.dot_dimension_numbers<[1], [0], [0], [1], [0, 0, 1, 1], [], []>} : vector<256x16xbf16>, vector<16x16xbf16>, vector<256x16xf32> -> vector<256x16xf32>
    %175 = arith.addf %168, %174 : vector<256x16xf32>
    %c8_164 = arith.constant 8 : index
    %c0_165 = arith.constant 0 : index
    %c0_166 = arith.constant 0 : index
    %176 = vector.load %arg8[%c8_164, %c0_165, %c0_166] : memref<24x24x16xf32, #tpu.memory_space<vmem>>, vector<16x16x16xf32>
    %177 = vector.shape_cast %176 : vector<16x16x16xf32> to vector<256x16xf32>
    %178 = arith.truncf %177 : vector<256x16xf32> to vector<256x16xbf16>
    %c24 = arith.constant 24 : index
    %c0_167 = arith.constant 0 : index
    %c0_168 = arith.constant 0 : index
    %179 = vector.load %arg2[%c24, %c0_167, %c0_168] : memref<27x16x16xbf16, #tpu.memory_space<vmem>>, vector<1x16x16xbf16>
    %180 = vector.shape_cast %179 : vector<1x16x16xbf16> to vector<16x16xbf16>
    %cst_169 = arith.constant dense<0.000000e+00> : vector<256x16xf32>
    %181 = tpu.matmul %178, %180, %cst_169 {dimension_numbers = #tpu.dot_dimension_numbers<[1], [0], [0], [1], [0, 0, 1, 1], [], []>} : vector<256x16xbf16>, vector<16x16xbf16>, vector<256x16xf32> -> vector<256x16xf32>
    %182 = arith.addf %175, %181 : vector<256x16xf32>
    %c8_170 = arith.constant 8 : index
    %c4_171 = arith.constant 4 : index
    %c0_172 = arith.constant 0 : index
    %183 = vector.load %arg8[%c8_170, %c4_171, %c0_172] : memref<24x24x16xf32, #tpu.memory_space<vmem>>, vector<16x16x16xf32>
    %184 = vector.shape_cast %183 : vector<16x16x16xf32> to vector<256x16xf32>
    %185 = arith.truncf %184 : vector<256x16xf32> to vector<256x16xbf16>
    %c25 = arith.constant 25 : index
    %c0_173 = arith.constant 0 : index
    %c0_174 = arith.constant 0 : index
    %186 = vector.load %arg2[%c25, %c0_173, %c0_174] : memref<27x16x16xbf16, #tpu.memory_space<vmem>>, vector<1x16x16xbf16>
    %187 = vector.shape_cast %186 : vector<1x16x16xbf16> to vector<16x16xbf16>
    %cst_175 = arith.constant dense<0.000000e+00> : vector<256x16xf32>
    %188 = tpu.matmul %185, %187, %cst_175 {dimension_numbers = #tpu.dot_dimension_numbers<[1], [0], [0], [1], [0, 0, 1, 1], [], []>} : vector<256x16xbf16>, vector<16x16xbf16>, vector<256x16xf32> -> vector<256x16xf32>
    %189 = arith.addf %182, %188 : vector<256x16xf32>
    %c8_176 = arith.constant 8 : index
    %c8_177 = arith.constant 8 : index
    %c0_178 = arith.constant 0 : index
    %190 = vector.load %arg8[%c8_176, %c8_177, %c0_178] : memref<24x24x16xf32, #tpu.memory_space<vmem>>, vector<16x16x16xf32>
    %191 = vector.shape_cast %190 : vector<16x16x16xf32> to vector<256x16xf32>
    %192 = arith.truncf %191 : vector<256x16xf32> to vector<256x16xbf16>
    %c26 = arith.constant 26 : index
    %c0_179 = arith.constant 0 : index
    %c0_180 = arith.constant 0 : index
    %193 = vector.load %arg2[%c26, %c0_179, %c0_180] : memref<27x16x16xbf16, #tpu.memory_space<vmem>>, vector<1x16x16xbf16>
    %194 = vector.shape_cast %193 : vector<1x16x16xbf16> to vector<16x16xbf16>
    %cst_181 = arith.constant dense<0.000000e+00> : vector<256x16xf32>
    %195 = tpu.matmul %192, %194, %cst_181 {dimension_numbers = #tpu.dot_dimension_numbers<[1], [0], [0], [1], [0, 0, 1, 1], [], []>} : vector<256x16xbf16>, vector<16x16xbf16>, vector<256x16xf32> -> vector<256x16xf32>
    %196 = arith.addf %189, %195 : vector<256x16xf32>
    %197 = arith.addf %134, %196 : vector<256x16xf32>
    %c0_182 = arith.constant 0 : index
    %c0_183 = arith.constant 0 : index
    %198 = vector.load %arg3[%c0_182, %c0_183] : memref<1x16xf32, #tpu.memory_space<vmem>>, vector<1x16xf32>
    %199 = vector.broadcast %198 : vector<1x16xf32> to vector<256x16xf32>
    %200 = arith.addf %197, %199 : vector<256x16xf32>
    %c0_184 = arith.constant 0 : index
    %c0_185 = arith.constant 0 : index
    %c0_186 = arith.constant 0 : index
    %201 = vector.load %arg6[%c0_184, %c0_185, %c0_186] : memref<1x256x16xf32, #tpu.memory_space<vmem>>, vector<1x256x16xf32>
    %202 = vector.shape_cast %201 : vector<1x256x16xf32> to vector<256x16xf32>
    %203 = vector.shape_cast %200 : vector<256x16xf32> to vector<1x256x16xf32>
    tpu.vector_store %arg6[%c0_184, %c0_185, %c0_186], %203 {strides = array<i32>} : memref<1x256x16xf32, #tpu.memory_space<vmem>>, vector<1x256x16xf32>,
    %204 = arith.truncf %200 : vector<256x16xf32> to vector<256x16xbf16>
    %c0_187 = arith.constant 0 : index
    %c0_188 = arith.constant 0 : index
    %205 = vector.load %arg4[%c0_187, %c0_188] : memref<16x10xbf16, #tpu.memory_space<vmem>>, vector<16x10xbf16>
    %cst_189 = arith.constant dense<0.000000e+00> : vector<256x10xf32>
    %206 = tpu.matmul %204, %205, %cst_189 {dimension_numbers = #tpu.dot_dimension_numbers<[1], [0], [0], [1], [0, 0, 1, 1], [], []>} : vector<256x16xbf16>, vector<16x10xbf16>, vector<256x10xf32> -> vector<256x10xf32>
    %c0_190 = arith.constant 0 : index
    %c0_191 = arith.constant 0 : index
    %207 = vector.load %arg5[%c0_190, %c0_191] : memref<1x10xf32, #tpu.memory_space<vmem>>, vector<1x10xf32>
    %208 = vector.broadcast %207 : vector<1x10xf32> to vector<256x10xf32>
    %209 = arith.addf %206, %208 : vector<256x10xf32>
    %c0_192 = arith.constant 0 : index
    %c0_193 = arith.constant 0 : index
    %c0_194 = arith.constant 0 : index
    %210 = vector.load %arg7[%c0_192, %c0_193, %c0_194] : memref<1x256x10xf32, #tpu.memory_space<vmem>>, vector<1x256x10xf32>
    %211 = vector.shape_cast %210 : vector<1x256x10xf32> to vector<256x10xf32>
    %212 = vector.shape_cast %209 : vector<256x10xf32> to vector<1x256x10xf32>
    tpu.vector_store %arg7[%c0_192, %c0_193, %c0_194], %212 {strides = array<i32>} : memref<1x256x10xf32, #tpu.memory_space<vmem>>, vector<1x256x10xf32>,
    return
  }
  func.func @transform_0(%arg0: i32) -> (i32, i32, i32, i32) {
    %c0_i32 = arith.constant 0 : i32
    %c0_i32_0 = arith.constant 0 : i32
    %c0_i32_1 = arith.constant 0 : i32
    %c0_i32_2 = arith.constant 0 : i32
    return %arg0, %c0_i32, %c0_i32_0, %c0_i32_1 : i32, i32, i32, i32
  }
  func.func @transform_1(%arg0: i32) -> (i32, i32, i32) {
    %c0_i32 = arith.constant 0 : i32
    %c0_i32_0 = arith.constant 0 : i32
    %c0_i32_1 = arith.constant 0 : i32
    %c0_i32_2 = arith.constant 0 : i32
    return %c0_i32, %c0_i32_0, %c0_i32_1 : i32, i32, i32
  }
  func.func @transform_2(%arg0: i32) -> (i32, i32) {
    %c0_i32 = arith.constant 0 : i32
    %c0_i32_0 = arith.constant 0 : i32
    %c0_i32_1 = arith.constant 0 : i32
    return %c0_i32, %c0_i32_0 : i32, i32
  }
  func.func @transform_3(%arg0: i32) -> (i32, i32) {
    %c0_i32 = arith.constant 0 : i32
    %c0_i32_0 = arith.constant 0 : i32
    %c0_i32_1 = arith.constant 0 : i32
    return %c0_i32, %c0_i32_0 : i32, i32
  }
  func.func @transform_4(%arg0: i32) -> (i32, i32) {
    %c0_i32 = arith.constant 0 : i32
    %c0_i32_0 = arith.constant 0 : i32
    %c0_i32_1 = arith.constant 0 : i32
    return %c0_i32, %c0_i32_0 : i32, i32
  }
  func.func @transform_5(%arg0: i32) -> (i32, i32, i32) {
    %c0_i32 = arith.constant 0 : i32
    %c0_i32_0 = arith.constant 0 : i32
    %c0_i32_1 = arith.constant 0 : i32
    return %arg0, %c0_i32, %c0_i32_0 : i32, i32, i32
  }
  func.func @transform_6(%arg0: i32) -> (i32, i32, i32) {
    %c0_i32 = arith.constant 0 : i32
    %c0_i32_0 = arith.constant 0 : i32
    %c0_i32_1 = arith.constant 0 : i32
    return %arg0, %c0_i32, %c0_i32_0 : i32, i32, i32
  }
}

</mosaic_0001>

<bundles_post_ra>
// kernel: dec_unit_forward.2
= control target key start
LH: loop header
LB: loop body
LE: loop exit
PB: predicated region body
PF: predicated region fallthrough
CT: control target
= control target key end

     0   :  { %s8148_s27 = smov 0   ;;  %s9044_s0 = inlined_call_operand.vmem [shape: bf16[2,64,4], index: 0, kind: input, shape index: {}]   ;;  %s9045_s1 = inlined_call_operand.vmem [shape: f32[2,64,16], index: 1, kind: input, shape index: {}]   ;;  %s9046_s2 = inlined_call_operand.vmem [shape: bf16[4,16], index: 2, kind: input, shape index: {}]   ;;  %s9047_s3 = inlined_call_operand.vmem [shape: f32[1,16], index: 3, kind: input, shape index: {}]   ;;  %s9048_s4 = inlined_call_operand.vmem [shape: bf16[45,16,16], index: 4, kind: input, shape index: {}]   ;;  %s9049_s5 = inlined_call_operand.vmem [shape: f32[5,16], index: 5, kind: input, shape index: {}]   ;;  %s9050_s6 = inlined_call_operand.vmem [shape: bf16[9,16,64], index: 6, kind: input, shape index: {}]   ;;  %s9051_s7 = inlined_call_operand.vmem [shape: f32[1,64], index: 7, kind: input, shape index: {}]   ;;  %s9052_s8 = inlined_call_operand.vmem [shape: bf16[2,64,64], index: 8, kind: output, shape index: {}]  }
   0x1 LB: > { %s6393_s28 = sadd.s32 4294967295, %s8100_s27   ;;  %p6397_p0 = scmp.ge.s32.totalorder %s8100_s27, 1  ;;  %s8100_s27 = sphi %s8148_s27, %s18_s27  }
   0x2   : > { %p272_p1 = scmp.lt.s32.totalorder %s8100_s27, 3 }
   0x4   : > { %p273_p2 = pnand %p6397_p0, %p272_p1 }
   0x5   : > { %v363_v0 = vld [vmem:[%s9046_s2] sm:$0x3] (!%p273_p2)  ;;  %vm404_vm0 = vcmask (!%p273_p2), 1041408   ;;  %p311_p3 = scmp.lt.s32.totalorder (!%p273_p2), %s6393_s28, 1  ;;  %vm391_vm1 = vcmask (!%p273_p2), 31744   ;;  %vm327_vm2 = vcmask (!%p273_p2), 130048  }
   0x6   : > { %276 = sbr.rel (%p273_p2) target bundleno = 2388 (0x954), region = 52  ;;  %8025 = vmatprep.subr.msk.bf16.mxu0 (!%p273_p2), %vm404_vm0, %v363_v0  ;;  %8026 = vmatprep.subr.msk.bf16.mxu1 (!%p273_p2), %vm404_vm0, %v363_v0  ;;  %v406_v1 = vsel (!%p273_p2), %vm404_vm0, %v363_v0, 0  ;;  %vm329_vm3 = vcmask (!%p273_p2), 123904   ;;  %vm334_vm4 = vcmask (!%p273_p2), 122880   ;;  %v8102_v6 = vmov (!%p273_p2), 0.0   ;;  %v8040_v7 = vld [vmem:[%s9048_s4 + $0x8] sm:$0xff] (!%p273_p2)  }
   0x7   : > { %7090 = vmatpush3.bf16.msra.mxu0 (!%p273_p2), %v406_v1  ;;  %7640 = vmatpush3.bf16.msra.mxu1 (!%p273_p2), %v406_v1  ;;  %328 = vst.msk [vmem:[#allocation2] sm:$0xff] (!%p273_p2), %vm327_vm2, %v8102_v6  ;;  %332 = vst.msk [vmem:[#allocation2 + $0x90] sm:$0xff] (!%p273_p2), %vm327_vm2, %v8102_v6  ;;  %v8041_v8 = vld [vmem:[%s9048_s4] sm:$0xff] (!%p273_p2)   ;;  %v8042_v50 = vld [vmem:[%s9048_s4 + $0x10] sm:$0xff] (!%p273_p2)   ;;  %vm6317_vm5 = vcmask (!%p273_p2), 519168  }
   0x8   : > { %330 = vst.msk [vmem:[#allocation2 + $0x8] sm:$0x3] (!%p273_p2), %vm329_vm3, %v8102_v6  ;;  %333 = vst.msk [vmem:[#allocation2 + $0x98] sm:$0x3] (!%p273_p2), %vm329_vm3, %v8102_v6  ;;  %7099 = vmatprep.subr.bf16.mxu1 (!%p273_p2), %v8040_v7  ;;  %v6404_v9 = vld [vmem:[%s9047_s3] ss:$0 sm:$0xff] (!%p273_p2) }
   0x9   : > { %336 = vst.msk [vmem:[#allocation2 + $0x10] sm:$0x1] (!%p273_p2), %vm334_vm4, %v8102_v6  ;;  %337 = vst.msk [vmem:[#allocation2 + $0x20] sm:$0x1] (!%p273_p2), %vm334_vm4, %v8102_v6  ;;  %v8043_v63 = vld [vmem:[%s9048_s4 + $0x18] sm:$0xff] (!%p273_p2)  }
   0xa   : > { %338 = vst.msk [vmem:[#allocation2 + $0x30] sm:$0x1] (!%p273_p2), %vm334_vm4, %v8102_v6  ;;  %339 = vst.msk [vmem:[#allocation2 + $0x40] sm:$0x1] (!%p273_p2), %vm334_vm4, %v8102_v6 }
   0xb   : > { %340 = vst.msk [vmem:[#allocation2 + $0x50] sm:$0x1] (!%p273_p2), %vm334_vm4, %v8102_v6  ;;  %341 = vst.msk [vmem:[#allocation2 + $0x60] sm:$0x1] (!%p273_p2), %vm334_vm4, %v8102_v6 }
   0xc   : > { %342 = vst.msk [vmem:[#allocation2 + $0x70] sm:$0x1] (!%p273_p2), %vm334_vm4, %v8102_v6  ;;  %343 = vst.msk [vmem:[#allocation2 + $0x80] sm:$0x1] (!%p273_p2), %vm334_vm4, %v8102_v6 }
   0xd   : > { %s9054_s28 = smov (!%p311_p3, %s6393_s28), 1  ;;  %346 = vst.msk [vmem:[#allocation2 + $0x19] sm:$0x1] %vm334_vm4, %v8102_v6  ;;  %347 = vst.msk [vmem:[#allocation2 + $0x29] sm:$0x1] %vm334_vm4, %v8102_v6 }
   0xe   : > { %s6803_s9 = sshll.u32 %s9054_s28, 5  ;;  %348 = vst.msk [vmem:[#allocation2 + $0x39] sm:$0x1] %vm334_vm4, %v8102_v6  ;;  %349 = vst.msk [vmem:[#allocation2 + $0x49] sm:$0x1] %vm334_vm4, %v8102_v6  ;;  %s6804_s17 = sshll.u32 %s9054_s28, 6 }
   0xf   : > { %s315_s12 = scalar_lea.vmem %s9044_s0, %s6803_s9  ;;  %350 = vst.msk [vmem:[#allocation2 + $0x59] sm:$0x1] %vm334_vm4, %v8102_v6  ;;  %351 = vst.msk [vmem:[#allocation2 + $0x69] sm:$0x1] %vm334_vm4, %v8102_v6  ;;  %s320_s20 = scalar_lea.vmem %s9045_s1, %s6804_s17  ;;  %v8234_v42 = vld [vmem:[#allocation2 + $0x1] sm:$0xff] }
  0x10   : > { %v8036_v2 = vld [vmem:[%s315_s12] sm:$0xff]   ;;  %v8037_v3 = vld [vmem:[%s315_s12 + $0x8] sm:$0xff]   ;;  %v8038_v4 = vld [vmem:[%s315_s12 + $0x10] sm:$0xff]   ;;  %352 = vst.msk [vmem:[#allocation2 + $0x79] sm:$0x1] %vm334_vm4, %v8102_v6  ;;  %s325_s29 = scalar_lea.vmem %s9052_s8, %s6803_s9 }
  0x11   : > { %7091 = vmatprep.mubr.msk.bf16.mxu0 %vm391_vm1, %v8036_v2  ;;  %v8039_v5 = vld [vmem:[%s315_s12 + $0x18] sm:$0xff]   ;;  %7095 = vmatprep.mubr.msk.bf16.mxu1 %vm391_vm1, %v8038_v4  ;;  %353 = vst.msk [vmem:[#allocation2 + $0x89] sm:$0x1] %vm334_vm4, %v8102_v6  ;;  %335 = vst.msk [vmem:[#allocation2] sm:$0x1] %vm334_vm4, %v8102_v6  ;;  %v475_v11 = vld [vmem:[%s320_s20 + $0x10] sm:$0xff] }
  0x12   : > { %7092 = vmatmul.mubr.msk.bf16.vlgmr.msra.gmra.mrb[0].mxu0 %vm391_vm1, %v8037_v3  ;;  %7096 = vmatmul.mubr.msk.bf16.vlgmr.msra.gmra.mrb[0].mxu1 %vm391_vm1, %v8039_v5  ;;  %344 = vst.msk [vmem:[#allocation2 + $0x90] sm:$0x1] %vm334_vm4, %v8102_v6  ;;  %345 = vst.msk [vmem:[#allocation2 + $0x9] sm:$0x1] %vm334_vm4, %v8102_v6  ;;  %v473_v14 = vld [vmem:[%s320_s20] sm:$0xff]  ;;  %v479_v17 = vld [vmem:[%s320_s20 + $0x30] sm:$0xff] }
  0x13   : > { %354 = vst.msk [vmem:[#allocation2 + $0x99] sm:$0x1] %vm334_vm4, %v8102_v6  ;;  %7100 = vmatpush3.bf16.msra.mxu1 %v8040_v7  ;;  %v476_v19 = vld [vmem:[%s320_s20 + $0x18] sm:$0xff]  ;;  %v477_v24 = vld [vmem:[%s320_s20 + $0x20] sm:$0xff]  ;;  %v474_v26 = vld [vmem:[%s320_s20 + $0x8] sm:$0xff] }
  0x14   : > { %7109 = vmatprep.subr.bf16.mxu1 %v8041_v8  ;;  %v480_v31 = vld [vmem:[%s320_s20 + $0x38] sm:$0xff]  ;;  %v478_v36 = vld [vmem:[%s320_s20 + $0x28] sm:$0xff] }
  0x18   : > { %v8266_v54 = vld [vmem:[#allocation2] sm:$0xff] }
  0x19   : > { %v8286_v3 = vld [vmem:[#allocation2 + $0x2] sm:$0xff] }
  0xe5   : > { %v7093_v10 = vpop.f32.mrb[0].mxu0  ;;  %v7097_v16 = vpop.f32.mrb[0].mxu1 }
  0xe6   : > { %v451_v12 = vadd.f32 %v7093_v10, %v6404_v9  ;;  %v442_v13 = vpop.f32.mrb[1].mxu0  ;;  %v467_v21 = vadd.f32 %v7097_v16, %v6404_v9  ;;  %v458_v23 = vpop.f32.mrb[1].mxu1 }
  0xe7   : > { %v443_v15 = vadd.f32 %v6404_v9, %v442_v13  ;;  %v7094_v18 = vpop.f32.mrb[2].mxu0  ;;  %v459_v28 = vadd.f32 %v6404_v9, %v458_v23  ;;  %v7098_v30 = vpop.f32.mrb[2].mxu1 }
  0xe8   : > { %v8202_v20 = vadd.f32 %v475_v11, %v451_v12  ;;  %v454_v22 = vadd.f32 %v7094_v18, %v6404_v9  ;;  %v445_v25 = vpop.f32.mrb[3].mxu0  ;;  %v8208_v32 = vadd.f32 %v479_v17, %v467_v21  ;;  %v470_v34 = vadd.f32 %v7098_v30, %v6404_v9  ;;  %v461_v35 = vpop.f32.mrb[3].mxu1  ;;  %v8044_v12 = vld [vmem:[%s9048_s4 + $0x20] sm:$0xff]  }
  0xe9   : > { %v8204_v27 = vadd.f32 %v473_v14, %v443_v15  ;;  %v446_v29 = vadd.f32 %v6404_v9, %v445_v25  ;;  %v8214_v37 = vadd.f32 %v477_v24, %v459_v28  ;;  %v462_v39 = vadd.f32 %v6404_v9, %v461_v35  ;;  %v8047_v35 = vld [vmem:[%s9048_s4 + $0x38] sm:$0xff]  }
  0xea   : > { %492 = vst.msk [vmem:[#allocation2 + $0x31] sm:$0xff] %vm327_vm2, %v8202_v20  ;;  %v8210_v33 = vadd.f32 %v476_v19, %v454_v22  ;;  %496 = vst.msk [vmem:[#allocation2 + $0x71] sm:$0xff] %vm327_vm2, %v8208_v32  ;;  %v8222_v40 = vadd.f32 %v480_v31, %v470_v34  ;;  %v8045_v19 = vld [vmem:[%s9048_s4 + $0x28] sm:$0xff]  }
  0xeb   : > { %490 = vst.msk [vmem:[#allocation2 + $0x11] sm:$0xff] %vm327_vm2, %v8204_v27  ;;  %v8216_v38 = vadd.f32 %v474_v26, %v446_v29  ;;  %494 = vst.msk [vmem:[#allocation2 + $0x51] sm:$0xff] %vm327_vm2, %v8214_v37  ;;  %v8228_v41 = vadd.f32 %v478_v36, %v462_v39  ;;  %v8046_v26 = vld [vmem:[%s9048_s4 + $0x30] sm:$0xff]  }
  0xec   : > { %493 = vst.msk [vmem:[#allocation2 + $0x41] sm:$0xff] %vm327_vm2, %v8210_v33  ;;  %497 = vst.msk [vmem:[#allocation2 + $0x81] sm:$0xff] %vm327_vm2, %v8222_v40 }
  0xed   : > { %491 = vst.msk [vmem:[#allocation2 + $0x21] sm:$0xff] %vm327_vm2, %v8216_v38  ;;  %495 = vst.msk [vmem:[#allocation2 + $0x61] sm:$0xff] %vm327_vm2, %v8228_v41 }
  0xf1   : > { %v8244_v47 = vld [vmem:[#allocation2 + $0x31] sm:$0xff] }
  0xf2   : > { %v8236_v43 = vld [vmem:[#allocation2 + $0x11] sm:$0xff] }
  0xf3   : > { %v520_v44 = vpack.c.bf16 %v8236_v43, %v8234_v42  ;;  %v8240_v45 = vld [vmem:[#allocation2 + $0x41] sm:$0xff]  ;;  %v8246_v48 = vld [vmem:[#allocation2 + $0x51] sm:$0xff] }
  0xf4   : > { %v8242_v46 = vld [vmem:[#allocation2 + $0x21] sm:$0xff]  ;;  %v8258_v51 = vpack.c.bf16 %v8246_v48, %v8240_v45  ;;  %v8264_v53 = vld [vmem:[#allocation2 + $0x71] sm:$0xff]  ;;  %v914_v25 = vpack.c.bf16 %v8240_v45, %v8244_v47 }
  0xf5   : > { %7101 = vmatprep.mubr.msk.bf16.mxu1 %vm327_vm2, %v520_v44  ;;  %v8251_v49 = vpack.c.bf16 %v8244_v47, %v8242_v46  ;;  %v518_v52 = vld [vmem:[#allocation2 + $0x61] sm:$0xff]  ;;  %v499_v55 = vld [vmem:[#allocation2 + $0x10] sm:$0xff]  ;;  %v913_v24 = vpack.c.bf16 %v8242_v46, %v8236_v43 }
  0xf6   : > { %v8269_v56 = vpack.c.bf16 %v8264_v53, %v518_v52  ;;  %v506_v57 = vpack.c.bf16 %v499_v55, %v8266_v54  ;;  %v500_v58 = vld [vmem:[#allocation2 + $0x20] sm:$0xff]  ;;  %v503_v60 = vld [vmem:[#allocation2 + $0x50] sm:$0xff]  ;;  %v915_v28 = vpack.c.bf16 %v518_v52, %v8246_v48  ;;  %v8050_v52 = vld [vmem:[%s9048_s4 + $0x48] sm:$0xff]  }
  0xf7   : > { %7102 = vmatmul.mubr.msk.bf16.vlgmr.msra.gmra.mrb[4].mxu1 %vm327_vm2, %v8251_v49  ;;  %v502_v59 = vld [vmem:[#allocation2 + $0x40] sm:$0xff]  ;;  %v501_v61 = vld [vmem:[#allocation2 + $0x30] sm:$0xff]  ;;  %v807_v17 = vpack.c.bf16 %v500_v58, %v499_v55 }
  0xf8   : > { %7110 = vmatpush3.bf16.msra.mxu1 %v8041_v8  ;;  %7105 = vmatprep.mubr.msk.bf16.mxu1 %vm327_vm2, %v8258_v51  ;;  %v8275_v62 = vpack.c.bf16 %v501_v61, %v500_v58  ;;  %v8280_v0 = vpack.c.bf16 %v503_v60, %v502_v59  ;;  %v504_v1 = vld [vmem:[#allocation2 + $0x60] sm:$0xff]  ;;  %v505_v2 = vld [vmem:[#allocation2 + $0x70] sm:$0xff]  ;;  %v808_v18 = vpack.c.bf16 %v502_v59, %v501_v61 }
  0xf9   : > { %7119 = vmatprep.subr.bf16.mxu1 %v8042_v50  ;;  %v694_v4 = vld [vmem:[#allocation2 + $0x12] sm:$0xff]  ;;  %v509_v5 = vpack.c.bf16 %v505_v2, %v504_v1  ;;  %v695_v7 = vld [vmem:[#allocation2 + $0x22] sm:$0xff]  ;;  %v809_v21 = vpack.c.bf16 %v504_v1, %v503_v60 }
  0xfa   : > { %v701_v6 = vpack.c.bf16 %v694_v4, %v8286_v3  ;;  %v697_v8 = vld [vmem:[#allocation2 + $0x42] sm:$0xff]  ;;  %v698_v9 = vld [vmem:[#allocation2 + $0x52] sm:$0xff]  ;;  %v1019_v31 = vpack.c.bf16 %v695_v7, %v694_v4 }
  0xfb   : > { %v696_v10 = vld [vmem:[#allocation2 + $0x32] sm:$0xff]  ;;  %v703_v13 = vpack.c.bf16 %v698_v9, %v697_v8  ;;  %v699_v14 = vld [vmem:[#allocation2 + $0x62] sm:$0xff] }
  0xfc   : > { %v8291_v11 = vpack.c.bf16 %v696_v10, %v695_v7  ;;  %v700_v15 = vld [vmem:[#allocation2 + $0x72] sm:$0xff]  ;;  %v806_v22 = vld [vmem:[#allocation2 + $0x80] sm:$0xff]  ;;  %v1020_v34 = vpack.c.bf16 %v697_v8, %v696_v10  ;;  %v1021_v36 = vpack.c.bf16 %v699_v14, %v698_v9 }
  0xfd   : > { %v704_v16 = vpack.c.bf16 %v700_v15, %v699_v14  ;;  %v810_v23 = vpack.c.bf16 %v806_v22, %v505_v2  ;;  %v912_v29 = vld [vmem:[#allocation2 + $0x81] sm:$0xff]  ;;  %v8335_v45 = vld [vmem:[#allocation2 + $0x90] sm:$0xff] }
  0xfe   : > { %v916_v30 = vpack.c.bf16 %v912_v29, %v8264_v53  ;;  %v1018_v39 = vld [vmem:[#allocation2 + $0x82] sm:$0xff]  ;;  %v1129_v46 = vpack.c.bf16 %v8335_v45, %v806_v22  ;;  %v8345_v47 = vld [vmem:[#allocation2 + $0x91] sm:$0xff]  ;;  %v6474_v53 = vld [vmem:[%s9049_s5] ss:$0 sm:$0xff] }
  0xff   : > { %7106 = vmatmul.mubr.msk.bf16.gmra.mrb[8].mxu1 %vm327_vm2, %v8269_v56  ;;  %v1022_v43 = vpack.c.bf16 %v1018_v39, %v700_v15  ;;  %v8048_v44 = vld [vmem:[%s9048_s4 + $0x40] sm:$0xff]   ;;  %v1235_v48 = vpack.c.bf16 %v8345_v47, %v912_v29  ;;  %v8051_v22 = vld [vmem:[%s9048_s4 + $0x58] sm:$0xff]  }
 0x100   : > { %7111 = vmatprep.mubr.msk.bf16.mxu1 %vm327_vm2, %v506_v57 }
 0x107   : > { %7112 = vmatmul.mubr.msk.bf16.vlgmr.msra.gmra.mrb[4].mxu1 %vm327_vm2, %v8275_v62 }
 0x108   : > { %7120 = vmatpush3.bf16.msra.mxu1 %v8042_v50  ;;  %7115 = vmatprep.mubr.msk.bf16.mxu1 %vm327_vm2, %v8280_v0 }
 0x109   : > { %7129 = vmatprep.subr.bf16.mxu1 %v8043_v63 }
 0x10f   : > { %7116 = vmatmul.mubr.msk.bf16.gmra.mrb[8].mxu1 %vm327_vm2, %v509_v5 }
 0x110   : > { %7121 = vmatprep.mubr.msk.bf16.mxu1 %vm327_vm2, %v701_v6 }
 0x117   : > { %7122 = vmatmul.mubr.msk.bf16.vlgmr.msra.gmra.mrb[4].mxu1 %vm327_vm2, %v8291_v11 }
 0x118   : > { %7130 = vmatpush3.bf16.msra.mxu1 %v8043_v63  ;;  %7125 = vmatprep.mubr.msk.bf16.mxu1 %vm327_vm2, %v703_v13 }
 0x119   : > { %7139 = vmatprep.subr.bf16.mxu1 %v8044_v12 }
 0x11f   : > { %7126 = vmatmul.mubr.msk.bf16.gmra.mrb[8].mxu1 %vm327_vm2, %v704_v16 }
 0x120   : > { %7131 = vmatprep.mubr.msk.bf16.mxu1 %vm327_vm2, %v807_v17 }
 0x127   : > { %7132 = vmatmul.mubr.msk.bf16.vlgmr.msra.gmra.mrb[4].mxu1 %vm327_vm2, %v808_v18 }
 0x128   : > { %7140 = vmatpush3.bf16.msra.mxu1 %v8044_v12  ;;  %7135 = vmatprep.mubr.msk.bf16.mxu1 %vm327_vm2, %v809_v21 }
 0x129   : > { %7149 = vmatprep.subr.bf16.mxu1 %v8045_v19 }
 0x12f   : > { %7136 = vmatmul.mubr.msk.bf16.gmra.mrb[8].mxu1 %vm327_vm2, %v810_v23 }
 0x130   : > { %7141 = vmatprep.mubr.msk.bf16.mxu1 %vm327_vm2, %v913_v24 }
 0x137   : > { %7142 = vmatmul.mubr.msk.bf16.vlgmr.msra.gmra.mrb[4].mxu1 %vm327_vm2, %v914_v25 }
 0x138   : > { %7150 = vmatpush3.bf16.msra.mxu1 %v8045_v19  ;;  %7145 = vmatprep.mubr.msk.bf16.mxu1 %vm327_vm2, %v915_v28 }
 0x139   : > { %7159 = vmatprep.subr.bf16.mxu1 %v8046_v26 }
 0x13f   : > { %7146 = vmatmul.mubr.msk.bf16.gmra.mrb[8].mxu1 %vm327_vm2, %v916_v30 }
 0x140   : > { %7151 = vmatprep.mubr.msk.bf16.mxu1 %vm327_vm2, %v1019_v31 }
 0x147   : > { %7152 = vmatmul.mubr.msk.bf16.vlgmr.msra.gmra.mrb[4].mxu1 %vm327_vm2, %v1020_v34 }
 0x148   : > { %7160 = vmatpush3.bf16.msra.mxu1 %v8046_v26  ;;  %7155 = vmatprep.mubr.msk.bf16.mxu1 %vm327_vm2, %v1021_v36 }
 0x149   : > { %7169 = vmatprep.subr.bf16.mxu1 %v8047_v35 }
 0x14f   : > { %7156 = vmatmul.mubr.msk.bf16.gmra.mrb[8].mxu1 %vm327_vm2, %v1022_v43 }
 0x150   : > { %7161 = vmatprep.mubr.msk.bf16.mxu1 %vm327_vm2, %v8275_v62 }
 0x157   : > { %7162 = vmatmul.mubr.msk.bf16.vlgmr.msra.gmra.mrb[4].mxu1 %vm327_vm2, %v8280_v0 }
 0x158   : > { %7170 = vmatpush3.bf16.msra.mxu1 %v8047_v35  ;;  %7165 = vmatprep.mubr.msk.bf16.mxu1 %vm327_vm2, %v509_v5 }
 0x159   : > { %7179 = vmatprep.subr.bf16.mxu1 %v8048_v44 }
 0x15f   : > { %7166 = vmatmul.mubr.msk.bf16.gmra.mrb[8].mxu1 %vm327_vm2, %v1129_v46 }
 0x160   : > { %7171 = vmatprep.mubr.msk.bf16.mxu1 %vm327_vm2, %v8251_v49  ;;  %v8353_v49 = vld [vmem:[#allocation2 + $0x92] sm:$0xff] }
 0x161   : > { %v1341_v50 = vpack.c.bf16 %v8353_v49, %v1018_v39 }
 0x167   : > { %7172 = vmatmul.mubr.msk.bf16.vlgmr.msra.gmra.mrb[4].mxu1 %vm327_vm2, %v8258_v51  ;;  %v8049_v51 = vld [vmem:[%s9048_s4 + $0x50] sm:$0xff]  }
 0x168   : > { %7180 = vmatpush3.bf16.msra.mxu1 %v8048_v44  ;;  %7175 = vmatprep.mubr.msk.bf16.mxu1 %vm327_vm2, %v8269_v56  ;;  %v8052_v44 = vld [vmem:[%s9048_s4 + $0x60] sm:$0xff]  }
 0x169   : > { %7189 = vmatprep.subr.bf16.mxu0 %v8049_v51 }
 0x16a   : > { %7190 = vmatpush3.bf16.msra.mxu0 %v8049_v51 }
 0x16b   : > { %7199 = vmatprep.subr.bf16.mxu0 %v8050_v52 }
 0x16f   : > { %7176 = vmatmul.mubr.msk.bf16.gmra.mrb[8].mxu1 %vm327_vm2, %v1235_v48 }
 0x170   : > { %7181 = vmatprep.mubr.msk.bf16.mxu1 %vm327_vm2, %v8291_v11 }
 0x177   : > { %7182 = vmatmul.mubr.msk.bf16.vlgmr.msra.gmra.mrb[4].mxu1 %vm327_vm2, %v703_v13 }
 0x178   : > { %7185 = vmatprep.mubr.msk.bf16.mxu1 %vm327_vm2, %v704_v16 }
 0x17f   : > { %7186 = vmatmul.mubr.msk.bf16.gmra.mrb[8].mxu1 %vm327_vm2, %v1341_v50 }
 0x24a   : > { %v7183_v55 = vpop.f32.mrb[4].mxu1 }
 0x24b   : > { %v1443_v56 = vadd.f32 %v7183_v55, %v6474_v53  ;;  %v1397_v57 = vpop.f32.mrb[5].mxu1 }
 0x24c   : > { %v1441_v58 = vadd.f32 %v6474_v53, %v1397_v57  ;;  %v7184_v59 = vpop.f32.mrb[6].mxu1 }
 0x24d   : > { %v1451_v60 = vmax.f32 %v1443_v56, 0.0  ;;  %v1444_v61 = vadd.f32 %v7184_v59, %v6474_v53  ;;  %v1400_v62 = vpop.f32.mrb[7].mxu1 }
 0x24e   : > { %v1449_v63 = vmax.f32 %v1441_v58, 0.0  ;;  %v1442_v0 = vadd.f32 %v6474_v53, %v1400_v62 }
 0x24f   : > { %1459 = vst.msk [vmem:[#allocation2 + $0x31] sm:$0xff] %vm327_vm2, %v1451_v60  ;;  %v1452_v1 = vmax.f32 %v1444_v61, 0.0  ;;  %v8053_v60 = vld [vmem:[%s9048_s4 + $0x68] sm:$0xff]  }
 0x250   : > { %1457 = vst.msk [vmem:[#allocation2 + $0x11] sm:$0xff] %vm327_vm2, %v1449_v63  ;;  %v1450_v2 = vmax.f32 %v1442_v0, 0.0 }
 0x251   : > { %1460 = vst.msk [vmem:[#allocation2 + $0x41] sm:$0xff] %vm327_vm2, %v1452_v1 }
 0x252   : > { %1458 = vst.msk [vmem:[#allocation2 + $0x21] sm:$0xff] %vm327_vm2, %v1450_v2  ;;  %v7187_v4 = vpop.f32.mrb[8].mxu1 }
 0x253   : > { %v1447_v5 = vadd.f32 %v7187_v4, %v6474_v53  ;;  %v1413_v6 = vpop.f32.mrb[9].mxu1  ;;  %v8054_v4 = vld [vmem:[%s9048_s4 + $0x70] sm:$0xff]  }
 0x254   : > { %v1445_v7 = vadd.f32 %v6474_v53, %v1413_v6  ;;  %v7188_v8 = vpop.f32.mrb[10].mxu1 }
 0x255   : > { %v1455_v9 = vmax.f32 %v1447_v5, 0.0  ;;  %v1448_v10 = vadd.f32 %v7188_v8, %v6474_v53  ;;  %v1416_v11 = vpop.f32.mrb[11].mxu1 }
 0x256   : > { %v1453_v12 = vmax.f32 %v1445_v7, 0.0  ;;  %v1446_v13 = vadd.f32 %v6474_v53, %v1416_v11  ;;  %v8379_v19 = vld [vmem:[#allocation2 + $0x31] sm:$0xff] }
 0x257   : > { %1463 = vst.msk [vmem:[#allocation2 + $0x71] sm:$0xff] %vm327_vm2, %v1455_v9  ;;  %v1456_v14 = vmax.f32 %v1448_v10, 0.0  ;;  %v8371_v15 = vld [vmem:[#allocation2 + $0x11] sm:$0xff] }
 0x258   : > { %1461 = vst.msk [vmem:[#allocation2 + $0x51] sm:$0xff] %vm327_vm2, %v1453_v12  ;;  %v1454_v16 = vmax.f32 %v1446_v13, 0.0  ;;  %v1488_v17 = vpack.c.bf16 %v8371_v15, %v8234_v42  ;;  %v1484_v23 = vld [vmem:[#allocation2 + $0x41] sm:$0xff]  ;;  %v1466_v26 = vld [vmem:[#allocation2 + $0x10] sm:$0xff]  ;;  %v8055_v10 = vld [vmem:[%s9048_s4 + $0x78] sm:$0xff]  }
 0x259   : > { %1464 = vst.msk [vmem:[#allocation2 + $0x81] sm:$0xff] %vm327_vm2, %v1456_v14  ;;  %v8377_v18 = vld [vmem:[#allocation2 + $0x21] sm:$0xff]  ;;  %v1473_v31 = vpack.c.bf16 %v1466_v26, %v8266_v54  ;;  %v1468_v36 = vld [vmem:[#allocation2 + $0x30] sm:$0xff]  ;;  %v1882_v9 = vpack.c.bf16 %v1484_v23, %v8379_v19 }
 0x25a   : > { %1462 = vst.msk [vmem:[#allocation2 + $0x61] sm:$0xff] %vm327_vm2, %v1454_v16  ;;  %7191 = vmatprep.mubr.msk.bf16.mxu0 %vm327_vm2, %v1488_v17  ;;  %v8385_v21 = vpack.c.bf16 %v8379_v19, %v8377_v18  ;;  %v1467_v34 = vld [vmem:[#allocation2 + $0x20] sm:$0xff]  ;;  %v1662_v50 = vld [vmem:[#allocation2 + $0x12] sm:$0xff]  ;;  %v1881_v8 = vpack.c.bf16 %v8377_v18, %v8371_v15 }
 0x25b   : > { %v8408_v39 = vpack.c.bf16 %v1468_v36, %v1467_v34  ;;  %v1469_v43 = vld [vmem:[#allocation2 + $0x40] sm:$0xff]  ;;  %v1669_v53 = vpack.c.bf16 %v1662_v50, %v8286_v3  ;;  %v1664_v57 = vld [vmem:[#allocation2 + $0x32] sm:$0xff]  ;;  %v1775_v1 = vpack.c.bf16 %v1467_v34, %v1466_v26 }
 0x25c   : > { %7192 = vmatmul.mubr.msk.bf16.vlgmr.msra.gmra.mrb[4].mxu0 %vm327_vm2, %v8385_v21  ;;  %v1663_v55 = vld [vmem:[#allocation2 + $0x22] sm:$0xff]  ;;  %v1776_v2 = vpack.c.bf16 %v1469_v43, %v1468_v36 }
 0x25d   : > { %7200 = vmatpush3.bf16.msra.mxu0 %v8050_v52  ;;  %v1670_v58 = vpack.c.bf16 %v1664_v57, %v1663_v55  ;;  %v1665_v59 = vld [vmem:[#allocation2 + $0x42] sm:$0xff]  ;;  %v1987_v14 = vpack.c.bf16 %v1663_v55, %v1662_v50 }
 0x25e   : > { %7209 = vmatprep.subr.bf16.mxu0 %v8051_v22  ;;  %v8397_v29 = vld [vmem:[#allocation2 + $0x71] sm:$0xff]  ;;  %v1988_v15 = vpack.c.bf16 %v1665_v59, %v1664_v57  ;;  %v8056_v16 = vld [vmem:[%s9048_s4 + $0x80] sm:$0xff]  }
 0x25f   : > { %v8392_v24 = vld [vmem:[#allocation2 + $0x51] sm:$0xff] }
 0x260   : > { %v8395_v25 = vpack.c.bf16 %v8392_v24, %v1484_v23  ;;  %v1470_v35 = vld [vmem:[#allocation2 + $0x50] sm:$0xff]  ;;  %v1774_v6 = vld [vmem:[#allocation2 + $0x80] sm:$0xff] }
 0x261   : > { %v1486_v28 = vld [vmem:[#allocation2 + $0x61] sm:$0xff]  ;;  %v8413_v46 = vpack.c.bf16 %v1470_v35, %v1469_v43  ;;  %v1472_v51 = vld [vmem:[#allocation2 + $0x70] sm:$0xff]  ;;  %v2096_v23 = vpack.c.bf16 %v8335_v45, %v1774_v6 }
 0x262   : > { %7195 = vmatprep.mubr.msk.bf16.mxu0 %vm327_vm2, %v8395_v25  ;;  %v8402_v30 = vpack.c.bf16 %v8397_v29, %v1486_v28  ;;  %v1471_v48 = vld [vmem:[#allocation2 + $0x60] sm:$0xff]  ;;  %v1666_v56 = vld [vmem:[#allocation2 + $0x52] sm:$0xff]  ;;  %v1778_v7 = vpack.c.bf16 %v1774_v6, %v1472_v51  ;;  %v1883_v11 = vpack.c.bf16 %v1486_v28, %v8392_v24 }
 0x263   : > { %v1476_v52 = vpack.c.bf16 %v1472_v51, %v1471_v48  ;;  %v1671_v61 = vpack.c.bf16 %v1666_v56, %v1665_v59  ;;  %v1667_v62 = vld [vmem:[#allocation2 + $0x62] sm:$0xff]  ;;  %v1668_v63 = vld [vmem:[#allocation2 + $0x72] sm:$0xff]  ;;  %v1777_v5 = vpack.c.bf16 %v1471_v48, %v1470_v35  ;;  %v6538_v28 = vld [vmem:[%s9049_s5 + $0x1] ss:$0 sm:$0xff] }
 0x264   : > { %7196 = vmatmul.mubr.msk.bf16.gmra.mrb[8].mxu0 %vm327_vm2, %v8402_v30  ;;  %v1672_v0 = vpack.c.bf16 %v1668_v63, %v1667_v62  ;;  %v1880_v12 = vld [vmem:[#allocation2 + $0x81] sm:$0xff]  ;;  %v1989_v17 = vpack.c.bf16 %v1667_v62, %v1666_v56 }
 0x265   : > { %7201 = vmatprep.mubr.msk.bf16.mxu0 %vm327_vm2, %v1473_v31  ;;  %v1884_v13 = vpack.c.bf16 %v1880_v12, %v8397_v29  ;;  %v1986_v18 = vld [vmem:[#allocation2 + $0x82] sm:$0xff]  ;;  %v2202_v24 = vpack.c.bf16 %v8345_v47, %v1880_v12 }
 0x266   : > { %v1990_v19 = vpack.c.bf16 %v1986_v18, %v1668_v63  ;;  %v2308_v26 = vpack.c.bf16 %v8353_v49, %v1986_v18 }
 0x26c   : > { %7202 = vmatmul.mubr.msk.bf16.vlgmr.msra.gmra.mrb[4].mxu0 %vm327_vm2, %v8408_v39 }
 0x26d   : > { %7210 = vmatpush3.bf16.msra.mxu0 %v8051_v22  ;;  %7205 = vmatprep.mubr.msk.bf16.mxu0 %vm327_vm2, %v8413_v46  ;;  %v8057_v22 = vld [vmem:[%s9048_s4 + $0x88] sm:$0xff]  }
 0x26e   : > { %7219 = vmatprep.subr.bf16.mxu0 %v8052_v44 }
 0x274   : > { %7206 = vmatmul.mubr.msk.bf16.gmra.mrb[8].mxu0 %vm327_vm2, %v1476_v52 }
 0x275   : > { %7211 = vmatprep.mubr.msk.bf16.mxu0 %vm327_vm2, %v1669_v53 }
 0x27c   : > { %7212 = vmatmul.mubr.msk.bf16.vlgmr.msra.gmra.mrb[4].mxu0 %vm327_vm2, %v1670_v58 }
 0x27d   : > { %7220 = vmatpush3.bf16.msra.mxu0 %v8052_v44  ;;  %7215 = vmatprep.mubr.msk.bf16.mxu0 %vm327_vm2, %v1671_v61 }
 0x27e   : > { %7229 = vmatprep.subr.bf16.mxu0 %v8053_v60 }
 0x284   : > { %7216 = vmatmul.mubr.msk.bf16.gmra.mrb[8].mxu0 %vm327_vm2, %v1672_v0 }
 0x285   : > { %7221 = vmatprep.mubr.msk.bf16.mxu0 %vm327_vm2, %v1775_v1 }
 0x28c   : > { %7222 = vmatmul.mubr.msk.bf16.vlgmr.msra.gmra.mrb[4].mxu0 %vm327_vm2, %v1776_v2 }
 0x28d   : > { %7230 = vmatpush3.bf16.msra.mxu0 %v8053_v60  ;;  %7225 = vmatprep.mubr.msk.bf16.mxu0 %vm327_vm2, %v1777_v5 }
 0x28e   : > { %7239 = vmatprep.subr.bf16.mxu0 %v8054_v4 }
 0x294   : > { %7226 = vmatmul.mubr.msk.bf16.gmra.mrb[8].mxu0 %vm327_vm2, %v1778_v7 }
 0x295   : > { %7231 = vmatprep.mubr.msk.bf16.mxu0 %vm327_vm2, %v1881_v8 }
 0x29c   : > { %7232 = vmatmul.mubr.msk.bf16.vlgmr.msra.gmra.mrb[4].mxu0 %vm327_vm2, %v1882_v9 }
 0x29d   : > { %7240 = vmatpush3.bf16.msra.mxu0 %v8054_v4  ;;  %7235 = vmatprep.mubr.msk.bf16.mxu0 %vm327_vm2, %v1883_v11 }
 0x29e   : > { %7249 = vmatprep.subr.bf16.mxu0 %v8055_v10 }
 0x2a4   : > { %7236 = vmatmul.mubr.msk.bf16.gmra.mrb[8].mxu0 %vm327_vm2, %v1884_v13 }
 0x2a5   : > { %7241 = vmatprep.mubr.msk.bf16.mxu0 %vm327_vm2, %v1987_v14 }
 0x2ac   : > { %7242 = vmatmul.mubr.msk.bf16.vlgmr.msra.gmra.mrb[4].mxu0 %vm327_vm2, %v1988_v15 }
 0x2ad   : > { %7250 = vmatpush3.bf16.msra.mxu0 %v8055_v10  ;;  %7245 = vmatprep.mubr.msk.bf16.mxu0 %vm327_vm2, %v1989_v17 }
 0x2ae   : > { %7259 = vmatprep.subr.bf16.mxu0 %v8056_v16 }
 0x2b4   : > { %7246 = vmatmul.mubr.msk.bf16.gmra.mrb[8].mxu0 %vm327_vm2, %v1990_v19  ;;  %v8061_v19 = vld [vmem:[%s9048_s4 + $0xa8] sm:$0xff]  }
 0x2b5   : > { %7251 = vmatprep.mubr.msk.bf16.mxu0 %vm327_vm2, %v8408_v39 }
 0x2bc   : > { %7252 = vmatmul.mubr.msk.bf16.vlgmr.msra.gmra.mrb[4].mxu0 %vm327_vm2, %v8413_v46 }
 0x2bd   : > { %7260 = vmatpush3.bf16.msra.mxu0 %v8056_v16  ;;  %7255 = vmatprep.mubr.msk.bf16.mxu0 %vm327_vm2, %v1476_v52 }
 0x2be   : > { %7269 = vmatprep.subr.bf16.mxu0 %v8057_v22 }
 0x2c4   : > { %7256 = vmatmul.mubr.msk.bf16.gmra.mrb[8].mxu0 %vm327_vm2, %v2096_v23 }
 0x2c5   : > { %7261 = vmatprep.mubr.msk.bf16.mxu0 %vm327_vm2, %v8385_v21  ;;  %v8058_v21 = vld [vmem:[%s9048_s4 + $0x98] sm:$0xff]  }
 0x2c6   : > { %7279 = vmatprep.subr.bf16.mxu1 %v8058_v21 }
 0x2c7   : > { %7280 = vmatpush3.bf16.msra.mxu1 %v8058_v21 }
 0x2cc   : > { %7262 = vmatmul.mubr.msk.bf16.vlgmr.msra.gmra.mrb[4].mxu0 %vm327_vm2, %v8395_v25  ;;  %v8059_v25 = vld [vmem:[%s9048_s4 + $0x90] sm:$0xff]  }
 0x2cd   : > { %7270 = vmatpush3.bf16.msra.mxu0 %v8057_v22  ;;  %7265 = vmatprep.mubr.msk.bf16.mxu0 %vm327_vm2, %v8402_v30 }
 0x2ce   : > { %7289 = vmatprep.subr.bf16.mxu1 %v8059_v25 }
 0x2d4   : > { %7266 = vmatmul.mubr.msk.bf16.gmra.mrb[8].mxu0 %vm327_vm2, %v2202_v24 }
 0x2d5   : > { %7271 = vmatprep.mubr.msk.bf16.mxu0 %vm327_vm2, %v1670_v58 }
 0x2dc   : > { %7272 = vmatmul.mubr.msk.bf16.vlgmr.msra.gmra.mrb[4].mxu0 %vm327_vm2, %v1671_v61 }
 0x2dd   : > { %7275 = vmatprep.mubr.msk.bf16.mxu0 %vm327_vm2, %v1672_v0 }
 0x2e4   : > { %7276 = vmatmul.mubr.msk.bf16.gmra.mrb[8].mxu0 %vm327_vm2, %v2308_v26 }
 0x3af   : > { %v7273_v29 = vpop.f32.mrb[4].mxu0 }
 0x3b0   : > { %v2410_v30 = vadd.f32 %v7273_v29, %v6538_v28  ;;  %v2364_v31 = vpop.f32.mrb[5].mxu0 }
 0x3b1   : > { %v2408_v34 = vadd.f32 %v6538_v28, %v2364_v31  ;;  %v7274_v35 = vpop.f32.mrb[6].mxu0 }
 0x3b2   : > { %v8487_v36 = vadd.f32 %v2410_v30, %v8202_v20  ;;  %v2411_v39 = vadd.f32 %v7274_v35, %v6538_v28  ;;  %v2367_v43 = vpop.f32.mrb[7].mxu0 }
 0x3b3   : > { %v8490_v44 = vadd.f32 %v2408_v34, %v8204_v27  ;;  %v2409_v46 = vadd.f32 %v6538_v28, %v2367_v43  ;;  %v8062_v34 = vld [vmem:[%s9048_s4 + $0xb0] sm:$0xff]  }
 0x3b4   : > { %2426 = vst.msk [vmem:[#allocation2 + $0x31] sm:$0xff] %vm327_vm2, %v8487_v36  ;;  %v8495_v48 = vadd.f32 %v2411_v39, %v8210_v33 }
 0x3b5   : > { %2424 = vst.msk [vmem:[#allocation2 + $0x11] sm:$0xff] %vm327_vm2, %v8490_v44  ;;  %v8500_v50 = vadd.f32 %v2409_v46, %v8216_v38 }
 0x3b6   : > { %2427 = vst.msk [vmem:[#allocation2 + $0x41] sm:$0xff] %vm327_vm2, %v8495_v48 }
 0x3b7   : > { %2425 = vst.msk [vmem:[#allocation2 + $0x21] sm:$0xff] %vm327_vm2, %v8500_v50  ;;  %v7277_v51 = vpop.f32.mrb[8].mxu0 }
 0x3b8   : > { %v2414_v52 = vadd.f32 %v7277_v51, %v6538_v28  ;;  %v2380_v53 = vpop.f32.mrb[9].mxu0 }
 0x3b9   : > { %v2412_v55 = vadd.f32 %v6538_v28, %v2380_v53  ;;  %v7278_v56 = vpop.f32.mrb[10].mxu0 }
 0x3ba   : > { %v8507_v57 = vadd.f32 %v2414_v52, %v8208_v32  ;;  %v2415_v58 = vadd.f32 %v7278_v56, %v6538_v28  ;;  %v2383_v59 = vpop.f32.mrb[11].mxu0  ;;  %v8063_v52 = vld [vmem:[%s9048_s4 + $0xb8] sm:$0xff]  }
 0x3bb   : > { %v8510_v60 = vadd.f32 %v2412_v55, %v8214_v37  ;;  %v2413_v61 = vadd.f32 %v6538_v28, %v2383_v59  ;;  %v8530_v4 = vld [vmem:[#allocation2 + $0x31] sm:$0xff] }
 0x3bc   : > { %2430 = vst.msk [vmem:[#allocation2 + $0x71] sm:$0xff] %vm327_vm2, %v8507_v57  ;;  %v8515_v62 = vadd.f32 %v2415_v58, %v8222_v40  ;;  %v8517_v63 = vld [vmem:[#allocation2 + $0x11] sm:$0xff] }
 0x3bd   : > { %2428 = vst.msk [vmem:[#allocation2 + $0x51] sm:$0xff] %vm327_vm2, %v8510_v60  ;;  %v8522_v0 = vadd.f32 %v2413_v61, %v8228_v41  ;;  %v2455_v1 = vpack.c.bf16 %v8517_v63, %v8234_v42  ;;  %v8060_v42 = vld [vmem:[%s9048_s4 + $0xa0] sm:$0xff]   ;;  %v2433_v9 = vld [vmem:[#allocation2 + $0x10] sm:$0xff] }
 0x3be   : > { %2431 = vst.msk [vmem:[#allocation2 + $0x81] sm:$0xff] %vm327_vm2, %v8515_v62  ;;  %v8528_v2 = vld [vmem:[#allocation2 + $0x21] sm:$0xff]  ;;  %v2440_v13 = vpack.c.bf16 %v2433_v9, %v8266_v54  ;;  %v2435_v16 = vld [vmem:[#allocation2 + $0x30] sm:$0xff] }
 0x3bf   : > { %2429 = vst.msk [vmem:[#allocation2 + $0x61] sm:$0xff] %vm327_vm2, %v8522_v0  ;;  %7281 = vmatprep.mubr.msk.bf16.mxu1 %vm327_vm2, %v2455_v1  ;;  %v8537_v5 = vpack.c.bf16 %v8530_v4, %v8528_v2  ;;  %v2451_v6 = vld [vmem:[#allocation2 + $0x41] sm:$0xff]  ;;  %v2629_v23 = vld [vmem:[#allocation2 + $0x12] sm:$0xff]  ;;  %v2848_v58 = vpack.c.bf16 %v8528_v2, %v8517_v63 }
 0x3c0   : > { %v2434_v14 = vld [vmem:[#allocation2 + $0x20] sm:$0xff]  ;;  %v2636_v21 = vpack.c.bf16 %v2629_v23, %v8286_v3  ;;  %v2631_v29 = vld [vmem:[#allocation2 + $0x32] sm:$0xff]  ;;  %v2849_v59 = vpack.c.bf16 %v2451_v6, %v8530_v4 }
 0x3c1   : > { %7282 = vmatmul.mubr.msk.bf16.vlgmr.msra.gmra.mrb[12].mxu1 %vm327_vm2, %v8537_v5  ;;  %v8560_v17 = vpack.c.bf16 %v2435_v16, %v2434_v14  ;;  %v2436_v18 = vld [vmem:[#allocation2 + $0x40] sm:$0xff]  ;;  %v2742_v46 = vpack.c.bf16 %v2434_v14, %v2433_v9 }
 0x3c2   : > { %7290 = vmatpush3.bf16.msra.mxu1 %v8059_v25  ;;  %v2630_v25 = vld [vmem:[#allocation2 + $0x22] sm:$0xff]  ;;  %v2743_v51 = vpack.c.bf16 %v2436_v18, %v2435_v16 }
 0x3c3   : > { %7299 = vmatprep.subr.bf16.mxu1 %v8060_v42  ;;  %v8549_v11 = vld [vmem:[#allocation2 + $0x71] sm:$0xff]  ;;  %v2637_v30 = vpack.c.bf16 %v2631_v29, %v2630_v25  ;;  %v2632_v31 = vld [vmem:[#allocation2 + $0x42] sm:$0xff]  ;;  %v2954_v2 = vpack.c.bf16 %v2630_v25, %v2629_v23 }
 0x3c4   : > { %v8544_v7 = vld [vmem:[#allocation2 + $0x51] sm:$0xff]  ;;  %v8064_v61 = vld [vmem:[%s9048_s4 + $0xc0] sm:$0xff]   ;;  %v2955_v4 = vpack.c.bf16 %v2632_v31, %v2631_v29 }
 0x3c5   : > { %v8547_v8 = vpack.c.bf16 %v8544_v7, %v2451_v6  ;;  %v2437_v15 = vld [vmem:[#allocation2 + $0x50] sm:$0xff]  ;;  %v2741_v55 = vld [vmem:[#allocation2 + $0x80] sm:$0xff]  ;;  %v8065_v6 = vld [vmem:[%s9048_s4 + $0xc8] sm:$0xff]  }
 0x3c6   : > { %v2453_v10 = vld [vmem:[#allocation2 + $0x61] sm:$0xff]  ;;  %v8565_v22 = vpack.c.bf16 %v2437_v15, %v2436_v18  ;;  %v2439_v24 = vld [vmem:[#allocation2 + $0x70] sm:$0xff] }
 0x3c7   : > { %7285 = vmatprep.mubr.msk.bf16.mxu1 %vm327_vm2, %v8547_v8  ;;  %v8554_v12 = vpack.c.bf16 %v8549_v11, %v2453_v10  ;;  %v2438_v54 = vld [vmem:[#allocation2 + $0x60] sm:$0xff]  ;;  %v2633_v28 = vld [vmem:[#allocation2 + $0x52] sm:$0xff]  ;;  %v2745_v56 = vpack.c.bf16 %v2741_v55, %v2439_v24  ;;  %v2850_v1 = vpack.c.bf16 %v2453_v10, %v8544_v7 }
 0x3c8   : > { %v2443_v26 = vpack.c.bf16 %v2439_v24, %v2438_v54  ;;  %v2638_v35 = vpack.c.bf16 %v2633_v28, %v2632_v31  ;;  %v2634_v3 = vld [vmem:[#allocation2 + $0x62] sm:$0xff]  ;;  %v2635_v39 = vld [vmem:[#allocation2 + $0x72] sm:$0xff]  ;;  %v2744_v53 = vpack.c.bf16 %v2438_v54, %v2437_v15 }
 0x3c9   : > { %7286 = vmatmul.mubr.msk.bf16.gmra.mrb[16].mxu1 %vm327_vm2, %v8554_v12  ;;  %v2639_v43 = vpack.c.bf16 %v2635_v39, %v2634_v3  ;;  %v2956_v7 = vpack.c.bf16 %v2634_v3, %v2633_v28  ;;  %v2953_v9 = vld [vmem:[#allocation2 + $0x82] sm:$0xff] }
 0x3ca   : > { %7291 = vmatprep.mubr.msk.bf16.mxu1 %vm327_vm2, %v2440_v13  ;;  %v2957_v10 = vpack.c.bf16 %v2953_v9, %v2635_v39  ;;  %v3063_v13 = vpack.c.bf16 %v8335_v45, %v2741_v55  ;;  %v3275_v45 = vpack.c.bf16 %v8353_v49, %v2953_v9  ;;  %v8642_v3 = vld [vmem:[#allocation2 + $0x1] sm:$0xff] }
 0x3d1   : > { %7292 = vmatmul.mubr.msk.bf16.vlgmr.msra.gmra.mrb[12].mxu1 %vm327_vm2, %v8560_v17 }
 0x3d2   : > { %7300 = vmatpush3.bf16.msra.mxu1 %v8060_v42  ;;  %7295 = vmatprep.mubr.msk.bf16.mxu1 %vm327_vm2, %v8565_v22  ;;  %v2847_v42 = vld [vmem:[#allocation2 + $0x81] sm:$0xff] }
 0x3d3   : > { %7309 = vmatprep.subr.bf16.mxu1 %v8061_v19  ;;  %v2851_v63 = vpack.c.bf16 %v2847_v42, %v8549_v11  ;;  %v8066_v11 = vld [vmem:[%s9048_s4 + $0xd0] sm:$0xff]   ;;  %v3169_v14 = vpack.c.bf16 %v8345_v47, %v2847_v42  ;;  %v8068_v47 = vld [vmem:[%s9048_s4 + $0xd8] sm:$0xff]  }
 0x3d9   : > { %7296 = vmatmul.mubr.msk.bf16.gmra.mrb[16].mxu1 %vm327_vm2, %v2443_v26 }
 0x3da   : > { %7301 = vmatprep.mubr.msk.bf16.mxu1 %vm327_vm2, %v2636_v21 }
 0x3e1   : > { %7302 = vmatmul.mubr.msk.bf16.vlgmr.msra.gmra.mrb[12].mxu1 %vm327_vm2, %v2637_v30 }
 0x3e2   : > { %7310 = vmatpush3.bf16.msra.mxu1 %v8061_v19  ;;  %7305 = vmatprep.mubr.msk.bf16.mxu1 %vm327_vm2, %v2638_v35 }
 0x3e3   : > { %7319 = vmatprep.subr.bf16.mxu1 %v8062_v34 }
 0x3e9   : > { %7306 = vmatmul.mubr.msk.bf16.gmra.mrb[16].mxu1 %vm327_vm2, %v2639_v43 }
 0x3ea   : > { %7311 = vmatprep.mubr.msk.bf16.mxu1 %vm327_vm2, %v2742_v46 }
 0x3f1   : > { %7312 = vmatmul.mubr.msk.bf16.vlgmr.msra.gmra.mrb[12].mxu1 %vm327_vm2, %v2743_v51 }
 0x3f2   : > { %7320 = vmatpush3.bf16.msra.mxu1 %v8062_v34  ;;  %7315 = vmatprep.mubr.msk.bf16.mxu1 %vm327_vm2, %v2744_v53 }
 0x3f3   : > { %7329 = vmatprep.subr.bf16.mxu1 %v8063_v52 }
 0x3f9   : > { %7316 = vmatmul.mubr.msk.bf16.gmra.mrb[16].mxu1 %vm327_vm2, %v2745_v56 }
 0x3fa   : > { %7321 = vmatprep.mubr.msk.bf16.mxu1 %vm327_vm2, %v2848_v58 }
 0x401   : > { %7322 = vmatmul.mubr.msk.bf16.vlgmr.msra.gmra.mrb[12].mxu1 %vm327_vm2, %v2849_v59  ;;  %v8069_v59 = vld [vmem:[%s9048_s4 + $0xe8] sm:$0xff]  }
 0x402   : > { %7330 = vmatpush3.bf16.msra.mxu1 %v8063_v52  ;;  %7325 = vmatprep.mubr.msk.bf16.mxu1 %vm327_vm2, %v2850_v1 }
 0x403   : > { %7339 = vmatprep.subr.bf16.mxu1 %v8064_v61 }
 0x409   : > { %7326 = vmatmul.mubr.msk.bf16.gmra.mrb[16].mxu1 %vm327_vm2, %v2851_v63  ;;  %v8674_v63 = vld [vmem:[#allocation2] sm:$0xff] }
 0x40a   : > { %7331 = vmatprep.mubr.msk.bf16.mxu1 %vm327_vm2, %v2954_v2 }
 0x411   : > { %7332 = vmatmul.mubr.msk.bf16.vlgmr.msra.gmra.mrb[12].mxu1 %vm327_vm2, %v2955_v4 }
 0x412   : > { %7340 = vmatpush3.bf16.msra.mxu1 %v8064_v61  ;;  %7335 = vmatprep.mubr.msk.bf16.mxu1 %vm327_vm2, %v2956_v7 }
 0x413   : > { %7349 = vmatprep.subr.bf16.mxu1 %v8065_v6 }
 0x419   : > { %7336 = vmatmul.mubr.msk.bf16.gmra.mrb[16].mxu1 %vm327_vm2, %v2957_v10 }
 0x41a   : > { %7341 = vmatprep.mubr.msk.bf16.mxu1 %vm327_vm2, %v8560_v17 }
 0x421   : > { %7342 = vmatmul.mubr.msk.bf16.vlgmr.msra.gmra.mrb[12].mxu1 %vm327_vm2, %v8565_v22 }
 0x422   : > { %7350 = vmatpush3.bf16.msra.mxu1 %v8065_v6  ;;  %7345 = vmatprep.mubr.msk.bf16.mxu1 %vm327_vm2, %v2443_v26 }
 0x423   : > { %7359 = vmatprep.subr.bf16.mxu1 %v8066_v11 }
 0x429   : > { %7346 = vmatmul.mubr.msk.bf16.gmra.mrb[16].mxu1 %vm327_vm2, %v3063_v13 }
 0x42a   : > { %7351 = vmatprep.mubr.msk.bf16.mxu1 %vm327_vm2, %v8537_v5  ;;  %v8067_v5 = vld [vmem:[%s9048_s4 + $0xe0] sm:$0xff]  }
 0x42b   : > { %7369 = vmatprep.subr.bf16.mxu0 %v8067_v5 }
 0x42c   : > { %7370 = vmatpush3.bf16.msra.mxu0 %v8067_v5  ;;  %v8070_v5 = vld [vmem:[%s9048_s4 + $0xf0] sm:$0xff]  }
 0x42d   : > { %7379 = vmatprep.subr.bf16.mxu0 %v8068_v47 }
 0x431   : > { %7352 = vmatmul.mubr.msk.bf16.vlgmr.msra.gmra.mrb[12].mxu1 %vm327_vm2, %v8547_v8  ;;  %v6602_v8 = vld [vmem:[%s9049_s5 + $0x2] ss:$0 sm:$0xff] }
 0x432   : > { %7360 = vmatpush3.bf16.msra.mxu1 %v8066_v11  ;;  %7355 = vmatprep.mubr.msk.bf16.mxu1 %vm327_vm2, %v8554_v12 }
 0x439   : > { %7356 = vmatmul.mubr.msk.bf16.gmra.mrb[16].mxu1 %vm327_vm2, %v3169_v14 }
 0x43a   : > { %7361 = vmatprep.mubr.msk.bf16.mxu1 %vm327_vm2, %v2637_v30 }
 0x441   : > { %7362 = vmatmul.mubr.msk.bf16.vlgmr.msra.gmra.mrb[12].mxu1 %vm327_vm2, %v2638_v35 }
 0x442   : > { %7365 = vmatprep.mubr.msk.bf16.mxu1 %vm327_vm2, %v2639_v43 }
 0x449   : > { %7366 = vmatmul.mubr.msk.bf16.gmra.mrb[16].mxu1 %vm327_vm2, %v3275_v45 }
 0x514   : > { %v7363_v12 = vpop.f32.mrb[12].mxu1 }
 0x515   : > { %v3377_v15 = vadd.f32 %v7363_v12, %v6602_v8  ;;  %v3331_v49 = vpop.f32.mrb[13].mxu1  ;;  %v8698_v12 = vld [vmem:[#allocation2 + $0x2] sm:$0xff] }
 0x516   : > { %v3375_v16 = vadd.f32 %v6602_v8, %v3331_v49  ;;  %v7364_v17 = vpop.f32.mrb[14].mxu1 }
 0x517   : > { %v3385_v18 = vmax.f32 %v3377_v15, 0.0  ;;  %v3378_v19 = vadd.f32 %v7364_v17, %v6602_v8  ;;  %v3334_v22 = vpop.f32.mrb[15].mxu1 }
 0x518   : > { %v3383_v54 = vmax.f32 %v3375_v16, 0.0  ;;  %v3376_v23 = vadd.f32 %v6602_v8, %v3334_v22 }
 0x519   : > { %3393 = vst.msk [vmem:[#allocation2 + $0x31] sm:$0xff] %vm327_vm2, %v3385_v18  ;;  %v3386_v24 = vmax.f32 %v3378_v19, 0.0 }
 0x51a   : > { %3391 = vst.msk [vmem:[#allocation2 + $0x11] sm:$0xff] %vm327_vm2, %v3383_v54  ;;  %v3384_v26 = vmax.f32 %v3376_v23, 0.0 }
 0x51b   : > { %3394 = vst.msk [vmem:[#allocation2 + $0x41] sm:$0xff] %vm327_vm2, %v3386_v24  ;;  %v8071_v24 = vld [vmem:[%s9048_s4 + $0xf8] sm:$0xff]  }
 0x51c   : > { %3392 = vst.msk [vmem:[#allocation2 + $0x21] sm:$0xff] %vm327_vm2, %v3384_v26  ;;  %v7367_v21 = vpop.f32.mrb[16].mxu1 }
 0x51d   : > { %v3381_v25 = vadd.f32 %v7367_v21, %v6602_v8  ;;  %v3347_v28 = vpop.f32.mrb[17].mxu1 }
 0x51e   : > { %v3379_v29 = vadd.f32 %v6602_v8, %v3347_v28  ;;  %v7368_v30 = vpop.f32.mrb[18].mxu1 }
 0x51f   : > { %v3389_v31 = vmax.f32 %v3381_v25, 0.0  ;;  %v3382_v34 = vadd.f32 %v7368_v30, %v6602_v8  ;;  %v3350_v35 = vpop.f32.mrb[19].mxu1 }
 0x520   : > { %v3387_v39 = vmax.f32 %v3379_v29, 0.0  ;;  %v3380_v43 = vadd.f32 %v6602_v8, %v3350_v35  ;;  %v8653_v56 = vld [vmem:[#allocation2 + $0x31] sm:$0xff] }
 0x521   : > { %3397 = vst.msk [vmem:[#allocation2 + $0x71] sm:$0xff] %vm327_vm2, %v3389_v31  ;;  %v3390_v46 = vmax.f32 %v3382_v34, 0.0  ;;  %v8645_v51 = vld [vmem:[#allocation2 + $0x11] sm:$0xff]  ;;  %v8072_v31 = vld [vmem:[%s9048_s4 + $0x100] sm:$0xff]  }
 0x522   : > { %3395 = vst.msk [vmem:[#allocation2 + $0x51] sm:$0xff] %vm327_vm2, %v3387_v39  ;;  %v3388_v52 = vmax.f32 %v3380_v43, 0.0  ;;  %v3422_v53 = vpack.c.bf16 %v8645_v51, %v8642_v3  ;;  %v8666_v61 = vld [vmem:[#allocation2 + $0x41] sm:$0xff]  ;;  %v3400_v2 = vld [vmem:[#allocation2 + $0x10] sm:$0xff] }
 0x523   : > { %3398 = vst.msk [vmem:[#allocation2 + $0x81] sm:$0xff] %vm327_vm2, %v3390_v46  ;;  %v8651_v55 = vld [vmem:[#allocation2 + $0x21] sm:$0xff]  ;;  %v3407_v9 = vpack.c.bf16 %v3400_v2, %v8674_v63  ;;  %v3402_v13 = vld [vmem:[#allocation2 + $0x30] sm:$0xff]  ;;  %v3816_v46 = vpack.c.bf16 %v8666_v61, %v8653_v56 }
 0x524   : > { %3396 = vst.msk [vmem:[#allocation2 + $0x61] sm:$0xff] %vm327_vm2, %v3388_v52  ;;  %7371 = vmatprep.mubr.msk.bf16.mxu0 %vm327_vm2, %v3422_v53  ;;  %v8659_v58 = vpack.c.bf16 %v8653_v56, %v8651_v55  ;;  %v3401_v10 = vld [vmem:[#allocation2 + $0x20] sm:$0xff]  ;;  %v3596_v15 = vld [vmem:[#allocation2 + $0x12] sm:$0xff]  ;;  %v3815_v43 = vpack.c.bf16 %v8651_v55, %v8645_v51  ;;  %v8073_v52 = vld [vmem:[%s9048_s4 + $0x108] sm:$0xff]  }
 0x525   : > { %v8687_v14 = vpack.c.bf16 %v3402_v13, %v3401_v10  ;;  %v3403_v45 = vld [vmem:[#allocation2 + $0x40] sm:$0xff]  ;;  %v3603_v17 = vpack.c.bf16 %v3596_v15, %v8698_v12  ;;  %v3598_v22 = vld [vmem:[#allocation2 + $0x32] sm:$0xff]  ;;  %v3709_v29 = vpack.c.bf16 %v3401_v10, %v3400_v2 }
 0x526   : > { %7372 = vmatmul.mubr.msk.bf16.vlgmr.msra.gmra.mrb[12].mxu0 %vm327_vm2, %v8659_v58  ;;  %v3597_v18 = vld [vmem:[#allocation2 + $0x22] sm:$0xff]  ;;  %v3710_v30 = vpack.c.bf16 %v3403_v45, %v3402_v13 }
 0x527   : > { %7380 = vmatpush3.bf16.msra.mxu0 %v8068_v47  ;;  %v8703_v54 = vpack.c.bf16 %v3598_v22, %v3597_v18  ;;  %v3599_v23 = vld [vmem:[#allocation2 + $0x42] sm:$0xff] }
 0x528   : > { %7389 = vmatprep.subr.bf16.mxu0 %v8069_v59  ;;  %v8676_v6 = vld [vmem:[#allocation2 + $0x71] sm:$0xff]  ;;  %v3922_v56 = vpack.c.bf16 %v3599_v23, %v3598_v22 }
 0x529   : > { %v8668_v1 = vld [vmem:[#allocation2 + $0x51] sm:$0xff] }
 0x52a   : > { %v8672_v42 = vpack.c.bf16 %v8668_v1, %v8666_v61  ;;  %v3404_v11 = vld [vmem:[#allocation2 + $0x50] sm:$0xff]  ;;  %v3708_v35 = vld [vmem:[#allocation2 + $0x80] sm:$0xff] }
 0x52b   : > { %v3420_v4 = vld [vmem:[#allocation2 + $0x61] sm:$0xff]  ;;  %v8692_v47 = vpack.c.bf16 %v3404_v11, %v3403_v45  ;;  %v3406_v49 = vld [vmem:[#allocation2 + $0x70] sm:$0xff] }
 0x52c   : > { %7375 = vmatprep.mubr.msk.bf16.mxu0 %vm327_vm2, %v8672_v42  ;;  %v8681_v7 = vpack.c.bf16 %v8676_v6, %v3420_v4  ;;  %v3405_v8 = vld [vmem:[#allocation2 + $0x60] sm:$0xff]  ;;  %v3600_v19 = vld [vmem:[#allocation2 + $0x52] sm:$0xff]  ;;  %v3712_v39 = vpack.c.bf16 %v3708_v35, %v3406_v49  ;;  %v3817_v53 = vpack.c.bf16 %v3420_v4, %v8668_v1 }
 0x52d   : > { %v3410_v16 = vpack.c.bf16 %v3406_v49, %v3405_v8  ;;  %v3605_v26 = vpack.c.bf16 %v3600_v19, %v3599_v23  ;;  %v3601_v21 = vld [vmem:[#allocation2 + $0x62] sm:$0xff]  ;;  %v3602_v25 = vld [vmem:[#allocation2 + $0x72] sm:$0xff]  ;;  %v3711_v34 = vpack.c.bf16 %v3405_v8, %v3404_v11 }
 0x52e   : > { %7376 = vmatmul.mubr.msk.bf16.gmra.mrb[16].mxu0 %vm327_vm2, %v8681_v7  ;;  %v3606_v28 = vpack.c.bf16 %v3602_v25, %v3601_v21  ;;  %v3814_v51 = vld [vmem:[#allocation2 + $0x81] sm:$0xff]  ;;  %v8074_v61 = vld [vmem:[%s9048_s4 + $0x110] sm:$0xff]   ;;  %v3923_v1 = vpack.c.bf16 %v3601_v21, %v3600_v19 }
 0x52f   : > { %7381 = vmatprep.mubr.msk.bf16.mxu0 %vm327_vm2, %v3407_v9  ;;  %v3818_v55 = vpack.c.bf16 %v3814_v51, %v8676_v6  ;;  %v3920_v2 = vld [vmem:[#allocation2 + $0x82] sm:$0xff]  ;;  %v8075_v6 = vld [vmem:[%s9048_s4 + $0x118] sm:$0xff]   ;;  %v8747_v9 = vld [vmem:[#allocation2 + $0x90] sm:$0xff] }
 0x530   : > { %v3924_v4 = vpack.c.bf16 %v3920_v2, %v3602_v25  ;;  %v4030_v10 = vpack.c.bf16 %v8747_v9, %v3708_v35  ;;  %v8757_v11 = vld [vmem:[#allocation2 + $0x91] sm:$0xff]  ;;  %v6666_v45 = vld [vmem:[%s9049_s5 + $0x3] ss:$0 sm:$0xff] }
 0x531   : > { %v4136_v13 = vpack.c.bf16 %v8757_v11, %v3814_v51 }
 0x536   : > { %7382 = vmatmul.mubr.msk.bf16.vlgmr.msra.gmra.mrb[12].mxu0 %vm327_vm2, %v8687_v14 }
 0x537   : > { %7390 = vmatpush3.bf16.msra.mxu0 %v8069_v59  ;;  %7385 = vmatprep.mubr.msk.bf16.mxu0 %vm327_vm2, %v8692_v47  ;;  %v3921_v59 = vpack.c.bf16 %v3597_v18, %v3596_v15 }
 0x538   : > { %7399 = vmatprep.subr.bf16.mxu0 %v8070_v5 }
 0x53e   : > { %7386 = vmatmul.mubr.msk.bf16.gmra.mrb[16].mxu0 %vm327_vm2, %v3410_v16 }
 0x53f   : > { %7391 = vmatprep.mubr.msk.bf16.mxu0 %vm327_vm2, %v3603_v17 }
 0x546   : > { %7392 = vmatmul.mubr.msk.bf16.vlgmr.msra.gmra.mrb[12].mxu0 %vm327_vm2, %v8703_v54 }
 0x547   : > { %7400 = vmatpush3.bf16.msra.mxu0 %v8070_v5  ;;  %7395 = vmatprep.mubr.msk.bf16.mxu0 %vm327_vm2, %v3605_v26 }
 0x548   : > { %7409 = vmatprep.subr.bf16.mxu0 %v8071_v24 }
 0x54e   : > { %7396 = vmatmul.mubr.msk.bf16.gmra.mrb[16].mxu0 %vm327_vm2, %v3606_v28 }
 0x54f   : > { %7401 = vmatprep.mubr.msk.bf16.mxu0 %vm327_vm2, %v3709_v29 }
 0x556   : > { %7402 = vmatmul.mubr.msk.bf16.vlgmr.msra.gmra.mrb[12].mxu0 %vm327_vm2, %v3710_v30 }
 0x557   : > { %7410 = vmatpush3.bf16.msra.mxu0 %v8071_v24  ;;  %7405 = vmatprep.mubr.msk.bf16.mxu0 %vm327_vm2, %v3711_v34 }
 0x558   : > { %7419 = vmatprep.subr.bf16.mxu0 %v8072_v31 }
 0x55e   : > { %7406 = vmatmul.mubr.msk.bf16.gmra.mrb[16].mxu0 %vm327_vm2, %v3712_v39 }
 0x55f   : > { %7411 = vmatprep.mubr.msk.bf16.mxu0 %vm327_vm2, %v3815_v43 }
 0x566   : > { %7412 = vmatmul.mubr.msk.bf16.vlgmr.msra.gmra.mrb[12].mxu0 %vm327_vm2, %v3816_v46 }
 0x567   : > { %7420 = vmatpush3.bf16.msra.mxu0 %v8072_v31  ;;  %7415 = vmatprep.mubr.msk.bf16.mxu0 %vm327_vm2, %v3817_v53 }
 0x568   : > { %7429 = vmatprep.subr.bf16.mxu0 %v8073_v52 }
 0x56e   : > { %7416 = vmatmul.mubr.msk.bf16.gmra.mrb[16].mxu0 %vm327_vm2, %v3818_v55 }
 0x56f   : > { %7421 = vmatprep.mubr.msk.bf16.mxu0 %vm327_vm2, %v3921_v59 }
 0x576   : > { %7422 = vmatmul.mubr.msk.bf16.vlgmr.msra.gmra.mrb[12].mxu0 %vm327_vm2, %v3922_v56 }
 0x577   : > { %7430 = vmatpush3.bf16.msra.mxu0 %v8073_v52  ;;  %7425 = vmatprep.mubr.msk.bf16.mxu0 %vm327_vm2, %v3923_v1 }
 0x578   : > { %7439 = vmatprep.subr.bf16.mxu0 %v8074_v61 }
 0x57e   : > { %7426 = vmatmul.mubr.msk.bf16.gmra.mrb[16].mxu0 %vm327_vm2, %v3924_v4 }
 0x57f   : > { %7431 = vmatprep.mubr.msk.bf16.mxu0 %vm327_vm2, %v8687_v14  ;;  %v8077_v14 = vld [vmem:[%s9048_s4 + $0x120] sm:$0xff]  }
 0x586   : > { %7432 = vmatmul.mubr.msk.bf16.vlgmr.msra.gmra.mrb[12].mxu0 %vm327_vm2, %v8692_v47 }
 0x587   : > { %7440 = vmatpush3.bf16.msra.mxu0 %v8074_v61  ;;  %7435 = vmatprep.mubr.msk.bf16.mxu0 %vm327_vm2, %v3410_v16 }
 0x588   : > { %7449 = vmatprep.subr.bf16.mxu0 %v8075_v6 }
 0x58e   : > { %7436 = vmatmul.mubr.msk.bf16.gmra.mrb[16].mxu0 %vm327_vm2, %v4030_v10 }
 0x58f   : > { %7441 = vmatprep.mubr.msk.bf16.mxu0 %vm327_vm2, %v8659_v58  ;;  %v8765_v58 = vld [vmem:[#allocation2 + $0x92] sm:$0xff] }
 0x596   : > { %7442 = vmatmul.mubr.msk.bf16.vlgmr.msra.gmra.mrb[12].mxu0 %vm327_vm2, %v8672_v42  ;;  %v4242_v42 = vpack.c.bf16 %v8765_v58, %v3920_v2 }
 0x597   : > { %7450 = vmatpush3.bf16.msra.mxu0 %v8075_v6  ;;  %7445 = vmatprep.mubr.msk.bf16.mxu0 %vm327_vm2, %v8681_v7  ;;  %v8076_v7 = vld [vmem:[%s9048_s4 + $0x128] sm:$0xff]   ;;  %v8079_v6 = vld [vmem:[%s9048_s4 + $0x138] sm:$0xff]  }
 0x598   : > { %7459 = vmatprep.subr.bf16.mxu1 %v8076_v7 }
 0x599   : > { %7460 = vmatpush3.bf16.msra.mxu1 %v8076_v7 }
 0x59a   : > { %7469 = vmatprep.subr.bf16.mxu1 %v8077_v14 }
 0x59e   : > { %7446 = vmatmul.mubr.msk.bf16.gmra.mrb[16].mxu0 %vm327_vm2, %v4136_v13 }
 0x59f   : > { %7451 = vmatprep.mubr.msk.bf16.mxu0 %vm327_vm2, %v8703_v54 }
 0x5a6   : > { %7452 = vmatmul.mubr.msk.bf16.vlgmr.msra.gmra.mrb[12].mxu0 %vm327_vm2, %v3605_v26 }
 0x5a7   : > { %7455 = vmatprep.mubr.msk.bf16.mxu0 %vm327_vm2, %v3606_v28 }
 0x5ae   : > { %7456 = vmatmul.mubr.msk.bf16.gmra.mrb[16].mxu0 %vm327_vm2, %v4242_v42 }
 0x679   : > { %v7453_v5 = vpop.f32.mrb[12].mxu0 }
 0x67a   : > { %v4344_v47 = vadd.f32 %v7453_v5, %v6666_v45  ;;  %v4298_v8 = vpop.f32.mrb[13].mxu0 }
 0x67b   : > { %v4342_v15 = vadd.f32 %v6666_v45, %v4298_v8  ;;  %v7454_v49 = vpop.f32.mrb[14].mxu0 }
 0x67c   : > { %v4352_v16 = vadd.f32 %v4344_v47, %v8487_v36  ;;  %v4345_v17 = vadd.f32 %v7454_v49, %v6666_v45  ;;  %v4301_v18 = vpop.f32.mrb[15].mxu0 }
 0x67d   : > { %v4350_v19 = vadd.f32 %v4342_v15, %v8490_v44  ;;  %v4343_v22 = vadd.f32 %v6666_v45, %v4301_v18 }
 0x67e   : > { %4360 = vst.msk [vmem:[#allocation2 + $0x31] sm:$0xff] %vm327_vm2, %v4352_v16  ;;  %v4353_v54 = vadd.f32 %v4345_v17, %v8495_v48  ;;  %v8080_v16 = vld [vmem:[%s9048_s4 + $0x140] sm:$0xff]  }
 0x67f   : > { %4358 = vst.msk [vmem:[#allocation2 + $0x11] sm:$0xff] %vm327_vm2, %v4350_v19  ;;  %v4351_v23 = vadd.f32 %v4343_v22, %v8500_v50 }
 0x680   : > { %4361 = vst.msk [vmem:[#allocation2 + $0x41] sm:$0xff] %vm327_vm2, %v4353_v54 }
 0x681   : > { %4359 = vst.msk [vmem:[#allocation2 + $0x21] sm:$0xff] %vm327_vm2, %v4351_v23  ;;  %v7457_v24 = vpop.f32.mrb[16].mxu0 }
 0x682   : > { %v4348_v26 = vadd.f32 %v7457_v24, %v6666_v45  ;;  %v4314_v36 = vpop.f32.mrb[17].mxu0  ;;  %v8081_v24 = vld [vmem:[%s9048_s4 + $0x148] sm:$0xff]  }
 0x683   : > { %v4346_v21 = vadd.f32 %v6666_v45, %v4314_v36  ;;  %v7458_v25 = vpop.f32.mrb[18].mxu0 }
 0x684   : > { %v4356_v44 = vadd.f32 %v4348_v26, %v8507_v57  ;;  %v4349_v28 = vadd.f32 %v7458_v25, %v6666_v45  ;;  %v4317_v29 = vpop.f32.mrb[19].mxu0 }
 0x685   : > { %v4354_v30 = vadd.f32 %v4346_v21, %v8510_v60  ;;  %v4347_v48 = vadd.f32 %v6666_v45, %v4317_v29  ;;  %v8799_v39 = vld [vmem:[#allocation2 + $0x31] sm:$0xff] }
 0x686   : > { %4364 = vst.msk [vmem:[#allocation2 + $0x71] sm:$0xff] %vm327_vm2, %v4356_v44  ;;  %v4357_v50 = vadd.f32 %v4349_v28, %v8515_v62  ;;  %v8790_v31 = vld [vmem:[#allocation2 + $0x11] sm:$0xff] }
 0x687   : > { %4362 = vst.msk [vmem:[#allocation2 + $0x51] sm:$0xff] %vm327_vm2, %v4354_v30  ;;  %v4355_v34 = vadd.f32 %v4347_v48, %v8522_v0  ;;  %v4389_v35 = vpack.c.bf16 %v8790_v31, %v8642_v3  ;;  %v8078_v62 = vld [vmem:[%s9048_s4 + $0x130] sm:$0xff]   ;;  %v4385_v0 = vld [vmem:[#allocation2 + $0x41] sm:$0xff] }
 0x688   : > { %4365 = vst.msk [vmem:[#allocation2 + $0x81] sm:$0xff] %vm327_vm2, %v4357_v50  ;;  %v8797_v57 = vld [vmem:[#allocation2 + $0x21] sm:$0xff]  ;;  %v4367_v52 = vld [vmem:[#allocation2 + $0x10] sm:$0xff]  ;;  %v4783_v44 = vpack.c.bf16 %v4385_v0, %v8799_v39 }
 0x689   : > { %4363 = vst.msk [vmem:[#allocation2 + $0x61] sm:$0xff] %vm327_vm2, %v4355_v34  ;;  %7461 = vmatprep.mubr.msk.bf16.mxu1 %vm327_vm2, %v4389_v35  ;;  %v8805_v60 = vpack.c.bf16 %v8799_v39, %v8797_v57  ;;  %v4374_v59 = vpack.c.bf16 %v4367_v52, %v8674_v63  ;;  %v4368_v56 = vld [vmem:[#allocation2 + $0x20] sm:$0xff]  ;;  %v4369_v1 = vld [vmem:[#allocation2 + $0x30] sm:$0xff]  ;;  %v4782_v25 = vpack.c.bf16 %v8797_v57, %v8790_v31  ;;  %v8083_v34 = vld [vmem:[%s9048_s4 + $0x158] sm:$0xff]  }
 0x68a   : > { %v8828_v2 = vpack.c.bf16 %v4369_v1, %v4368_v56  ;;  %v4370_v4 = vld [vmem:[#allocation2 + $0x40] sm:$0xff]  ;;  %v4563_v42 = vld [vmem:[#allocation2 + $0x12] sm:$0xff]  ;;  %v4676_v54 = vpack.c.bf16 %v4368_v56, %v4367_v52 }
 0x68b   : > { %7462 = vmatmul.mubr.msk.bf16.vlgmr.msra.gmra.mrb[20].mxu1 %vm327_vm2, %v8805_v60  ;;  %v4570_v45 = vpack.c.bf16 %v4563_v42, %v8698_v12  ;;  %v4564_v5 = vld [vmem:[#allocation2 + $0x22] sm:$0xff]  ;;  %v4565_v8 = vld [vmem:[#allocation2 + $0x32] sm:$0xff]  ;;  %v4677_v23 = vpack.c.bf16 %v4370_v4, %v4369_v1 }
 0x68c   : > { %7470 = vmatpush3.bf16.msra.mxu1 %v8077_v14  ;;  %v4571_v15 = vpack.c.bf16 %v4565_v8, %v4564_v5  ;;  %v4566_v49 = vld [vmem:[#allocation2 + $0x42] sm:$0xff]  ;;  %v8082_v28 = vld [vmem:[%s9048_s4 + $0x150] sm:$0xff]   ;;  %v4888_v50 = vpack.c.bf16 %v4564_v5, %v4563_v42 }
 0x68d   : > { %7479 = vmatprep.subr.bf16.mxu1 %v8078_v62  ;;  %v8817_v51 = vld [vmem:[#allocation2 + $0x71] sm:$0xff]  ;;  %v4889_v31 = vpack.c.bf16 %v4566_v49, %v4565_v8 }
 0x68e   : > { %v8812_v43 = vld [vmem:[#allocation2 + $0x51] sm:$0xff] }
 0x68f   : > { %v8815_v46 = vpack.c.bf16 %v8812_v43, %v4385_v0  ;;  %v4371_v61 = vld [vmem:[#allocation2 + $0x50] sm:$0xff]  ;;  %v4675_v36 = vld [vmem:[#allocation2 + $0x80] sm:$0xff] }
 0x690   : > { %v4387_v53 = vld [vmem:[#allocation2 + $0x61] sm:$0xff]  ;;  %v8833_v10 = vpack.c.bf16 %v4371_v61, %v4370_v4  ;;  %v4373_v7 = vld [vmem:[#allocation2 + $0x70] sm:$0xff]  ;;  %v4997_v0 = vpack.c.bf16 %v8747_v9, %v4675_v36 }
 0x691   : > { %7465 = vmatprep.mubr.msk.bf16.mxu1 %vm327_vm2, %v8815_v46  ;;  %v8822_v55 = vpack.c.bf16 %v8817_v51, %v4387_v53  ;;  %v4372_v13 = vld [vmem:[#allocation2 + $0x60] sm:$0xff]  ;;  %v4567_v47 = vld [vmem:[#allocation2 + $0x52] sm:$0xff]  ;;  %v4679_v21 = vpack.c.bf16 %v4675_v36, %v4373_v7  ;;  %v4784_v29 = vpack.c.bf16 %v4387_v53, %v8812_v43 }
 0x692   : > { %v4377_v14 = vpack.c.bf16 %v4373_v7, %v4372_v13  ;;  %v4572_v17 = vpack.c.bf16 %v4567_v47, %v4566_v49  ;;  %v4568_v18 = vld [vmem:[#allocation2 + $0x62] sm:$0xff]  ;;  %v4569_v19 = vld [vmem:[#allocation2 + $0x72] sm:$0xff]  ;;  %v4678_v26 = vpack.c.bf16 %v4372_v13, %v4371_v61 }
 0x693   : > { %7466 = vmatmul.mubr.msk.bf16.gmra.mrb[24].mxu1 %vm327_vm2, %v8822_v55  ;;  %v4573_v22 = vpack.c.bf16 %v4569_v19, %v4568_v18  ;;  %v4781_v30 = vld [vmem:[#allocation2 + $0x81] sm:$0xff]  ;;  %v4890_v35 = vpack.c.bf16 %v4568_v18, %v4567_v47 }
 0x694   : > { %7471 = vmatprep.mubr.msk.bf16.mxu1 %vm327_vm2, %v4374_v59  ;;  %v4785_v48 = vpack.c.bf16 %v4781_v30, %v8817_v51  ;;  %v4887_v57 = vld [vmem:[#allocation2 + $0x82] sm:$0xff]  ;;  %v5103_v43 = vpack.c.bf16 %v8757_v11, %v4781_v30 }
 0x695   : > { %v4891_v39 = vpack.c.bf16 %v4887_v57, %v4569_v19  ;;  %v5209_v52 = vpack.c.bf16 %v8765_v58, %v4887_v57  ;;  %v6730_v51 = vld [vmem:[%s9049_s5 + $0x4] ss:$0 sm:$0xff] }
 0x69b   : > { %7472 = vmatmul.mubr.msk.bf16.vlgmr.msra.gmra.mrb[20].mxu1 %vm327_vm2, %v8828_v2 }
 0x69c   : > { %7480 = vmatpush3.bf16.msra.mxu1 %v8078_v62  ;;  %7475 = vmatprep.mubr.msk.bf16.mxu1 %vm327_vm2, %v8833_v10  ;;  %v8084_v62 = vld [vmem:[%s9048_s4 + $0x160] sm:$0xff]  }
 0x69d   : > { %7489 = vmatprep.subr.bf16.mxu1 %v8079_v6 }
 0x6a3   : > { %7476 = vmatmul.mubr.msk.bf16.gmra.mrb[24].mxu1 %vm327_vm2, %v4377_v14 }
 0x6a4   : > { %7481 = vmatprep.mubr.msk.bf16.mxu1 %vm327_vm2, %v4570_v45 }
 0x6ab   : > { %7482 = vmatmul.mubr.msk.bf16.vlgmr.msra.gmra.mrb[20].mxu1 %vm327_vm2, %v4571_v15 }
 0x6ac   : > { %7490 = vmatpush3.bf16.msra.mxu1 %v8079_v6  ;;  %7485 = vmatprep.mubr.msk.bf16.mxu1 %vm327_vm2, %v4572_v17 }
 0x6ad   : > { %7499 = vmatprep.subr.bf16.mxu1 %v8080_v16 }
 0x6b3   : > { %7486 = vmatmul.mubr.msk.bf16.gmra.mrb[24].mxu1 %vm327_vm2, %v4573_v22 }
 0x6b4   : > { %7491 = vmatprep.mubr.msk.bf16.mxu1 %vm327_vm2, %v4676_v54 }
 0x6bb   : > { %7492 = vmatmul.mubr.msk.bf16.vlgmr.msra.gmra.mrb[20].mxu1 %vm327_vm2, %v4677_v23 }
 0x6bc   : > { %7500 = vmatpush3.bf16.msra.mxu1 %v8080_v16  ;;  %7495 = vmatprep.mubr.msk.bf16.mxu1 %vm327_vm2, %v4678_v26 }
 0x6bd   : > { %7509 = vmatprep.subr.bf16.mxu1 %v8081_v24 }
 0x6c3   : > { %7496 = vmatmul.mubr.msk.bf16.gmra.mrb[24].mxu1 %vm327_vm2, %v4679_v21 }
 0x6c4   : > { %7501 = vmatprep.mubr.msk.bf16.mxu1 %vm327_vm2, %v4782_v25 }
 0x6cb   : > { %7502 = vmatmul.mubr.msk.bf16.vlgmr.msra.gmra.mrb[20].mxu1 %vm327_vm2, %v4783_v44 }
 0x6cc   : > { %7510 = vmatpush3.bf16.msra.mxu1 %v8081_v24  ;;  %7505 = vmatprep.mubr.msk.bf16.mxu1 %vm327_vm2, %v4784_v29  ;;  %v8088_v29 = vld [vmem:[%s9050_s6 + $0x18] sm:$0xff]  }
 0x6cd   : > { %7519 = vmatprep.subr.bf16.mxu1 %v8082_v28 }
 0x6d3   : > { %7506 = vmatmul.mubr.msk.bf16.gmra.mrb[24].mxu1 %vm327_vm2, %v4785_v48 }
 0x6d4   : > { %7511 = vmatprep.mubr.msk.bf16.mxu1 %vm327_vm2, %v4888_v50 }
 0x6db   : > { %7512 = vmatmul.mubr.msk.bf16.vlgmr.msra.gmra.mrb[20].mxu1 %vm327_vm2, %v4889_v31 }
 0x6dc   : > { %7520 = vmatpush3.bf16.msra.mxu1 %v8082_v28  ;;  %7515 = vmatprep.mubr.msk.bf16.mxu1 %vm327_vm2, %v4890_v35 }
 0x6dd   : > { %7529 = vmatprep.subr.bf16.mxu1 %v8083_v34 }
 0x6e3   : > { %7516 = vmatmul.mubr.msk.bf16.gmra.mrb[24].mxu1 %vm327_vm2, %v4891_v39 }
 0x6e4   : > { %7521 = vmatprep.mubr.msk.bf16.mxu1 %vm327_vm2, %v8828_v2 }
 0x6eb   : > { %7522 = vmatmul.mubr.msk.bf16.vlgmr.msra.gmra.mrb[20].mxu1 %vm327_vm2, %v8833_v10 }
 0x6ec   : > { %7530 = vmatpush3.bf16.msra.mxu1 %v8083_v34  ;;  %7525 = vmatprep.mubr.msk.bf16.mxu1 %vm327_vm2, %v4377_v14 }
 0x6ed   : > { %7539 = vmatprep.subr.bf16.mxu1 %v8084_v62 }
 0x6f3   : > { %7526 = vmatmul.mubr.msk.bf16.gmra.mrb[24].mxu1 %vm327_vm2, %v4997_v0 }
 0x6f4   : > { %7531 = vmatprep.mubr.msk.bf16.mxu1 %vm327_vm2, %v8805_v60  ;;  %v8085_v60 = vld [vmem:[%s9050_s6 + $0x8] sm:$0xff]  }
 0x6f5   : > { %7549 = vmatprep.subr.bf16.mxu0 %v8085_v60 }
 0x6f6   : > { %7550 = vmatpush3.bf16.msra.mxu0 %v8085_v60 }
 0x6fb   : > { %7532 = vmatmul.mubr.msk.bf16.vlgmr.msra.gmra.mrb[20].mxu1 %vm327_vm2, %v8815_v46  ;;  %v8086_v46 = vld [vmem:[%s9050_s6] sm:$0xff]  }
 0x6fc   : > { %7540 = vmatpush3.bf16.msra.mxu1 %v8084_v62  ;;  %7535 = vmatprep.mubr.msk.bf16.mxu1 %vm327_vm2, %v8822_v55 }
 0x6fd   : > { %7559 = vmatprep.subr.bf16.mxu0 %v8086_v46 }
 0x703   : > { %7536 = vmatmul.mubr.msk.bf16.gmra.mrb[24].mxu1 %vm327_vm2, %v5103_v43  ;;  %v8089_v43 = vld [vmem:[%s9050_s6 + $0x20] sm:$0xff]  }
 0x704   : > { %7541 = vmatprep.mubr.msk.bf16.mxu1 %vm327_vm2, %v4571_v15 }
 0x70b   : > { %7542 = vmatmul.mubr.msk.bf16.vlgmr.msra.gmra.mrb[20].mxu1 %vm327_vm2, %v4572_v17  ;;  %v8087_v17 = vld [vmem:[%s9050_s6 + $0x10] sm:$0xff]  }
 0x70c   : > { %7545 = vmatprep.mubr.msk.bf16.mxu1 %vm327_vm2, %v4573_v22 }
 0x713   : > { %7546 = vmatmul.mubr.msk.bf16.gmra.mrb[24].mxu1 %vm327_vm2, %v5209_v52 }
 0x7de   : > { %v7543_v53 = vpop.f32.mrb[20].mxu1 }
 0x7df   : > { %v5306_v55 = vadd.f32 %v7543_v53, %v8202_v20  ;;  %v5265_v59 = vpop.f32.mrb[21].mxu1 }
 0x7e0   : > { %v5304_v56 = vadd.f32 %v5265_v59, %v8204_v27  ;;  %v7544_v61 = vpop.f32.mrb[22].mxu1 }
 0x7e1   : > { %v5319_v1 = vadd.f32 %v6730_v51, %v5306_v55  ;;  %v5307_v2 = vadd.f32 %v7544_v61, %v8210_v33  ;;  %v5268_v4 = vpop.f32.mrb[23].mxu1  ;;  %v8090_v55 = vld [vmem:[%s9050_s6 + $0x28] sm:$0xff]  }
 0x7e2   : > { %v5317_v6 = vadd.f32 %v6730_v51, %v5304_v56  ;;  %v5305_v10 = vadd.f32 %v5268_v4, %v8216_v38  ;;  %v8091_v4 = vld [vmem:[%s9050_s6 + $0x30] sm:$0xff]  }
 0x7e3   : > { %5327 = vst.msk [vmem:[#allocation2 + $0x31] sm:$0xff] %vm327_vm2, %v5319_v1  ;;  %v5320_v13 = vadd.f32 %v6730_v51, %v5307_v2 }
 0x7e4   : > { %5325 = vst.msk [vmem:[#allocation2 + $0x11] sm:$0xff] %vm327_vm2, %v5317_v6  ;;  %v5318_v42 = vadd.f32 %v6730_v51, %v5305_v10 }
 0x7e5   : > { %5328 = vst.msk [vmem:[#allocation2 + $0x41] sm:$0xff] %vm327_vm2, %v5320_v13 }
 0x7e6   : > { %5326 = vst.msk [vmem:[#allocation2 + $0x21] sm:$0xff] %vm327_vm2, %v5318_v42  ;;  %v7547_v20 = vpop.f32.mrb[24].mxu1 }
 0x7e7   : > { %v5310_v27 = vadd.f32 %v7547_v20, %v8208_v32  ;;  %v5281_v7 = vpop.f32.mrb[25].mxu1 }
 0x7e8   : > { %v5308_v33 = vadd.f32 %v5281_v7, %v8214_v37  ;;  %v7548_v14 = vpop.f32.mrb[26].mxu1 }
 0x7e9   : > { %v5323_v45 = vadd.f32 %v6730_v51, %v5310_v27  ;;  %v5311_v38 = vadd.f32 %v7548_v14, %v8222_v40  ;;  %v5284_v5 = vpop.f32.mrb[27].mxu1  ;;  %v8092_v27 = vld [vmem:[%s9050_s6 + $0x38] sm:$0xff]  }
 0x7ea   : > { %v5321_v47 = vadd.f32 %v6730_v51, %v5308_v33  ;;  %v5309_v8 = vadd.f32 %v5284_v5, %v8228_v41  ;;  %v8927_v40 = vld [vmem:[#allocation2 + $0x31] sm:$0xff] }
 0x7eb   : > { %5331 = vst.msk [vmem:[#allocation2 + $0x71] sm:$0xff] %vm327_vm2, %v5323_v45  ;;  %v5324_v15 = vadd.f32 %v6730_v51, %v5311_v38  ;;  %v8919_v49 = vld [vmem:[#allocation2 + $0x11] sm:$0xff]  ;;  %v8093_v45 = vld [vmem:[%s9050_s6 + $0x40] sm:$0xff]  }
 0x7ec   : > { %5329 = vst.msk [vmem:[#allocation2 + $0x51] sm:$0xff] %vm327_vm2, %v5321_v47  ;;  %v5322_v16 = vadd.f32 %v6730_v51, %v5309_v8  ;;  %v5355_v32 = vpack.c.bf16 %v8919_v49, %v8642_v3  ;;  %v5351_v3 = vld [vmem:[#allocation2 + $0x41] sm:$0xff]  ;;  %v5334_v22 = vld [vmem:[#allocation2 + $0x10] sm:$0xff]  ;;  %v6792_v47 = vld [vmem:[%s9051_s7] ss:$0 sm:$0xff] }
 0x7ed   : > { %5332 = vst.msk [vmem:[#allocation2 + $0x81] sm:$0xff] %vm327_vm2, %v5324_v15  ;;  %v8925_v37 = vld [vmem:[#allocation2 + $0x21] sm:$0xff]  ;;  %v5341_v26 = vpack.c.bf16 %v5334_v22, %v8674_v63  ;;  %v5336_v25 = vld [vmem:[#allocation2 + $0x30] sm:$0xff]  ;;  %v5749_v2 = vpack.c.bf16 %v5351_v3, %v8927_v40 }
 0x7ee   : > { %5330 = vst.msk [vmem:[#allocation2 + $0x61] sm:$0xff] %vm327_vm2, %v5322_v16  ;;  %7551 = vmatprep.mubr.msk.bf16.mxu0 %vm327_vm2, %v5355_v32  ;;  %v8933_v41 = vpack.c.bf16 %v8927_v40, %v8925_v37  ;;  %v5335_v36 = vld [vmem:[#allocation2 + $0x20] sm:$0xff]  ;;  %v5529_v48 = vld [vmem:[#allocation2 + $0x12] sm:$0xff]  ;;  %v5748_v1 = vpack.c.bf16 %v8925_v37, %v8919_v49 }
 0x7ef   : > { %v8956_v44 = vpack.c.bf16 %v5336_v25, %v5335_v36  ;;  %v5337_v28 = vld [vmem:[#allocation2 + $0x40] sm:$0xff]  ;;  %v5536_v34 = vpack.c.bf16 %v5529_v48, %v8698_v12  ;;  %v5531_v39 = vld [vmem:[#allocation2 + $0x32] sm:$0xff]  ;;  %v5642_v53 = vpack.c.bf16 %v5335_v36, %v5334_v22 }
 0x7f0   : > { %7552 = vmatmul.mubr.msk.bf16.vlgmr.msra.gmra.mrb[20].mxu0 %vm327_vm2, %v8933_v41  ;;  %v5530_v35 = vld [vmem:[#allocation2 + $0x22] sm:$0xff]  ;;  %v5643_v51 = vpack.c.bf16 %v5337_v28, %v5336_v25 }
 0x7f1   : > { %7560 = vmatpush3.bf16.msra.mxu0 %v8086_v46  ;;  %v5537_v62 = vpack.c.bf16 %v5531_v39, %v5530_v35  ;;  %v5532_v0 = vld [vmem:[#allocation2 + $0x42] sm:$0xff]  ;;  %v5854_v42 = vpack.c.bf16 %v5530_v35, %v5529_v48 }
 0x7f2   : > { %7569 = vmatprep.subr.bf16.mxu0 %v8087_v17  ;;  %v8945_v23 = vld [vmem:[#allocation2 + $0x71] sm:$0xff]  ;;  %v5855_v20 = vpack.c.bf16 %v5532_v0, %v5531_v39 }
 0x7f3   : > { %v8940_v18 = vld [vmem:[#allocation2 + $0x51] sm:$0xff] }
 0x7f4   : > { %v8943_v19 = vpack.c.bf16 %v8940_v18, %v5351_v3  ;;  %v5338_v21 = vld [vmem:[#allocation2 + $0x50] sm:$0xff]  ;;  %v5641_v56 = vld [vmem:[#allocation2 + $0x80] sm:$0xff] }
 0x7f5   : > { %v5353_v54 = vld [vmem:[#allocation2 + $0x61] sm:$0xff]  ;;  %v8961_v30 = vpack.c.bf16 %v5338_v21, %v5337_v28  ;;  %v5340_v50 = vld [vmem:[#allocation2 + $0x70] sm:$0xff]  ;;  %v5963_v38 = vpack.c.bf16 %v8747_v9, %v5641_v56 }
 0x7f6   : > { %7555 = vmatprep.mubr.msk.bf16.mxu0 %vm327_vm2, %v8943_v19  ;;  %v8950_v24 = vpack.c.bf16 %v8945_v23, %v5353_v54  ;;  %v5339_v63 = vld [vmem:[#allocation2 + $0x60] sm:$0xff]  ;;  %v5533_v57 = vld [vmem:[#allocation2 + $0x52] sm:$0xff]  ;;  %v5645_v61 = vpack.c.bf16 %v5641_v56, %v5340_v50  ;;  %v5750_v6 = vpack.c.bf16 %v5353_v54, %v8940_v18 }
 0x7f7   : > { %v5344_v31 = vpack.c.bf16 %v5340_v50, %v5339_v63  ;;  %v5538_v52 = vpack.c.bf16 %v5533_v57, %v5532_v0  ;;  %v5534_v12 = vld [vmem:[#allocation2 + $0x62] sm:$0xff]  ;;  %v5535_v60 = vld [vmem:[#allocation2 + $0x72] sm:$0xff]  ;;  %v5644_v59 = vpack.c.bf16 %v5339_v63, %v5338_v21 }
 0x7f8   : > { %7556 = vmatmul.mubr.msk.bf16.gmra.mrb[24].mxu0 %vm327_vm2, %v8950_v24  ;;  %v5539_v46 = vpack.c.bf16 %v5535_v60, %v5534_v12  ;;  %v5747_v10 = vld [vmem:[#allocation2 + $0x81] sm:$0xff]  ;;  %v5856_v7 = vpack.c.bf16 %v5534_v12, %v5533_v57 }
 0x7f9   : > { %7561 = vmatprep.mubr.msk.bf16.mxu0 %vm327_vm2, %v5341_v26  ;;  %v5751_v13 = vpack.c.bf16 %v5747_v10, %v8945_v23  ;;  %v5853_v33 = vld [vmem:[#allocation2 + $0x82] sm:$0xff]  ;;  %v6069_v5 = vpack.c.bf16 %v8757_v11, %v5747_v10 }
 0x7fa   : > { %v5857_v14 = vpack.c.bf16 %v5853_v33, %v5535_v60  ;;  %v6175_v9 = vpack.c.bf16 %v8765_v58, %v5853_v33 }
 0x800   : > { %7562 = vmatmul.mubr.msk.bf16.vlgmr.msra.gmra.mrb[20].mxu0 %vm327_vm2, %v8956_v44 }
 0x801   : > { %7570 = vmatpush3.bf16.msra.mxu0 %v8087_v17  ;;  %7565 = vmatprep.mubr.msk.bf16.mxu0 %vm327_vm2, %v8961_v30 }
 0x802   : > { %7579 = vmatprep.subr.bf16.mxu0 %v8088_v29 }
 0x808   : > { %7566 = vmatmul.mubr.msk.bf16.gmra.mrb[24].mxu0 %vm327_vm2, %v5344_v31 }
 0x809   : > { %7571 = vmatprep.mubr.msk.bf16.mxu0 %vm327_vm2, %v5536_v34 }
 0x810   : > { %7572 = vmatmul.mubr.msk.bf16.vlgmr.msra.gmra.mrb[20].mxu0 %vm327_vm2, %v5537_v62 }
 0x811   : > { %7580 = vmatpush3.bf16.msra.mxu0 %v8088_v29  ;;  %7575 = vmatprep.mubr.msk.bf16.mxu0 %vm327_vm2, %v5538_v52 }
 0x812   : > { %7589 = vmatprep.subr.bf16.mxu0 %v8089_v43 }
 0x818   : > { %7576 = vmatmul.mubr.msk.bf16.gmra.mrb[24].mxu0 %vm327_vm2, %v5539_v46 }
 0x819   : > { %7581 = vmatprep.mubr.msk.bf16.mxu0 %vm327_vm2, %v5642_v53 }
 0x820   : > { %7582 = vmatmul.mubr.msk.bf16.vlgmr.msra.gmra.mrb[20].mxu0 %vm327_vm2, %v5643_v51 }
 0x821   : > { %7590 = vmatpush3.bf16.msra.mxu0 %v8089_v43  ;;  %7585 = vmatprep.mubr.msk.bf16.mxu0 %vm327_vm2, %v5644_v59 }
 0x822   : > { %7599 = vmatprep.subr.bf16.mxu0 %v8090_v55 }
 0x828   : > { %7586 = vmatmul.mubr.msk.bf16.gmra.mrb[24].mxu0 %vm327_vm2, %v5645_v61 }
 0x829   : > { %7591 = vmatprep.mubr.msk.bf16.mxu0 %vm327_vm2, %v5748_v1 }
 0x830   : > { %7592 = vmatmul.mubr.msk.bf16.vlgmr.msra.gmra.mrb[20].mxu0 %vm327_vm2, %v5749_v2 }
 0x831   : > { %7600 = vmatpush3.bf16.msra.mxu0 %v8090_v55  ;;  %7595 = vmatprep.mubr.msk.bf16.mxu0 %vm327_vm2, %v5750_v6 }
 0x832   : > { %7609 = vmatprep.subr.bf16.mxu0 %v8091_v4 }
 0x838   : > { %7596 = vmatmul.mubr.msk.bf16.gmra.mrb[24].mxu0 %vm327_vm2, %v5751_v13 }
 0x839   : > { %7601 = vmatprep.mubr.msk.bf16.mxu0 %vm327_vm2, %v5854_v42 }
 0x840   : > { %7602 = vmatmul.mubr.msk.bf16.vlgmr.msra.gmra.mrb[20].mxu0 %vm327_vm2, %v5855_v20 }
 0x841   : > { %7610 = vmatpush3.bf16.msra.mxu0 %v8091_v4  ;;  %7605 = vmatprep.mubr.msk.bf16.mxu0 %vm327_vm2, %v5856_v7 }
 0x842   : > { %7619 = vmatprep.subr.bf16.mxu0 %v8092_v27 }
 0x848   : > { %7606 = vmatmul.mubr.msk.bf16.gmra.mrb[24].mxu0 %vm327_vm2, %v5857_v14 }
 0x849   : > { %7611 = vmatprep.mubr.msk.bf16.mxu0 %vm327_vm2, %v8956_v44 }
 0x850   : > { %7612 = vmatmul.mubr.msk.bf16.vlgmr.msra.gmra.mrb[20].mxu0 %vm327_vm2, %v8961_v30 }
 0x851   : > { %7620 = vmatpush3.bf16.msra.mxu0 %v8092_v27  ;;  %7615 = vmatprep.mubr.msk.bf16.mxu0 %vm327_vm2, %v5344_v31 }
 0x852   : > { %7629 = vmatprep.subr.bf16.mxu0 %v8093_v45 }
 0x858   : > { %7616 = vmatmul.mubr.msk.bf16.gmra.mrb[24].mxu0 %vm327_vm2, %v5963_v38 }
 0x859   : > { %7621 = vmatprep.mubr.msk.bf16.mxu0 %vm327_vm2, %v8933_v41 }
 0x860   : > { %7622 = vmatmul.mubr.msk.bf16.vlgmr.msra.gmra.mrb[20].mxu0 %vm327_vm2, %v8943_v19 }
 0x861   : > { %7630 = vmatpush3.bf16.msra.mxu0 %v8093_v45  ;;  %7625 = vmatprep.mubr.msk.bf16.mxu0 %vm327_vm2, %v8950_v24 }
 0x868   : > { %7626 = vmatmul.mubr.msk.bf16.gmra.mrb[24].mxu0 %vm327_vm2, %v6069_v5 }
 0x869   : > { %7631 = vmatprep.mubr.msk.bf16.mxu0 %vm327_vm2, %v5537_v62 }
 0x870   : > { %7632 = vmatmul.mubr.msk.bf16.vlgmr.msra.gmra.mrb[20].mxu0 %vm327_vm2, %v5538_v52 }
 0x871   : > { %7635 = vmatprep.mubr.msk.bf16.mxu0 %vm327_vm2, %v5539_v46 }
 0x878   : > { %7636 = vmatmul.mubr.msk.bf16.gmra.mrb[24].mxu0 %vm327_vm2, %v6175_v9 }
 0x943   : > { %v7633_v8 = vpop.f32.mrb[20].mxu0 }
 0x944   : > { %v6279_v15 = vadd.f32 %v7633_v8, %v6792_v47  ;;  %v6231_v49 = vpop.f32.mrb[21].mxu0 }
 0x945   : > { %v6277_v11 = vadd.f32 %v6792_v47, %v6231_v49  ;;  %v7634_v16 = vpop.f32.mrb[22].mxu0 }
 0x946   : > { %v6808_v32 = vpack.c.bf16 %v6279_v15, %v6279_v15  ;;  %v6280_v37 = vadd.f32 %v7634_v16, %v6792_v47  ;;  %v6234_v58 = vpop.f32.mrb[23].mxu0 }
 0x947   : > { %v6806_v40 = vpack.c.bf16 %v6277_v11, %v6277_v11  ;;  %v6278_v41 = vadd.f32 %v6792_v47, %v6234_v58 }
 0x948   : > { %6320 = vst.msk [vmem:[%s325_s29 + $0x8] sm:$0xf] %vm6317_vm5, %v6808_v32  ;;  %v6809_v17 = vpack.c.bf16 %v6280_v37, %v6280_v37 }
 0x949   : > { %6318 = vst.msk [vmem:[%s325_s29] sm:$0xf] %vm6317_vm5, %v6806_v40  ;;  %v6807_v3 = vpack.c.bf16 %v6278_v41, %v6278_v41 }
 0x94a   : > { %6321 = vst.msk [vmem:[%s325_s29 + $0xc] sm:$0xf] %vm6317_vm5, %v6809_v17 }
 0x94b   : > { %6319 = vst.msk [vmem:[%s325_s29 + $0x4] sm:$0xf] %vm6317_vm5, %v6807_v3  ;;  %v7637_v18 = vpop.f32.mrb[24].mxu0 }
 0x94c   : > { %v6283_v19 = vadd.f32 %v7637_v18, %v6792_v47  ;;  %v6247_v22 = vpop.f32.mrb[25].mxu0 }
 0x94d   : > { %v6281_v54 = vadd.f32 %v6792_v47, %v6247_v22  ;;  %v7638_v23 = vpop.f32.mrb[26].mxu0 }
 0x94e   : > { %v6812_v24 = vpack.c.bf16 %v6283_v19, %v6283_v19  ;;  %v6284_v26 = vadd.f32 %v7638_v23, %v6792_v47  ;;  %v6250_v36 = vpop.f32.mrb[27].mxu0 }
 0x94f   : > { %v6810_v21 = vpack.c.bf16 %v6281_v54, %v6281_v54  ;;  %v6282_v25 = vadd.f32 %v6792_v47, %v6250_v36 }
 0x950   : > { %6324 = vst.msk [vmem:[%s325_s29 + $0x18] sm:$0xf] %vm6317_vm5, %v6812_v24  ;;  %v6813_v44 = vpack.c.bf16 %v6284_v26, %v6284_v26 }
 0x951   : > { %6322 = vst.msk [vmem:[%s325_s29 + $0x10] sm:$0xf] %vm6317_vm5, %v6810_v21  ;;  %v6811_v28 = vpack.c.bf16 %v6282_v25, %v6282_v25 }
 0x952   : > { %6325 = vst.msk [vmem:[%s325_s29 + $0x1c] sm:$0xf] %vm6317_vm5, %v6813_v44 }
 0x953   : > { %6323 = vst.msk [vmem:[%s325_s29 + $0x14] sm:$0xf] %vm6317_vm5, %v6811_v28 }
 0x954 PF: > { %s18_s27 = sadd.s32 1, %s8100_s27  }
 0x955   : > { %p15_p4 = scmp.ge.s32.totalorder %s18_s27, 4  }
 0x957   :  { %17 = sbr.rel (!%p15_p4) target bundleno = 1 (0x1), region = 140 }

// kernel: dec_unit_forward.3
= control target key start
LH: loop header
LB: loop body
LE: loop exit
PB: predicated region body
PF: predicated region fallthrough
CT: control target
= control target key end

     0   :  { %s11566_s21 = smov 0   ;;  %s13351_s0 = inlined_call_operand.vmem [shape: bf16[2,16,16,16], index: 0, kind: input, shape index: {}]   ;;  %s13352_s1 = inlined_call_operand.vmem [shape: bf16[27,16,16], index: 1, kind: input, shape index: {}]   ;;  %s13353_s2 = inlined_call_operand.vmem [shape: f32[1,16], index: 2, kind: input, shape index: {}]   ;;  %s13354_s3 = inlined_call_operand.vmem [shape: bf16[16,10], index: 3, kind: input, shape index: {}]   ;;  %s13355_s4 = inlined_call_operand.vmem [shape: f32[1,10], index: 4, kind: input, shape index: {}]   ;;  %s13356_s5 = inlined_call_operand.vmem [shape: f32[2,256,16], index: 5, kind: output, shape index: {0}]   ;;  %s13357_s6 = inlined_call_operand.vmem [shape: f32[2,256,10], index: 6, kind: output, shape index: {1}]  }
   0x1 LB: > { %s8600_s22 = sadd.s32 4294967295, %s11528_s21   ;;  %p8604_p0 = scmp.ge.s32.totalorder %s11528_s21, 1  ;;  %s11528_s21 = sphi %s11566_s21, %s17_s21  }
   0x2   : > { %p215_p1 = scmp.lt.s32.totalorder %s11528_s21, 3 }
   0x4   : > { %p216_p2 = pnand %p8604_p0, %p215_p1 }
   0x6   : > { %219 = sbr.rel (%p216_p2) target bundleno = 1389 (0x56d), region = 40 }
   0xd   : > { %v11494_v0 = vld [vmem:[%s13352_s1 + $0x8] sm:$0xff]   ;;  %vm266_vm0 = vcmask 130048   ;;  %v11530_v2 = vmov 0.0   ;;  %p250_p3 = scmp.lt.s32.totalorder %s8600_s22, 1  ;;  %v11633_v3 = vld [vmem:[%s13352_s1 + $0x70] sm:$0xff]   ;;  %v11638_v4 = vld [vmem:[%s13352_s1] sm:$0xff]  }
   0xe   : > { %v11495_v1 = vld [vmem:[%s13352_s1 + $0x68] sm:$0xff]   ;;  %9701 = vmatprep.subr.bf16.mxu1 %v11494_v0  ;;  %276 = vst.msk [vmem:[#allocation2 + $0x48] sm:$0xff] %vm266_vm0, %v11530_v2  ;;  %277 = vst.msk [vmem:[#allocation2 + $0x50] sm:$0xff] %vm266_vm0, %v11530_v2  ;;  %vm292_vm1 = vcmask 125952   ;;  %vm8479_vm2 = vcmask 80896  }
   0xf   : > { %278 = vst.msk [vmem:[#allocation2 + $0x58] sm:$0xff] %vm266_vm0, %v11530_v2  ;;  %267 = vst.msk [vmem:[#allocation2] sm:$0xff] %vm266_vm0, %v11530_v2  ;;  %10143 = vmatprep.subr.bf16.mxu0 %v11495_v1  ;;  %9702 = vmatpush3.bf16.msra.mxu1 %v11494_v0  ;;  %s13404_s22 = smov (!%p250_p3, %s8600_s22), 1 }
  0x10   : > { %268 = vst.msk [vmem:[#allocation2 + $0x8] sm:$0xff] %vm266_vm0, %v11530_v2  ;;  %269 = vst.msk [vmem:[#allocation2 + $0x10] sm:$0xff] %vm266_vm0, %v11530_v2  ;;  %10144 = vmatpush3.bf16.msra.mxu0 %v11495_v1  ;;  %9735 = vmatprep.subr.bf16.mxu1 %v11638_v4  ;;  %s9143_s7 = sshll.u32 %s13404_s22, 7  ;;  %v11806_v1 = vld [vmem:[%s13352_s1 + $0x78] sm:$0xff]   ;;  %s9144_s15 = sshll.u32 %s13404_s22, 8 }
  0x11   : > { %270 = vst.msk [vmem:[#allocation2 + $0x18] sm:$0xff] %vm266_vm0, %v11530_v2  ;;  %271 = vst.msk [vmem:[#allocation2 + $0x20] sm:$0xff] %vm266_vm0, %v11530_v2  ;;  %10177 = vmatprep.subr.bf16.mxu0 %v11633_v3  ;;  %s11746_s10 = scalar_lea.vmem %s13351_s0, %s9143_s7  ;;  %s13102_s20 = scalar_lea.vmem %s13356_s5, %s9144_s15 }
  0x12   : > { %272 = vst.msk [vmem:[#allocation2 + $0x28] sm:$0xff] %vm266_vm0, %v11530_v2  ;;  %273 = vst.msk [vmem:[#allocation2 + $0x30] sm:$0xff] %vm266_vm0, %v11530_v2  ;;  %v9147_v5 = vld [vmem:[%s11746_s10] sm:$0xff]   ;;  %v9210_v6 = vld [vmem:[%s11746_s10 + $0x8] sm:$0xff]   ;;  %s13250_s27 = scalar_lea.vmem %s13357_s6, %s9144_s15 }
  0x13   : > { %274 = vst.msk [vmem:[#allocation2 + $0x38] sm:$0xff] %vm266_vm0, %v11530_v2  ;;  %275 = vst.msk [vmem:[#allocation2 + $0x40] sm:$0xff] %vm266_vm0, %v11530_v2  ;;  %v9211_v7 = vld [vmem:[%s11746_s10 + $0x10] sm:$0xff]   ;;  %v9148_v10 = vunpack.c.l.bf16 %v9147_v5  ;;  %v9149_v11 = vunpack.c.h.bf16 %v9147_v5  ;;  %v9152_v12 = vunpack.c.l.bf16 %v9210_v6  ;;  %v9153_v13 = vunpack.c.h.bf16 %v9210_v6  ;;  %v9212_v14 = vld [vmem:[%s11746_s10 + $0x18] sm:$0xff]  }
  0x14   : > { %280 = vst.msk [vmem:[#allocation2 + $0x1e0] sm:$0xff] %vm266_vm0, %v11530_v2  ;;  %281 = vst.msk [vmem:[#allocation2 + $0x1e8] sm:$0xff] %vm266_vm0, %v11530_v2  ;;  %v9156_v16 = vunpack.c.l.bf16 %v9211_v7  ;;  %v9157_v17 = vunpack.c.h.bf16 %v9211_v7  ;;  %v9160_v18 = vunpack.c.l.bf16 %v9212_v14  ;;  %v9213_v19 = vld [vmem:[%s11746_s10 + $0x20] sm:$0xff]   ;;  %v9214_v20 = vld [vmem:[%s11746_s10 + $0x28] sm:$0xff]   ;;  %v9161_v22 = vunpack.c.h.bf16 %v9212_v14 }
  0x15   : > { %282 = vst.msk [vmem:[#allocation2 + $0x1f0] sm:$0xff] %vm266_vm0, %v11530_v2  ;;  %283 = vst.msk [vmem:[#allocation2 + $0x1f8] sm:$0xff] %vm266_vm0, %v11530_v2  ;;  %v489_v8 = vld [vmem:[#allocation2 + $0x4c] sm:$0xff]  ;;  %v9164_v23 = vunpack.c.l.bf16 %v9213_v19  ;;  %v9165_v24 = vunpack.c.h.bf16 %v9213_v19  ;;  %v9168_v25 = vunpack.c.l.bf16 %v9214_v20  ;;  %v9216_v26 = vld [vmem:[%s11746_s10 + $0x38] sm:$0xff]   ;;  %v9169_v29 = vunpack.c.h.bf16 %v9214_v20 }
  0x16   : > { %284 = vst.msk [vmem:[#allocation2 + $0x200] sm:$0xff] %vm266_vm0, %v11530_v2  ;;  %285 = vst.msk [vmem:[#allocation2 + $0x208] sm:$0xff] %vm266_vm0, %v11530_v2  ;;  %v490_v9 = vld [vmem:[#allocation2 + $0x54] sm:$0xff]  ;;  %v9217_v27 = vld [vmem:[%s11746_s10 + $0x40] sm:$0xff]   ;;  %v9176_v32 = vunpack.c.l.bf16 %v9216_v26  ;;  %v9177_v36 = vunpack.c.h.bf16 %v9216_v26 }
  0x17   : > { %286 = vst.msk [vmem:[#allocation2 + $0x210] sm:$0xff] %vm266_vm0, %v11530_v2  ;;  %287 = vst.msk [vmem:[#allocation2 + $0x218] sm:$0xff] %vm266_vm0, %v11530_v2  ;;  %v521_v15 = vpack.c.bf16 %v490_v9, %v489_v8  ;;  %v9215_v21 = vld [vmem:[%s11746_s10 + $0x30] sm:$0xff]   ;;  %v9218_v28 = vld [vmem:[%s11746_s10 + $0x48] sm:$0xff]   ;;  %v9180_v37 = vunpack.c.l.bf16 %v9217_v27  ;;  %v9181_v38 = vunpack.c.h.bf16 %v9217_v27 }
  0x18   : > { %288 = vst.msk [vmem:[#allocation2 + $0x220] sm:$0xff] %vm266_vm0, %v11530_v2  ;;  %289 = vst.msk [vmem:[#allocation2 + $0x228] sm:$0xff] %vm266_vm0, %v11530_v2  ;;  %v9172_v30 = vunpack.c.l.bf16 %v9215_v21  ;;  %v9173_v31 = vunpack.c.h.bf16 %v9215_v21  ;;  %v9219_v33 = vld [vmem:[%s11746_s10 + $0x50] sm:$0xff]   ;;  %v9220_v34 = vld [vmem:[%s11746_s10 + $0x58] sm:$0xff]   ;;  %v9184_v39 = vunpack.c.l.bf16 %v9218_v28  ;;  %v9185_v43 = vunpack.c.h.bf16 %v9218_v28 }
  0x19   : > { %290 = vst.msk [vmem:[#allocation2 + $0x230] sm:$0xff] %vm266_vm0, %v11530_v2  ;;  %291 = vst.msk [vmem:[#allocation2 + $0x238] sm:$0xff] %vm266_vm0, %v11530_v2  ;;  %9703 = vmatprep.mubr.msk.bf16.mxu1 %vm266_vm0, %v521_v15  ;;  %v9221_v35 = vld [vmem:[%s11746_s10 + $0x60] sm:$0xff]   ;;  %v9222_v40 = vld [vmem:[%s11746_s10 + $0x68] sm:$0xff]   ;;  %v9188_v44 = vunpack.c.l.bf16 %v9219_v33  ;;  %v9189_v45 = vunpack.c.h.bf16 %v9219_v33  ;;  %v9192_v46 = vunpack.c.l.bf16 %v9220_v34  ;;  %v9193_v47 = vunpack.c.h.bf16 %v9220_v34 }
  0x1a   : > { %296 = vst.msk [vmem:[#allocation2 + $0x48] sm:$0xf] %vm292_vm1, %v11530_v2  ;;  %293 = vst.msk [vmem:[#allocation2] sm:$0xf] %vm292_vm1, %v11530_v2  ;;  %v9223_v41 = vld [vmem:[%s11746_s10 + $0x70] sm:$0xff]   ;;  %v9224_v42 = vld [vmem:[%s11746_s10 + $0x78] sm:$0xff]   ;;  %v9196_v48 = vunpack.c.l.bf16 %v9221_v35  ;;  %v9197_v49 = vunpack.c.h.bf16 %v9221_v35  ;;  %v9200_v50 = vunpack.c.l.bf16 %v9222_v40  ;;  %v9201_v51 = vunpack.c.h.bf16 %v9222_v40 }
  0x1b   : > { %294 = vst.msk [vmem:[#allocation2 + $0x18] sm:$0xf] %vm292_vm1, %v11530_v2  ;;  %295 = vst.msk [vmem:[#allocation2 + $0x30] sm:$0xf] %vm292_vm1, %v11530_v2  ;;  %v9204_v52 = vunpack.c.l.bf16 %v9223_v41  ;;  %v9205_v53 = vunpack.c.h.bf16 %v9223_v41  ;;  %v9208_v54 = vunpack.c.l.bf16 %v9224_v42  ;;  %v9209_v55 = vunpack.c.h.bf16 %v9224_v42  ;;  %v440_v40 = vld [vmem:[#allocation2 + $0x53] sm:$0xff] }
  0x1c   : > { %297 = vst.msk [vmem:[#allocation2 + $0x60] sm:$0xf] %vm292_vm1, %v11530_v2  ;;  %298 = vst.msk [vmem:[#allocation2 + $0x78] sm:$0xf] %vm292_vm1, %v11530_v2 }
  0x1d   : > { %299 = vst.msk [vmem:[#allocation2 + $0x90] sm:$0xf] %vm292_vm1, %v11530_v2  ;;  %300 = vst.msk [vmem:[#allocation2 + $0xa8] sm:$0xf] %vm292_vm1, %v11530_v2 }
  0x1e   : > { %301 = vst.msk [vmem:[#allocation2 + $0xc0] sm:$0xf] %vm292_vm1, %v11530_v2  ;;  %302 = vst.msk [vmem:[#allocation2 + $0xd8] sm:$0xf] %vm292_vm1, %v11530_v2 }
  0x1f   : > { %303 = vst.msk [vmem:[#allocation2 + $0xf0] sm:$0xf] %vm292_vm1, %v11530_v2  ;;  %304 = vst.msk [vmem:[#allocation2 + $0x108] sm:$0xf] %vm292_vm1, %v11530_v2 }
  0x20   : > { %305 = vst.msk [vmem:[#allocation2 + $0x120] sm:$0xf] %vm292_vm1, %v11530_v2  ;;  %306 = vst.msk [vmem:[#allocation2 + $0x138] sm:$0xf] %vm292_vm1, %v11530_v2 }
  0x21   : > { %307 = vst.msk [vmem:[#allocation2 + $0x150] sm:$0xf] %vm292_vm1, %v11530_v2  ;;  %308 = vst.msk [vmem:[#allocation2 + $0x168] sm:$0xf] %vm292_vm1, %v11530_v2 }
  0x22   : > { %309 = vst.msk [vmem:[#allocation2 + $0x180] sm:$0xf] %vm292_vm1, %v11530_v2  ;;  %310 = vst.msk [vmem:[#allocation2 + $0x198] sm:$0xf] %vm292_vm1, %v11530_v2 }
  0x23   : > { %311 = vst.msk [vmem:[#allocation2 + $0x1b0] sm:$0xf] %vm292_vm1, %v11530_v2  ;;  %312 = vst.msk [vmem:[#allocation2 + $0x1c8] sm:$0xf] %vm292_vm1, %v11530_v2 }
  0x24   : > { %313 = vst.msk [vmem:[#allocation2 + $0x1e0] sm:$0xf] %vm292_vm1, %v11530_v2  ;;  %314 = vst.msk [vmem:[#allocation2 + $0x1f8] sm:$0xf] %vm292_vm1, %v11530_v2 }
  0x25   : > { %315 = vst.msk [vmem:[#allocation2 + $0x210] sm:$0xf] %vm292_vm1, %v11530_v2  ;;  %316 = vst.msk [vmem:[#allocation2 + $0x228] sm:$0xf] %vm292_vm1, %v11530_v2 }
  0x26   : > { %317 = vst.msk [vmem:[#allocation2 + $0x14] sm:$0xf] %vm292_vm1, %v11530_v2  ;;  %318 = vst.msk [vmem:[#allocation2 + $0x2c] sm:$0xf] %vm292_vm1, %v11530_v2 }
  0x27   : > { %319 = vst.msk [vmem:[#allocation2 + $0x44] sm:$0xf] %vm292_vm1, %v11530_v2  ;;  %320 = vst.msk [vmem:[#allocation2 + $0x5c] sm:$0xf] %vm292_vm1, %v11530_v2 }
  0x28   : > { %321 = vst.msk [vmem:[#allocation2 + $0x74] sm:$0xf] %vm292_vm1, %v11530_v2  ;;  %322 = vst.msk [vmem:[#allocation2 + $0x8c] sm:$0xf] %vm292_vm1, %v11530_v2 }
  0x29   : > { %323 = vst.msk [vmem:[#allocation2 + $0xa4] sm:$0xf] %vm292_vm1, %v11530_v2  ;;  %324 = vst.msk [vmem:[#allocation2 + $0xbc] sm:$0xf] %vm292_vm1, %v11530_v2 }
  0x2a   : > { %325 = vst.msk [vmem:[#allocation2 + $0xd4] sm:$0xf] %vm292_vm1, %v11530_v2  ;;  %326 = vst.msk [vmem:[#allocation2 + $0xec] sm:$0xf] %vm292_vm1, %v11530_v2 }
  0x2b   : > { %327 = vst.msk [vmem:[#allocation2 + $0x104] sm:$0xf] %vm292_vm1, %v11530_v2  ;;  %328 = vst.msk [vmem:[#allocation2 + $0x11c] sm:$0xf] %vm292_vm1, %v11530_v2 }
  0x2c   : > { %329 = vst.msk [vmem:[#allocation2 + $0x134] sm:$0xf] %vm292_vm1, %v11530_v2  ;;  %330 = vst.msk [vmem:[#allocation2 + $0x14c] sm:$0xf] %vm292_vm1, %v11530_v2 }
  0x2d   : > { %331 = vst.msk [vmem:[#allocation2 + $0x164] sm:$0xf] %vm292_vm1, %v11530_v2  ;;  %332 = vst.msk [vmem:[#allocation2 + $0x17c] sm:$0xf] %vm292_vm1, %v11530_v2 }
  0x2e   : > { %333 = vst.msk [vmem:[#allocation2 + $0x194] sm:$0xf] %vm292_vm1, %v11530_v2  ;;  %334 = vst.msk [vmem:[#allocation2 + $0x1ac] sm:$0xf] %vm292_vm1, %v11530_v2 }
  0x2f   : > { %335 = vst.msk [vmem:[#allocation2 + $0x1c4] sm:$0xf] %vm292_vm1, %v11530_v2  ;;  %336 = vst.msk [vmem:[#allocation2 + $0x1dc] sm:$0xf] %vm292_vm1, %v11530_v2 }
  0x30   : > { %337 = vst.msk [vmem:[#allocation2 + $0x1f4] sm:$0xf] %vm292_vm1, %v11530_v2  ;;  %338 = vst.msk [vmem:[#allocation2 + $0x20c] sm:$0xf] %vm292_vm1, %v11530_v2 }
  0x31   : > { %339 = vst.msk [vmem:[#allocation2 + $0x224] sm:$0xf] %vm292_vm1, %v11530_v2  ;;  %340 = vst.msk [vmem:[#allocation2 + $0x23c] sm:$0xf] %vm292_vm1, %v11530_v2  ;;  %v11815_v2 = vld [vmem:[%s13352_s1 + $0x10] sm:$0xff]  }
  0x32   : > { %406 = vst.msk [vmem:[#allocation2 + $0x64] sm:$0xff] %vm266_vm0, %v9148_v10  ;;  %407 = vst.msk [vmem:[#allocation2 + $0x6c] sm:$0xff] %vm266_vm0, %v9149_v11 }
  0x33   : > { %408 = vst.msk [vmem:[#allocation2 + $0x7c] sm:$0xff] %vm266_vm0, %v9152_v12  ;;  %409 = vst.msk [vmem:[#allocation2 + $0x84] sm:$0xff] %vm266_vm0, %v9153_v13 }
  0x34   : > { %410 = vst.msk [vmem:[#allocation2 + $0x94] sm:$0xff] %vm266_vm0, %v9156_v16  ;;  %411 = vst.msk [vmem:[#allocation2 + $0x9c] sm:$0xff] %vm266_vm0, %v9157_v17 }
  0x35   : > { %412 = vst.msk [vmem:[#allocation2 + $0xac] sm:$0xff] %vm266_vm0, %v9160_v18  ;;  %413 = vst.msk [vmem:[#allocation2 + $0xb4] sm:$0xff] %vm266_vm0, %v9161_v22 }
  0x36   : > { %414 = vst.msk [vmem:[#allocation2 + $0xc4] sm:$0xff] %vm266_vm0, %v9164_v23  ;;  %415 = vst.msk [vmem:[#allocation2 + $0xcc] sm:$0xff] %vm266_vm0, %v9165_v24 }
  0x37   : > { %416 = vst.msk [vmem:[#allocation2 + $0xdc] sm:$0xff] %vm266_vm0, %v9168_v25  ;;  %417 = vst.msk [vmem:[#allocation2 + $0xe4] sm:$0xff] %vm266_vm0, %v9169_v29 }
  0x38   : > { %418 = vst.msk [vmem:[#allocation2 + $0xf4] sm:$0xff] %vm266_vm0, %v9172_v30  ;;  %419 = vst.msk [vmem:[#allocation2 + $0xfc] sm:$0xff] %vm266_vm0, %v9173_v31 }
  0x39   : > { %420 = vst.msk [vmem:[#allocation2 + $0x10c] sm:$0xff] %vm266_vm0, %v9176_v32  ;;  %421 = vst.msk [vmem:[#allocation2 + $0x114] sm:$0xff] %vm266_vm0, %v9177_v36  ;;  %v491_v56 = vld [vmem:[#allocation2 + $0x64] sm:$0xff]  ;;  %v492_v57 = vld [vmem:[#allocation2 + $0x6c] sm:$0xff] }
  0x3a   : > { %422 = vst.msk [vmem:[#allocation2 + $0x124] sm:$0xff] %vm266_vm0, %v9180_v37  ;;  %423 = vst.msk [vmem:[#allocation2 + $0x12c] sm:$0xff] %vm266_vm0, %v9181_v38  ;;  %v1568_v58 = vld [vmem:[#allocation2 + $0x7c] sm:$0xff]  ;;  %v11796_v59 = vpack.c.bf16 %v492_v57, %v491_v56  ;;  %v1569_v60 = vld [vmem:[#allocation2 + $0x84] sm:$0xff] }
  0x3b   : > { %424 = vst.msk [vmem:[#allocation2 + $0x13c] sm:$0xff] %vm266_vm0, %v9184_v39  ;;  %425 = vst.msk [vmem:[#allocation2 + $0x144] sm:$0xff] %vm266_vm0, %v9185_v43  ;;  %v495_v61 = vld [vmem:[#allocation2 + $0x94] sm:$0xff]  ;;  %v496_v62 = vld [vmem:[#allocation2 + $0x9c] sm:$0xff]  ;;  %v11799_v63 = vpack.c.bf16 %v1569_v60, %v1568_v58 }
  0x3c   : > { %426 = vst.msk [vmem:[#allocation2 + $0x154] sm:$0xff] %vm266_vm0, %v9188_v44  ;;  %427 = vst.msk [vmem:[#allocation2 + $0x15c] sm:$0xff] %vm266_vm0, %v9189_v45  ;;  %v11801_v0 = vpack.c.bf16 %v496_v62, %v495_v61  ;;  %9704 = vmatmul.mubr.msk.bf16.vlgmr.msra.gmra.mrb[0].mxu1 %vm266_vm0, %v11796_v59  ;;  %10145 = vmatprep.mubr.msk.bf16.mxu0 %vm266_vm0, %v11796_v59  ;;  %v1572_v5 = vld [vmem:[#allocation2 + $0xac] sm:$0xff]  ;;  %v1573_v6 = vld [vmem:[#allocation2 + $0xb4] sm:$0xff] }
  0x3d   : > { %428 = vst.msk [vmem:[#allocation2 + $0x16c] sm:$0xff] %vm266_vm0, %v9192_v46  ;;  %429 = vst.msk [vmem:[#allocation2 + $0x174] sm:$0xff] %vm266_vm0, %v9193_v47  ;;  %10146 = vmatmul.mubr.msk.bf16.vlgmr.msra.gmra.mrb[0].mxu0 %vm266_vm0, %v11799_v63  ;;  %9707 = vmatprep.mubr.msk.bf16.mxu1 %vm266_vm0, %v11799_v63  ;;  %v499_v7 = vld [vmem:[#allocation2 + $0xc4] sm:$0xff]  ;;  %v500_v8 = vld [vmem:[#allocation2 + $0xcc] sm:$0xff]  ;;  %v11827_v9 = vpack.c.bf16 %v1573_v6, %v1572_v5 }
  0x3e   : > { %430 = vst.msk [vmem:[#allocation2 + $0x184] sm:$0xff] %vm266_vm0, %v9196_v48  ;;  %431 = vst.msk [vmem:[#allocation2 + $0x18c] sm:$0xff] %vm266_vm0, %v9197_v49  ;;  %10178 = vmatpush3.bf16.msra.mxu0 %v11633_v3  ;;  %10149 = vmatprep.mubr.msk.bf16.mxu0 %vm266_vm0, %v11801_v0  ;;  %v11829_v10 = vpack.c.bf16 %v500_v8, %v499_v7  ;;  %v1576_v3 = vld [vmem:[#allocation2 + $0xdc] sm:$0xff]  ;;  %v439_v39 = vld [vmem:[#allocation2 + $0x4b] sm:$0xff] }
  0x3f   : > { %432 = vst.msk [vmem:[#allocation2 + $0x19c] sm:$0xff] %vm266_vm0, %v9200_v50  ;;  %433 = vst.msk [vmem:[#allocation2 + $0x1a4] sm:$0xff] %vm266_vm0, %v9201_v51  ;;  %9736 = vmatpush3.bf16.msra.mxu1 %v11638_v4  ;;  %10211 = vmatprep.subr.bf16.mxu0 %v11806_v1  ;;  %v1577_v4 = vld [vmem:[#allocation2 + $0xe4] sm:$0xff]  ;;  %v503_v11 = vld [vmem:[#allocation2 + $0xf4] sm:$0xff]  ;;  %v471_v46 = vpack.c.bf16 %v440_v40, %v439_v39 }
  0x40   : > { %434 = vst.msk [vmem:[#allocation2 + $0x1b4] sm:$0xff] %vm266_vm0, %v9204_v52  ;;  %435 = vst.msk [vmem:[#allocation2 + $0x1bc] sm:$0xff] %vm266_vm0, %v9205_v53  ;;  %9769 = vmatprep.subr.bf16.mxu1 %v11815_v2  ;;  %v504_v12 = vld [vmem:[#allocation2 + $0xfc] sm:$0xff]  ;;  %v11839_v13 = vpack.c.bf16 %v1577_v4, %v1576_v3  ;;  %v1580_v15 = vld [vmem:[#allocation2 + $0x10c] sm:$0xff] }
  0x41   : > { %436 = vst.msk [vmem:[#allocation2 + $0x1cc] sm:$0xff] %vm266_vm0, %v9208_v54  ;;  %437 = vst.msk [vmem:[#allocation2 + $0x1d4] sm:$0xff] %vm266_vm0, %v9209_v55  ;;  %v11841_v14 = vpack.c.bf16 %v504_v12, %v503_v11  ;;  %v1581_v16 = vld [vmem:[#allocation2 + $0x114] sm:$0xff]  ;;  %v507_v17 = vld [vmem:[#allocation2 + $0x124] sm:$0xff] }
  0x42   : > { %v508_v18 = vld [vmem:[#allocation2 + $0x12c] sm:$0xff]  ;;  %v11851_v19 = vpack.c.bf16 %v1581_v16, %v1580_v15  ;;  %v1584_v21 = vld [vmem:[#allocation2 + $0x13c] sm:$0xff]  ;;  %v1585_v22 = vld [vmem:[#allocation2 + $0x144] sm:$0xff] }
  0x43   : > { %v11853_v20 = vpack.c.bf16 %v508_v18, %v507_v17  ;;  %v511_v23 = vld [vmem:[#allocation2 + $0x154] sm:$0xff]  ;;  %v512_v24 = vld [vmem:[#allocation2 + $0x15c] sm:$0xff]  ;;  %v11863_v25 = vpack.c.bf16 %v1585_v22, %v1584_v21  ;;  %v4388_v43 = vld [vmem:[#allocation2 + $0x66] sm:$0xff] }
  0x44   : > { %9708 = vmatmul.mubr.msk.bf16.gmra.mrb[4].mxu1 %vm266_vm0, %v11801_v0  ;;  %v11865_v26 = vpack.c.bf16 %v512_v24, %v511_v23  ;;  %v1588_v27 = vld [vmem:[#allocation2 + $0x16c] sm:$0xff]  ;;  %v1589_v28 = vld [vmem:[#allocation2 + $0x174] sm:$0xff]  ;;  %v441_v48 = vld [vmem:[#allocation2 + $0x63] sm:$0xff] }
  0x45   : > { %10150 = vmatmul.mubr.msk.bf16.gmra.mrb[4].mxu0 %vm266_vm0, %v11827_v9  ;;  %9711 = vmatprep.mubr.msk.bf16.mxu1 %vm266_vm0, %v11827_v9  ;;  %v515_v29 = vld [vmem:[#allocation2 + $0x184] sm:$0xff]  ;;  %v516_v30 = vld [vmem:[#allocation2 + $0x18c] sm:$0xff]  ;;  %v11875_v31 = vpack.c.bf16 %v1589_v28, %v1588_v27  ;;  %v443_v52 = vld [vmem:[#allocation2 + $0x7b] sm:$0xff] }
  0x46   : > { %10153 = vmatprep.mubr.msk.bf16.mxu0 %vm266_vm0, %v11829_v10  ;;  %v11877_v32 = vpack.c.bf16 %v516_v30, %v515_v29  ;;  %v1592_v33 = vld [vmem:[#allocation2 + $0x19c] sm:$0xff]  ;;  %v1593_v34 = vld [vmem:[#allocation2 + $0x1a4] sm:$0xff]  ;;  %v4389_v44 = vld [vmem:[#allocation2 + $0x6e] sm:$0xff] }
  0x47   : > { %v519_v35 = vld [vmem:[#allocation2 + $0x1b4] sm:$0xff]  ;;  %v520_v36 = vld [vmem:[#allocation2 + $0x1bc] sm:$0xff]  ;;  %v11887_v37 = vpack.c.bf16 %v1593_v34, %v1592_v33  ;;  %v4420_v47 = vpack.c.bf16 %v4389_v44, %v4388_v43  ;;  %v442_v49 = vld [vmem:[#allocation2 + $0x6b] sm:$0xff] }
  0x48   : > { %13373 = vst [vmem:[#allocation3_spill] sm:$0xff] %v11877_v32  ;;  %v11889_v38 = vpack.c.bf16 %v520_v36, %v519_v35  ;;  %v1596_v41 = vld [vmem:[#allocation2 + $0x1cc] sm:$0xff]  ;;  %v1597_v42 = vld [vmem:[#allocation2 + $0x1d4] sm:$0xff]  ;;  %v4390_v50 = vld [vmem:[#allocation2 + $0x7e] sm:$0xff]  ;;  %v11907_v56 = vpack.c.bf16 %v442_v49, %v441_v48 }
  0x49   : > { %13374 = vst [vmem:[#allocation4_spill] sm:$0xff] %v11887_v37  ;;  %v11899_v45 = vpack.c.bf16 %v1597_v42, %v1596_v41  ;;  %v4391_v51 = vld [vmem:[#allocation2 + $0x86] sm:$0xff]  ;;  %v4392_v54 = vld [vmem:[#allocation2 + $0x96] sm:$0xff]  ;;  %v4393_v55 = vld [vmem:[#allocation2 + $0x9e] sm:$0xff] }
  0x4a   : > { %13375 = vst [vmem:[#allocation5_spill] sm:$0xff] %v11889_v38  ;;  %v444_v53 = vld [vmem:[#allocation2 + $0x83] sm:$0xff]  ;;  %v4421_v57 = vpack.c.bf16 %v4391_v51, %v4390_v50  ;;  %v11911_v60 = vpack.c.bf16 %v4393_v55, %v4392_v54  ;;  %v11923_v62 = vld [vmem:[%s13352_s1 + $0x18] sm:$0xff]   ;;  %v4394_v7 = vld [vmem:[#allocation2 + $0xae] sm:$0xff] }
  0x4b   : > { %13376 = vst [vmem:[#allocation6_spill] sm:$0xff] %v11899_v45  ;;  %v11909_v58 = vpack.c.bf16 %v444_v53, %v443_v52  ;;  %v11916_v61 = vld [vmem:[%s13352_s1 + $0x80] sm:$0xff]   ;;  %v445_v5 = vld [vmem:[#allocation2 + $0x93] sm:$0xff]  ;;  %v447_v3 = vld [vmem:[#allocation2 + $0xab] sm:$0xff] }
  0x4c   : > { %9712 = vmatmul.mubr.msk.bf16.gmra.mrb[8].mxu1 %vm266_vm0, %v11829_v10  ;;  %v446_v6 = vld [vmem:[#allocation2 + $0x9b] sm:$0xff]  ;;  %v448_v4 = vld [vmem:[#allocation2 + $0xb3] sm:$0xff]  ;;  %v4396_v11 = vld [vmem:[#allocation2 + $0xc6] sm:$0xff] }
  0x4d   : > { %10154 = vmatmul.mubr.msk.bf16.gmra.mrb[8].mxu0 %vm266_vm0, %v11839_v13  ;;  %9715 = vmatprep.mubr.msk.bf16.mxu1 %vm266_vm0, %v11839_v13  ;;  %v4395_v8 = vld [vmem:[#allocation2 + $0xb6] sm:$0xff]  ;;  %v4397_v12 = vld [vmem:[#allocation2 + $0xce] sm:$0xff]  ;;  %v11933_v15 = vpack.c.bf16 %v446_v6, %v445_v5  ;;  %v11938_v17 = vpack.c.bf16 %v448_v4, %v447_v3  ;;  %v4398_v21 = vld [vmem:[#allocation2 + $0xde] sm:$0xff] }
  0x4e   : > { %10157 = vmatprep.mubr.msk.bf16.mxu0 %vm266_vm0, %v11841_v14  ;;  %v11936_v16 = vpack.c.bf16 %v4395_v8, %v4394_v7  ;;  %v450_v18 = vld [vmem:[#allocation2 + $0xcb] sm:$0xff]  ;;  %v451_v23 = vld [vmem:[#allocation2 + $0xdb] sm:$0xff]  ;;  %v452_v24 = vld [vmem:[#allocation2 + $0xe3] sm:$0xff] }
  0x4f   : > { %v4399_v22 = vld [vmem:[#allocation2 + $0xe6] sm:$0xff]  ;;  %v4400_v27 = vld [vmem:[#allocation2 + $0xf6] sm:$0xff]  ;;  %v4401_v28 = vld [vmem:[#allocation2 + $0xfe] sm:$0xff]  ;;  %v11954_v33 = vpack.c.bf16 %v452_v24, %v451_v23 }
  0x50   : > { %v11952_v30 = vpack.c.bf16 %v4399_v22, %v4398_v21  ;;  %v11956_v34 = vpack.c.bf16 %v4401_v28, %v4400_v27  ;;  %v453_v35 = vld [vmem:[#allocation2 + $0xf3] sm:$0xff]  ;;  %v454_v36 = vld [vmem:[#allocation2 + $0xfb] sm:$0xff]  ;;  %v455_v41 = vld [vmem:[#allocation2 + $0x10b] sm:$0xff] }
  0x51   : > { %v4402_v39 = vld [vmem:[#allocation2 + $0x10e] sm:$0xff]  ;;  %v4403_v40 = vld [vmem:[#allocation2 + $0x116] sm:$0xff]  ;;  %v4404_v43 = vld [vmem:[#allocation2 + $0x126] sm:$0xff] }
  0x52   : > { %v456_v42 = vld [vmem:[#allocation2 + $0x113] sm:$0xff]  ;;  %v457_v50 = vld [vmem:[#allocation2 + $0x123] sm:$0xff]  ;;  %v458_v51 = vld [vmem:[#allocation2 + $0x12b] sm:$0xff] }
  0x53   : > { %v4405_v44 = vld [vmem:[#allocation2 + $0x12e] sm:$0xff]  ;;  %v11970_v48 = vpack.c.bf16 %v456_v42, %v455_v41  ;;  %v4406_v52 = vld [vmem:[#allocation2 + $0x13e] sm:$0xff]  ;;  %v4407_v53 = vld [vmem:[#allocation2 + $0x146] sm:$0xff]  ;;  %v11982_v6 = vpack.c.bf16 %v458_v51, %v457_v50 }
  0x54   : > { %9716 = vmatmul.mubr.msk.bf16.gmra.mrb[12].mxu1 %vm266_vm0, %v11841_v14  ;;  %v11972_v49 = vpack.c.bf16 %v4405_v44, %v4404_v43  ;;  %v459_v54 = vld [vmem:[#allocation2 + $0x13b] sm:$0xff]  ;;  %v460_v55 = vld [vmem:[#allocation2 + $0x143] sm:$0xff]  ;;  %v11984_v7 = vpack.c.bf16 %v4407_v53, %v4406_v52  ;;  %v461_v4 = vld [vmem:[#allocation2 + $0x153] sm:$0xff] }
  0x55   : > { %10158 = vmatmul.mubr.msk.bf16.gmra.mrb[12].mxu0 %vm266_vm0, %v11851_v19  ;;  %9719 = vmatprep.mubr.msk.bf16.mxu1 %vm266_vm0, %v11851_v19  ;;  %v4409_v5 = vld [vmem:[#allocation2 + $0x15e] sm:$0xff]  ;;  %v11986_v8 = vpack.c.bf16 %v460_v55, %v459_v54  ;;  %v464_v21 = vld [vmem:[#allocation2 + $0x173] sm:$0xff]  ;;  %v4412_v22 = vld [vmem:[#allocation2 + $0x186] sm:$0xff] }
  0x56   : > { %10161 = vmatprep.mubr.msk.bf16.mxu0 %vm266_vm0, %v11853_v20  ;;  %v4413_v23 = vld [vmem:[#allocation2 + $0x18e] sm:$0xff]  ;;  %v4415_v41 = vld [vmem:[#allocation2 + $0x1a6] sm:$0xff]  ;;  %v467_v42 = vld [vmem:[#allocation2 + $0x19b] sm:$0xff] }
  0x57   : > { %v468_v43 = vld [vmem:[#allocation2 + $0x1a3] sm:$0xff]  ;;  %v4416_v44 = vld [vmem:[#allocation2 + $0x1b6] sm:$0xff] }
  0x58   : > { %v4417_v50 = vld [vmem:[#allocation2 + $0x1be] sm:$0xff]  ;;  %v12018_v53 = vpack.c.bf16 %v468_v43, %v467_v42  ;;  %v469_v55 = vld [vmem:[#allocation2 + $0x1b3] sm:$0xff] }
  0x59   : > { %v12020_v54 = vpack.c.bf16 %v4417_v50, %v4416_v44  ;;  %v4690_v42 = vld [vmem:[#allocation2 + $0xb2] sm:$0xff]  ;;  %v974_v43 = vld [vmem:[#allocation2 + $0x7d] sm:$0xff]  ;;  %v975_v44 = vld [vmem:[#allocation2 + $0x85] sm:$0xff] }
  0x5a   : > { %v4691_v50 = vld [vmem:[#allocation2 + $0xc2] sm:$0xff] }
  0x5c   : > { %9720 = vmatmul.mubr.msk.bf16.gmra.mrb[16].mxu1 %vm266_vm0, %v11853_v20 }
  0x5d   : > { %10162 = vmatmul.mubr.msk.bf16.gmra.mrb[16].mxu0 %vm266_vm0, %v11863_v25  ;;  %9723 = vmatprep.mubr.msk.bf16.mxu1 %vm266_vm0, %v11863_v25 }
  0x5e   : > { %10165 = vmatprep.mubr.msk.bf16.mxu0 %vm266_vm0, %v11865_v26 }
  0x64   : > { %9724 = vmatmul.mubr.msk.bf16.gmra.mrb[20].mxu1 %vm266_vm0, %v11865_v26 }
  0x65   : > { %10166 = vmatmul.mubr.msk.bf16.gmra.mrb[20].mxu0 %vm266_vm0, %v11875_v31  ;;  %9727 = vmatprep.mubr.msk.bf16.mxu1 %vm266_vm0, %v11875_v31 }
  0x66   : > { %10169 = vmatprep.mubr.msk.bf16.mxu0 %vm266_vm0, %v11877_v32 }
  0x6c   : > { %9728 = vmatmul.mubr.msk.bf16.gmra.mrb[24].mxu1 %vm266_vm0, %v11877_v32 }
  0x6d   : > { %10170 = vmatmul.mubr.msk.bf16.gmra.mrb[24].mxu0 %vm266_vm0, %v11887_v37  ;;  %9731 = vmatprep.mubr.msk.bf16.mxu1 %vm266_vm0, %v11887_v37 }
  0x6e   : > { %10173 = vmatprep.mubr.msk.bf16.mxu0 %vm266_vm0, %v11889_v38 }
  0x74   : > { %9732 = vmatmul.mubr.msk.bf16.gmra.mrb[28].mxu1 %vm266_vm0, %v11889_v38 }
  0x75   : > { %10174 = vmatmul.mubr.msk.bf16.gmra.mrb[28].mxu0 %vm266_vm0, %v11899_v45  ;;  %9737 = vmatprep.mubr.msk.bf16.mxu1 %vm266_vm0, %v471_v46  ;;  %v11966_v46 = vpack.c.bf16 %v454_v36, %v453_v35  ;;  %v12004_v35 = vpack.c.bf16 %v4413_v23, %v4412_v22  ;;  %v465_v36 = vld [vmem:[#allocation2 + $0x183] sm:$0xff] }
  0x76   : > { %10179 = vmatprep.mubr.msk.bf16.mxu0 %vm266_vm0, %v4420_v47  ;;  %v11968_v47 = vpack.c.bf16 %v4403_v40, %v4402_v39  ;;  %v466_v39 = vld [vmem:[#allocation2 + $0x18b] sm:$0xff]  ;;  %v4414_v40 = vld [vmem:[#allocation2 + $0x19e] sm:$0xff] }
  0x77   : > { %v12014_v51 = vpack.c.bf16 %v466_v39, %v465_v36  ;;  %v12016_v52 = vpack.c.bf16 %v4415_v41, %v4414_v40  ;;  %v972_v39 = vld [vmem:[#allocation2 + $0x65] sm:$0xff]  ;;  %v973_v40 = vld [vmem:[#allocation2 + $0x6d] sm:$0xff] }
  0x78   : > { %v4689_v41 = vld [vmem:[#allocation2 + $0xaa] sm:$0xff] }
  0x7c   : > { %9738 = vmatmul.mubr.msk.bf16.vlgmr.msra.gmra.mrb[0].mxu1 %vm266_vm0, %v11907_v56 }
  0x7d   : > { %10180 = vmatmul.mubr.msk.bf16.vlgmr.msra.gmra.mrb[0].mxu0 %vm266_vm0, %v4421_v57  ;;  %9741 = vmatprep.mubr.msk.bf16.mxu1 %vm266_vm0, %v11909_v58  ;;  %v4408_v57 = vld [vmem:[#allocation2 + $0x156] sm:$0xff] }
  0x7e   : > { %10212 = vmatpush3.bf16.msra.mxu0 %v11806_v1  ;;  %10183 = vmatprep.mubr.msk.bf16.mxu0 %vm266_vm0, %v11911_v60  ;;  %v11940_v1 = vpack.c.bf16 %v4397_v12, %v4396_v11  ;;  %v11988_v3 = vpack.c.bf16 %v4409_v5, %v4408_v57  ;;  %v462_v11 = vld [vmem:[#allocation2 + $0x15b] sm:$0xff]  ;;  %v4410_v12 = vld [vmem:[#allocation2 + $0x16e] sm:$0xff] }
  0x7f   : > { %9770 = vmatpush3.bf16.msra.mxu1 %v11815_v2  ;;  %10245 = vmatprep.subr.bf16.mxu0 %v11916_v61  ;;  %v449_v2 = vld [vmem:[#allocation2 + $0xc3] sm:$0xff]  ;;  %v11998_v24 = vpack.c.bf16 %v462_v11, %v461_v4  ;;  %v470_v57 = vld [vmem:[#allocation2 + $0x1bb] sm:$0xff]  ;;  %v970_v5 = vld [vmem:[#allocation2 + $0x4d] sm:$0xff] }
  0x80   : > { %9803 = vmatprep.subr.bf16.mxu1 %v11923_v62  ;;  %v11950_v29 = vpack.c.bf16 %v450_v18, %v449_v2  ;;  %v4411_v2 = vld [vmem:[#allocation2 + $0x176] sm:$0xff]  ;;  %v463_v18 = vld [vmem:[#allocation2 + $0x16b] sm:$0xff] }
  0x81   : > { %v12000_v27 = vpack.c.bf16 %v4411_v2, %v4410_v12  ;;  %v12002_v28 = vpack.c.bf16 %v464_v21, %v463_v18  ;;  %v4418_v4 = vld [vmem:[#allocation2 + $0x1ce] sm:$0xff]  ;;  %v4419_v11 = vld [vmem:[#allocation2 + $0x1d6] sm:$0xff]  ;;  %v12030_v21 = vpack.c.bf16 %v470_v57, %v469_v55  ;;  %v12040_v57 = vpack.c.bf16 %v973_v40, %v972_v39  ;;  %v4694_v39 = vld [vmem:[#allocation2 + $0xe2] sm:$0xff] }
  0x82   : > { %v971_v12 = vld [vmem:[#allocation2 + $0x55] sm:$0xff]  ;;  %v12032_v22 = vpack.c.bf16 %v4419_v11, %v4418_v4  ;;  %v4692_v55 = vld [vmem:[#allocation2 + $0xca] sm:$0xff]  ;;  %v12042_v4 = vpack.c.bf16 %v975_v44, %v974_v43 }
  0x83   : > { %v4687_v2 = vld [vmem:[#allocation2 + $0x92] sm:$0xff]  ;;  %v4688_v18 = vld [vmem:[#allocation2 + $0x9a] sm:$0xff]  ;;  %v1002_v23 = vpack.c.bf16 %v971_v12, %v970_v5  ;;  %v4720_v5 = vpack.c.bf16 %v4690_v42, %v4689_v41  ;;  %v4721_v11 = vpack.c.bf16 %v4692_v55, %v4691_v50  ;;  %v12047_v12 = vld [vmem:[%s13352_s1 + $0x88] sm:$0xff]  }
  0x84   : > { %9742 = vmatmul.mubr.msk.bf16.gmra.mrb[4].mxu1 %vm266_vm0, %v11933_v15  ;;  %v4719_v36 = vpack.c.bf16 %v4688_v18, %v4687_v2  ;;  %13377 = vst [vmem:[#allocation7_spill] sm:$0xff] %v12042_v4  ;;  %v12054_v2 = vld [vmem:[%s13352_s1 + $0x20] sm:$0xff]   ;;  %v976_v18 = vld [vmem:[#allocation2 + $0x95] sm:$0xff]  ;;  %v978_v40 = vld [vmem:[#allocation2 + $0xad] sm:$0xff] }
  0x85   : > { %10184 = vmatmul.mubr.msk.bf16.gmra.mrb[4].mxu0 %vm266_vm0, %v11936_v16  ;;  %9745 = vmatprep.mubr.msk.bf16.mxu1 %vm266_vm0, %v11938_v17  ;;  %v979_v41 = vld [vmem:[#allocation2 + $0xb5] sm:$0xff] }
  0x86   : > { %10187 = vmatprep.mubr.msk.bf16.mxu0 %vm266_vm0, %v11940_v1  ;;  %v4695_v42 = vld [vmem:[#allocation2 + $0xf2] sm:$0xff]  ;;  %v4696_v43 = vld [vmem:[#allocation2 + $0xfa] sm:$0xff]  ;;  %v12066_v55 = vpack.c.bf16 %v979_v41, %v978_v40 }
  0x88   : > { %13379 = vst [vmem:[#allocation9_spill] sm:$0xff] %v12066_v55 }
  0x8c   : > { %9746 = vmatmul.mubr.msk.bf16.gmra.mrb[8].mxu1 %vm266_vm0, %v11950_v29 }
  0x8d   : > { %10188 = vmatmul.mubr.msk.bf16.gmra.mrb[8].mxu0 %vm266_vm0, %v11952_v30  ;;  %9749 = vmatprep.mubr.msk.bf16.mxu1 %vm266_vm0, %v11954_v33 }
  0x8e   : > { %10191 = vmatprep.mubr.msk.bf16.mxu0 %vm266_vm0, %v11956_v34 }
  0x94   : > { %9750 = vmatmul.mubr.msk.bf16.gmra.mrb[12].mxu1 %vm266_vm0, %v11966_v46 }
  0x95   : > { %10192 = vmatmul.mubr.msk.bf16.gmra.mrb[12].mxu0 %vm266_vm0, %v11968_v47  ;;  %9753 = vmatprep.mubr.msk.bf16.mxu1 %vm266_vm0, %v11970_v48 }
  0x96   : > { %10195 = vmatprep.mubr.msk.bf16.mxu0 %vm266_vm0, %v11972_v49 }
  0x9c   : > { %9754 = vmatmul.mubr.msk.bf16.gmra.mrb[16].mxu1 %vm266_vm0, %v11982_v6 }
  0x9d   : > { %10196 = vmatmul.mubr.msk.bf16.gmra.mrb[16].mxu0 %vm266_vm0, %v11984_v7  ;;  %9757 = vmatprep.mubr.msk.bf16.mxu1 %vm266_vm0, %v11986_v8 }
  0x9e   : > { %10199 = vmatprep.mubr.msk.bf16.mxu0 %vm266_vm0, %v11988_v3 }
  0xa4   : > { %9758 = vmatmul.mubr.msk.bf16.gmra.mrb[20].mxu1 %vm266_vm0, %v11998_v24 }
  0xa5   : > { %10200 = vmatmul.mubr.msk.bf16.gmra.mrb[20].mxu0 %vm266_vm0, %v12000_v27  ;;  %9761 = vmatprep.mubr.msk.bf16.mxu1 %vm266_vm0, %v12002_v28 }
  0xa6   : > { %10203 = vmatprep.mubr.msk.bf16.mxu0 %vm266_vm0, %v12004_v35 }
  0xac   : > { %9762 = vmatmul.mubr.msk.bf16.gmra.mrb[24].mxu1 %vm266_vm0, %v12014_v51 }
  0xad   : > { %10204 = vmatmul.mubr.msk.bf16.gmra.mrb[24].mxu0 %vm266_vm0, %v12016_v52  ;;  %9765 = vmatprep.mubr.msk.bf16.mxu1 %vm266_vm0, %v12018_v53 }
  0xae   : > { %10207 = vmatprep.mubr.msk.bf16.mxu0 %vm266_vm0, %v12020_v54 }
  0xb4   : > { %9766 = vmatmul.mubr.msk.bf16.gmra.mrb[28].mxu1 %vm266_vm0, %v12030_v21 }
  0xb5   : > { %10208 = vmatmul.mubr.msk.bf16.gmra.mrb[28].mxu0 %vm266_vm0, %v12032_v22  ;;  %9771 = vmatprep.mubr.msk.bf16.mxu1 %vm266_vm0, %v1002_v23  ;;  %v977_v23 = vld [vmem:[#allocation2 + $0x9d] sm:$0xff] }
  0xb6   : > { %10213 = vmatprep.mubr.msk.bf16.mxu0 %vm266_vm0, %v4719_v36  ;;  %v4693_v36 = vld [vmem:[#allocation2 + $0xda] sm:$0xff]  ;;  %v12063_v44 = vpack.c.bf16 %v977_v23, %v976_v18  ;;  %v4698_v18 = vld [vmem:[#allocation2 + $0x112] sm:$0xff] }
  0xb7   : > { %v4722_v50 = vpack.c.bf16 %v4694_v39, %v4693_v36  ;;  %v982_v23 = vld [vmem:[#allocation2 + $0xdd] sm:$0xff]  ;;  %v4700_v39 = vld [vmem:[#allocation2 + $0x12a] sm:$0xff] }
  0xb8   : > { %13378 = vst [vmem:[#allocation8_spill] sm:$0xff] %v12063_v44  ;;  %v4699_v36 = vld [vmem:[#allocation2 + $0x122] sm:$0xff] }
  0xbc   : > { %9772 = vmatmul.mubr.msk.bf16.vlgmr.msra.gmra.mrb[0].mxu1 %vm266_vm0, %v12040_v57 }
  0xbd   : > { %10214 = vmatmul.mubr.msk.bf16.vlgmr.msra.gmra.mrb[0].mxu0 %vm266_vm0, %v4720_v5  ;;  %9775 = vmatprep.mubr.msk.bf16.mxu1 %vm266_vm0, %v12042_v4  ;;  %v4723_v5 = vpack.c.bf16 %v4696_v43, %v4695_v42  ;;  %v983_v4 = vld [vmem:[#allocation2 + $0xe5] sm:$0xff]  ;;  %v4725_v43 = vpack.c.bf16 %v4700_v39, %v4699_v36 }
  0xbe   : > { %10246 = vmatpush3.bf16.msra.mxu0 %v11916_v61  ;;  %10217 = vmatprep.mubr.msk.bf16.mxu0 %vm266_vm0, %v4721_v11  ;;  %v980_v61 = vld [vmem:[#allocation2 + $0xc5] sm:$0xff]  ;;  %v12076_v42 = vpack.c.bf16 %v983_v4, %v982_v23  ;;  %v4704_v4 = vld [vmem:[#allocation2 + $0x15a] sm:$0xff] }
  0xbf   : > { %9804 = vmatpush3.bf16.msra.mxu1 %v11923_v62  ;;  %10279 = vmatprep.subr.bf16.mxu0 %v12047_v12  ;;  %v981_v62 = vld [vmem:[#allocation2 + $0xcd] sm:$0xff] }
  0xc0   : > { %9837 = vmatprep.subr.bf16.mxu1 %v12054_v2  ;;  %v4697_v11 = vld [vmem:[#allocation2 + $0x10a] sm:$0xff]  ;;  %v12074_v40 = vpack.c.bf16 %v981_v62, %v980_v61  ;;  %13381 = vst [vmem:[#allocation11_spill] sm:$0xff] %v12076_v42  ;;  %v987_v62 = vld [vmem:[#allocation2 + $0x115] sm:$0xff] }
  0xc1   : > { %v4724_v41 = vpack.c.bf16 %v4698_v18, %v4697_v11  ;;  %v986_v61 = vld [vmem:[#allocation2 + $0x10d] sm:$0xff] }
  0xc2   : > { %13380 = vst [vmem:[#allocation10_spill] sm:$0xff] %v12074_v40  ;;  %v4703_v11 = vld [vmem:[#allocation2 + $0x152] sm:$0xff]  ;;  %v12086_v36 = vpack.c.bf16 %v987_v62, %v986_v61 }
  0xc3   : > { %v4727_v39 = vpack.c.bf16 %v4704_v4, %v4703_v11 }
  0xc4   : > { %9776 = vmatmul.mubr.msk.bf16.gmra.mrb[4].mxu1 %vm266_vm0, %v12063_v44  ;;  %v4702_v44 = vld [vmem:[#allocation2 + $0x142] sm:$0xff]  ;;  %13383 = vst [vmem:[#allocation13_spill] sm:$0xff] %v12086_v36 }
  0xc5   : > { %10218 = vmatmul.mubr.msk.bf16.gmra.mrb[4].mxu0 %vm266_vm0, %v4722_v50  ;;  %9779 = vmatprep.mubr.msk.bf16.mxu1 %vm266_vm0, %v12066_v55  ;;  %v984_v50 = vld [vmem:[#allocation2 + $0xf5] sm:$0xff] }
  0xc6   : > { %10221 = vmatprep.mubr.msk.bf16.mxu0 %vm266_vm0, %v4723_v5  ;;  %v985_v5 = vld [vmem:[#allocation2 + $0xfd] sm:$0xff] }
  0xc7   : > { %v4701_v55 = vld [vmem:[#allocation2 + $0x13a] sm:$0xff]  ;;  %v12084_v18 = vpack.c.bf16 %v985_v5, %v984_v50  ;;  %v991_v5 = vld [vmem:[#allocation2 + $0x145] sm:$0xff] }
  0xc8   : > { %v4726_v23 = vpack.c.bf16 %v4702_v44, %v4701_v55  ;;  %v990_v50 = vld [vmem:[#allocation2 + $0x13d] sm:$0xff]  ;;  %v4708_v55 = vld [vmem:[#allocation2 + $0x18a] sm:$0xff] }
  0xc9   : > { %13382 = vst [vmem:[#allocation12_spill] sm:$0xff] %v12084_v18  ;;  %v4707_v44 = vld [vmem:[#allocation2 + $0x182] sm:$0xff]  ;;  %v12096_v11 = vpack.c.bf16 %v991_v5, %v990_v50 }
  0xca   : > { %v4729_v4 = vpack.c.bf16 %v4708_v55, %v4707_v44 }
  0xcb   : > { %13385 = vst [vmem:[#allocation15_spill] sm:$0xff] %v12096_v11 }
  0xcc   : > { %9780 = vmatmul.mubr.msk.bf16.gmra.mrb[8].mxu1 %vm266_vm0, %v12074_v40  ;;  %v4706_v40 = vld [vmem:[#allocation2 + $0x172] sm:$0xff] }
  0xcd   : > { %10222 = vmatmul.mubr.msk.bf16.gmra.mrb[8].mxu0 %vm266_vm0, %v4724_v41  ;;  %9783 = vmatprep.mubr.msk.bf16.mxu1 %vm266_vm0, %v12076_v42  ;;  %v988_v41 = vld [vmem:[#allocation2 + $0x125] sm:$0xff] }
  0xce   : > { %10225 = vmatprep.mubr.msk.bf16.mxu0 %vm266_vm0, %v4725_v43  ;;  %v989_v43 = vld [vmem:[#allocation2 + $0x12d] sm:$0xff] }
  0xcf   : > { %v4705_v42 = vld [vmem:[#allocation2 + $0x16a] sm:$0xff]  ;;  %v12094_v61 = vpack.c.bf16 %v989_v43, %v988_v41  ;;  %v995_v43 = vld [vmem:[#allocation2 + $0x175] sm:$0xff] }
  0xd0   : > { %v4728_v62 = vpack.c.bf16 %v4706_v40, %v4705_v42  ;;  %v994_v41 = vld [vmem:[#allocation2 + $0x16d] sm:$0xff]  ;;  %v4712_v42 = vld [vmem:[#allocation2 + $0x1ba] sm:$0xff] }
  0xd1   : > { %13384 = vst [vmem:[#allocation14_spill] sm:$0xff] %v12094_v61  ;;  %v4711_v40 = vld [vmem:[#allocation2 + $0x1b2] sm:$0xff]  ;;  %v12106_v44 = vpack.c.bf16 %v995_v43, %v994_v41 }
  0xd2   : > { %v4731_v55 = vpack.c.bf16 %v4712_v42, %v4711_v40 }
  0xd3   : > { %13387 = vst [vmem:[#allocation17_spill] sm:$0xff] %v12106_v44 }
  0xd4   : > { %9784 = vmatmul.mubr.msk.bf16.gmra.mrb[12].mxu1 %vm266_vm0, %v12084_v18  ;;  %v4710_v18 = vld [vmem:[#allocation2 + $0x1a2] sm:$0xff] }
  0xd5   : > { %10226 = vmatmul.mubr.msk.bf16.gmra.mrb[12].mxu0 %vm266_vm0, %v4726_v23  ;;  %9787 = vmatprep.mubr.msk.bf16.mxu1 %vm266_vm0, %v12086_v36  ;;  %v992_v23 = vld [vmem:[#allocation2 + $0x155] sm:$0xff] }
  0xd6   : > { %10229 = vmatprep.mubr.msk.bf16.mxu0 %vm266_vm0, %v4727_v39  ;;  %v993_v39 = vld [vmem:[#allocation2 + $0x15d] sm:$0xff] }
  0xd7   : > { %v4709_v36 = vld [vmem:[#allocation2 + $0x19a] sm:$0xff]  ;;  %v12104_v50 = vpack.c.bf16 %v993_v39, %v992_v23  ;;  %v999_v39 = vld [vmem:[#allocation2 + $0x1a5] sm:$0xff] }
  0xd8   : > { %v4730_v5 = vpack.c.bf16 %v4710_v18, %v4709_v36  ;;  %v998_v23 = vld [vmem:[#allocation2 + $0x19d] sm:$0xff]  ;;  %v4716_v36 = vld [vmem:[#allocation2 + $0x1ea] sm:$0xff] }
  0xd9   : > { %13386 = vst [vmem:[#allocation16_spill] sm:$0xff] %v12104_v50  ;;  %v4715_v18 = vld [vmem:[#allocation2 + $0x1e2] sm:$0xff]  ;;  %v12116_v40 = vpack.c.bf16 %v999_v39, %v998_v23 }
  0xda   : > { %v4733_v42 = vpack.c.bf16 %v4716_v36, %v4715_v18  ;;  %v13390_v18 = vld [vmem:[#allocation9_spill] sm:$0xff]  ;;  %v13391_v36 = vld [vmem:[#allocation10_spill] sm:$0xff] }
  0xdc   : > { %9788 = vmatmul.mubr.msk.bf16.gmra.mrb[16].mxu1 %vm266_vm0, %v12094_v61  ;;  %v4714_v61 = vld [vmem:[#allocation2 + $0x1d2] sm:$0xff] }
  0xdd   : > { %10230 = vmatmul.mubr.msk.bf16.gmra.mrb[16].mxu0 %vm266_vm0, %v4728_v62  ;;  %9791 = vmatprep.mubr.msk.bf16.mxu1 %vm266_vm0, %v12096_v11  ;;  %v996_v62 = vld [vmem:[#allocation2 + $0x185] sm:$0xff] }
  0xde   : > { %10233 = vmatprep.mubr.msk.bf16.mxu0 %vm266_vm0, %v4729_v4  ;;  %v997_v4 = vld [vmem:[#allocation2 + $0x18d] sm:$0xff] }
  0xdf   : > { %v4713_v11 = vld [vmem:[#allocation2 + $0x1ca] sm:$0xff]  ;;  %v12114_v41 = vpack.c.bf16 %v997_v4, %v996_v62 }
  0xe0   : > { %v4732_v43 = vpack.c.bf16 %v4714_v61, %v4713_v11  ;;  %v11504_v11 = vld [vmem:[%s13352_s1 + $0x98] sm:$0xff]   ;;  %v5673_v4 = vld [vmem:[#allocation2 + $0x6c] sm:$0xff] }
  0xe4   : > { %9792 = vmatmul.mubr.msk.bf16.gmra.mrb[20].mxu1 %vm266_vm0, %v12104_v50  ;;  %v4718_v50 = vld [vmem:[#allocation2 + $0x202] sm:$0xff] }
  0xe5   : > { %10234 = vmatmul.mubr.msk.bf16.gmra.mrb[20].mxu0 %vm266_vm0, %v4730_v5  ;;  %9795 = vmatprep.mubr.msk.bf16.mxu1 %vm266_vm0, %v12106_v44  ;;  %v1000_v5 = vld [vmem:[#allocation2 + $0x1b5] sm:$0xff] }
  0xe6   : > { %10237 = vmatprep.mubr.msk.bf16.mxu0 %vm266_vm0, %v4731_v55  ;;  %v1001_v55 = vld [vmem:[#allocation2 + $0x1bd] sm:$0xff] }
  0xe7   : > { %v4717_v44 = vld [vmem:[#allocation2 + $0x1fa] sm:$0xff]  ;;  %v12124_v62 = vpack.c.bf16 %v1001_v55, %v1000_v5 }
  0xe8   : > { %v4734_v61 = vpack.c.bf16 %v4718_v50, %v4717_v44  ;;  %v11505_v50 = vld [vmem:[%s13352_s1 + $0x28] sm:$0xff]   ;;  %v5676_v5 = vld [vmem:[#allocation2 + $0x94] sm:$0xff]  ;;  %v5677_v55 = vld [vmem:[#allocation2 + $0x9c] sm:$0xff] }
  0xe9   : > { %v5672_v44 = vld [vmem:[#allocation2 + $0x64] sm:$0xff] }
  0xea   : > { %v5700_v39 = vpack.c.bf16 %v5673_v4, %v5672_v44 }
  0xec   : > { %9796 = vmatmul.mubr.msk.bf16.gmra.mrb[24].mxu1 %vm266_vm0, %v12114_v41 }
  0xed   : > { %10238 = vmatmul.mubr.msk.bf16.gmra.mrb[24].mxu0 %vm266_vm0, %v4732_v43  ;;  %9799 = vmatprep.mubr.msk.bf16.mxu1 %vm266_vm0, %v12116_v40  ;;  %v5674_v43 = vld [vmem:[#allocation2 + $0x7c] sm:$0xff] }
  0xee   : > { %10241 = vmatprep.mubr.msk.bf16.mxu0 %vm266_vm0, %v4733_v42  ;;  %v5675_v42 = vld [vmem:[#allocation2 + $0x84] sm:$0xff] }
  0xf4   : > { %9800 = vmatmul.mubr.msk.bf16.gmra.mrb[28].mxu1 %vm266_vm0, %v12124_v62 }
  0xf5   : > { %10242 = vmatmul.mubr.msk.bf16.gmra.mrb[28].mxu0 %vm266_vm0, %v4734_v61  ;;  %9805 = vmatprep.mubr.msk.bf16.mxu1 %vm266_vm0, %v11907_v56  ;;  %v5013_v56 = vld [vmem:[#allocation2 + $0x1e4] sm:$0xff]  ;;  %v12299_v61 = vpack.c.bf16 %v5675_v42, %v5674_v43 }
  0xf6   : > { %10247 = vmatprep.mubr.msk.bf16.mxu0 %vm266_vm0, %v11801_v0  ;;  %v2164_v43 = vld [vmem:[#allocation2 + $0x83] sm:$0xff] }
  0xf7   : > { %v5613_v42 = vld [vmem:[#allocation2] sm:$0xff] }
  0xfc   : > { %9806 = vmatmul.mubr.msk.bf16.vlgmr.msra.gmra.mrb[0].mxu1 %vm266_vm0, %v11909_v58  ;;  %v5014_v58 = vld [vmem:[#allocation2 + $0x1ec] sm:$0xff] }
  0xfd   : > { %10248 = vmatmul.mubr.msk.bf16.vlgmr.msra.gmra.mrb[0].mxu0 %vm266_vm0, %v11827_v9  ;;  %9809 = vmatprep.mubr.msk.bf16.mxu1 %vm266_vm0, %v11933_v15  ;;  %v12189_v15 = vpack.c.bf16 %v5014_v58, %v5013_v56  ;;  %v13393_v56 = vld [vmem:[#allocation12_spill] sm:$0xff] }
  0xfe   : > { %10280 = vmatpush3.bf16.msra.mxu0 %v12047_v12  ;;  %10251 = vmatprep.mubr.msk.bf16.mxu0 %vm266_vm0, %v11829_v10  ;;  %v5670_v12 = vld [vmem:[#allocation2 + $0x4c] sm:$0xff] }
  0xff   : > { %9838 = vmatpush3.bf16.msra.mxu1 %v12054_v2  ;;  %10313 = vmatprep.subr.bf16.mxu0 %v11504_v11  ;;  %v5671_v2 = vld [vmem:[#allocation2 + $0x54] sm:$0xff]  ;;  %v5678_v58 = vld [vmem:[#allocation2 + $0xac] sm:$0xff] }
 0x100   : > { %9871 = vmatprep.subr.bf16.mxu1 %v11505_v50  ;;  %v5699_v23 = vpack.c.bf16 %v5671_v2, %v5670_v12  ;;  %v5692_v12 = vld [vmem:[#allocation2 + $0x154] sm:$0xff]  ;;  %v5693_v2 = vld [vmem:[#allocation2 + $0x15c] sm:$0xff] }
 0x101   : > { %v12349_v4 = vpack.c.bf16 %v5693_v2, %v5692_v12  ;;  %v5621_v12 = vld [vmem:[#allocation2 + $0x60] sm:$0xff]  ;;  %v12395_v2 = vld [vmem:[#allocation2 + $0x68] sm:$0xff] }
 0x104   : > { %9810 = vmatmul.mubr.msk.bf16.gmra.mrb[4].mxu1 %vm266_vm0, %v11938_v17  ;;  %v1298_v17 = vld [vmem:[#allocation2 + $0x1cb] sm:$0xff] }
 0x105   : > { %10252 = vmatmul.mubr.msk.bf16.gmra.mrb[4].mxu0 %vm266_vm0, %v11839_v13  ;;  %9813 = vmatprep.mubr.msk.bf16.mxu1 %vm266_vm0, %v11950_v29  ;;  %v1299_v29 = vld [vmem:[#allocation2 + $0x1d3] sm:$0xff] }
 0x106   : > { %10255 = vmatprep.mubr.msk.bf16.mxu0 %vm266_vm0, %v11841_v14 }
 0x10c   : > { %9814 = vmatmul.mubr.msk.bf16.gmra.mrb[8].mxu1 %vm266_vm0, %v11954_v33  ;;  %v5015_v33 = vld [vmem:[#allocation2 + $0x1fc] sm:$0xff] }
 0x10d   : > { %10256 = vmatmul.mubr.msk.bf16.gmra.mrb[8].mxu0 %vm266_vm0, %v11851_v19  ;;  %9817 = vmatprep.mubr.msk.bf16.mxu1 %vm266_vm0, %v11966_v46  ;;  %v5016_v46 = vld [vmem:[#allocation2 + $0x204] sm:$0xff] }
 0x10e   : > { %10259 = vmatprep.mubr.msk.bf16.mxu0 %vm266_vm0, %v11853_v20 }
 0x114   : > { %9818 = vmatmul.mubr.msk.bf16.gmra.mrb[12].mxu1 %vm266_vm0, %v11970_v48  ;;  %v12199_v48 = vpack.c.bf16 %v1299_v29, %v1298_v17  ;;  %v5679_v17 = vld [vmem:[#allocation2 + $0xb4] sm:$0xff]  ;;  %v5680_v29 = vld [vmem:[#allocation2 + $0xc4] sm:$0xff] }
 0x115   : > { %10260 = vmatmul.mubr.msk.bf16.gmra.mrb[12].mxu0 %vm266_vm0, %v11863_v25  ;;  %9821 = vmatprep.mubr.msk.bf16.mxu1 %vm266_vm0, %v11982_v6  ;;  %v5032_v6 = vpack.c.bf16 %v5016_v46, %v5015_v33  ;;  %v5681_v33 = vld [vmem:[#allocation2 + $0xcc] sm:$0xff]  ;;  %v12311_v46 = vpack.c.bf16 %v5679_v17, %v5678_v58  ;;  %v2166_v58 = vld [vmem:[#allocation2 + $0x9b] sm:$0xff] }
 0x116   : > { %10263 = vmatprep.mubr.msk.bf16.mxu0 %vm266_vm0, %v11865_v26  ;;  %v5615_v17 = vld [vmem:[#allocation2 + $0x18] sm:$0xff] }
 0x11c   : > { %9822 = vmatmul.mubr.msk.bf16.gmra.mrb[16].mxu1 %vm266_vm0, %v11986_v8  ;;  %v11506_v8 = vld [vmem:[%s13352_s1 + $0x90] sm:$0xff]  }
 0x11d   : > { %10264 = vmatmul.mubr.msk.bf16.gmra.mrb[16].mxu0 %vm266_vm0, %v11875_v31  ;;  %9825 = vmatprep.mubr.msk.bf16.mxu1 %vm266_vm0, %v11998_v24  ;;  %v11507_v24 = vld [vmem:[%s13352_s1 + $0x30] sm:$0xff]  }
 0x11e   : > { %10267 = vmatprep.mubr.msk.bf16.mxu0 %vm266_vm0, %v11877_v32 }
 0x124   : > { %9826 = vmatmul.mubr.msk.bf16.gmra.mrb[20].mxu1 %vm266_vm0, %v12002_v28  ;;  %v5667_v28 = vld [vmem:[#allocation2 + $0x24] sm:$0xff] }
 0x125   : > { %10268 = vmatmul.mubr.msk.bf16.gmra.mrb[20].mxu0 %vm266_vm0, %v11887_v37  ;;  %9829 = vmatprep.mubr.msk.bf16.mxu1 %vm266_vm0, %v12014_v51  ;;  %v5669_v51 = vld [vmem:[#allocation2 + $0x3c] sm:$0xff] }
 0x126   : > { %10271 = vmatprep.mubr.msk.bf16.mxu0 %vm266_vm0, %v11889_v38 }
 0x12c   : > { %9830 = vmatmul.mubr.msk.bf16.gmra.mrb[24].mxu1 %vm266_vm0, %v12018_v53 }
 0x12d   : > { %10272 = vmatmul.mubr.msk.bf16.gmra.mrb[24].mxu0 %vm266_vm0, %v11899_v45  ;;  %9833 = vmatprep.mubr.msk.bf16.mxu1 %vm266_vm0, %v12030_v21  ;;  %v13388_v21 = vld [vmem:[#allocation7_spill] sm:$0xff] }
 0x12e   : > { %10275 = vmatprep.mubr.msk.bf16.mxu0 %vm266_vm0, %v12189_v15 }
 0x134   : > { %9834 = vmatmul.mubr.msk.bf16.gmra.mrb[28].mxu1 %vm266_vm0, %v12199_v48 }
 0x135   : > { %10276 = vmatmul.mubr.msk.bf16.gmra.mrb[28].mxu0 %vm266_vm0, %v5032_v6  ;;  %9839 = vmatprep.mubr.msk.bf16.mxu1 %vm266_vm0, %v11796_v59  ;;  %v12313_v6 = vpack.c.bf16 %v5681_v33, %v5680_v29  ;;  %v12372_v29 = vld [vmem:[#allocation2 + $0x20] sm:$0xff]  ;;  %v2167_v33 = vld [vmem:[#allocation2 + $0xab] sm:$0xff] }
 0x136   : > { %10281 = vmatprep.mubr.msk.bf16.mxu0 %vm266_vm0, %v11911_v60  ;;  %v5311_v60 = vld [vmem:[#allocation2 + $0x1e6] sm:$0xff] }
 0x13c   : > { %9840 = vmatmul.mubr.msk.bf16.vlgmr.msra.gmra.mrb[0].mxu1 %vm266_vm0, %v11799_v63 }
 0x13d   : > { %10282 = vmatmul.mubr.msk.bf16.vlgmr.msra.gmra.mrb[0].mxu0 %vm266_vm0, %v11936_v16  ;;  %9843 = vmatprep.mubr.msk.bf16.mxu1 %vm266_vm0, %v11801_v0  ;;  %v5312_v16 = vld [vmem:[#allocation2 + $0x1ee] sm:$0xff] }
 0x13e   : > { %10314 = vmatpush3.bf16.msra.mxu0 %v11504_v11  ;;  %10285 = vmatprep.mubr.msk.bf16.mxu0 %vm266_vm0, %v11940_v1  ;;  %v5329_v1 = vpack.c.bf16 %v5312_v16, %v5311_v60  ;;  %v12301_v11 = vpack.c.bf16 %v5677_v55, %v5676_v5  ;;  %v5682_v60 = vld [vmem:[#allocation2 + $0xdc] sm:$0xff]  ;;  %v5683_v16 = vld [vmem:[#allocation2 + $0xe4] sm:$0xff] }
 0x13f   : > { %9872 = vmatpush3.bf16.msra.mxu1 %v11505_v50  ;;  %10347 = vmatprep.subr.bf16.mxu0 %v11506_v8  ;;  %v13392_v50 = vld [vmem:[#allocation11_spill] sm:$0xff]  ;;  %v12359_v5 = vld [vmem:[#allocation2 + $0x8] sm:$0xff] }
 0x140   : > { %9905 = vmatprep.subr.bf16.mxu1 %v11507_v24 }
 0x144   : > { %9844 = vmatmul.mubr.msk.bf16.gmra.mrb[4].mxu1 %vm266_vm0, %v11827_v9 }
 0x145   : > { %10286 = vmatmul.mubr.msk.bf16.gmra.mrb[4].mxu0 %vm266_vm0, %v11952_v30  ;;  %9847 = vmatprep.mubr.msk.bf16.mxu1 %vm266_vm0, %v11829_v10  ;;  %v5313_v30 = vld [vmem:[#allocation2 + $0x1fe] sm:$0xff] }
 0x146   : > { %10289 = vmatprep.mubr.msk.bf16.mxu0 %vm266_vm0, %v11956_v34  ;;  %v5314_v34 = vld [vmem:[#allocation2 + $0x206] sm:$0xff] }
 0x14c   : > { %9848 = vmatmul.mubr.msk.bf16.gmra.mrb[8].mxu1 %vm266_vm0, %v11839_v13 }
 0x14d   : > { %10290 = vmatmul.mubr.msk.bf16.gmra.mrb[8].mxu0 %vm266_vm0, %v11968_v47  ;;  %9851 = vmatprep.mubr.msk.bf16.mxu1 %vm266_vm0, %v11841_v14  ;;  %v5664_v47 = vld [vmem:[#allocation2 + $0x4] sm:$0xff] }
 0x14e   : > { %10293 = vmatprep.mubr.msk.bf16.mxu0 %vm266_vm0, %v11972_v49  ;;  %v5665_v49 = vld [vmem:[#allocation2 + $0xc] sm:$0xff] }
 0x154   : > { %9852 = vmatmul.mubr.msk.bf16.gmra.mrb[12].mxu1 %vm266_vm0, %v11851_v19 }
 0x155   : > { %10294 = vmatmul.mubr.msk.bf16.gmra.mrb[12].mxu0 %vm266_vm0, %v11984_v7  ;;  %9855 = vmatprep.mubr.msk.bf16.mxu1 %vm266_vm0, %v11853_v20  ;;  %v5330_v7 = vpack.c.bf16 %v5314_v34, %v5313_v30  ;;  %v5685_v30 = vld [vmem:[#allocation2 + $0xfc] sm:$0xff]  ;;  %v12323_v34 = vpack.c.bf16 %v5683_v16, %v5682_v60 }
 0x156   : > { %10297 = vmatprep.mubr.msk.bf16.mxu0 %vm266_vm0, %v11988_v3  ;;  %v5696_v3 = vpack.c.bf16 %v5665_v49, %v5664_v47  ;;  %v13396_v49 = vld [vmem:[#allocation15_spill] sm:$0xff]  ;;  %v12374_v60 = vld [vmem:[#allocation2 + $0x38] sm:$0xff] }
 0x15c   : > { %9856 = vmatmul.mubr.msk.bf16.gmra.mrb[16].mxu1 %vm266_vm0, %v11863_v25 }
 0x15d   : > { %10298 = vmatmul.mubr.msk.bf16.gmra.mrb[16].mxu0 %vm266_vm0, %v12000_v27  ;;  %9859 = vmatprep.mubr.msk.bf16.mxu1 %vm266_vm0, %v11865_v26  ;;  %v5666_v27 = vld [vmem:[#allocation2 + $0x1c] sm:$0xff] }
 0x15e   : > { %10301 = vmatprep.mubr.msk.bf16.mxu0 %vm266_vm0, %v12004_v35  ;;  %v5668_v35 = vld [vmem:[#allocation2 + $0x34] sm:$0xff] }
 0x15f   : > { %v5698_v53 = vpack.c.bf16 %v5669_v51, %v5668_v35  ;;  %v5689_v35 = vld [vmem:[#allocation2 + $0x12c] sm:$0xff] }
 0x164   : > { %9860 = vmatmul.mubr.msk.bf16.gmra.mrb[20].mxu1 %vm266_vm0, %v11875_v31 }
 0x165   : > { %10302 = vmatmul.mubr.msk.bf16.gmra.mrb[20].mxu0 %vm266_vm0, %v12016_v52  ;;  %9863 = vmatprep.mubr.msk.bf16.mxu1 %vm266_vm0, %v11877_v32  ;;  %v5697_v52 = vpack.c.bf16 %v5667_v28, %v5666_v27  ;;  %v5687_v27 = vld [vmem:[#allocation2 + $0x114] sm:$0xff]  ;;  %v5688_v28 = vld [vmem:[#allocation2 + $0x124] sm:$0xff] }
 0x166   : > { %10305 = vmatprep.mubr.msk.bf16.mxu0 %vm266_vm0, %v12020_v54  ;;  %v12278_v54 = vld [vmem:[%s13352_s1 + $0xa0] sm:$0xff]  }
 0x16c   : > { %9864 = vmatmul.mubr.msk.bf16.gmra.mrb[24].mxu1 %vm266_vm0, %v11887_v37  ;;  %v6150_v37 = vld [vmem:[#allocation2 + $0x40] sm:$0xff] }
 0x16d   : > { %10306 = vmatmul.mubr.msk.bf16.gmra.mrb[24].mxu0 %vm266_vm0, %v12032_v22  ;;  %9867 = vmatprep.mubr.msk.bf16.mxu1 %vm266_vm0, %v11889_v38  ;;  %v12285_v22 = vld [vmem:[%s13352_s1 + $0x38] sm:$0xff]  }
 0x16e   : > { %10309 = vmatprep.mubr.msk.bf16.mxu0 %vm266_vm0, %v5329_v1  ;;  %v5684_v1 = vld [vmem:[#allocation2 + $0xf4] sm:$0xff] }
 0x16f   : > { %v12325_v47 = vpack.c.bf16 %v5685_v30, %v5684_v1  ;;  %v5646_v1 = vpack.c.bf16 %v12372_v29, %v5615_v17 }
 0x174   : > { %9868 = vmatmul.mubr.msk.bf16.gmra.mrb[28].mxu1 %vm266_vm0, %v11899_v45  ;;  %v2194_v45 = vld [vmem:[#allocation2 + $0x1eb] sm:$0xff] }
 0x175   : > { %10310 = vmatmul.mubr.msk.bf16.gmra.mrb[28].mxu0 %vm266_vm0, %v5330_v7  ;;  %9873 = vmatprep.mubr.msk.bf16.mxu1 %vm266_vm0, %v12040_v57  ;;  %v13389_v57 = vld [vmem:[#allocation8_spill] sm:$0xff] }
 0x176   : > { %10315 = vmatprep.mubr.msk.bf16.mxu0 %vm266_vm0, %v5696_v3  ;;  %v13397_v7 = vld [vmem:[#allocation16_spill] sm:$0xff] }
 0x177   : > { %v5686_v3 = vld [vmem:[#allocation2 + $0x10c] sm:$0xff] }
 0x178   : > { %v12335_v51 = vpack.c.bf16 %v5687_v27, %v5686_v3  ;;  %v12387_v3 = vld [vmem:[%s13352_s1 + $0x40] sm:$0xff]  }
 0x179   : > { %v2169_v27 = vld [vmem:[#allocation2 + $0xc3] sm:$0xff] }
 0x17c   : > { %9874 = vmatmul.mubr.msk.bf16.vlgmr.msra.gmra.mrb[0].mxu1 %vm266_vm0, %v13388_v21  ;;  %v5690_v21 = vld [vmem:[#allocation2 + $0x13c] sm:$0xff] }
 0x17d   : > { %10316 = vmatmul.mubr.msk.bf16.vlgmr.msra.gmra.mrb[0].mxu0 %vm266_vm0, %v5697_v52  ;;  %9877 = vmatprep.mubr.msk.bf16.mxu1 %vm266_vm0, %v13389_v57  ;;  %v12337_v52 = vpack.c.bf16 %v5689_v35, %v5688_v28  ;;  %v5691_v57 = vld [vmem:[#allocation2 + $0x144] sm:$0xff] }
 0x17e   : > { %10348 = vmatpush3.bf16.msra.mxu0 %v11506_v8  ;;  %10319 = vmatprep.mubr.msk.bf16.mxu0 %vm266_vm0, %v5698_v53  ;;  %v13394_v8 = vld [vmem:[#allocation13_spill] sm:$0xff]  ;;  %v12347_v44 = vpack.c.bf16 %v5691_v57, %v5690_v21  ;;  %v5619_v35 = vld [vmem:[#allocation2 + $0x48] sm:$0xff]  ;;  %v2171_v21 = vld [vmem:[#allocation2 + $0xdb] sm:$0xff] }
 0x17f   : > { %9906 = vmatpush3.bf16.msra.mxu1 %v11507_v24  ;;  %10381 = vmatprep.subr.bf16.mxu0 %v12278_v54  ;;  %v13395_v24 = vld [vmem:[#allocation14_spill] sm:$0xff]  ;;  %v13398_v53 = vld [vmem:[#allocation17_spill] sm:$0xff]  ;;  %v2172_v57 = vld [vmem:[#allocation2 + $0xe3] sm:$0xff] }
 0x180   : > { %9939 = vmatprep.subr.bf16.mxu1 %v12285_v22  ;;  %v2170_v28 = vld [vmem:[#allocation2 + $0xcb] sm:$0xff] }
 0x184   : > { %9878 = vmatmul.mubr.msk.bf16.gmra.mrb[4].mxu1 %vm266_vm0, %v13390_v18  ;;  %v5695_v18 = vld [vmem:[#allocation2 + $0x174] sm:$0xff] }
 0x185   : > { %10320 = vmatmul.mubr.msk.bf16.gmra.mrb[4].mxu0 %vm266_vm0, %v5699_v23  ;;  %9881 = vmatprep.mubr.msk.bf16.mxu1 %vm266_vm0, %v13391_v36  ;;  %v1895_v23 = vld [vmem:[#allocation2 + $0x1d5] sm:$0xff] }
 0x186   : > { %10323 = vmatprep.mubr.msk.bf16.mxu0 %vm266_vm0, %v5700_v39  ;;  %v5694_v39 = vld [vmem:[#allocation2 + $0x16c] sm:$0xff]  ;;  %v2163_v36 = vld [vmem:[#allocation2 + $0x7b] sm:$0xff] }
 0x18c   : > { %9882 = vmatmul.mubr.msk.bf16.gmra.mrb[8].mxu1 %vm266_vm0, %v13392_v50  ;;  %v2195_v50 = vpack.c.bf16 %v2164_v43, %v2163_v36  ;;  %v2174_v36 = vld [vmem:[#allocation2 + $0xfb] sm:$0xff] }
 0x18d   : > { %10324 = vmatmul.mubr.msk.bf16.gmra.mrb[8].mxu0 %vm266_vm0, %v12299_v61  ;;  %9885 = vmatprep.mubr.msk.bf16.mxu1 %vm266_vm0, %v13393_v56  ;;  %v5645_v56 = vpack.c.bf16 %v12359_v5, %v5613_v42  ;;  %v12409_v43 = vld [vmem:[#allocation2 + $0x80] sm:$0xff]  ;;  %v2175_v42 = vld [vmem:[#allocation2 + $0x10b] sm:$0xff] }
 0x18e   : > { %10327 = vmatprep.mubr.msk.bf16.mxu0 %vm266_vm0, %v12301_v11 }
 0x194   : > { %9886 = vmatmul.mubr.msk.bf16.gmra.mrb[12].mxu1 %vm266_vm0, %v13394_v8  ;;  %v2168_v8 = vld [vmem:[#allocation2 + $0xb3] sm:$0xff] }
 0x195   : > { %10328 = vmatmul.mubr.msk.bf16.gmra.mrb[12].mxu0 %vm266_vm0, %v12311_v46  ;;  %9889 = vmatprep.mubr.msk.bf16.mxu1 %vm266_vm0, %v13395_v24  ;;  %v5617_v24 = vld [vmem:[#allocation2 + $0x30] sm:$0xff]  ;;  %v2197_v30 = vpack.c.bf16 %v2168_v8, %v2167_v33 }
 0x196   : > { %10331 = vmatprep.mubr.msk.bf16.mxu0 %vm266_vm0, %v12313_v6 }
 0x19c   : > { %9890 = vmatmul.mubr.msk.bf16.gmra.mrb[16].mxu1 %vm266_vm0, %v13396_v49  ;;  %v5647_v49 = vpack.c.bf16 %v12374_v60, %v5617_v24  ;;  %v2177_v24 = vld [vmem:[#allocation2 + $0x123] sm:$0xff] }
 0x19d   : > { %10332 = vmatmul.mubr.msk.bf16.gmra.mrb[16].mxu0 %vm266_vm0, %v12323_v34  ;;  %9893 = vmatprep.mubr.msk.bf16.mxu1 %vm266_vm0, %v13397_v7  ;;  %v12381_v7 = vld [vmem:[%s13352_s1 + $0xa8] sm:$0xff]  }
 0x19e   : > { %10335 = vmatprep.mubr.msk.bf16.mxu0 %vm266_vm0, %v12325_v47 }
 0x1a4   : > { %9894 = vmatmul.mubr.msk.bf16.gmra.mrb[20].mxu1 %vm266_vm0, %v13398_v53  ;;  %v12393_v53 = vld [vmem:[#allocation2 + $0x50] sm:$0xff] }
 0x1a5   : > { %10336 = vmatmul.mubr.msk.bf16.gmra.mrb[20].mxu0 %vm266_vm0, %v12335_v51  ;;  %9897 = vmatprep.mubr.msk.bf16.mxu1 %vm266_vm0, %v12114_v41  ;;  %v1894_v41 = vld [vmem:[#allocation2 + $0x1cd] sm:$0xff] }
 0x1a6   : > { %10339 = vmatprep.mubr.msk.bf16.mxu0 %vm266_vm0, %v12337_v52  ;;  %v12361_v55 = vpack.c.bf16 %v1895_v23, %v1894_v41  ;;  %v2198_v41 = vpack.c.bf16 %v2170_v28, %v2169_v27  ;;  %v5648_v23 = vpack.c.bf16 %v12393_v53, %v5619_v35  ;;  %v2180_v27 = vld [vmem:[#allocation2 + $0x143] sm:$0xff] }
 0x1a7   : > { %v5629_v28 = vld [vmem:[#allocation2 + $0xc0] sm:$0xff]  ;;  %v12427_v35 = vld [vmem:[#allocation2 + $0xc8] sm:$0xff] }
 0x1ac   : > { %9898 = vmatmul.mubr.msk.bf16.gmra.mrb[24].mxu1 %vm266_vm0, %v12116_v40  ;;  %v12363_v40 = vpack.c.bf16 %v5695_v18, %v5694_v39  ;;  %v2199_v39 = vpack.c.bf16 %v2172_v57, %v2171_v21  ;;  %v2173_v18 = vld [vmem:[#allocation2 + $0xf3] sm:$0xff] }
 0x1ad   : > { %10340 = vmatmul.mubr.msk.bf16.gmra.mrb[24].mxu0 %vm266_vm0, %v12347_v44  ;;  %9901 = vmatprep.mubr.msk.bf16.mxu1 %vm266_vm0, %v12124_v62  ;;  %v2165_v62 = vld [vmem:[#allocation2 + $0x93] sm:$0xff] }
 0x1ae   : > { %10343 = vmatprep.mubr.msk.bf16.mxu0 %vm266_vm0, %v12349_v4  ;;  %v2196_v16 = vpack.c.bf16 %v2166_v58, %v2165_v62  ;;  %v12411_v62 = vld [vmem:[#allocation2 + $0x98] sm:$0xff]  ;;  %v2200_v58 = vpack.c.bf16 %v2174_v36, %v2173_v18  ;;  %v12441_v36 = vld [vmem:[#allocation2 + $0xe0] sm:$0xff] }
 0x1af   : > { %v5631_v18 = vld [vmem:[#allocation2 + $0xd8] sm:$0xff] }
 0x1b4   : > { %9902 = vmatmul.mubr.msk.bf16.gmra.mrb[28].mxu1 %vm266_vm0, %v12361_v55 }
 0x1b5   : > { %10344 = vmatmul.mubr.msk.bf16.gmra.mrb[28].mxu0 %vm266_vm0, %v12363_v40  ;;  %9907 = vmatprep.mubr.msk.bf16.mxu1 %vm266_vm0, %v2195_v50  ;;  %v2176_v50 = vld [vmem:[#allocation2 + $0x113] sm:$0xff] }
 0x1b6   : > { %10349 = vmatprep.mubr.msk.bf16.mxu0 %vm266_vm0, %v5645_v56  ;;  %v5625_v56 = vld [vmem:[#allocation2 + $0x90] sm:$0xff]  ;;  %v2201_v33 = vpack.c.bf16 %v2176_v50, %v2175_v42 }
 0x1b7   : > { %v12417_v8 = vpack.c.bf16 %v12411_v62, %v5625_v56  ;;  %v2184_v42 = vld [vmem:[#allocation2 + $0x173] sm:$0xff] }
 0x1b8   : > { %v5633_v50 = vld [vmem:[#allocation2 + $0xf0] sm:$0xff]  ;;  %v12443_v56 = vld [vmem:[#allocation2 + $0xf8] sm:$0xff] }
 0x1bc   : > { %9908 = vmatmul.mubr.msk.bf16.vlgmr.msra.gmra.mrb[0].mxu1 %vm266_vm0, %v2196_v16  ;;  %v2178_v16 = vld [vmem:[#allocation2 + $0x12b] sm:$0xff] }
 0x1bd   : > { %10350 = vmatmul.mubr.msk.bf16.vlgmr.msra.gmra.mrb[0].mxu0 %vm266_vm0, %v5646_v1  ;;  %9911 = vmatprep.mubr.msk.bf16.mxu1 %vm266_vm0, %v2197_v30  ;;  %v5627_v1 = vld [vmem:[#allocation2 + $0xa8] sm:$0xff]  ;;  %v12425_v30 = vld [vmem:[#allocation2 + $0xb0] sm:$0xff]  ;;  %v2202_v21 = vpack.c.bf16 %v2178_v16, %v2177_v24  ;;  %v12449_v16 = vpack.c.bf16 %v12443_v56, %v5633_v50 }
 0x1be   : > { %10382 = vmatpush3.bf16.msra.mxu0 %v12278_v54  ;;  %10353 = vmatprep.mubr.msk.bf16.mxu0 %vm266_vm0, %v5647_v49  ;;  %v12402_v54 = vpack.c.bf16 %v12395_v2, %v5621_v12  ;;  %v2179_v49 = vld [vmem:[#allocation2 + $0x13b] sm:$0xff]  ;;  %v12430_v57 = vpack.c.bf16 %v12425_v30, %v5627_v1  ;;  %v2185_v1 = vld [vmem:[#allocation2 + $0x183] sm:$0xff] }
 0x1bf   : > { %9940 = vmatpush3.bf16.msra.mxu1 %v12285_v22  ;;  %10415 = vmatprep.subr.bf16.mxu0 %v12381_v7  ;;  %v5623_v22 = vld [vmem:[#allocation2 + $0x78] sm:$0xff]  ;;  %v2203_v12 = vpack.c.bf16 %v2180_v27, %v2179_v49  ;;  %v2186_v49 = vld [vmem:[#allocation2 + $0x18b] sm:$0xff] }
 0x1c0   : > { %9973 = vmatprep.subr.bf16.mxu1 %v12387_v3  ;;  %v12414_v17 = vpack.c.bf16 %v12409_v43, %v5623_v22  ;;  %v2183_v22 = vld [vmem:[#allocation2 + $0x16b] sm:$0xff] }
 0x1c1   : > { %v2205_v24 = vpack.c.bf16 %v2184_v42, %v2183_v22  ;;  %v5635_v27 = vld [vmem:[#allocation2 + $0x108] sm:$0xff] }
 0x1c4   : > { %9912 = vmatmul.mubr.msk.bf16.gmra.mrb[4].mxu1 %vm266_vm0, %v2198_v41  ;;  %v12433_v41 = vpack.c.bf16 %v12427_v35, %v5629_v28  ;;  %v12457_v28 = vld [vmem:[#allocation2 + $0x110] sm:$0xff] }
 0x1c5   : > { %10354 = vmatmul.mubr.msk.bf16.gmra.mrb[4].mxu0 %vm266_vm0, %v5648_v23  ;;  %9915 = vmatprep.mubr.msk.bf16.mxu1 %vm266_vm0, %v2199_v39  ;;  %v2181_v23 = vld [vmem:[#allocation2 + $0x153] sm:$0xff]  ;;  %v2182_v39 = vld [vmem:[#allocation2 + $0x15b] sm:$0xff]  ;;  %v12462_v22 = vpack.c.bf16 %v12457_v28, %v5635_v27 }
 0x1c6   : > { %10357 = vmatprep.mubr.msk.bf16.mxu0 %vm266_vm0, %v12402_v54  ;;  %v5641_v27 = vld [vmem:[#allocation2 + $0x150] sm:$0xff] }
 0x1cc   : > { %9916 = vmatmul.mubr.msk.bf16.gmra.mrb[8].mxu1 %vm266_vm0, %v2200_v58  ;;  %v2204_v58 = vpack.c.bf16 %v2182_v39, %v2181_v23  ;;  %v5637_v23 = vld [vmem:[#allocation2 + $0x120] sm:$0xff]  ;;  %v12459_v39 = vld [vmem:[#allocation2 + $0x128] sm:$0xff] }
 0x1cd   : > { %10358 = vmatmul.mubr.msk.bf16.gmra.mrb[8].mxu0 %vm266_vm0, %v12414_v17  ;;  %9919 = vmatprep.mubr.msk.bf16.mxu1 %vm266_vm0, %v2201_v33  ;;  %v12446_v33 = vpack.c.bf16 %v12441_v36, %v5631_v18  ;;  %v2206_v18 = vpack.c.bf16 %v2186_v49, %v2185_v1  ;;  %v12465_v50 = vpack.c.bf16 %v12459_v39, %v5637_v23  ;;  %v5639_v1 = vld [vmem:[#allocation2 + $0x138] sm:$0xff]  ;;  %v12473_v49 = vld [vmem:[#allocation2 + $0x140] sm:$0xff] }
 0x1ce   : > { %10361 = vmatprep.mubr.msk.bf16.mxu0 %vm266_vm0, %v12417_v8  ;;  %v12478_v23 = vpack.c.bf16 %v12473_v49, %v5639_v1  ;;  %v6146_v1 = vld [vmem:[#allocation2 + $0x10] sm:$0xff] }
 0x1d4   : > { %9920 = vmatmul.mubr.msk.bf16.gmra.mrb[12].mxu1 %vm266_vm0, %v2202_v21  ;;  %v2187_v21 = vld [vmem:[#allocation2 + $0x19b] sm:$0xff] }
 0x1d5   : > { %10362 = vmatmul.mubr.msk.bf16.gmra.mrb[12].mxu0 %vm266_vm0, %v12430_v57  ;;  %9923 = vmatprep.mubr.msk.bf16.mxu1 %vm266_vm0, %v2203_v12  ;;  %v2188_v12 = vld [vmem:[#allocation2 + $0x1a3] sm:$0xff] }
 0x1d6   : > { %10365 = vmatprep.mubr.msk.bf16.mxu0 %vm266_vm0, %v12433_v41  ;;  %v2207_v42 = vpack.c.bf16 %v2188_v12, %v2187_v21  ;;  %v12475_v21 = vld [vmem:[#allocation2 + $0x158] sm:$0xff] }
 0x1dc   : > { %9924 = vmatmul.mubr.msk.bf16.gmra.mrb[16].mxu1 %vm266_vm0, %v2204_v58  ;;  %v2189_v58 = vld [vmem:[#allocation2 + $0x1b3] sm:$0xff] }
 0x1dd   : > { %10366 = vmatmul.mubr.msk.bf16.gmra.mrb[16].mxu0 %vm266_vm0, %v12446_v33  ;;  %9927 = vmatprep.mubr.msk.bf16.mxu1 %vm266_vm0, %v2205_v24  ;;  %v2190_v24 = vld [vmem:[#allocation2 + $0x1bb] sm:$0xff] }
 0x1de   : > { %10369 = vmatprep.mubr.msk.bf16.mxu0 %vm266_vm0, %v12449_v16  ;;  %v2208_v12 = vpack.c.bf16 %v2190_v24, %v2189_v58  ;;  %v5643_v58 = vld [vmem:[#allocation2 + $0x168] sm:$0xff]  ;;  %v12490_v24 = vld [vmem:[#allocation2 + $0x170] sm:$0xff] }
 0x1e4   : > { %9928 = vmatmul.mubr.msk.bf16.gmra.mrb[20].mxu1 %vm266_vm0, %v2206_v18  ;;  %v12481_v18 = vpack.c.bf16 %v12475_v21, %v5641_v27  ;;  %v12493_v27 = vpack.c.bf16 %v12490_v24, %v5643_v58  ;;  %v2483_v58 = vld [vmem:[#allocation2 + $0x184] sm:$0xff] }
 0x1e5   : > { %10370 = vmatmul.mubr.msk.bf16.gmra.mrb[20].mxu0 %vm266_vm0, %v12462_v22  ;;  %9931 = vmatprep.mubr.msk.bf16.mxu1 %vm266_vm0, %v2207_v42  ;;  %v2193_v42 = vld [vmem:[#allocation2 + $0x1e3] sm:$0xff] }
 0x1e6   : > { %10373 = vmatprep.mubr.msk.bf16.mxu0 %vm266_vm0, %v12465_v50  ;;  %v2210_v38 = vpack.c.bf16 %v2194_v45, %v2193_v42  ;;  %v6179_v45 = vpack.c.bf16 %v6150_v37, %v12374_v60  ;;  %v6152_v37 = vld [vmem:[#allocation2 + $0x58] sm:$0xff]  ;;  %v6166_v42 = vld [vmem:[#allocation2 + $0x100] sm:$0xff] }
 0x1ec   : > { %9932 = vmatmul.mubr.msk.bf16.gmra.mrb[24].mxu1 %vm266_vm0, %v2208_v12  ;;  %v6177_v12 = vpack.c.bf16 %v6146_v1, %v12359_v5  ;;  %v12507_v5 = vld [vmem:[%s13352_s1 + $0xb0] sm:$0xff]  }
 0x1ed   : > { %10374 = vmatmul.mubr.msk.bf16.gmra.mrb[24].mxu0 %vm266_vm0, %v12478_v23  ;;  %9935 = vmatprep.mubr.msk.bf16.mxu1 %vm266_vm0, %v12199_v48  ;;  %v6148_v48 = vld [vmem:[#allocation2 + $0x28] sm:$0xff] }
 0x1ee   : > { %10377 = vmatprep.mubr.msk.bf16.mxu0 %vm266_vm0, %v12481_v18  ;;  %v6178_v32 = vpack.c.bf16 %v6148_v48, %v12372_v29  ;;  %v2484_v1 = vld [vmem:[#allocation2 + $0x18c] sm:$0xff]  ;;  %v2486_v48 = vld [vmem:[#allocation2 + $0x1a4] sm:$0xff] }
 0x1f4   : > { %9936 = vmatmul.mubr.msk.bf16.gmra.mrb[28].mxu1 %vm266_vm0, %v2210_v38  ;;  %v12514_v38 = vld [vmem:[%s13352_s1 + $0x50] sm:$0xff]  }
 0x1f5   : > { %10378 = vmatmul.mubr.msk.bf16.gmra.mrb[28].mxu0 %vm266_vm0, %v12493_v27  ;;  %9941 = vmatprep.mubr.msk.bf16.mxu1 %vm266_vm0, %v12299_v61  ;;  %v6154_v61 = vld [vmem:[#allocation2 + $0x70] sm:$0xff] }
 0x1f6   : > { %10383 = vmatprep.mubr.msk.bf16.mxu0 %vm266_vm0, %v6177_v12  ;;  %v12526_v29 = vpack.c.bf16 %v6154_v61, %v12395_v2  ;;  %v6168_v12 = vld [vmem:[#allocation2 + $0x118] sm:$0xff] }
 0x1fc   : > { %9942 = vmatmul.mubr.msk.bf16.vlgmr.msra.gmra.mrb[0].mxu1 %vm266_vm0, %v12301_v11  ;;  %v6180_v11 = vpack.c.bf16 %v6152_v37, %v12393_v53  ;;  %v6162_v53 = vld [vmem:[#allocation2 + $0xd0] sm:$0xff]  ;;  %v12580_v37 = vpack.c.bf16 %v6168_v12, %v12457_v28  ;;  %v6172_v28 = vld [vmem:[#allocation2 + $0x148] sm:$0xff]  ;;  %v6176_v12 = vld [vmem:[#allocation2 + $0x178] sm:$0xff] }
 0x1fd   : > { %10384 = vmatmul.mubr.msk.bf16.vlgmr.msra.gmra.mrb[0].mxu0 %vm266_vm0, %v6178_v32  ;;  %9945 = vmatprep.mubr.msk.bf16.mxu1 %vm266_vm0, %v12311_v46  ;;  %v6156_v32 = vld [vmem:[#allocation2 + $0x88] sm:$0xff]  ;;  %v6158_v46 = vld [vmem:[#allocation2 + $0xa0] sm:$0xff] }
 0x1fe   : > { %10416 = vmatpush3.bf16.msra.mxu0 %v12381_v7  ;;  %10387 = vmatprep.mubr.msk.bf16.mxu0 %vm266_vm0, %v6179_v45  ;;  %v12536_v60 = vpack.c.bf16 %v6156_v32, %v12409_v43  ;;  %v12539_v7 = vpack.c.bf16 %v6158_v46, %v12411_v62  ;;  %v12553_v43 = vpack.c.bf16 %v6162_v53, %v12427_v35  ;;  %v6164_v62 = vld [vmem:[#allocation2 + $0xe8] sm:$0xff]  ;;  %v6170_v45 = vld [vmem:[#allocation2 + $0x130] sm:$0xff]  ;;  %v2488_v46 = vld [vmem:[#allocation2 + $0x1bc] sm:$0xff] }
 0x1ff   : > { %9974 = vmatpush3.bf16.msra.mxu1 %v12387_v3  ;;  %10449 = vmatprep.subr.bf16.mxu0 %v12507_v5  ;;  %v6160_v3 = vld [vmem:[#allocation2 + $0xb8] sm:$0xff]  ;;  %v12567_v35 = vpack.c.bf16 %v6166_v42, %v12443_v56  ;;  %v12577_v56 = vpack.c.bf16 %v2484_v1, %v2483_v58  ;;  %v12596_v42 = vpack.c.bf16 %v6172_v28, %v12473_v49 }
 0x200   : > { %10007 = vmatprep.subr.bf16.mxu1 %v12514_v38  ;;  %v12550_v2 = vpack.c.bf16 %v6160_v3, %v12425_v30  ;;  %v12564_v30 = vpack.c.bf16 %v6164_v62, %v12441_v36  ;;  %v2485_v36 = vld [vmem:[#allocation2 + $0x19c] sm:$0xff]  ;;  %v2487_v32 = vld [vmem:[#allocation2 + $0x1b4] sm:$0xff]  ;;  %v2489_v3 = vld [vmem:[#allocation2 + $0x1cc] sm:$0xff]  ;;  %v12608_v49 = vpack.c.bf16 %v6176_v12, %v12490_v24 }
 0x201   : > { %v12582_v61 = vpack.c.bf16 %v2486_v48, %v2485_v36  ;;  %v2490_v53 = vld [vmem:[#allocation2 + $0x1d4] sm:$0xff]  ;;  %v6174_v62 = vld [vmem:[#allocation2 + $0x160] sm:$0xff] }
 0x202   : > { %v2507_v58 = vpack.c.bf16 %v2490_v53, %v2489_v3  ;;  %v12599_v1 = vpack.c.bf16 %v6174_v62, %v12475_v21  ;;  %v2759_v36 = vld [vmem:[#allocation2 + $0x7d] sm:$0xff]  ;;  %v2760_v48 = vld [vmem:[#allocation2 + $0x85] sm:$0xff]  ;;  %v2761_v21 = vld [vmem:[#allocation2 + $0x95] sm:$0xff] }
 0x203   : > { %v2764_v28 = vld [vmem:[#allocation2 + $0xb5] sm:$0xff]  ;;  %v2766_v62 = vld [vmem:[#allocation2 + $0xcd] sm:$0xff] }
 0x204   : > { %9946 = vmatmul.mubr.msk.bf16.gmra.mrb[4].mxu1 %vm266_vm0, %v12313_v6  ;;  %v12620_v24 = vld [vmem:[%s13352_s1 + $0xb8] sm:$0xff]  }
 0x205   : > { %10388 = vmatmul.mubr.msk.bf16.gmra.mrb[4].mxu0 %vm266_vm0, %v6180_v11  ;;  %9949 = vmatprep.mubr.msk.bf16.mxu1 %vm266_vm0, %v12323_v34  ;;  %v12585_v11 = vpack.c.bf16 %v6170_v45, %v12459_v39  ;;  %v2506_v39 = vpack.c.bf16 %v2488_v46, %v2487_v32  ;;  %v2791_v45 = vpack.c.bf16 %v2760_v48, %v2759_v36  ;;  %v2762_v32 = vld [vmem:[#allocation2 + $0x9d] sm:$0xff]  ;;  %v2763_v46 = vld [vmem:[#allocation2 + $0xad] sm:$0xff] }
 0x206   : > { %10391 = vmatprep.mubr.msk.bf16.mxu0 %vm266_vm0, %v12526_v29  ;;  %v2792_v3 = vpack.c.bf16 %v2762_v32, %v2761_v21  ;;  %v2793_v53 = vpack.c.bf16 %v2764_v28, %v2763_v46  ;;  %v2773_v21 = vld [vmem:[#allocation2 + $0x125] sm:$0xff]  ;;  %v2775_v32 = vld [vmem:[#allocation2 + $0x13d] sm:$0xff] }
 0x207   : > { %v2776_v46 = vld [vmem:[#allocation2 + $0x145] sm:$0xff] }
 0x20c   : > { %9950 = vmatmul.mubr.msk.bf16.gmra.mrb[8].mxu1 %vm266_vm0, %v12325_v47 }
 0x20d   : > { %10392 = vmatmul.mubr.msk.bf16.gmra.mrb[8].mxu0 %vm266_vm0, %v12536_v60  ;;  %9953 = vmatprep.mubr.msk.bf16.mxu1 %vm266_vm0, %v12335_v51 }
 0x20e   : > { %10395 = vmatprep.mubr.msk.bf16.mxu0 %vm266_vm0, %v12539_v7 }
 0x214   : > { %9954 = vmatmul.mubr.msk.bf16.gmra.mrb[12].mxu1 %vm266_vm0, %v12337_v52 }
 0x215   : > { %10396 = vmatmul.mubr.msk.bf16.gmra.mrb[12].mxu0 %vm266_vm0, %v12550_v2  ;;  %9957 = vmatprep.mubr.msk.bf16.mxu1 %vm266_vm0, %v12347_v44 }
 0x216   : > { %10399 = vmatprep.mubr.msk.bf16.mxu0 %vm266_vm0, %v12553_v43 }
 0x21c   : > { %9958 = vmatmul.mubr.msk.bf16.gmra.mrb[16].mxu1 %vm266_vm0, %v12349_v4 }
 0x21d   : > { %10400 = vmatmul.mubr.msk.bf16.gmra.mrb[16].mxu0 %vm266_vm0, %v12564_v30  ;;  %9961 = vmatprep.mubr.msk.bf16.mxu1 %vm266_vm0, %v12363_v40 }
 0x21e   : > { %10403 = vmatprep.mubr.msk.bf16.mxu0 %vm266_vm0, %v12567_v35 }
 0x224   : > { %9962 = vmatmul.mubr.msk.bf16.gmra.mrb[20].mxu1 %vm266_vm0, %v12577_v56 }
 0x225   : > { %10404 = vmatmul.mubr.msk.bf16.gmra.mrb[20].mxu0 %vm266_vm0, %v12580_v37  ;;  %9965 = vmatprep.mubr.msk.bf16.mxu1 %vm266_vm0, %v12582_v61 }
 0x226   : > { %10407 = vmatprep.mubr.msk.bf16.mxu0 %vm266_vm0, %v12585_v11 }
 0x22c   : > { %9966 = vmatmul.mubr.msk.bf16.gmra.mrb[24].mxu1 %vm266_vm0, %v2506_v39  ;;  %v2767_v39 = vld [vmem:[#allocation2 + $0xdd] sm:$0xff] }
 0x22d   : > { %10408 = vmatmul.mubr.msk.bf16.gmra.mrb[24].mxu0 %vm266_vm0, %v12596_v42  ;;  %9969 = vmatprep.mubr.msk.bf16.mxu1 %vm266_vm0, %v2507_v58  ;;  %v2768_v58 = vld [vmem:[#allocation2 + $0xe5] sm:$0xff] }
 0x22e   : > { %10411 = vmatprep.mubr.msk.bf16.mxu0 %vm266_vm0, %v12599_v1  ;;  %v2795_v36 = vpack.c.bf16 %v2768_v58, %v2767_v39  ;;  %v2781_v39 = vld [vmem:[#allocation2 + $0x185] sm:$0xff]  ;;  %v2783_v58 = vld [vmem:[#allocation2 + $0x19d] sm:$0xff] }
 0x234   : > { %9970 = vmatmul.mubr.msk.bf16.gmra.mrb[28].mxu1 %vm266_vm0, %v12189_v15  ;;  %v12626_v15 = vld [vmem:[%s13352_s1 + $0x48] sm:$0xff]  }
 0x235   : > { %10412 = vmatmul.mubr.msk.bf16.gmra.mrb[28].mxu0 %vm266_vm0, %v12608_v49  ;;  %9975 = vmatprep.mubr.msk.bf16.mxu1 %vm266_vm0, %v2791_v45 }
 0x236   : > { %10417 = vmatprep.mubr.msk.bf16.mxu0 %vm266_vm0, %v12402_v54  ;;  %v2765_v54 = vld [vmem:[#allocation2 + $0xc5] sm:$0xff] }
 0x237   : > { %v2794_v12 = vpack.c.bf16 %v2766_v62, %v2765_v54  ;;  %v2780_v54 = vld [vmem:[#allocation2 + $0x175] sm:$0xff] }
 0x23c   : > { %9976 = vmatmul.mubr.msk.bf16.vlgmr.msra.gmra.mrb[0].mxu1 %vm266_vm0, %v2792_v3  ;;  %v2777_v3 = vld [vmem:[#allocation2 + $0x155] sm:$0xff] }
 0x23d   : > { %10418 = vmatmul.mubr.msk.bf16.vlgmr.msra.gmra.mrb[0].mxu0 %vm266_vm0, %v12414_v17  ;;  %9979 = vmatprep.mubr.msk.bf16.mxu1 %vm266_vm0, %v2793_v53  ;;  %v2769_v17 = vld [vmem:[#allocation2 + $0xf5] sm:$0xff]  ;;  %v2779_v53 = vld [vmem:[#allocation2 + $0x16d] sm:$0xff] }
 0x23e   : > { %10450 = vmatpush3.bf16.msra.mxu0 %v12507_v5  ;;  %10421 = vmatprep.mubr.msk.bf16.mxu0 %vm266_vm0, %v12417_v8  ;;  %v2770_v5 = vld [vmem:[#allocation2 + $0xfd] sm:$0xff]  ;;  %v2771_v8 = vld [vmem:[#allocation2 + $0x10d] sm:$0xff] }
 0x23f   : > { %10008 = vmatpush3.bf16.msra.mxu1 %v12514_v38  ;;  %10483 = vmatprep.subr.bf16.mxu0 %v12620_v24  ;;  %v2772_v38 = vld [vmem:[#allocation2 + $0x115] sm:$0xff]  ;;  %v2796_v48 = vpack.c.bf16 %v2770_v5, %v2769_v17 }
 0x240   : > { %10041 = vmatprep.subr.bf16.mxu1 %v12626_v15  ;;  %v2797_v45 = vpack.c.bf16 %v2772_v38, %v2771_v8  ;;  %v2786_v38 = vld [vmem:[#allocation2 + $0x1bd] sm:$0xff] }
 0x244   : > { %9980 = vmatmul.mubr.msk.bf16.gmra.mrb[4].mxu1 %vm266_vm0, %v2794_v12  ;;  %v2784_v12 = vld [vmem:[#allocation2 + $0x1a5] sm:$0xff] }
 0x245   : > { %10422 = vmatmul.mubr.msk.bf16.gmra.mrb[4].mxu0 %vm266_vm0, %v12430_v57  ;;  %9983 = vmatprep.mubr.msk.bf16.mxu1 %vm266_vm0, %v2795_v36  ;;  %v2774_v57 = vld [vmem:[#allocation2 + $0x12d] sm:$0xff]  ;;  %v6467_v36 = vld [vmem:[#allocation2 + $0x180] sm:$0xff]  ;;  %v2803_v5 = vpack.c.bf16 %v2784_v12, %v2783_v58 }
 0x246   : > { %10425 = vmatprep.mubr.msk.bf16.mxu0 %vm266_vm0, %v12433_v41  ;;  %v2798_v28 = vpack.c.bf16 %v2774_v57, %v2773_v21  ;;  %v2799_v41 = vpack.c.bf16 %v2776_v46, %v2775_v32  ;;  %v12674_v21 = vld [vmem:[#allocation2 + $0x1b8] sm:$0xff]  ;;  %v3114_v58 = vld [vmem:[#allocation2 + $0x6c] sm:$0xff] }
 0x24c   : > { %9984 = vmatmul.mubr.msk.bf16.gmra.mrb[8].mxu1 %vm266_vm0, %v2796_v48  ;;  %v12672_v48 = vld [vmem:[#allocation2 + $0x1a0] sm:$0xff] }
 0x24d   : > { %10426 = vmatmul.mubr.msk.bf16.gmra.mrb[8].mxu0 %vm266_vm0, %v12446_v33  ;;  %9987 = vmatprep.mubr.msk.bf16.mxu1 %vm266_vm0, %v2797_v45  ;;  %v2778_v33 = vld [vmem:[#allocation2 + $0x15d] sm:$0xff]  ;;  %v6471_v45 = vld [vmem:[#allocation2 + $0x1b0] sm:$0xff] }
 0x24e   : > { %10429 = vmatprep.mubr.msk.bf16.mxu0 %vm266_vm0, %v12449_v16  ;;  %v2800_v62 = vpack.c.bf16 %v2778_v33, %v2777_v3  ;;  %v2801_v16 = vpack.c.bf16 %v2780_v54, %v2779_v53  ;;  %v12680_v46 = vpack.c.bf16 %v12674_v21, %v6471_v45  ;;  %v12689_v3 = vld [vmem:[#allocation2 + $0x1d0] sm:$0xff]  ;;  %v3110_v53 = vld [vmem:[#allocation2 + $0x3c] sm:$0xff] }
 0x24f   : > { %v3109_v33 = vld [vmem:[#allocation2 + $0x34] sm:$0xff] }
 0x254   : > { %9988 = vmatmul.mubr.msk.bf16.gmra.mrb[12].mxu1 %vm266_vm0, %v2798_v28  ;;  %v2790_v28 = vld [vmem:[#allocation2 + $0x1ed] sm:$0xff] }
 0x255   : > { %10430 = vmatmul.mubr.msk.bf16.gmra.mrb[12].mxu0 %vm266_vm0, %v12462_v22  ;;  %9991 = vmatprep.mubr.msk.bf16.mxu1 %vm266_vm0, %v2799_v41  ;;  %v2782_v22 = vld [vmem:[#allocation2 + $0x18d] sm:$0xff] }
 0x256   : > { %10433 = vmatprep.mubr.msk.bf16.mxu0 %vm266_vm0, %v12465_v50  ;;  %v12661_v50 = vld [vmem:[#allocation2 + $0x188] sm:$0xff]  ;;  %v2802_v17 = vpack.c.bf16 %v2782_v22, %v2781_v39  ;;  %v3112_v39 = vld [vmem:[#allocation2 + $0x54] sm:$0xff] }
 0x257   : > { %v12664_v8 = vpack.c.bf16 %v12661_v50, %v6467_v36  ;;  %v6473_v41 = vld [vmem:[#allocation2 + $0x1c8] sm:$0xff] }
 0x258   : > { %v3113_v22 = vld [vmem:[#allocation2 + $0x64] sm:$0xff] }
 0x259   : > { %v3143_v36 = vpack.c.bf16 %v3114_v58, %v3113_v22  ;;  %v3079_v22 = vld [vmem:[#allocation2 + $0x12a] sm:$0xff] }
 0x25c   : > { %9992 = vmatmul.mubr.msk.bf16.gmra.mrb[16].mxu1 %vm266_vm0, %v2800_v62  ;;  %v12692_v62 = vpack.c.bf16 %v12689_v3, %v6473_v41 }
 0x25d   : > { %10434 = vmatmul.mubr.msk.bf16.gmra.mrb[16].mxu0 %vm266_vm0, %v12478_v23  ;;  %9995 = vmatprep.mubr.msk.bf16.mxu1 %vm266_vm0, %v2801_v16  ;;  %v2785_v23 = vld [vmem:[#allocation2 + $0x1b5] sm:$0xff]  ;;  %v3141_v16 = vpack.c.bf16 %v3110_v53, %v3109_v33  ;;  %v3073_v53 = vld [vmem:[#allocation2 + $0xe2] sm:$0xff] }
 0x25e   : > { %10437 = vmatprep.mubr.msk.bf16.mxu0 %vm266_vm0, %v12481_v18  ;;  %v6469_v18 = vld [vmem:[#allocation2 + $0x198] sm:$0xff]  ;;  %v2804_v57 = vpack.c.bf16 %v2786_v38, %v2785_v23  ;;  %v3116_v23 = vld [vmem:[#allocation2 + $0x84] sm:$0xff] }
 0x25f   : > { %v12677_v32 = vpack.c.bf16 %v12672_v48, %v6469_v18  ;;  %v3117_v38 = vld [vmem:[#allocation2 + $0x94] sm:$0xff]  ;;  %v3118_v18 = vld [vmem:[#allocation2 + $0x9c] sm:$0xff] }
 0x264   : > { %9996 = vmatmul.mubr.msk.bf16.gmra.mrb[20].mxu1 %vm266_vm0, %v2802_v17  ;;  %v11516_v17 = vld [vmem:[%s13352_s1 + $0xc0] sm:$0xff]  }
 0x265   : > { %10438 = vmatmul.mubr.msk.bf16.gmra.mrb[20].mxu0 %vm266_vm0, %v12493_v27  ;;  %9999 = vmatprep.mubr.msk.bf16.mxu1 %vm266_vm0, %v2803_v5  ;;  %v2789_v27 = vld [vmem:[#allocation2 + $0x1e5] sm:$0xff]  ;;  %v12707_v5 = vld [vmem:[%s13352_s1 + $0x58] sm:$0xff]  }
 0x266   : > { %10441 = vmatprep.mubr.msk.bf16.mxu0 %vm266_vm0, %v12664_v8  ;;  %v2806_v54 = vpack.c.bf16 %v2790_v28, %v2789_v27  ;;  %v3070_v27 = vld [vmem:[#allocation2 + $0xc2] sm:$0xff]  ;;  %v3071_v28 = vld [vmem:[#allocation2 + $0xca] sm:$0xff] }
 0x267   : > { %v12805_v33 = vpack.c.bf16 %v3071_v28, %v3070_v27 }
 0x26c   : > { %10000 = vmatmul.mubr.msk.bf16.gmra.mrb[24].mxu1 %vm266_vm0, %v2804_v57  ;;  %v3145_v57 = vpack.c.bf16 %v3118_v18, %v3117_v38  ;;  %v12854_v18 = vld [vmem:[#allocation2 + $0x1a8] sm:$0xff] }
 0x26d   : > { %10442 = vmatmul.mubr.msk.bf16.gmra.mrb[24].mxu0 %vm266_vm0, %v12677_v32  ;;  %10003 = vmatprep.mubr.msk.bf16.mxu1 %vm266_vm0, %v12361_v55  ;;  %v3111_v55 = vld [vmem:[#allocation2 + $0x4c] sm:$0xff] }
 0x26e   : > { %10445 = vmatprep.mubr.msk.bf16.mxu0 %vm266_vm0, %v12680_v46  ;;  %v3142_v12 = vpack.c.bf16 %v3112_v39, %v3111_v55  ;;  %v3077_v39 = vld [vmem:[#allocation2 + $0x112] sm:$0xff] }
 0x274   : > { %10004 = vmatmul.mubr.msk.bf16.gmra.mrb[28].mxu1 %vm266_vm0, %v2806_v54  ;;  %v3075_v54 = vld [vmem:[#allocation2 + $0xfa] sm:$0xff] }
 0x275   : > { %10446 = vmatmul.mubr.msk.bf16.gmra.mrb[28].mxu0 %vm266_vm0, %v12692_v62  ;;  %10009 = vmatprep.mubr.msk.bf16.mxu1 %vm266_vm0, %v3141_v16 }
 0x276   : > { %10451 = vmatprep.mubr.msk.bf16.mxu0 %vm266_vm0, %v11796_v59  ;;  %v3115_v59 = vld [vmem:[#allocation2 + $0x7c] sm:$0xff] }
 0x277   : > { %v3144_v45 = vpack.c.bf16 %v3116_v23, %v3115_v59 }
 0x27c   : > { %10010 = vmatmul.mubr.msk.bf16.vlgmr.msra.gmra.mrb[0].mxu1 %vm266_vm0, %v3142_v12 }
 0x27d   : > { %10452 = vmatmul.mubr.msk.bf16.vlgmr.msra.gmra.mrb[0].mxu0 %vm266_vm0, %v11799_v63  ;;  %10013 = vmatprep.mubr.msk.bf16.mxu1 %vm266_vm0, %v3143_v36  ;;  %v3119_v63 = vld [vmem:[#allocation2 + $0xac] sm:$0xff]  ;;  %v3081_v36 = vld [vmem:[#allocation2 + $0x142] sm:$0xff] }
 0x27e   : > { %10484 = vmatpush3.bf16.msra.mxu0 %v12620_v24  ;;  %10455 = vmatprep.mubr.msk.bf16.mxu0 %vm266_vm0, %v11801_v0  ;;  %v3120_v24 = vld [vmem:[#allocation2 + $0xb4] sm:$0xff] }
 0x27f   : > { %10042 = vmatpush3.bf16.msra.mxu1 %v12626_v15  ;;  %10517 = vmatprep.subr.bf16.mxu0 %v11516_v17  ;;  %v3146_v0 = vpack.c.bf16 %v3120_v24, %v3119_v63  ;;  %v3069_v15 = vld [vmem:[#allocation2 + $0xb2] sm:$0xff]  ;;  %v12856_v63 = vld [vmem:[#allocation2 + $0x1c0] sm:$0xff]  ;;  %v6988_v24 = vpack.c.bf16 %v12854_v18, %v12672_v48 }
 0x280   : > { %10075 = vmatprep.subr.bf16.mxu1 %v12707_v5  ;;  %v3590_v48 = vld [vmem:[#allocation2 + $0x36] sm:$0xff] }
 0x284   : > { %10014 = vmatmul.mubr.msk.bf16.gmra.mrb[4].mxu1 %vm266_vm0, %v3144_v45  ;;  %v3086_v45 = vld [vmem:[#allocation2 + $0x182] sm:$0xff] }
 0x285   : > { %10456 = vmatmul.mubr.msk.bf16.gmra.mrb[4].mxu0 %vm266_vm0, %v11827_v9  ;;  %10017 = vmatprep.mubr.msk.bf16.mxu1 %vm266_vm0, %v3145_v57  ;;  %v13399_v9 = vld [vmem:[#allocation3_spill] sm:$0xff]  ;;  %v3087_v57 = vld [vmem:[#allocation2 + $0x18a] sm:$0xff] }
 0x286   : > { %10459 = vmatprep.mubr.msk.bf16.mxu0 %vm266_vm0, %v11829_v10  ;;  %v13400_v10 = vld [vmem:[#allocation4_spill] sm:$0xff] }
 0x28c   : > { %10018 = vmatmul.mubr.msk.bf16.gmra.mrb[8].mxu1 %vm266_vm0, %v3146_v0  ;;  %v12862_v0 = vpack.c.bf16 %v3087_v57, %v3086_v45  ;;  %v3602_v45 = vld [vmem:[#allocation2 + $0xc6] sm:$0xff]  ;;  %v3603_v57 = vld [vmem:[#allocation2 + $0xce] sm:$0xff] }
 0x28d   : > { %10460 = vmatmul.mubr.msk.bf16.gmra.mrb[8].mxu0 %vm266_vm0, %v11839_v13  ;;  %10021 = vmatprep.mubr.msk.bf16.mxu1 %vm266_vm0, %v12313_v6  ;;  %v13401_v13 = vld [vmem:[#allocation5_spill] sm:$0xff]  ;;  %v3062_v6 = vld [vmem:[#allocation2 + $0x62] sm:$0xff] }
 0x28e   : > { %10463 = vmatprep.mubr.msk.bf16.mxu0 %vm266_vm0, %v11841_v14  ;;  %v3058_v14 = vld [vmem:[#allocation2 + $0x32] sm:$0xff] }
 0x294   : > { %10022 = vmatmul.mubr.msk.bf16.gmra.mrb[12].mxu1 %vm266_vm0, %v12323_v34  ;;  %v3063_v34 = vld [vmem:[#allocation2 + $0x6a] sm:$0xff] }
 0x295   : > { %10464 = vmatmul.mubr.msk.bf16.gmra.mrb[12].mxu0 %vm266_vm0, %v11851_v19  ;;  %10025 = vmatprep.mubr.msk.bf16.mxu1 %vm266_vm0, %v12325_v47  ;;  %v3059_v19 = vld [vmem:[#allocation2 + $0x3a] sm:$0xff] }
 0x296   : > { %10467 = vmatprep.mubr.msk.bf16.mxu0 %vm266_vm0, %v11853_v20  ;;  %v3090_v20 = vpack.c.bf16 %v3059_v19, %v3058_v14  ;;  %v3591_v14 = vld [vmem:[#allocation2 + $0x3e] sm:$0xff] }
 0x297   : > { %v7242_v19 = vld [vmem:[#allocation2 + $0xc0] sm:$0xff] }
 0x29c   : > { %10026 = vmatmul.mubr.msk.bf16.gmra.mrb[16].mxu1 %vm266_vm0, %v12335_v51  ;;  %v12769_v51 = vpack.c.bf16 %v3063_v34, %v3062_v6  ;;  %v3592_v6 = vld [vmem:[#allocation2 + $0x4e] sm:$0xff]  ;;  %v3593_v34 = vld [vmem:[#allocation2 + $0x56] sm:$0xff] }
 0x29d   : > { %10468 = vmatmul.mubr.msk.bf16.gmra.mrb[16].mxu0 %vm266_vm0, %v11863_v25  ;;  %10029 = vmatprep.mubr.msk.bf16.mxu1 %vm266_vm0, %v12337_v52  ;;  %v13402_v25 = vld [vmem:[#allocation6_spill] sm:$0xff]  ;;  %v12774_v52 = vld [vmem:[%s13352_s1 + $0xc8] sm:$0xff]  }
 0x29e   : > { %10471 = vmatprep.mubr.msk.bf16.mxu0 %vm266_vm0, %v11865_v26  ;;  %v3060_v26 = vld [vmem:[#allocation2 + $0x4a] sm:$0xff] }
 0x2a4   : > { %10030 = vmatmul.mubr.msk.bf16.gmra.mrb[20].mxu1 %vm266_vm0, %v12347_v44  ;;  %v12780_v44 = vld [vmem:[%s13352_s1 + $0x60] sm:$0xff]  }
 0x2a5   : > { %10472 = vmatmul.mubr.msk.bf16.gmra.mrb[20].mxu0 %vm266_vm0, %v11875_v31  ;;  %10033 = vmatprep.mubr.msk.bf16.mxu1 %vm266_vm0, %v12349_v4  ;;  %v3061_v31 = vld [vmem:[#allocation2 + $0x52] sm:$0xff]  ;;  %v3064_v4 = vld [vmem:[#allocation2 + $0x7a] sm:$0xff] }
 0x2a6   : > { %10475 = vmatprep.mubr.msk.bf16.mxu0 %vm266_vm0, %v13399_v9  ;;  %v3091_v47 = vpack.c.bf16 %v3061_v31, %v3060_v26  ;;  %v3088_v9 = vld [vmem:[#allocation2 + $0x19a] sm:$0xff]  ;;  %v3622_v26 = vpack.c.bf16 %v3591_v14, %v3590_v48  ;;  %v3628_v48 = vpack.c.bf16 %v3603_v57, %v3602_v45  ;;  %v7270_v45 = vld [vmem:[#allocation2 + $0x210] sm:$0xff] }
 0x2a7   : > { %v12948_v57 = vld [vmem:[#allocation2 + $0x218] sm:$0xff] }
 0x2ac   : > { %10034 = vmatmul.mubr.msk.bf16.gmra.mrb[24].mxu1 %vm266_vm0, %v12363_v40  ;;  %v3065_v40 = vld [vmem:[#allocation2 + $0x82] sm:$0xff] }
 0x2ad   : > { %10476 = vmatmul.mubr.msk.bf16.gmra.mrb[24].mxu0 %vm266_vm0, %v13400_v10  ;;  %10037 = vmatprep.mubr.msk.bf16.mxu1 %vm266_vm0, %v12577_v56  ;;  %v3067_v56 = vld [vmem:[#allocation2 + $0x9a] sm:$0xff]  ;;  %v3089_v10 = vld [vmem:[#allocation2 + $0x1a2] sm:$0xff] }
 0x2ae   : > { %10479 = vmatprep.mubr.msk.bf16.mxu0 %vm266_vm0, %v13401_v13  ;;  %v12872_v13 = vld [vmem:[#allocation2 + $0x1d8] sm:$0xff] }
 0x2b4   : > { %10038 = vmatmul.mubr.msk.bf16.gmra.mrb[28].mxu1 %vm266_vm0, %v12582_v61  ;;  %v12790_v61 = vpack.c.bf16 %v3065_v40, %v3064_v4  ;;  %v12886_v4 = vld [vmem:[#allocation2 + $0xe0] sm:$0xff] }
 0x2b5   : > { %10480 = vmatmul.mubr.msk.bf16.gmra.mrb[28].mxu0 %vm266_vm0, %v13402_v25  ;;  %10043 = vmatprep.mubr.msk.bf16.mxu1 %vm266_vm0, %v3090_v20  ;;  %v12874_v20 = vld [vmem:[#allocation2 + $0xc8] sm:$0xff]  ;;  %v6990_v25 = vpack.c.bf16 %v12872_v13, %v12689_v3  ;;  %v7246_v3 = vld [vmem:[#allocation2 + $0xf0] sm:$0xff] }
 0x2b6   : > { %10485 = vmatprep.mubr.msk.bf16.mxu0 %vm266_vm0, %v12526_v29  ;;  %v3066_v29 = vld [vmem:[#allocation2 + $0x92] sm:$0xff]  ;;  %v7274_v31 = vpack.c.bf16 %v12874_v20, %v7242_v19  ;;  %v3594_v40 = vld [vmem:[#allocation2 + $0x66] sm:$0xff]  ;;  %v3604_v19 = vld [vmem:[#allocation2 + $0xde] sm:$0xff] }
 0x2bc   : > { %10044 = vmatmul.mubr.msk.bf16.vlgmr.msra.gmra.mrb[0].mxu1 %vm266_vm0, %v3091_v47  ;;  %v7244_v47 = vld [vmem:[#allocation2 + $0xd8] sm:$0xff] }
 0x2bd   : > { %10486 = vmatmul.mubr.msk.bf16.vlgmr.msra.gmra.mrb[0].mxu0 %vm266_vm0, %v12536_v60  ;;  %10047 = vmatprep.mubr.msk.bf16.mxu1 %vm266_vm0, %v12769_v51  ;;  %v12793_v60 = vpack.c.bf16 %v3067_v56, %v3066_v29  ;;  %v3595_v29 = vld [vmem:[#allocation2 + $0x6e] sm:$0xff]  ;;  %v12888_v56 = vld [vmem:[#allocation2 + $0xf8] sm:$0xff] }
 0x2be   : > { %10518 = vmatpush3.bf16.msra.mxu0 %v11516_v17  ;;  %10489 = vmatprep.mubr.msk.bf16.mxu0 %vm266_vm0, %v12539_v7  ;;  %v3068_v7 = vld [vmem:[#allocation2 + $0xaa] sm:$0xff]  ;;  %v3083_v17 = vld [vmem:[#allocation2 + $0x15a] sm:$0xff]  ;;  %v3624_v27 = vpack.c.bf16 %v3595_v29, %v3594_v40  ;;  %v7276_v28 = vpack.c.bf16 %v12888_v56, %v7246_v3 }
 0x2bf   : > { %10076 = vmatpush3.bf16.msra.mxu1 %v12707_v5  ;;  %10551 = vmatprep.subr.bf16.mxu0 %v12774_v52  ;;  %v12803_v41 = vpack.c.bf16 %v3069_v15, %v3068_v7  ;;  %v12839_v5 = vld [vmem:[#allocation2 + $0x190] sm:$0xff]  ;;  %v3623_v7 = vpack.c.bf16 %v3593_v34, %v3592_v6  ;;  %v7275_v15 = vpack.c.bf16 %v12886_v4, %v7244_v47  ;;  %v3607_v34 = vld [vmem:[#allocation2 + $0xfe] sm:$0xff] }
 0x2c0   : > { %10109 = vmatprep.subr.bf16.mxu1 %v12780_v44  ;;  %v6987_v38 = vpack.c.bf16 %v12839_v5, %v12661_v50  ;;  %v3606_v6 = vld [vmem:[#allocation2 + $0xf6] sm:$0xff]  ;;  %v3608_v3 = vld [vmem:[#allocation2 + $0x10e] sm:$0xff] }
 0x2c1   : > { %v3630_v29 = vpack.c.bf16 %v3607_v34, %v3606_v6  ;;  %v7541_v6 = vld [vmem:[#allocation2 + $0xcc] sm:$0xff] }
 0x2c4   : > { %10048 = vmatmul.mubr.msk.bf16.gmra.mrb[4].mxu1 %vm266_vm0, %v12790_v61 }
 0x2c5   : > { %10490 = vmatmul.mubr.msk.bf16.gmra.mrb[4].mxu0 %vm266_vm0, %v12550_v2  ;;  %10051 = vmatprep.mubr.msk.bf16.mxu1 %vm266_vm0, %v12793_v60  ;;  %v3072_v2 = vld [vmem:[#allocation2 + $0xda] sm:$0xff] }
 0x2c6   : > { %10493 = vmatprep.mubr.msk.bf16.mxu0 %vm266_vm0, %v12553_v43  ;;  %v3074_v43 = vld [vmem:[#allocation2 + $0xf2] sm:$0xff]  ;;  %v12815_v16 = vpack.c.bf16 %v3073_v53, %v3072_v2  ;;  %v3596_v53 = vld [vmem:[#allocation2 + $0x7e] sm:$0xff] }
 0x2c7   : > { %v12817_v55 = vpack.c.bf16 %v3075_v54, %v3074_v43  ;;  %v12895_v2 = vld [vmem:[%s13352_s1 + $0xd0] sm:$0xff]   ;;  %v3597_v43 = vld [vmem:[#allocation2 + $0x86] sm:$0xff] }
 0x2c8   : > { %v7248_v54 = vld [vmem:[#allocation2 + $0x108] sm:$0xff] }
 0x2cc   : > { %10052 = vmatmul.mubr.msk.bf16.gmra.mrb[8].mxu1 %vm266_vm0, %v12803_v41 }
 0x2cd   : > { %10494 = vmatmul.mubr.msk.bf16.gmra.mrb[8].mxu0 %vm266_vm0, %v12564_v30  ;;  %10055 = vmatprep.mubr.msk.bf16.mxu1 %vm266_vm0, %v12805_v33  ;;  %v3076_v30 = vld [vmem:[#allocation2 + $0x10a] sm:$0xff] }
 0x2ce   : > { %10497 = vmatprep.mubr.msk.bf16.mxu0 %vm266_vm0, %v12567_v35  ;;  %v3078_v35 = vld [vmem:[#allocation2 + $0x122] sm:$0xff]  ;;  %v12827_v58 = vpack.c.bf16 %v3077_v39, %v3076_v30  ;;  %v12902_v30 = vld [vmem:[#allocation2 + $0x110] sm:$0xff] }
 0x2cf   : > { %v12829_v12 = vpack.c.bf16 %v3079_v22, %v3078_v35  ;;  %v3598_v39 = vld [vmem:[#allocation2 + $0x96] sm:$0xff]  ;;  %v3599_v35 = vld [vmem:[#allocation2 + $0x9e] sm:$0xff] }
 0x2d0   : > { %v7250_v22 = vld [vmem:[#allocation2 + $0x120] sm:$0xff] }
 0x2d4   : > { %10056 = vmatmul.mubr.msk.bf16.gmra.mrb[12].mxu1 %vm266_vm0, %v12815_v16 }
 0x2d5   : > { %10498 = vmatmul.mubr.msk.bf16.gmra.mrb[12].mxu0 %vm266_vm0, %v12580_v37  ;;  %10059 = vmatprep.mubr.msk.bf16.mxu1 %vm266_vm0, %v12817_v55  ;;  %v3080_v37 = vld [vmem:[#allocation2 + $0x13a] sm:$0xff] }
 0x2d6   : > { %10501 = vmatprep.mubr.msk.bf16.mxu0 %vm266_vm0, %v12585_v11  ;;  %v3082_v11 = vld [vmem:[#allocation2 + $0x152] sm:$0xff]  ;;  %v12841_v59 = vpack.c.bf16 %v3081_v36, %v3080_v37  ;;  %v12904_v37 = vld [vmem:[#allocation2 + $0x128] sm:$0xff]  ;;  %v3625_v36 = vpack.c.bf16 %v3597_v43, %v3596_v53  ;;  %v3612_v43 = vld [vmem:[#allocation2 + $0x13e] sm:$0xff] }
 0x2d7   : > { %v12843_v23 = vpack.c.bf16 %v3083_v17, %v3082_v11  ;;  %v7277_v11 = vpack.c.bf16 %v12902_v30, %v7248_v54  ;;  %v3626_v17 = vpack.c.bf16 %v3599_v35, %v3598_v39  ;;  %v3613_v54 = vld [vmem:[#allocation2 + $0x146] sm:$0xff]  ;;  %v3614_v39 = vld [vmem:[#allocation2 + $0x156] sm:$0xff]  ;;  %v3615_v35 = vld [vmem:[#allocation2 + $0x15e] sm:$0xff] }
 0x2dc   : > { %10060 = vmatmul.mubr.msk.bf16.gmra.mrb[16].mxu1 %vm266_vm0, %v12827_v58 }
 0x2dd   : > { %10502 = vmatmul.mubr.msk.bf16.gmra.mrb[16].mxu0 %vm266_vm0, %v12596_v42  ;;  %10063 = vmatprep.mubr.msk.bf16.mxu1 %vm266_vm0, %v12829_v12  ;;  %v3084_v42 = vld [vmem:[#allocation2 + $0x16a] sm:$0xff] }
 0x2de   : > { %10505 = vmatprep.mubr.msk.bf16.mxu0 %vm266_vm0, %v12599_v1  ;;  %v3085_v1 = vld [vmem:[#allocation2 + $0x172] sm:$0xff] }
 0x2df   : > { %v12858_v50 = vpack.c.bf16 %v3085_v1, %v3084_v42  ;;  %v3601_v42 = vld [vmem:[#allocation2 + $0xb6] sm:$0xff] }
 0x2e0   : > { %v7252_v1 = vld [vmem:[#allocation2 + $0x138] sm:$0xff] }
 0x2e4   : > { %10064 = vmatmul.mubr.msk.bf16.gmra.mrb[20].mxu1 %vm266_vm0, %v12841_v59 }
 0x2e5   : > { %10506 = vmatmul.mubr.msk.bf16.gmra.mrb[20].mxu0 %vm266_vm0, %v12608_v49  ;;  %10067 = vmatprep.mubr.msk.bf16.mxu1 %vm266_vm0, %v12843_v23  ;;  %v6989_v49 = vpack.c.bf16 %v12856_v63, %v12674_v21  ;;  %v12876_v21 = vpack.c.bf16 %v3089_v10, %v3088_v9 }
 0x2e6   : > { %10509 = vmatprep.mubr.msk.bf16.mxu0 %vm266_vm0, %v6987_v38  ;;  %v7278_v38 = vpack.c.bf16 %v12904_v37, %v7250_v22  ;;  %v7266_v22 = vld [vmem:[#allocation2 + $0x1e0] sm:$0xff] }
 0x2ec   : > { %10068 = vmatmul.mubr.msk.bf16.gmra.mrb[24].mxu1 %vm266_vm0, %v12858_v50 }
 0x2ed   : > { %10510 = vmatmul.mubr.msk.bf16.gmra.mrb[24].mxu0 %vm266_vm0, %v6988_v24  ;;  %10071 = vmatprep.mubr.msk.bf16.mxu1 %vm266_vm0, %v12862_v0  ;;  %v7254_v24 = vld [vmem:[#allocation2 + $0x150] sm:$0xff] }
 0x2ee   : > { %10513 = vmatprep.mubr.msk.bf16.mxu0 %vm266_vm0, %v6989_v49  ;;  %v12916_v49 = vld [vmem:[#allocation2 + $0x158] sm:$0xff] }
 0x2ef   : > { %v7280_v14 = vpack.c.bf16 %v12916_v49, %v7254_v24 }
 0x2f4   : > { %10072 = vmatmul.mubr.msk.bf16.gmra.mrb[28].mxu1 %vm266_vm0, %v12876_v21 }
 0x2f5   : > { %10514 = vmatmul.mubr.msk.bf16.gmra.mrb[28].mxu0 %vm266_vm0, %v6990_v25  ;;  %10077 = vmatprep.mubr.msk.bf16.mxu1 %vm266_vm0, %v3622_v26  ;;  %v3605_v25 = vld [vmem:[#allocation2 + $0xe6] sm:$0xff] }
 0x2f6   : > { %10519 = vmatprep.mubr.msk.bf16.mxu0 %vm266_vm0, %v7274_v31  ;;  %v7256_v26 = vld [vmem:[#allocation2 + $0x168] sm:$0xff]  ;;  %v12924_v31 = vld [vmem:[#allocation2 + $0x170] sm:$0xff]  ;;  %v3629_v47 = vpack.c.bf16 %v3605_v25, %v3604_v19 }
 0x2f7   : > { %v7281_v40 = vpack.c.bf16 %v12924_v31, %v7256_v26  ;;  %v7272_v19 = vld [vmem:[#allocation2 + $0x228] sm:$0xff]  ;;  %v12956_v25 = vld [vmem:[#allocation2 + $0x230] sm:$0xff] }
 0x2f8   : > { %v7540_v26 = vld [vmem:[#allocation2 + $0xc4] sm:$0xff] }
 0x2fc   : > { %10078 = vmatmul.mubr.msk.bf16.vlgmr.msra.gmra.mrb[0].mxu1 %vm266_vm0, %v3623_v7  ;;  %v3609_v7 = vld [vmem:[#allocation2 + $0x116] sm:$0xff] }
 0x2fd   : > { %10520 = vmatmul.mubr.msk.bf16.vlgmr.msra.gmra.mrb[0].mxu0 %vm266_vm0, %v7275_v15  ;;  %10081 = vmatprep.mubr.msk.bf16.mxu1 %vm266_vm0, %v3624_v27  ;;  %v3610_v15 = vld [vmem:[#allocation2 + $0x126] sm:$0xff]  ;;  %v3611_v27 = vld [vmem:[#allocation2 + $0x12e] sm:$0xff] }
 0x2fe   : > { %10552 = vmatpush3.bf16.msra.mxu0 %v12774_v52  ;;  %10523 = vmatprep.mubr.msk.bf16.mxu0 %vm266_vm0, %v7276_v28  ;;  %v3600_v52 = vld [vmem:[#allocation2 + $0xae] sm:$0xff]  ;;  %v3631_v28 = vpack.c.bf16 %v3609_v7, %v3608_v3  ;;  %v3632_v53 = vpack.c.bf16 %v3611_v27, %v3610_v15  ;;  %v7543_v3 = vld [vmem:[#allocation2 + $0xe4] sm:$0xff]  ;;  %v7545_v15 = vld [vmem:[#allocation2 + $0xfc] sm:$0xff] }
 0x2ff   : > { %10110 = vmatpush3.bf16.msra.mxu1 %v12780_v44  ;;  %10585 = vmatprep.subr.bf16.mxu0 %v12895_v2  ;;  %v12914_v44 = vld [vmem:[#allocation2 + $0x140] sm:$0xff]  ;;  %v3627_v9 = vpack.c.bf16 %v3601_v42, %v3600_v52  ;;  %v7268_v52 = vld [vmem:[#allocation2 + $0x1f8] sm:$0xff] }
 0x300   : > { %v7279_v10 = vpack.c.bf16 %v12914_v44, %v7252_v1  ;;  %v3618_v42 = vld [vmem:[#allocation2 + $0x186] sm:$0xff]  ;;  %v3619_v1 = vld [vmem:[#allocation2 + $0x18e] sm:$0xff] }
 0x301   : > { %v7544_v7 = vld [vmem:[#allocation2 + $0xf4] sm:$0xff] }
 0x304   : > { %10082 = vmatmul.mubr.msk.bf16.gmra.mrb[4].mxu1 %vm266_vm0, %v3625_v36  ;;  %v3633_v36 = vpack.c.bf16 %v3613_v54, %v3612_v43  ;;  %v7548_v43 = vld [vmem:[#allocation2 + $0x124] sm:$0xff]  ;;  %v7549_v54 = vld [vmem:[#allocation2 + $0x12c] sm:$0xff] }
 0x305   : > { %10524 = vmatmul.mubr.msk.bf16.gmra.mrb[4].mxu0 %vm266_vm0, %v7277_v11  ;;  %10085 = vmatprep.mubr.msk.bf16.mxu1 %vm266_vm0, %v3626_v17  ;;  %v3634_v11 = vpack.c.bf16 %v3615_v35, %v3614_v39  ;;  %v7576_v35 = vpack.c.bf16 %v7549_v54, %v7548_v43  ;;  %v7845_v54 = vld [vmem:[#allocation2 + $0x118] sm:$0xff] }
 0x306   : > { %10527 = vmatprep.mubr.msk.bf16.mxu0 %vm266_vm0, %v7278_v38  ;;  %v3617_v38 = vld [vmem:[#allocation2 + $0x176] sm:$0xff] }
 0x30c   : > { %10086 = vmatmul.mubr.msk.bf16.gmra.mrb[8].mxu1 %vm266_vm0, %v3627_v9 }
 0x30d   : > { %10528 = vmatmul.mubr.msk.bf16.gmra.mrb[8].mxu0 %vm266_vm0, %v7279_v10  ;;  %10089 = vmatprep.mubr.msk.bf16.mxu1 %vm266_vm0, %v3628_v48  ;;  %v3636_v10 = vpack.c.bf16 %v3619_v1, %v3618_v42  ;;  %v3620_v48 = vld [vmem:[#allocation2 + $0x19e] sm:$0xff]  ;;  %v7560_v42 = vld [vmem:[#allocation2 + $0x1b4] sm:$0xff] }
 0x30e   : > { %10531 = vmatprep.mubr.msk.bf16.mxu0 %vm266_vm0, %v7280_v14  ;;  %v3621_v14 = vld [vmem:[#allocation2 + $0x1a6] sm:$0xff]  ;;  %v7561_v1 = vld [vmem:[#allocation2 + $0x1bc] sm:$0xff] }
 0x30f   : > { %v3637_v34 = vpack.c.bf16 %v3621_v14, %v3620_v48  ;;  %v3916_v14 = vld [vmem:[#allocation2 + $0x1b2] sm:$0xff] }
 0x314   : > { %10090 = vmatmul.mubr.msk.bf16.gmra.mrb[12].mxu1 %vm266_vm0, %v3629_v47  ;;  %v7289_v47 = vpack.c.bf16 %v12956_v25, %v7272_v19  ;;  %v3917_v19 = vld [vmem:[#allocation2 + $0x1ba] sm:$0xff] }
 0x315   : > { %10532 = vmatmul.mubr.msk.bf16.gmra.mrb[12].mxu0 %vm266_vm0, %v7281_v40  ;;  %10093 = vmatprep.mubr.msk.bf16.mxu1 %vm266_vm0, %v3630_v29  ;;  %v7572_v40 = vpack.c.bf16 %v7541_v6, %v7540_v26  ;;  %v7542_v29 = vld [vmem:[#allocation2 + $0xdc] sm:$0xff]  ;;  %v7568_v26 = vld [vmem:[#allocation2 + $0x214] sm:$0xff] }
 0x316   : > { %10535 = vmatprep.mubr.msk.bf16.mxu0 %vm266_vm0, %v12664_v8  ;;  %v12938_v8 = vld [vmem:[#allocation2 + $0x1e8] sm:$0xff]  ;;  %v7573_v27 = vpack.c.bf16 %v7543_v3, %v7542_v29  ;;  %v7569_v6 = vld [vmem:[#allocation2 + $0x21c] sm:$0xff]  ;;  %v7571_v3 = vld [vmem:[#allocation2 + $0x234] sm:$0xff] }
 0x317   : > { %v7286_v17 = vpack.c.bf16 %v12938_v8, %v7266_v22  ;;  %v7553_v22 = vld [vmem:[#allocation2 + $0x15c] sm:$0xff]  ;;  %v7570_v29 = vld [vmem:[#allocation2 + $0x22c] sm:$0xff] }
 0x31c   : > { %10094 = vmatmul.mubr.msk.bf16.gmra.mrb[16].mxu1 %vm266_vm0, %v3631_v28  ;;  %v7574_v28 = vpack.c.bf16 %v7545_v15, %v7544_v7  ;;  %v7839_v7 = vld [vmem:[#allocation2 + $0xd0] sm:$0xff] }
 0x31d   : > { %10536 = vmatmul.mubr.msk.bf16.gmra.mrb[16].mxu0 %vm266_vm0, %v12677_v32  ;;  %10097 = vmatprep.mubr.msk.bf16.mxu1 %vm266_vm0, %v3632_v53  ;;  %v3616_v32 = vld [vmem:[#allocation2 + $0x16e] sm:$0xff] }
 0x31e   : > { %10539 = vmatprep.mubr.msk.bf16.mxu0 %vm266_vm0, %v12680_v46  ;;  %v12946_v46 = vld [vmem:[#allocation2 + $0x200] sm:$0xff]  ;;  %v3635_v24 = vpack.c.bf16 %v3617_v38, %v3616_v32  ;;  %v7547_v53 = vld [vmem:[#allocation2 + $0x114] sm:$0xff]  ;;  %v7557_v32 = vld [vmem:[#allocation2 + $0x18c] sm:$0xff] }
 0x31f   : > { %v7287_v9 = vpack.c.bf16 %v12946_v46, %v7268_v52 }
 0x324   : > { %10098 = vmatmul.mubr.msk.bf16.gmra.mrb[20].mxu1 %vm266_vm0, %v3633_v36 }
 0x325   : > { %10540 = vmatmul.mubr.msk.bf16.gmra.mrb[20].mxu0 %vm266_vm0, %v12692_v62  ;;  %10101 = vmatprep.mubr.msk.bf16.mxu1 %vm266_vm0, %v3634_v11  ;;  %v7288_v62 = vpack.c.bf16 %v12948_v57, %v7270_v45 }
 0x326   : > { %10543 = vmatprep.mubr.msk.bf16.mxu0 %vm266_vm0, %v7286_v17  ;;  %v7556_v17 = vld [vmem:[#allocation2 + $0x184] sm:$0xff] }
 0x327   : > { %v7580_v52 = vpack.c.bf16 %v7557_v32, %v7556_v17 }
 0x32c   : > { %10102 = vmatmul.mubr.msk.bf16.gmra.mrb[24].mxu1 %vm266_vm0, %v3635_v24  ;;  %v7582_v24 = vpack.c.bf16 %v7561_v1, %v7560_v42 }
 0x32d   : > { %10544 = vmatmul.mubr.msk.bf16.gmra.mrb[24].mxu0 %vm266_vm0, %v7287_v9  ;;  %10105 = vmatprep.mubr.msk.bf16.mxu1 %vm266_vm0, %v3636_v10  ;;  %v7564_v9 = vld [vmem:[#allocation2 + $0x1e4] sm:$0xff]  ;;  %v7565_v10 = vld [vmem:[#allocation2 + $0x1ec] sm:$0xff] }
 0x32e   : > { %10547 = vmatprep.mubr.msk.bf16.mxu0 %vm266_vm0, %v7288_v62  ;;  %v7584_v48 = vpack.c.bf16 %v7565_v10, %v7564_v9 }
 0x334   : > { %10106 = vmatmul.mubr.msk.bf16.gmra.mrb[28].mxu1 %vm266_vm0, %v3637_v34 }
 0x335   : > { %10548 = vmatmul.mubr.msk.bf16.gmra.mrb[28].mxu0 %vm266_vm0, %v7289_v47  ;;  %10111 = vmatprep.mubr.msk.bf16.mxu1 %vm266_vm0, %v12769_v51  ;;  %v7546_v51 = vld [vmem:[#allocation2 + $0x10c] sm:$0xff]  ;;  %v3934_v47 = vpack.c.bf16 %v3917_v19, %v3916_v14 }
 0x336   : > { %10553 = vmatprep.mubr.msk.bf16.mxu0 %vm266_vm0, %v7572_v40  ;;  %v7575_v39 = vpack.c.bf16 %v7547_v53, %v7546_v51  ;;  %v7586_v40 = vpack.c.bf16 %v7569_v6, %v7568_v26  ;;  %v7843_v51 = vld [vmem:[#allocation2 + $0x100] sm:$0xff] }
 0x337   : > { %v7872_v43 = vpack.c.bf16 %v7843_v51, %v12888_v56 }
 0x33c   : > { %10112 = vmatmul.mubr.msk.bf16.vlgmr.msra.gmra.mrb[0].mxu1 %vm266_vm0, %v12790_v61  ;;  %v7550_v61 = vld [vmem:[#allocation2 + $0x13c] sm:$0xff] }
 0x33d   : > { %10554 = vmatmul.mubr.msk.bf16.vlgmr.msra.gmra.mrb[0].mxu0 %vm266_vm0, %v7573_v27  ;;  %10115 = vmatprep.mubr.msk.bf16.mxu1 %vm266_vm0, %v12793_v60  ;;  %v7551_v60 = vld [vmem:[#allocation2 + $0x144] sm:$0xff]  ;;  %v7587_v27 = vpack.c.bf16 %v7571_v3, %v7570_v29 }
 0x33e   : > { %10586 = vmatpush3.bf16.msra.mxu0 %v12895_v2  ;;  %10557 = vmatprep.mubr.msk.bf16.mxu0 %vm266_vm0, %v7574_v28  ;;  %v7552_v2 = vld [vmem:[#allocation2 + $0x154] sm:$0xff]  ;;  %v7577_v36 = vpack.c.bf16 %v7551_v60, %v7550_v61  ;;  %v7870_v28 = vpack.c.bf16 %v7839_v7, %v12874_v20  ;;  %v7873_v20 = vpack.c.bf16 %v7845_v54, %v12902_v30  ;;  %v7849_v61 = vld [vmem:[#allocation2 + $0x148] sm:$0xff]  ;;  %v7851_v60 = vld [vmem:[#allocation2 + $0x160] sm:$0xff] }
 0x33f   : > { %v7578_v11 = vpack.c.bf16 %v7553_v22, %v7552_v2  ;;  %v7876_v56 = vpack.c.bf16 %v7851_v60, %v12916_v49  ;;  %v7853_v2 = vld [vmem:[#allocation2 + $0x178] sm:$0xff]  ;;  %v7854_v22 = vld [vmem:[#allocation2 + $0x188] sm:$0xff] }
 0x340   : > { %v7877_v30 = vpack.c.bf16 %v7853_v2, %v12924_v31  ;;  %v7863_v31 = vld [vmem:[#allocation2 + $0x1f0] sm:$0xff] }
 0x341   : > { %v7882_v17 = vpack.c.bf16 %v7863_v31, %v12938_v8 }
 0x344   : > { %10116 = vmatmul.mubr.msk.bf16.gmra.mrb[4].mxu1 %vm266_vm0, %v12803_v41  ;;  %v7554_v41 = vld [vmem:[#allocation2 + $0x16c] sm:$0xff] }
 0x345   : > { %10558 = vmatmul.mubr.msk.bf16.gmra.mrb[4].mxu0 %vm266_vm0, %v7575_v39  ;;  %10119 = vmatprep.mubr.msk.bf16.mxu1 %vm266_vm0, %v12805_v33  ;;  %v7555_v33 = vld [vmem:[#allocation2 + $0x174] sm:$0xff] }
 0x346   : > { %10561 = vmatprep.mubr.msk.bf16.mxu0 %vm266_vm0, %v7576_v35  ;;  %v7579_v38 = vpack.c.bf16 %v7555_v33, %v7554_v41  ;;  %v7847_v39 = vld [vmem:[#allocation2 + $0x130] sm:$0xff]  ;;  %v11521_v41 = vld [vmem:[%s13354_s3] sm:$0xff]  }
 0x347   : > { %v7874_v35 = vpack.c.bf16 %v7847_v39, %v12904_v37  ;;  %v7878_v37 = vpack.c.bf16 %v12839_v5, %v7854_v22  ;;  %10619 = vmatprep.subr.bf16.mxu1 %v11521_v41  ;;  %v7860_v5 = vld [vmem:[#allocation2 + $0x1d0] sm:$0xff] }
 0x348   : > { %10620 = vmatpush3.bf16.msra.mxu1 %v11521_v41  ;;  %v7881_v33 = vpack.c.bf16 %v12872_v13, %v7860_v5 }
 0x34c   : > { %10120 = vmatmul.mubr.msk.bf16.gmra.mrb[8].mxu1 %vm266_vm0, %v12815_v16  ;;  %v7558_v16 = vld [vmem:[#allocation2 + $0x19c] sm:$0xff] }
 0x34d   : > { %10562 = vmatmul.mubr.msk.bf16.gmra.mrb[8].mxu0 %vm266_vm0, %v7577_v36  ;;  %10123 = vmatprep.mubr.msk.bf16.mxu1 %vm266_vm0, %v12817_v55  ;;  %v7559_v55 = vld [vmem:[#allocation2 + $0x1a4] sm:$0xff] }
 0x34e   : > { %10565 = vmatprep.mubr.msk.bf16.mxu0 %vm266_vm0, %v7578_v11  ;;  %v7581_v45 = vpack.c.bf16 %v7559_v55, %v7558_v16  ;;  %v7856_v36 = vld [vmem:[#allocation2 + $0x1a0] sm:$0xff]  ;;  %v7858_v11 = vld [vmem:[#allocation2 + $0x1b8] sm:$0xff] }
 0x34f   : > { %v7880_v49 = vpack.c.bf16 %v12856_v63, %v7858_v11  ;;  %v7867_v63 = vld [vmem:[#allocation2 + $0x220] sm:$0xff] }
 0x354   : > { %10124 = vmatmul.mubr.msk.bf16.gmra.mrb[12].mxu1 %vm266_vm0, %v12827_v58  ;;  %v7562_v58 = vld [vmem:[#allocation2 + $0x1cc] sm:$0xff] }
 0x355   : > { %10566 = vmatmul.mubr.msk.bf16.gmra.mrb[12].mxu0 %vm266_vm0, %v7579_v38  ;;  %10127 = vmatprep.mubr.msk.bf16.mxu1 %vm266_vm0, %v12829_v12  ;;  %v7563_v12 = vld [vmem:[#allocation2 + $0x1d4] sm:$0xff]  ;;  %v7884_v38 = vpack.c.bf16 %v7867_v63, %v12948_v57 }
 0x356   : > { %10569 = vmatprep.mubr.msk.bf16.mxu0 %vm266_vm0, %v7580_v52  ;;  %v7583_v62 = vpack.c.bf16 %v7563_v12, %v7562_v58  ;;  %v7869_v52 = vld [vmem:[#allocation2 + $0x238] sm:$0xff] }
 0x357   : > { %v7885_v16 = vpack.c.bf16 %v7869_v52, %v12956_v25 }
 0x35c   : > { %10128 = vmatmul.mubr.msk.bf16.gmra.mrb[16].mxu1 %vm266_vm0, %v12841_v59  ;;  %v7566_v59 = vld [vmem:[#allocation2 + $0x1fc] sm:$0xff] }
 0x35d   : > { %10570 = vmatmul.mubr.msk.bf16.gmra.mrb[16].mxu0 %vm266_vm0, %v7581_v45  ;;  %10131 = vmatprep.mubr.msk.bf16.mxu1 %vm266_vm0, %v12843_v23  ;;  %v7567_v23 = vld [vmem:[#allocation2 + $0x204] sm:$0xff] }
 0x35e   : > { %10573 = vmatprep.mubr.msk.bf16.mxu0 %vm266_vm0, %v7582_v24  ;;  %v7585_v34 = vpack.c.bf16 %v7567_v23, %v7566_v59 }
 0x364   : > { %10132 = vmatmul.mubr.msk.bf16.gmra.mrb[20].mxu1 %vm266_vm0, %v12858_v50  ;;  %v3918_v50 = vld [vmem:[#allocation2 + $0x1ca] sm:$0xff] }
 0x365   : > { %10574 = vmatmul.mubr.msk.bf16.gmra.mrb[20].mxu0 %vm266_vm0, %v7583_v62  ;;  %10135 = vmatprep.mubr.msk.bf16.mxu1 %vm266_vm0, %v12862_v0  ;;  %v3919_v0 = vld [vmem:[#allocation2 + $0x1d2] sm:$0xff] }
 0x366   : > { %10577 = vmatprep.mubr.msk.bf16.mxu0 %vm266_vm0, %v7584_v48  ;;  %v3935_v15 = vpack.c.bf16 %v3919_v0, %v3918_v50 }
 0x36c   : > { %10136 = vmatmul.mubr.msk.bf16.gmra.mrb[24].mxu1 %vm266_vm0, %v12876_v21  ;;  %v7841_v21 = vld [vmem:[#allocation2 + $0xe8] sm:$0xff] }
 0x36d   : > { %10578 = vmatmul.mubr.msk.bf16.gmra.mrb[24].mxu0 %vm266_vm0, %v7585_v34  ;;  %10139 = vmatprep.mubr.msk.bf16.mxu1 %vm266_vm0, %v3934_v47  ;;  %v7871_v53 = vpack.c.bf16 %v7841_v21, %v12886_v4  ;;  %v7875_v4 = vpack.c.bf16 %v7849_v61, %v12914_v44  ;;  %v7879_v44 = vpack.c.bf16 %v12854_v18, %v7856_v36  ;;  %v7865_v18 = vld [vmem:[#allocation2 + $0x208] sm:$0xff]  ;;  %v13095_v21 = vld [vmem:[%s13353_s2] ss:$0 sm:$0xff] }
 0x36e   : > { %10581 = vmatprep.mubr.msk.bf16.mxu0 %vm266_vm0, %v7586_v40  ;;  %v7883_v32 = vpack.c.bf16 %v7865_v18, %v12946_v46 }
 0x374   : > { %10140 = vmatmul.mubr.msk.bf16.gmra.mrb[28].mxu1 %vm266_vm0, %v3935_v15 }
 0x375   : > { %10582 = vmatmul.mubr.msk.bf16.gmra.mrb[28].mxu0 %vm266_vm0, %v7587_v27 }
 0x376   : > { %10587 = vmatprep.mubr.msk.bf16.mxu0 %vm266_vm0, %v7870_v28 }
 0x37d   : > { %10588 = vmatmul.mubr.msk.bf16.vlgmr.msra.gmra.mrb[0].mxu0 %vm266_vm0, %v7871_v53 }
 0x37e   : > { %10591 = vmatprep.mubr.msk.bf16.mxu0 %vm266_vm0, %v7872_v43 }
 0x385   : > { %10592 = vmatmul.mubr.msk.bf16.gmra.mrb[4].mxu0 %vm266_vm0, %v7873_v20 }
 0x386   : > { %10595 = vmatprep.mubr.msk.bf16.mxu0 %vm266_vm0, %v7874_v35 }
 0x38d   : > { %10596 = vmatmul.mubr.msk.bf16.gmra.mrb[8].mxu0 %vm266_vm0, %v7875_v4 }
 0x38e   : > { %10599 = vmatprep.mubr.msk.bf16.mxu0 %vm266_vm0, %v7876_v56 }
 0x395   : > { %10600 = vmatmul.mubr.msk.bf16.gmra.mrb[12].mxu0 %vm266_vm0, %v7877_v30 }
 0x396   : > { %10603 = vmatprep.mubr.msk.bf16.mxu0 %vm266_vm0, %v7878_v37 }
 0x39d   : > { %10604 = vmatmul.mubr.msk.bf16.gmra.mrb[16].mxu0 %vm266_vm0, %v7879_v44 }
 0x39e   : > { %10607 = vmatprep.mubr.msk.bf16.mxu0 %vm266_vm0, %v7880_v49 }
 0x3a5   : > { %10608 = vmatmul.mubr.msk.bf16.gmra.mrb[20].mxu0 %vm266_vm0, %v7881_v33 }
 0x3a6   : > { %10611 = vmatprep.mubr.msk.bf16.mxu0 %vm266_vm0, %v7882_v17 }
 0x3ad   : > { %10612 = vmatmul.mubr.msk.bf16.gmra.mrb[24].mxu0 %vm266_vm0, %v7883_v32 }
 0x3ae   : > { %10615 = vmatprep.mubr.msk.bf16.mxu0 %vm266_vm0, %v7884_v38 }
 0x3b5   : > { %10616 = vmatmul.mubr.msk.bf16.gmra.mrb[28].mxu0 %vm266_vm0, %v7885_v16 }
 0x40f   : > { %v10113_v13 = vpop.f32.mrb[0].mxu1 }
 0x410   : > { %v4027_v8 = vpop.f32.mrb[1].mxu1 }
 0x411   : > { %v10114_v55 = vpop.f32.mrb[2].mxu1 }
 0x412   : > { %v4030_v42 = vpop.f32.mrb[3].mxu1 }
 0x417   : > { %v10117_v1 = vpop.f32.mrb[4].mxu1 }
 0x418   : > { %v4043_v45 = vpop.f32.mrb[5].mxu1 }
 0x419   : > { %v10118_v24 = vpop.f32.mrb[6].mxu1 }
 0x41a   : > { %v4046_v58 = vpop.f32.mrb[7].mxu1 }
 0x41f   : > { %v13043_v46 = vpop.f32.mrb[8].mxu1 }
 0x420   : > { %v13045_v57 = vpop.f32.mrb[9].mxu1 }
 0x421   : > { %v13047_v12 = vpop.f32.mrb[10].mxu1 }
 0x422   : > { %v13049_v9 = vpop.f32.mrb[11].mxu1 }
 0x427   : > { %v13051_v10 = vpop.f32.mrb[12].mxu1 }
 0x428   : > { %v13053_v25 = vpop.f32.mrb[13].mxu1 }
 0x429   : > { %v13055_v62 = vpop.f32.mrb[14].mxu1 }
 0x42a   : > { %v13057_v48 = vpop.f32.mrb[15].mxu1 }
 0x42f   : > { %v13059_v59 = vpop.f32.mrb[16].mxu1 }
 0x430   : > { %v13061_v23 = vpop.f32.mrb[17].mxu1 }
 0x431   : > { %v13063_v14 = vpop.f32.mrb[18].mxu1 }
 0x432   : > { %v13065_v19 = vpop.f32.mrb[19].mxu1 }
 0x437   : > { %v13067_v26 = vpop.f32.mrb[20].mxu1 }
 0x438   : > { %v13069_v6 = vpop.f32.mrb[21].mxu1 }
 0x439   : > { %v13071_v34 = vpop.f32.mrb[22].mxu1 }
 0x43a   : > { %v13073_v47 = vpop.f32.mrb[23].mxu1 }
 0x43f   : > { %v13075_v40 = vpop.f32.mrb[24].mxu1 }
 0x440   : > { %v13077_v50 = vpop.f32.mrb[25].mxu1 }
 0x441   : > { %v13079_v0 = vpop.f32.mrb[26].mxu1 }
 0x442   : > { %v13081_v29 = vpop.f32.mrb[27].mxu1 }
 0x447   : > { %v13083_v3 = vpop.f32.mrb[28].mxu1 }
 0x448   : > { %v13085_v7 = vpop.f32.mrb[29].mxu1 }
 0x449   : > { %v13087_v15 = vpop.f32.mrb[30].mxu1 }
 0x44a   : > { %v13089_v27 = vpop.f32.mrb[31].mxu1 }
 0x450   : > { %v10589_v28 = vpop.f32.mrb[0].mxu0 }
 0x451   : > { %v10653_v51 = vadd.f32 %v10589_v28, %v10113_v13  ;;  %v7977_v53 = vpop.f32.mrb[1].mxu0 }
 0x452   : > { %v10654_v43 = vadd.f32 %v7977_v53, %v4027_v8  ;;  %v10590_v54 = vpop.f32.mrb[2].mxu0 }
 0x453   : > { %v8177_v39 = vadd.f32 %v10653_v51, %v13095_v21  ;;  %v10655_v20 = vadd.f32 %v10590_v54, %v10114_v55  ;;  %v7980_v35 = vpop.f32.mrb[3].mxu0 }
 0x454   : > { %v8175_v61 = vadd.f32 %v10654_v43, %v13095_v21  ;;  %v10656_v60 = vadd.f32 %v7980_v35, %v4030_v42 }
 0x455   : > { %8209 = vst.msk [vmem:[%s13102_s20 + $0x10] sm:$0xff] %vm266_vm0, %v8177_v39  ;;  %v8178_v4 = vadd.f32 %v10655_v20, %v13095_v21 }
 0x456   : > { %8207 = vst.msk [vmem:[%s13102_s20] sm:$0xff] %vm266_vm0, %v8175_v61  ;;  %v8176_v56 = vadd.f32 %v10656_v60, %v13095_v21 }
 0x457   : > { %8210 = vst.msk [vmem:[%s13102_s20 + $0x18] sm:$0xff] %vm266_vm0, %v8178_v4  ;;  %v8240_v2 = vpack.c.bf16 %v8178_v4, %v8177_v39 }
 0x458   : > { %8208 = vst.msk [vmem:[%s13102_s20 + $0x8] sm:$0xff] %vm266_vm0, %v8176_v56  ;;  %v8239_v22 = vpack.c.bf16 %v8176_v56, %v8175_v61  ;;  %v10593_v30 = vpop.f32.mrb[4].mxu0 }
 0x459   : > { %v10657_v37 = vadd.f32 %v10593_v30, %v10117_v1  ;;  %v7993_v36 = vpop.f32.mrb[5].mxu0 }
 0x45a   : > { %v10658_v11 = vadd.f32 %v7993_v36, %v4043_v45  ;;  %v10594_v44 = vpop.f32.mrb[6].mxu0  ;;  %10621 = vmatprep.mubr.msk.bf16.mxu1 %vm266_vm0, %v8239_v22 }
 0x45b   : > { %v8181_v49 = vadd.f32 %v10657_v37, %v13095_v21  ;;  %v10659_v41 = vadd.f32 %v10594_v44, %v10118_v24  ;;  %v7996_v5 = vpop.f32.mrb[7].mxu0  ;;  %10622 = vmatmul.mubr.msk.bf16.vlgmr.msra.gmra.mrb[32].mxu1 %vm266_vm0, %v8240_v2 }
 0x45c   : > { %v8179_v31 = vadd.f32 %v10658_v11, %v13095_v21  ;;  %v10660_v33 = vadd.f32 %v7996_v5, %v4046_v58 }
 0x45d   : > { %8213 = vst.msk [vmem:[%s13102_s20 + $0x30] sm:$0xff] %vm266_vm0, %v8181_v49  ;;  %v8182_v17 = vadd.f32 %v10659_v41, %v13095_v21 }
 0x45e   : > { %8211 = vst.msk [vmem:[%s13102_s20 + $0x20] sm:$0xff] %vm266_vm0, %v8179_v31  ;;  %v8180_v18 = vadd.f32 %v10660_v33, %v13095_v21 }
 0x45f   : > { %8214 = vst.msk [vmem:[%s13102_s20 + $0x38] sm:$0xff] %vm266_vm0, %v8182_v17  ;;  %v8242_v63 = vpack.c.bf16 %v8182_v17, %v8181_v49 }
 0x460   : > { %8212 = vst.msk [vmem:[%s13102_s20 + $0x28] sm:$0xff] %vm266_vm0, %v8180_v18  ;;  %v8241_v32 = vpack.c.bf16 %v8180_v18, %v8179_v31  ;;  %v10597_v38 = vpop.f32.mrb[8].mxu0 }
 0x461   : > { %v10661_v52 = vadd.f32 %v10597_v38, %v13043_v46  ;;  %v8009_v16 = vpop.f32.mrb[9].mxu0 }
 0x462   : > { %v10662_v13 = vadd.f32 %v8009_v16, %v13045_v57  ;;  %v10598_v8 = vpop.f32.mrb[10].mxu0  ;;  %10625 = vmatprep.mubr.msk.bf16.mxu1 %vm266_vm0, %v8241_v32 }
 0x463   : > { %v8185_v55 = vadd.f32 %v10661_v52, %v13095_v21  ;;  %v10663_v42 = vadd.f32 %v10598_v8, %v13047_v12  ;;  %v8012_v1 = vpop.f32.mrb[11].mxu0  ;;  %10626 = vmatmul.mubr.msk.bf16.gmra.mrb[36].mxu1 %vm266_vm0, %v8242_v63 }
 0x464   : > { %v8183_v45 = vadd.f32 %v10662_v13, %v13095_v21  ;;  %v10664_v24 = vadd.f32 %v8012_v1, %v13049_v9 }
 0x465   : > { %8217 = vst.msk [vmem:[%s13102_s20 + $0x50] sm:$0xff] %vm266_vm0, %v8185_v55  ;;  %v8186_v58 = vadd.f32 %v10663_v42, %v13095_v21 }
 0x466   : > { %8215 = vst.msk [vmem:[%s13102_s20 + $0x40] sm:$0xff] %vm266_vm0, %v8183_v45  ;;  %v8184_v46 = vadd.f32 %v10664_v24, %v13095_v21 }
 0x467   : > { %8218 = vst.msk [vmem:[%s13102_s20 + $0x58] sm:$0xff] %vm266_vm0, %v8186_v58  ;;  %v8244_v57 = vpack.c.bf16 %v8186_v58, %v8185_v55 }
 0x468   : > { %8216 = vst.msk [vmem:[%s13102_s20 + $0x48] sm:$0xff] %vm266_vm0, %v8184_v46  ;;  %v8243_v12 = vpack.c.bf16 %v8184_v46, %v8183_v45  ;;  %v10601_v28 = vpop.f32.mrb[12].mxu0 }
 0x469   : > { %v10665_v9 = vadd.f32 %v10601_v28, %v13051_v10  ;;  %v8025_v51 = vpop.f32.mrb[13].mxu0 }
 0x46a   : > { %v10666_v53 = vadd.f32 %v8025_v51, %v13053_v25  ;;  %v10602_v43 = vpop.f32.mrb[14].mxu0  ;;  %10629 = vmatprep.mubr.msk.bf16.mxu1 %vm266_vm0, %v8243_v12 }
 0x46b   : > { %v8189_v54 = vadd.f32 %v10665_v9, %v13095_v21  ;;  %v10667_v39 = vadd.f32 %v10602_v43, %v13055_v62  ;;  %v8028_v20 = vpop.f32.mrb[15].mxu0  ;;  %10630 = vmatmul.mubr.msk.bf16.gmra.mrb[40].mxu1 %vm266_vm0, %v8244_v57 }
 0x46c   : > { %v8187_v35 = vadd.f32 %v10666_v53, %v13095_v21  ;;  %v10668_v61 = vadd.f32 %v8028_v20, %v13057_v48 }
 0x46d   : > { %8221 = vst.msk [vmem:[%s13102_s20 + $0x70] sm:$0xff] %vm266_vm0, %v8189_v54  ;;  %v8190_v10 = vadd.f32 %v10667_v39, %v13095_v21 }
 0x46e   : > { %8219 = vst.msk [vmem:[%s13102_s20 + $0x60] sm:$0xff] %vm266_vm0, %v8187_v35  ;;  %v8188_v25 = vadd.f32 %v10668_v61, %v13095_v21 }
 0x46f   : > { %8222 = vst.msk [vmem:[%s13102_s20 + $0x78] sm:$0xff] %vm266_vm0, %v8190_v10  ;;  %v8246_v60 = vpack.c.bf16 %v8190_v10, %v8189_v54 }
 0x470   : > { %8220 = vst.msk [vmem:[%s13102_s20 + $0x68] sm:$0xff] %vm266_vm0, %v8188_v25  ;;  %v8245_v62 = vpack.c.bf16 %v8188_v25, %v8187_v35  ;;  %v10605_v4 = vpop.f32.mrb[16].mxu0 }
 0x471   : > { %v10669_v48 = vadd.f32 %v10605_v4, %v13059_v59  ;;  %v8041_v56 = vpop.f32.mrb[17].mxu0 }
 0x472   : > { %v10670_v2 = vadd.f32 %v8041_v56, %v13061_v23  ;;  %v10606_v22 = vpop.f32.mrb[18].mxu0  ;;  %10633 = vmatprep.mubr.msk.bf16.mxu1 %vm266_vm0, %v8245_v62 }
 0x473   : > { %v8193_v30 = vadd.f32 %v10669_v48, %v13095_v21  ;;  %v10671_v37 = vadd.f32 %v10606_v22, %v13063_v14  ;;  %v8044_v36 = vpop.f32.mrb[19].mxu0  ;;  %10634 = vmatmul.mubr.msk.bf16.gmra.mrb[44].mxu1 %vm266_vm0, %v8246_v60 }
 0x474   : > { %v8191_v11 = vadd.f32 %v10670_v2, %v13095_v21  ;;  %v10672_v44 = vadd.f32 %v8044_v36, %v13065_v19 }
 0x475   : > { %8225 = vst.msk [vmem:[%s13102_s20 + $0x90] sm:$0xff] %vm266_vm0, %v8193_v30  ;;  %v8194_v59 = vadd.f32 %v10671_v37, %v13095_v21 }
 0x476   : > { %8223 = vst.msk [vmem:[%s13102_s20 + $0x80] sm:$0xff] %vm266_vm0, %v8191_v11  ;;  %v8192_v23 = vadd.f32 %v10672_v44, %v13095_v21 }
 0x477   : > { %8226 = vst.msk [vmem:[%s13102_s20 + $0x98] sm:$0xff] %vm266_vm0, %v8194_v59  ;;  %v8248_v49 = vpack.c.bf16 %v8194_v59, %v8193_v30 }
 0x478   : > { %8224 = vst.msk [vmem:[%s13102_s20 + $0x88] sm:$0xff] %vm266_vm0, %v8192_v23  ;;  %v8247_v14 = vpack.c.bf16 %v8192_v23, %v8191_v11  ;;  %v10609_v41 = vpop.f32.mrb[20].mxu0 }
 0x479   : > { %v10673_v19 = vadd.f32 %v10609_v41, %v13067_v26  ;;  %v8057_v5 = vpop.f32.mrb[21].mxu0 }
 0x47a   : > { %v10674_v31 = vadd.f32 %v8057_v5, %v13069_v6  ;;  %v10610_v33 = vpop.f32.mrb[22].mxu0  ;;  %10637 = vmatprep.mubr.msk.bf16.mxu1 %vm266_vm0, %v8247_v14 }
 0x47b   : > { %v8197_v17 = vadd.f32 %v10673_v19, %v13095_v21  ;;  %v10675_v18 = vadd.f32 %v10610_v33, %v13071_v34  ;;  %v8060_v63 = vpop.f32.mrb[23].mxu0  ;;  %10638 = vmatmul.mubr.msk.bf16.gmra.mrb[48].mxu1 %vm266_vm0, %v8248_v49 }
 0x47c   : > { %v8195_v32 = vadd.f32 %v10674_v31, %v13095_v21  ;;  %v10676_v38 = vadd.f32 %v8060_v63, %v13073_v47 }
 0x47d   : > { %8229 = vst.msk [vmem:[%s13102_s20 + $0xb0] sm:$0xff] %vm266_vm0, %v8197_v17  ;;  %v8198_v26 = vadd.f32 %v10675_v18, %v13095_v21 }
 0x47e   : > { %8227 = vst.msk [vmem:[%s13102_s20 + $0xa0] sm:$0xff] %vm266_vm0, %v8195_v32  ;;  %v8196_v6 = vadd.f32 %v10676_v38, %v13095_v21 }
 0x47f   : > { %8230 = vst.msk [vmem:[%s13102_s20 + $0xb8] sm:$0xff] %vm266_vm0, %v8198_v26  ;;  %v8250_v52 = vpack.c.bf16 %v8198_v26, %v8197_v17 }
 0x480   : > { %8228 = vst.msk [vmem:[%s13102_s20 + $0xa8] sm:$0xff] %vm266_vm0, %v8196_v6  ;;  %v8249_v34 = vpack.c.bf16 %v8196_v6, %v8195_v32  ;;  %v10613_v16 = vpop.f32.mrb[24].mxu0 }
 0x481   : > { %v10677_v47 = vadd.f32 %v10613_v16, %v13075_v40  ;;  %v8073_v13 = vpop.f32.mrb[25].mxu0 }
 0x482   : > { %v10678_v8 = vadd.f32 %v8073_v13, %v13077_v50  ;;  %v10614_v55 = vpop.f32.mrb[26].mxu0  ;;  %10641 = vmatprep.mubr.msk.bf16.mxu1 %vm266_vm0, %v8249_v34 }
 0x483   : > { %v8201_v42 = vadd.f32 %v10677_v47, %v13095_v21  ;;  %v10679_v1 = vadd.f32 %v10614_v55, %v13079_v0  ;;  %v8076_v45 = vpop.f32.mrb[27].mxu0  ;;  %10642 = vmatmul.mubr.msk.bf16.gmra.mrb[52].mxu1 %vm266_vm0, %v8250_v52 }
 0x484   : > { %v8199_v24 = vadd.f32 %v10678_v8, %v13095_v21  ;;  %v10680_v58 = vadd.f32 %v8076_v45, %v13081_v29 }
 0x485   : > { %8233 = vst.msk [vmem:[%s13102_s20 + $0xd0] sm:$0xff] %vm266_vm0, %v8201_v42  ;;  %v8202_v40 = vadd.f32 %v10679_v1, %v13095_v21 }
 0x486   : > { %8231 = vst.msk [vmem:[%s13102_s20 + $0xc0] sm:$0xff] %vm266_vm0, %v8199_v24  ;;  %v8200_v50 = vadd.f32 %v10680_v58, %v13095_v21 }
 0x487   : > { %8234 = vst.msk [vmem:[%s13102_s20 + $0xd8] sm:$0xff] %vm266_vm0, %v8202_v40  ;;  %v8252_v46 = vpack.c.bf16 %v8202_v40, %v8201_v42 }
 0x488   : > { %8232 = vst.msk [vmem:[%s13102_s20 + $0xc8] sm:$0xff] %vm266_vm0, %v8200_v50  ;;  %v8251_v0 = vpack.c.bf16 %v8200_v50, %v8199_v24  ;;  %v10617_v57 = vpop.f32.mrb[28].mxu0 }
 0x489   : > { %v10681_v29 = vadd.f32 %v10617_v57, %v13083_v3  ;;  %v8089_v12 = vpop.f32.mrb[29].mxu0 }
 0x48a   : > { %v10682_v28 = vadd.f32 %v8089_v12, %v13085_v7  ;;  %v10618_v9 = vpop.f32.mrb[30].mxu0  ;;  %10645 = vmatprep.mubr.msk.bf16.mxu1 %vm266_vm0, %v8251_v0 }
 0x48b   : > { %v8205_v51 = vadd.f32 %v10681_v29, %v13095_v21  ;;  %v10683_v53 = vadd.f32 %v10618_v9, %v13087_v15  ;;  %v8092_v43 = vpop.f32.mrb[31].mxu0  ;;  %10646 = vmatmul.mubr.msk.bf16.gmra.mrb[56].mxu1 %vm266_vm0, %v8252_v46 }
 0x48c   : > { %v8203_v54 = vadd.f32 %v10682_v28, %v13095_v21  ;;  %v10684_v39 = vadd.f32 %v8092_v43, %v13089_v27  ;;  %v13243_v27 = vld [vmem:[%s13355_s4] ss:$0 sm:$0xff] }
 0x48d   : > { %8237 = vst.msk [vmem:[%s13102_s20 + $0xf0] sm:$0xff] %vm266_vm0, %v8205_v51  ;;  %v8206_v3 = vadd.f32 %v10683_v53, %v13095_v21 }
 0x48e   : > { %8235 = vst.msk [vmem:[%s13102_s20 + $0xe0] sm:$0xff] %vm266_vm0, %v8203_v54  ;;  %v8204_v7 = vadd.f32 %v10684_v39, %v13095_v21 }
 0x48f   : > { %8238 = vst.msk [vmem:[%s13102_s20 + $0xf8] sm:$0xff] %vm266_vm0, %v8206_v3  ;;  %v8254_v20 = vpack.c.bf16 %v8206_v3, %v8205_v51 }
 0x490   : > { %8236 = vst.msk [vmem:[%s13102_s20 + $0xe8] sm:$0xff] %vm266_vm0, %v8204_v7  ;;  %v8253_v15 = vpack.c.bf16 %v8204_v7, %v8203_v54 }
 0x492   : > { %10649 = vmatprep.mubr.msk.bf16.mxu1 %vm266_vm0, %v8253_v15 }
 0x493   : > { %10650 = vmatmul.mubr.msk.bf16.gmra.mrb[60].mxu1 %vm266_vm0, %v8254_v20 }
 0x52e   : > { %v10623_v21 = vpop.f32.mrb[32].mxu1 }
 0x52f   : > { %v8361_v35 = vadd.f32 %v10623_v21, %v13243_v27  ;;  %v8352_v61 = vpop.f32.mrb[33].mxu1 }
 0x530   : > { %v8353_v10 = vadd.f32 %v13243_v27, %v8352_v61  ;;  %v10624_v25 = vpop.f32.mrb[34].mxu1 }
 0x531   : > { %8482 = vst.msk [vmem:[%s13250_s27 + $0x10] sm:$0xff] %vm8479_vm2, %v8361_v35  ;;  %v8364_v60 = vadd.f32 %v10624_v25, %v13243_v27  ;;  %v8355_v62 = vpop.f32.mrb[35].mxu1 }
 0x532   : > { %8480 = vst.msk [vmem:[%s13250_s27] sm:$0xff] %vm8479_vm2, %v8353_v10  ;;  %v8356_v4 = vadd.f32 %v13243_v27, %v8355_v62 }
 0x533   : > { %8483 = vst.msk [vmem:[%s13250_s27 + $0x18] sm:$0xff] %vm8479_vm2, %v8364_v60 }
 0x534   : > { %8481 = vst.msk [vmem:[%s13250_s27 + $0x8] sm:$0xff] %vm8479_vm2, %v8356_v4 }
 0x536   : > { %v10627_v48 = vpop.f32.mrb[36].mxu1 }
 0x537   : > { %v8377_v56 = vadd.f32 %v10627_v48, %v13243_v27  ;;  %v8368_v2 = vpop.f32.mrb[37].mxu1 }
 0x538   : > { %v8369_v22 = vadd.f32 %v13243_v27, %v8368_v2  ;;  %v10628_v30 = vpop.f32.mrb[38].mxu1 }
 0x539   : > { %8486 = vst.msk [vmem:[%s13250_s27 + $0x30] sm:$0xff] %vm8479_vm2, %v8377_v56  ;;  %v8380_v37 = vadd.f32 %v10628_v30, %v13243_v27  ;;  %v8371_v36 = vpop.f32.mrb[39].mxu1 }
 0x53a   : > { %8484 = vst.msk [vmem:[%s13250_s27 + $0x20] sm:$0xff] %vm8479_vm2, %v8369_v22  ;;  %v8372_v11 = vadd.f32 %v13243_v27, %v8371_v36 }
 0x53b   : > { %8487 = vst.msk [vmem:[%s13250_s27 + $0x38] sm:$0xff] %vm8479_vm2, %v8380_v37 }
 0x53c   : > { %8485 = vst.msk [vmem:[%s13250_s27 + $0x28] sm:$0xff] %vm8479_vm2, %v8372_v11 }
 0x53e   : > { %v10631_v44 = vpop.f32.mrb[40].mxu1 }
 0x53f   : > { %v8393_v59 = vadd.f32 %v10631_v44, %v13243_v27  ;;  %v8384_v23 = vpop.f32.mrb[41].mxu1 }
 0x540   : > { %v8385_v49 = vadd.f32 %v13243_v27, %v8384_v23  ;;  %v10632_v14 = vpop.f32.mrb[42].mxu1 }
 0x541   : > { %8490 = vst.msk [vmem:[%s13250_s27 + $0x50] sm:$0xff] %vm8479_vm2, %v8393_v59  ;;  %v8396_v41 = vadd.f32 %v10632_v14, %v13243_v27  ;;  %v8387_v19 = vpop.f32.mrb[43].mxu1 }
 0x542   : > { %8488 = vst.msk [vmem:[%s13250_s27 + $0x40] sm:$0xff] %vm8479_vm2, %v8385_v49  ;;  %v8388_v5 = vadd.f32 %v13243_v27, %v8387_v19 }
 0x543   : > { %8491 = vst.msk [vmem:[%s13250_s27 + $0x58] sm:$0xff] %vm8479_vm2, %v8396_v41 }
 0x544   : > { %8489 = vst.msk [vmem:[%s13250_s27 + $0x48] sm:$0xff] %vm8479_vm2, %v8388_v5 }
 0x546   : > { %v10635_v31 = vpop.f32.mrb[44].mxu1 }
 0x547   : > { %v8409_v33 = vadd.f32 %v10635_v31, %v13243_v27  ;;  %v8400_v17 = vpop.f32.mrb[45].mxu1 }
 0x548   : > { %v8401_v18 = vadd.f32 %v13243_v27, %v8400_v17  ;;  %v10636_v63 = vpop.f32.mrb[46].mxu1 }
 0x549   : > { %8494 = vst.msk [vmem:[%s13250_s27 + $0x70] sm:$0xff] %vm8479_vm2, %v8409_v33  ;;  %v8412_v32 = vadd.f32 %v10636_v63, %v13243_v27  ;;  %v8403_v38 = vpop.f32.mrb[47].mxu1 }
 0x54a   : > { %8492 = vst.msk [vmem:[%s13250_s27 + $0x60] sm:$0xff] %vm8479_vm2, %v8401_v18  ;;  %v8404_v26 = vadd.f32 %v13243_v27, %v8403_v38 }
 0x54b   : > { %8495 = vst.msk [vmem:[%s13250_s27 + $0x78] sm:$0xff] %vm8479_vm2, %v8412_v32 }
 0x54c   : > { %8493 = vst.msk [vmem:[%s13250_s27 + $0x68] sm:$0xff] %vm8479_vm2, %v8404_v26 }
 0x54e   : > { %v10639_v6 = vpop.f32.mrb[48].mxu1 }
 0x54f   : > { %v8425_v52 = vadd.f32 %v10639_v6, %v13243_v27  ;;  %v8416_v34 = vpop.f32.mrb[49].mxu1 }
 0x550   : > { %v8417_v16 = vadd.f32 %v13243_v27, %v8416_v34  ;;  %v10640_v47 = vpop.f32.mrb[50].mxu1 }
 0x551   : > { %8498 = vst.msk [vmem:[%s13250_s27 + $0x90] sm:$0xff] %vm8479_vm2, %v8425_v52  ;;  %v8428_v13 = vadd.f32 %v10640_v47, %v13243_v27  ;;  %v8419_v8 = vpop.f32.mrb[51].mxu1 }
 0x552   : > { %8496 = vst.msk [vmem:[%s13250_s27 + $0x80] sm:$0xff] %vm8479_vm2, %v8417_v16  ;;  %v8420_v55 = vadd.f32 %v13243_v27, %v8419_v8 }
 0x553   : > { %8499 = vst.msk [vmem:[%s13250_s27 + $0x98] sm:$0xff] %vm8479_vm2, %v8428_v13 }
 0x554   : > { %8497 = vst.msk [vmem:[%s13250_s27 + $0x88] sm:$0xff] %vm8479_vm2, %v8420_v55 }
 0x556   : > { %v10643_v42 = vpop.f32.mrb[52].mxu1 }
 0x557   : > { %v8441_v1 = vadd.f32 %v10643_v42, %v13243_v27  ;;  %v8432_v45 = vpop.f32.mrb[53].mxu1 }
 0x558   : > { %v8433_v24 = vadd.f32 %v13243_v27, %v8432_v45  ;;  %v10644_v58 = vpop.f32.mrb[54].mxu1 }
 0x559   : > { %8502 = vst.msk [vmem:[%s13250_s27 + $0xb0] sm:$0xff] %vm8479_vm2, %v8441_v1  ;;  %v8444_v40 = vadd.f32 %v10644_v58, %v13243_v27  ;;  %v8435_v50 = vpop.f32.mrb[55].mxu1 }
 0x55a   : > { %8500 = vst.msk [vmem:[%s13250_s27 + $0xa0] sm:$0xff] %vm8479_vm2, %v8433_v24  ;;  %v8436_v46 = vadd.f32 %v13243_v27, %v8435_v50 }
 0x55b   : > { %8503 = vst.msk [vmem:[%s13250_s27 + $0xb8] sm:$0xff] %vm8479_vm2, %v8444_v40 }
 0x55c   : > { %8501 = vst.msk [vmem:[%s13250_s27 + $0xa8] sm:$0xff] %vm8479_vm2, %v8436_v46 }
 0x55e   : > { %v10647_v0 = vpop.f32.mrb[56].mxu1 }
 0x55f   : > { %v8457_v57 = vadd.f32 %v10647_v0, %v13243_v27  ;;  %v8448_v29 = vpop.f32.mrb[57].mxu1 }
 0x560   : > { %v8449_v12 = vadd.f32 %v13243_v27, %v8448_v29  ;;  %v10648_v28 = vpop.f32.mrb[58].mxu1 }
 0x561   : > { %8506 = vst.msk [vmem:[%s13250_s27 + $0xd0] sm:$0xff] %vm8479_vm2, %v8457_v57  ;;  %v8460_v9 = vadd.f32 %v10648_v28, %v13243_v27  ;;  %v8451_v51 = vpop.f32.mrb[59].mxu1 }
 0x562   : > { %8504 = vst.msk [vmem:[%s13250_s27 + $0xc0] sm:$0xff] %vm8479_vm2, %v8449_v12  ;;  %v8452_v53 = vadd.f32 %v13243_v27, %v8451_v51 }
 0x563   : > { %8507 = vst.msk [vmem:[%s13250_s27 + $0xd8] sm:$0xff] %vm8479_vm2, %v8460_v9 }
 0x564   : > { %8505 = vst.msk [vmem:[%s13250_s27 + $0xc8] sm:$0xff] %vm8479_vm2, %v8452_v53 }
 0x566   : > { %v10651_v43 = vpop.f32.mrb[60].mxu1 }
 0x567   : > { %v8473_v54 = vadd.f32 %v10651_v43, %v13243_v27  ;;  %v8464_v39 = vpop.f32.mrb[61].mxu1 }
 0x568   : > { %v8465_v3 = vadd.f32 %v13243_v27, %v8464_v39  ;;  %v10652_v7 = vpop.f32.mrb[62].mxu1 }
 0x569   : > { %8510 = vst.msk [vmem:[%s13250_s27 + $0xf0] sm:$0xff] %vm8479_vm2, %v8473_v54  ;;  %v8476_v20 = vadd.f32 %v10652_v7, %v13243_v27  ;;  %v8467_v15 = vpop.f32.mrb[63].mxu1 }
 0x56a   : > { %8508 = vst.msk [vmem:[%s13250_s27 + $0xe0] sm:$0xff] %vm8479_vm2, %v8465_v3  ;;  %v8468_v21 = vadd.f32 %v13243_v27, %v8467_v15 }
 0x56b   : > { %8511 = vst.msk [vmem:[%s13250_s27 + $0xf8] sm:$0xff] %vm8479_vm2, %v8476_v20 }
 0x56c   : > { %8509 = vst.msk [vmem:[%s13250_s27 + $0xe8] sm:$0xff] %vm8479_vm2, %v8468_v21 }
 0x56d PF: > { %s17_s21 = sadd.s32 1, %s11528_s21  }
 0x56e   : > { %p14_p4 = scmp.ge.s32.totalorder %s17_s21, 4  }
 0x570   :  { %16 = sbr.rel (!%p14_p4) target bundleno = 1 (0x1), region = 115 }

</bundles_post_ra>
